<compile_context>
chip_gen: v7x
topology: tpu7x:2x2x1
jax: 0.10.0
libtpu: 0.0.40
codegen_flags: <defaults>
</compile_context>

<pallas_src>
import functools

import jax
import jax.numpy as jnp
from jax.experimental import pallas as pl
from jax.experimental.pallas import tpu as pltpu


# ------------------------------ Pallas kernel ------------------------------ #

def textrnn_kernel(x_ref,                                   # (T, Bp, D)  bf16, time-major
                   w0ih_ref, w0hh_ref, b0_ref,              # layer 0 (both dirs fused)
                   w1ihf_ref, w1ihb_ref, w1hhf_ref,         # layer 1
                   b1f_ref, b1b_ref,
                   fcw_ref, fcb_ref,                        # fc head
                   out_ref,                                 # (Bp, C)     f32 log-probs
                   gx0_scr, h0_scr,                         # VMEM scratch
                   *, seq_len):
    T = seq_len
    _, Bp, D = x_ref.shape
    H = w1hhf_ref.shape[0]
    H4 = 4 * H
    f32 = jnp.float32
    bf16 = jnp.bfloat16

    def cell(gates, c_prev):
        """PyTorch LSTM cell update from pre-activation gates (i, f, g, o)."""
        i = jax.nn.sigmoid(gates[:, 0:H])
        f = jax.nn.sigmoid(gates[:, H:2 * H])
        g = jnp.tanh(gates[:, 2 * H:3 * H])
        o = jax.nn.sigmoid(gates[:, 3 * H:4 * H])
        c = f * c_prev + i * g
        h = o * jnp.tanh(c)
        return h, c

    # ---- Layer 0: hoisted input projection, BOTH directions in one matmul ----
    # (T*Bp, D) @ (D, 8H): cols [0:4H] = fwd gates, [4H:8H] = bwd gates.
    gx0 = jnp.dot(x_ref[...].reshape(T * Bp, D), w0ih_ref[...],
                  preferred_element_type=f32) + b0_ref[...]
    gx0_scr[...] = gx0.reshape(T, Bp, 8 * H)

    # ---- Layer 0: bidirectional recurrence (statically unrolled over time) ----
    zeros = jnp.zeros((Bp, H), f32)
    hf, cf, hb, cb = zeros, zeros, zeros, zeros
    for s in range(T):
        tb = T - 1 - s                       # backward direction processes time T-1-s
        # One fused (2*Bp, H) @ (H, 8H) matmul for both directions' h @ W_hh.
        hh = jnp.dot(jnp.concatenate([hf, hb], axis=0).astype(bf16),
                     w0hh_ref[...], preferred_element_type=f32)
        g_f = gx0_scr[s, :, 0:H4] + hh[0:Bp, 0:H4]
        g_b = gx0_scr[tb, :, H4:] + hh[Bp:, H4:]
        hf, cf = cell(g_f, cf)
        hb, cb = cell(g_b, cb)
        # Full-tile stores: [:, :H]=fwd@t=s, [:, H:]=bwd@t=T-1-s.
        h0_scr[s, :, 0:H] = hf
        h0_scr[tb, :, H:] = hb

    # ---- Layer 1: hoisted FORWARD input projection (input is in VMEM) --------
    h0_flat = h0_scr[...].reshape(T * Bp, 2 * H).astype(bf16)
    gx1f = jnp.dot(h0_flat, w1ihf_ref[...], preferred_element_type=f32) + b1f_ref[...]
    # Reuse the (now dead) layer-0 gate buffer for layer-1's forward gates.
    gx0_scr[:, :, 0:H4] = gx1f.reshape(T, Bp, H4)

    # ---- Layer 1: forward recurrence (only its final hidden state is needed) --
    hf, cf = zeros, zeros
    for s in range(T):
        g_f = gx0_scr[s, :, 0:H4] + jnp.dot(hf.astype(bf16), w1hhf_ref[...],
                                            preferred_element_type=f32)
        hf, cf = cell(g_f, cf)

    # Layer-1 backward hidden at t = T-1 is its FIRST recurrence step from zero
    # state (h_prev @ W_hh == 0), so only the last timestep's input projection
    # is needed: one tiny (Bp, 2H) @ (2H, 4H) matmul.
    g_b = jnp.dot(h0_scr[T - 1].astype(bf16), w1ihb_ref[...],
                  preferred_element_type=f32) + b1b_ref[...]
    hb, _ = cell(g_b, zeros)

    # ---- fc(2H -> C) + log_softmax on the last timestep ----------------------
    # NOTE: valid only because the head consumes x[:, -1, :].
    h_last = jnp.concatenate([hf, hb], axis=1).astype(bf16)
    logits = jnp.dot(h_last, fcw_ref[...], preferred_element_type=f32) + fcb_ref[...]
    m = jnp.max(logits, axis=-1, keepdims=True)
    z = logits - m
    out_ref[...] = z - jnp.log(jnp.sum(jnp.exp(z), axis=-1, keepdims=True))


# -------------------------------- Wrapper ----------------------------------- #

def _full_spec(arr):
    n = arr.ndim
    return pl.BlockSpec(arr.shape, lambda: (0,) * n)


@jax.jit
def textrnn_forward(token_ids, packed):
    """token_ids: (B, T) int32 -> log-probabilities (B, num_classes)."""
    B, T = token_ids.shape
    Bp = max(8, -(-B // 8) * 8)              # pad batch to a full sublane tile
    # Embedding lookup (glue, plain JAX gather): (B, T) -> (B, T, D)
    emb = jnp.take(packed["embedding"], token_ids, axis=0)
    D = emb.shape[-1]
    x = jnp.transpose(emb, (1, 0, 2))        # time-major (T, B, D)
    if Bp != B:
        x = jnp.pad(x, ((0, 0), (0, Bp - B), (0, 0)))
    x = x.astype(jnp.bfloat16)               # pre-cast data path outside the kernel

    H = packed["w1hhf"].shape[0]
    C = packed["fcw"].shape[1]
    kernel = functools.partial(textrnn_kernel, seq_len=T)

    args = (x,
            packed["w0ih"], packed["w0hh"], packed["b0"],
            packed["w1ihf"], packed["w1ihb"], packed["w1hhf"],
            packed["b1f"], packed["b1b"],
            packed["fcw"], packed["fcb"])

    out = pl.pallas_call(
        kernel,
        out_shape=jax.ShapeDtypeStruct((Bp, C), jnp.float32),
        in_specs=[_full_spec(a) for a in args],
        out_specs=pl.BlockSpec((Bp, C), lambda: (0, 0)),
        scratch_shapes=[
            # layer-0 projected gates (both dirs); reused for layer-1 fwd gates
            pltpu.VMEM((T, Bp, 8 * H), jnp.float32),
            # layer-0 output sequence
            pltpu.VMEM((T, Bp, 2 * H), jnp.float32),
        ],
    )(*args)
    return out[:B]


# --------------------------- Parameters ------------------------------------- #

def init_lstm_dir(key, d_in, hidden):
    k1, k2, k3, k4 = jax.random.split(key, 4)
    s = 1.0 / jnp.sqrt(hidden).astype(jnp.float32)
    wih = jax.random.uniform(k1, (4 * hidden, d_in), jnp.float32, -s, s)
    whh = jax.random.uniform(k2, (4 * hidden, hidden), jnp.float32, -s, s)
    bih = jax.random.uniform(k3, (4 * hidden,), jnp.float32, -s, s)
    bhh = jax.random.uniform(k4, (4 * hidden,), jnp.float32, -s, s)
    return {"wih_T": wih.T, "whh_T": whh.T, "b": (bih + bhh).reshape(1, 4 * hidden)}


def init_params(key, vocab, embed_dim=300, hidden=128, num_classes=2):
    keys = jax.random.split(key, 7)
    params = {
        "embedding": jax.random.normal(keys[0], (vocab, embed_dim), jnp.float32),
        "l0_fwd": init_lstm_dir(keys[1], embed_dim, hidden),
        "l0_bwd": init_lstm_dir(keys[2], embed_dim, hidden),
        "l1_fwd": init_lstm_dir(keys[3], 2 * hidden, hidden),
        "l1_bwd": init_lstm_dir(keys[4], 2 * hidden, hidden),
    }
    fc_w = 0.01 * jax.random.normal(keys[5], (num_classes, 2 * hidden), jnp.float32)
    params["fc_w_T"] = fc_w.T
    params["fc_b"] = jnp.zeros((1, num_classes), jnp.float32)
    return params


def pack_params(p):
    """Pre-pack / pre-cast weights for the fused kernel (done once, outside jit)."""
    bf16 = jnp.bfloat16
    return {
        "embedding": p["embedding"],
        # Layer 0: W_ih^T and W_hh^T of both directions concatenated along gates.
        "w0ih": jnp.concatenate([p["l0_fwd"]["wih_T"], p["l0_bwd"]["wih_T"]], axis=1).astype(bf16),
        "w0hh": jnp.concatenate([p["l0_fwd"]["whh_T"], p["l0_bwd"]["whh_T"]], axis=1).astype(bf16),
        "b0": jnp.concatenate([p["l0_fwd"]["b"], p["l0_bwd"]["b"]], axis=1),
        # Layer 1: fwd projection over the sequence; bwd projection only at t=T-1
        # (its W_hh is never needed: only its first step feeds the head).
        "w1ihf": p["l1_fwd"]["wih_T"].astype(bf16),
        "w1ihb": p["l1_bwd"]["wih_T"].astype(bf16),
        "w1hhf": p["l1_fwd"]["whh_T"].astype(bf16),
        "b1f": p["l1_fwd"]["b"],
        "b1b": p["l1_bwd"]["b"],
        "fcw": p["fc_w_T"].astype(bf16),
        "fcb": p["fc_b"],
    }


# --------------------------- Pure-JAX reference ------------------------------ #

def _ref_lstm_dir(x_tbd, p, reverse):
    T, B, D = x_tbd.shape
    H = p["whh_T"].shape[0]
    wih = p["wih_T"].astype(jnp.bfloat16)
    whh = p["whh_T"].astype(jnp.bfloat16)
    gx = (jnp.dot(x_tbd.reshape(T * B, D).astype(jnp.bfloat16), wih,
                  preferred_element_type=jnp.float32) + p["b"]).reshape(T, B, 4 * H)
    if reverse:
        gx = gx[::-1]

    def step(carry, g_x):
        h, c = carry
        gates = g_x + jnp.dot(h.astype(jnp.bfloat16), whh,
                              preferred_element_type=jnp.float32)
        i = jax.nn.sigmoid(gates[:, 0:H])
        f = jax.nn.sigmoid(gates[:, H:2 * H])
        g = jnp.tanh(gates[:, 2 * H:3 * H])
        o = jax.nn.sigmoid(gates[:, 3 * H:4 * H])
        c = f * c + i * g
        h = o * jnp.tanh(c)
        return (h, c), h

    init = (jnp.zeros((B, H), jnp.float32), jnp.zeros((B, H), jnp.float32))
    _, hs = jax.lax.scan(step, init, gx)
    return hs[::-1] if reverse else hs


@jax.jit
def textrnn_reference(token_ids, params):
    emb = jnp.take(params["embedding"], token_ids, axis=0)
    h = jnp.transpose(emb, (1, 0, 2))
    h = jnp.concatenate([_ref_lstm_dir(h, params["l0_fwd"], False),
                         _ref_lstm_dir(h, params["l0_bwd"], True)], axis=-1)
    h = jnp.concatenate([_ref_lstm_dir(h, params["l1_fwd"], False),
                         _ref_lstm_dir(h, params["l1_bwd"], True)], axis=-1)
    logits = (jnp.dot(h[-1].astype(jnp.bfloat16),
                      params["fc_w_T"].astype(jnp.bfloat16),
                      preferred_element_type=jnp.float32) + params["fc_b"])
    return jax.nn.log_softmax(logits, axis=-1)


# ------------------------------- Main --------------------------------------- #

if __name__ == "__main__":
    key = jax.random.PRNGKey(0)
    k_param, k_tok = jax.random.split(key)

    VOCAB = 500          # small stand-in for the 201876-word vocabulary
    EMBED, HIDDEN, CLASSES = 300, 128, 2
    params = init_params(k_param, VOCAB, EMBED, HIDDEN, CLASSES)
    packed = pack_params(params)

    # B >= 8 keeps every sublane of the MXU LHS / VPU vregs occupied
    # (perf review: batching is the single biggest lever).
    B, T = 8, 8
    token_ids = jax.random.randint(k_tok, (B, T), 0, VOCAB, dtype=jnp.int32)

    logit = textrnn_forward(token_ids, packed)
    jax.block_until_ready(logit)

    assert logit.shape == (B, CLASSES) and logit.dtype == jnp.float32
    # log_softmax rows must (log-)normalize to 1.
    assert bool(jnp.all(jnp.abs(jnp.sum(jnp.exp(logit), axis=1) - 1.0) < 1e-4))
    # Check against a pure-JAX reference of the full bidirectional 2-layer LSTM.
    ref = textrnn_reference(token_ids, params)
    assert bool(jnp.allclose(logit, ref, atol=5e-3, rtol=5e-3)), (logit, ref)

    # Also exercise the batch-padding path (B=2, padded to 8 inside the wrapper).
    token_ids2 = jax.random.randint(jax.random.PRNGKey(1), (2, T), 0, VOCAB,
                                    dtype=jnp.int32)
    logit2 = textrnn_forward(token_ids2, packed)
    jax.block_until_ready(logit2)
    ref2 = textrnn_reference(token_ids2, params)
    assert logit2.shape == (2, CLASSES)
    assert bool(jnp.allclose(logit2, ref2, atol=5e-3, rtol=5e-3)), (logit2, ref2)

    print("KERNEL_OK")
</pallas_src>

<mosaic_0001>
module attributes {stable_mosaic.version = 11 : i64} {
  func.func @textrnn_kernel(%arg0: memref<8x8x300xbf16, #tpu.memory_space<vmem>>, %arg1: memref<300x1024xbf16, #tpu.memory_space<vmem>>, %arg2: memref<128x1024xbf16, #tpu.memory_space<vmem>>, %arg3: memref<1x1024xf32, #tpu.memory_space<vmem>>, %arg4: memref<256x512xbf16, #tpu.memory_space<vmem>>, %arg5: memref<256x512xbf16, #tpu.memory_space<vmem>>, %arg6: memref<128x512xbf16, #tpu.memory_space<vmem>>, %arg7: memref<1x512xf32, #tpu.memory_space<vmem>>, %arg8: memref<1x512xf32, #tpu.memory_space<vmem>>, %arg9: memref<256x2xbf16, #tpu.memory_space<vmem>>, %arg10: memref<1x2xf32, #tpu.memory_space<vmem>>, %arg11: memref<8x2xf32, #tpu.memory_space<vmem>>, %arg12: memref<8x8x1024xf32, #tpu.memory_space<vmem>>, %arg13: memref<8x8x256xf32, #tpu.memory_space<vmem>>) attributes {dimension_semantics = [], scalar_prefetch = 0 : i64, scratch_operands = 2 : i64, tpu.core_type = #tpu.core_type<tc>} {
    %c0 = arith.constant 0 : index
    %c0_0 = arith.constant 0 : index
    %c0_1 = arith.constant 0 : index
    %0 = vector.load %arg0[%c0, %c0_0, %c0_1] : memref<8x8x300xbf16, #tpu.memory_space<vmem>>, vector<8x8x300xbf16>
    %1 = vector.shape_cast %0 : vector<8x8x300xbf16> to vector<64x300xbf16>
    %c0_2 = arith.constant 0 : index
    %c0_3 = arith.constant 0 : index
    %2 = vector.load %arg1[%c0_2, %c0_3] : memref<300x1024xbf16, #tpu.memory_space<vmem>>, vector<300x1024xbf16>
    %cst = arith.constant dense<0.000000e+00> : vector<64x1024xf32>
    %3 = tpu.matmul %1, %2, %cst {dimension_numbers = #tpu.dot_dimension_numbers<[1], [0], [0], [1], [0, 0, 1, 1], [], []>} : vector<64x300xbf16>, vector<300x1024xbf16>, vector<64x1024xf32> -> vector<64x1024xf32>
    %c0_4 = arith.constant 0 : index
    %c0_5 = arith.constant 0 : index
    %4 = vector.load %arg3[%c0_4, %c0_5] : memref<1x1024xf32, #tpu.memory_space<vmem>>, vector<1x1024xf32>
    %5 = vector.broadcast %4 : vector<1x1024xf32> to vector<64x1024xf32>
    %6 = arith.addf %3, %5 : vector<64x1024xf32>
    %7 = vector.shape_cast %6 : vector<64x1024xf32> to vector<8x8x1024xf32>
    %c0_6 = arith.constant 0 : index
    %c0_7 = arith.constant 0 : index
    %c0_8 = arith.constant 0 : index
    %8 = vector.load %arg12[%c0_6, %c0_7, %c0_8] : memref<8x8x1024xf32, #tpu.memory_space<vmem>>, vector<8x8x1024xf32>
    tpu.vector_store %arg12[%c0_6, %c0_7, %c0_8], %7 {strides = array<i32>} : memref<8x8x1024xf32, #tpu.memory_space<vmem>>, vector<8x8x1024xf32>,
    %cst_9 = arith.constant 0.000000e+00 : f32
    %9 = vector.broadcast %cst_9 : f32 to vector<8x128xf32>
    %10 = tpu.concatenate %9, %9 in 0 : vector<8x128xf32>, vector<8x128xf32> -> vector<16x128xf32>
    %11 = arith.truncf %10 : vector<16x128xf32> to vector<16x128xbf16>
    %c0_10 = arith.constant 0 : index
    %c0_11 = arith.constant 0 : index
    %12 = vector.load %arg2[%c0_10, %c0_11] : memref<128x1024xbf16, #tpu.memory_space<vmem>>, vector<128x1024xbf16>
    %cst_12 = arith.constant dense<0.000000e+00> : vector<16x1024xf32>
    %13 = tpu.matmul %11, %12, %cst_12 {dimension_numbers = #tpu.dot_dimension_numbers<[1], [0], [0], [1], [0, 0, 1, 1], [], []>} : vector<16x128xbf16>, vector<128x1024xbf16>, vector<16x1024xf32> -> vector<16x1024xf32>
    %c0_13 = arith.constant 0 : index
    %c0_14 = arith.constant 0 : index
    %c0_15 = arith.constant 0 : index
    %14 = vector.load %arg12[%c0_13, %c0_14, %c0_15] : memref<8x8x1024xf32, #tpu.memory_space<vmem>>, vector<1x8x512xf32>
    %15 = vector.shape_cast %14 : vector<1x8x512xf32> to vector<8x512xf32>
    %16 = vector.extract_strided_slice %13 {offsets = [0, 0], sizes = [8, 512], strides = [1, 1]} : vector<16x1024xf32> to vector<8x512xf32>
    %17 = arith.addf %15, %16 : vector<8x512xf32>
    %c7 = arith.constant 7 : index
    %c0_16 = arith.constant 0 : index
    %c512 = arith.constant 512 : index
    %18 = vector.load %arg12[%c7, %c0_16, %c512] : memref<8x8x1024xf32, #tpu.memory_space<vmem>>, vector<1x8x512xf32>
    %19 = vector.shape_cast %18 : vector<1x8x512xf32> to vector<8x512xf32>
    %20 = vector.extract_strided_slice %13 {offsets = [8, 512], sizes = [8, 512], strides = [1, 1]} : vector<16x1024xf32> to vector<8x512xf32>
    %21 = arith.addf %19, %20 : vector<8x512xf32>
    %22 = vector.extract_strided_slice %17 {offsets = [0, 0], sizes = [8, 128], strides = [1, 1]} : vector<8x512xf32> to vector<8x128xf32>
    %23 = arith.negf %22 : vector<8x128xf32>
    %24 = math.exp %23 : vector<8x128xf32>
    %cst_17 = arith.constant 1.000000e+00 : f32
    %25 = vector.broadcast %cst_17 : f32 to vector<8x128xf32>
    %26 = arith.addf %25, %24 : vector<8x128xf32>
    %27 = arith.divf %25, %26 : vector<8x128xf32>
    %28 = vector.extract_strided_slice %17 {offsets = [0, 128], sizes = [8, 128], strides = [1, 1]} : vector<8x512xf32> to vector<8x128xf32>
    %29 = arith.negf %28 : vector<8x128xf32>
    %30 = math.exp %29 : vector<8x128xf32>
    %cst_18 = arith.constant 1.000000e+00 : f32
    %31 = vector.broadcast %cst_18 : f32 to vector<8x128xf32>
    %32 = arith.addf %31, %30 : vector<8x128xf32>
    %33 = arith.divf %31, %32 : vector<8x128xf32>
    %34 = vector.extract_strided_slice %17 {offsets = [0, 256], sizes = [8, 128], strides = [1, 1]} : vector<8x512xf32> to vector<8x128xf32>
    %35 = math.tanh %34 : vector<8x128xf32>
    %36 = vector.extract_strided_slice %17 {offsets = [0, 384], sizes = [8, 128], strides = [1, 1]} : vector<8x512xf32> to vector<8x128xf32>
    %37 = arith.negf %36 : vector<8x128xf32>
    %38 = math.exp %37 : vector<8x128xf32>
    %cst_19 = arith.constant 1.000000e+00 : f32
    %39 = vector.broadcast %cst_19 : f32 to vector<8x128xf32>
    %40 = arith.addf %39, %38 : vector<8x128xf32>
    %41 = arith.divf %39, %40 : vector<8x128xf32>
    %42 = arith.mulf %33, %9 : vector<8x128xf32>
    %43 = arith.mulf %27, %35 : vector<8x128xf32>
    %44 = arith.addf %42, %43 : vector<8x128xf32>
    %45 = math.tanh %44 : vector<8x128xf32>
    %46 = arith.mulf %41, %45 : vector<8x128xf32>
    %47 = vector.extract_strided_slice %21 {offsets = [0, 0], sizes = [8, 128], strides = [1, 1]} : vector<8x512xf32> to vector<8x128xf32>
    %48 = arith.negf %47 : vector<8x128xf32>
    %49 = math.exp %48 : vector<8x128xf32>
    %cst_20 = arith.constant 1.000000e+00 : f32
    %50 = vector.broadcast %cst_20 : f32 to vector<8x128xf32>
    %51 = arith.addf %50, %49 : vector<8x128xf32>
    %52 = arith.divf %50, %51 : vector<8x128xf32>
    %53 = vector.extract_strided_slice %21 {offsets = [0, 128], sizes = [8, 128], strides = [1, 1]} : vector<8x512xf32> to vector<8x128xf32>
    %54 = arith.negf %53 : vector<8x128xf32>
    %55 = math.exp %54 : vector<8x128xf32>
    %cst_21 = arith.constant 1.000000e+00 : f32
    %56 = vector.broadcast %cst_21 : f32 to vector<8x128xf32>
    %57 = arith.addf %56, %55 : vector<8x128xf32>
    %58 = arith.divf %56, %57 : vector<8x128xf32>
    %59 = vector.extract_strided_slice %21 {offsets = [0, 256], sizes = [8, 128], strides = [1, 1]} : vector<8x512xf32> to vector<8x128xf32>
    %60 = math.tanh %59 : vector<8x128xf32>
    %61 = vector.extract_strided_slice %21 {offsets = [0, 384], sizes = [8, 128], strides = [1, 1]} : vector<8x512xf32> to vector<8x128xf32>
    %62 = arith.negf %61 : vector<8x128xf32>
    %63 = math.exp %62 : vector<8x128xf32>
    %cst_22 = arith.constant 1.000000e+00 : f32
    %64 = vector.broadcast %cst_22 : f32 to vector<8x128xf32>
    %65 = arith.addf %64, %63 : vector<8x128xf32>
    %66 = arith.divf %64, %65 : vector<8x128xf32>
    %67 = arith.mulf %58, %9 : vector<8x128xf32>
    %68 = arith.mulf %52, %60 : vector<8x128xf32>
    %69 = arith.addf %67, %68 : vector<8x128xf32>
    %70 = math.tanh %69 : vector<8x128xf32>
    %71 = arith.mulf %66, %70 : vector<8x128xf32>
    %c0_23 = arith.constant 0 : index
    %c0_24 = arith.constant 0 : index
    %c0_25 = arith.constant 0 : index
    %72 = vector.load %arg13[%c0_23, %c0_24, %c0_25] : memref<8x8x256xf32, #tpu.memory_space<vmem>>, vector<1x8x128xf32>
    %73 = vector.shape_cast %72 : vector<1x8x128xf32> to vector<8x128xf32>
    %74 = vector.shape_cast %46 : vector<8x128xf32> to vector<1x8x128xf32>
    tpu.vector_store %arg13[%c0_23, %c0_24, %c0_25], %74 {strides = array<i32>} : memref<8x8x256xf32, #tpu.memory_space<vmem>>, vector<1x8x128xf32>,
    %c7_26 = arith.constant 7 : index
    %c0_27 = arith.constant 0 : index
    %c128 = arith.constant 128 : index
    %75 = vector.load %arg13[%c7_26, %c0_27, %c128] : memref<8x8x256xf32, #tpu.memory_space<vmem>>, vector<1x8x128xf32>
    %76 = vector.shape_cast %75 : vector<1x8x128xf32> to vector<8x128xf32>
    %77 = vector.shape_cast %71 : vector<8x128xf32> to vector<1x8x128xf32>
    tpu.vector_store %arg13[%c7_26, %c0_27, %c128], %77 {strides = array<i32>} : memref<8x8x256xf32, #tpu.memory_space<vmem>>, vector<1x8x128xf32>,
    %78 = tpu.concatenate %46, %71 in 0 : vector<8x128xf32>, vector<8x128xf32> -> vector<16x128xf32>
    %79 = arith.truncf %78 : vector<16x128xf32> to vector<16x128xbf16>
    %c0_28 = arith.constant 0 : index
    %c0_29 = arith.constant 0 : index
    %80 = vector.load %arg2[%c0_28, %c0_29] : memref<128x1024xbf16, #tpu.memory_space<vmem>>, vector<128x1024xbf16>
    %cst_30 = arith.constant dense<0.000000e+00> : vector<16x1024xf32>
    %81 = tpu.matmul %79, %80, %cst_30 {dimension_numbers = #tpu.dot_dimension_numbers<[1], [0], [0], [1], [0, 0, 1, 1], [], []>} : vector<16x128xbf16>, vector<128x1024xbf16>, vector<16x1024xf32> -> vector<16x1024xf32>
    %c1 = arith.constant 1 : index
    %c0_31 = arith.constant 0 : index
    %c0_32 = arith.constant 0 : index
    %82 = vector.load %arg12[%c1, %c0_31, %c0_32] : memref<8x8x1024xf32, #tpu.memory_space<vmem>>, vector<1x8x512xf32>
    %83 = vector.shape_cast %82 : vector<1x8x512xf32> to vector<8x512xf32>
    %84 = vector.extract_strided_slice %81 {offsets = [0, 0], sizes = [8, 512], strides = [1, 1]} : vector<16x1024xf32> to vector<8x512xf32>
    %85 = arith.addf %83, %84 : vector<8x512xf32>
    %c6 = arith.constant 6 : index
    %c0_33 = arith.constant 0 : index
    %c512_34 = arith.constant 512 : index
    %86 = vector.load %arg12[%c6, %c0_33, %c512_34] : memref<8x8x1024xf32, #tpu.memory_space<vmem>>, vector<1x8x512xf32>
    %87 = vector.shape_cast %86 : vector<1x8x512xf32> to vector<8x512xf32>
    %88 = vector.extract_strided_slice %81 {offsets = [8, 512], sizes = [8, 512], strides = [1, 1]} : vector<16x1024xf32> to vector<8x512xf32>
    %89 = arith.addf %87, %88 : vector<8x512xf32>
    %90 = vector.extract_strided_slice %85 {offsets = [0, 0], sizes = [8, 128], strides = [1, 1]} : vector<8x512xf32> to vector<8x128xf32>
    %91 = arith.negf %90 : vector<8x128xf32>
    %92 = math.exp %91 : vector<8x128xf32>
    %cst_35 = arith.constant 1.000000e+00 : f32
    %93 = vector.broadcast %cst_35 : f32 to vector<8x128xf32>
    %94 = arith.addf %93, %92 : vector<8x128xf32>
    %95 = arith.divf %93, %94 : vector<8x128xf32>
    %96 = vector.extract_strided_slice %85 {offsets = [0, 128], sizes = [8, 128], strides = [1, 1]} : vector<8x512xf32> to vector<8x128xf32>
    %97 = arith.negf %96 : vector<8x128xf32>
    %98 = math.exp %97 : vector<8x128xf32>
    %cst_36 = arith.constant 1.000000e+00 : f32
    %99 = vector.broadcast %cst_36 : f32 to vector<8x128xf32>
    %100 = arith.addf %99, %98 : vector<8x128xf32>
    %101 = arith.divf %99, %100 : vector<8x128xf32>
    %102 = vector.extract_strided_slice %85 {offsets = [0, 256], sizes = [8, 128], strides = [1, 1]} : vector<8x512xf32> to vector<8x128xf32>
    %103 = math.tanh %102 : vector<8x128xf32>
    %104 = vector.extract_strided_slice %85 {offsets = [0, 384], sizes = [8, 128], strides = [1, 1]} : vector<8x512xf32> to vector<8x128xf32>
    %105 = arith.negf %104 : vector<8x128xf32>
    %106 = math.exp %105 : vector<8x128xf32>
    %cst_37 = arith.constant 1.000000e+00 : f32
    %107 = vector.broadcast %cst_37 : f32 to vector<8x128xf32>
    %108 = arith.addf %107, %106 : vector<8x128xf32>
    %109 = arith.divf %107, %108 : vector<8x128xf32>
    %110 = arith.mulf %101, %44 : vector<8x128xf32>
    %111 = arith.mulf %95, %103 : vector<8x128xf32>
    %112 = arith.addf %110, %111 : vector<8x128xf32>
    %113 = math.tanh %112 : vector<8x128xf32>
    %114 = arith.mulf %109, %113 : vector<8x128xf32>
    %115 = vector.extract_strided_slice %89 {offsets = [0, 0], sizes = [8, 128], strides = [1, 1]} : vector<8x512xf32> to vector<8x128xf32>
    %116 = arith.negf %115 : vector<8x128xf32>
    %117 = math.exp %116 : vector<8x128xf32>
    %cst_38 = arith.constant 1.000000e+00 : f32
    %118 = vector.broadcast %cst_38 : f32 to vector<8x128xf32>
    %119 = arith.addf %118, %117 : vector<8x128xf32>
    %120 = arith.divf %118, %119 : vector<8x128xf32>
    %121 = vector.extract_strided_slice %89 {offsets = [0, 128], sizes = [8, 128], strides = [1, 1]} : vector<8x512xf32> to vector<8x128xf32>
    %122 = arith.negf %121 : vector<8x128xf32>
    %123 = math.exp %122 : vector<8x128xf32>
    %cst_39 = arith.constant 1.000000e+00 : f32
    %124 = vector.broadcast %cst_39 : f32 to vector<8x128xf32>
    %125 = arith.addf %124, %123 : vector<8x128xf32>
    %126 = arith.divf %124, %125 : vector<8x128xf32>
    %127 = vector.extract_strided_slice %89 {offsets = [0, 256], sizes = [8, 128], strides = [1, 1]} : vector<8x512xf32> to vector<8x128xf32>
    %128 = math.tanh %127 : vector<8x128xf32>
    %129 = vector.extract_strided_slice %89 {offsets = [0, 384], sizes = [8, 128], strides = [1, 1]} : vector<8x512xf32> to vector<8x128xf32>
    %130 = arith.negf %129 : vector<8x128xf32>
    %131 = math.exp %130 : vector<8x128xf32>
    %cst_40 = arith.constant 1.000000e+00 : f32
    %132 = vector.broadcast %cst_40 : f32 to vector<8x128xf32>
    %133 = arith.addf %132, %131 : vector<8x128xf32>
    %134 = arith.divf %132, %133 : vector<8x128xf32>
    %135 = arith.mulf %126, %69 : vector<8x128xf32>
    %136 = arith.mulf %120, %128 : vector<8x128xf32>
    %137 = arith.addf %135, %136 : vector<8x128xf32>
    %138 = math.tanh %137 : vector<8x128xf32>
    %139 = arith.mulf %134, %138 : vector<8x128xf32>
    %c1_41 = arith.constant 1 : index
    %c0_42 = arith.constant 0 : index
    %c0_43 = arith.constant 0 : index
    %140 = vector.load %arg13[%c1_41, %c0_42, %c0_43] : memref<8x8x256xf32, #tpu.memory_space<vmem>>, vector<1x8x128xf32>
    %141 = vector.shape_cast %140 : vector<1x8x128xf32> to vector<8x128xf32>
    %142 = vector.shape_cast %114 : vector<8x128xf32> to vector<1x8x128xf32>
    tpu.vector_store %arg13[%c1_41, %c0_42, %c0_43], %142 {strides = array<i32>} : memref<8x8x256xf32, #tpu.memory_space<vmem>>, vector<1x8x128xf32>,
    %c6_44 = arith.constant 6 : index
    %c0_45 = arith.constant 0 : index
    %c128_46 = arith.constant 128 : index
    %143 = vector.load %arg13[%c6_44, %c0_45, %c128_46] : memref<8x8x256xf32, #tpu.memory_space<vmem>>, vector<1x8x128xf32>
    %144 = vector.shape_cast %143 : vector<1x8x128xf32> to vector<8x128xf32>
    %145 = vector.shape_cast %139 : vector<8x128xf32> to vector<1x8x128xf32>
    tpu.vector_store %arg13[%c6_44, %c0_45, %c128_46], %145 {strides = array<i32>} : memref<8x8x256xf32, #tpu.memory_space<vmem>>, vector<1x8x128xf32>,
    %146 = tpu.concatenate %114, %139 in 0 : vector<8x128xf32>, vector<8x128xf32> -> vector<16x128xf32>
    %147 = arith.truncf %146 : vector<16x128xf32> to vector<16x128xbf16>
    %c0_47 = arith.constant 0 : index
    %c0_48 = arith.constant 0 : index
    %148 = vector.load %arg2[%c0_47, %c0_48] : memref<128x1024xbf16, #tpu.memory_space<vmem>>, vector<128x1024xbf16>
    %cst_49 = arith.constant dense<0.000000e+00> : vector<16x1024xf32>
    %149 = tpu.matmul %147, %148, %cst_49 {dimension_numbers = #tpu.dot_dimension_numbers<[1], [0], [0], [1], [0, 0, 1, 1], [], []>} : vector<16x128xbf16>, vector<128x1024xbf16>, vector<16x1024xf32> -> vector<16x1024xf32>
    %c2 = arith.constant 2 : index
    %c0_50 = arith.constant 0 : index
    %c0_51 = arith.constant 0 : index
    %150 = vector.load %arg12[%c2, %c0_50, %c0_51] : memref<8x8x1024xf32, #tpu.memory_space<vmem>>, vector<1x8x512xf32>
    %151 = vector.shape_cast %150 : vector<1x8x512xf32> to vector<8x512xf32>
    %152 = vector.extract_strided_slice %149 {offsets = [0, 0], sizes = [8, 512], strides = [1, 1]} : vector<16x1024xf32> to vector<8x512xf32>
    %153 = arith.addf %151, %152 : vector<8x512xf32>
    %c5 = arith.constant 5 : index
    %c0_52 = arith.constant 0 : index
    %c512_53 = arith.constant 512 : index
    %154 = vector.load %arg12[%c5, %c0_52, %c512_53] : memref<8x8x1024xf32, #tpu.memory_space<vmem>>, vector<1x8x512xf32>
    %155 = vector.shape_cast %154 : vector<1x8x512xf32> to vector<8x512xf32>
    %156 = vector.extract_strided_slice %149 {offsets = [8, 512], sizes = [8, 512], strides = [1, 1]} : vector<16x1024xf32> to vector<8x512xf32>
    %157 = arith.addf %155, %156 : vector<8x512xf32>
    %158 = vector.extract_strided_slice %153 {offsets = [0, 0], sizes = [8, 128], strides = [1, 1]} : vector<8x512xf32> to vector<8x128xf32>
    %159 = arith.negf %158 : vector<8x128xf32>
    %160 = math.exp %159 : vector<8x128xf32>
    %cst_54 = arith.constant 1.000000e+00 : f32
    %161 = vector.broadcast %cst_54 : f32 to vector<8x128xf32>
    %162 = arith.addf %161, %160 : vector<8x128xf32>
    %163 = arith.divf %161, %162 : vector<8x128xf32>
    %164 = vector.extract_strided_slice %153 {offsets = [0, 128], sizes = [8, 128], strides = [1, 1]} : vector<8x512xf32> to vector<8x128xf32>
    %165 = arith.negf %164 : vector<8x128xf32>
    %166 = math.exp %165 : vector<8x128xf32>
    %cst_55 = arith.constant 1.000000e+00 : f32
    %167 = vector.broadcast %cst_55 : f32 to vector<8x128xf32>
    %168 = arith.addf %167, %166 : vector<8x128xf32>
    %169 = arith.divf %167, %168 : vector<8x128xf32>
    %170 = vector.extract_strided_slice %153 {offsets = [0, 256], sizes = [8, 128], strides = [1, 1]} : vector<8x512xf32> to vector<8x128xf32>
    %171 = math.tanh %170 : vector<8x128xf32>
    %172 = vector.extract_strided_slice %153 {offsets = [0, 384], sizes = [8, 128], strides = [1, 1]} : vector<8x512xf32> to vector<8x128xf32>
    %173 = arith.negf %172 : vector<8x128xf32>
    %174 = math.exp %173 : vector<8x128xf32>
    %cst_56 = arith.constant 1.000000e+00 : f32
    %175 = vector.broadcast %cst_56 : f32 to vector<8x128xf32>
    %176 = arith.addf %175, %174 : vector<8x128xf32>
    %177 = arith.divf %175, %176 : vector<8x128xf32>
    %178 = arith.mulf %169, %112 : vector<8x128xf32>
    %179 = arith.mulf %163, %171 : vector<8x128xf32>
    %180 = arith.addf %178, %179 : vector<8x128xf32>
    %181 = math.tanh %180 : vector<8x128xf32>
    %182 = arith.mulf %177, %181 : vector<8x128xf32>
    %183 = vector.extract_strided_slice %157 {offsets = [0, 0], sizes = [8, 128], strides = [1, 1]} : vector<8x512xf32> to vector<8x128xf32>
    %184 = arith.negf %183 : vector<8x128xf32>
    %185 = math.exp %184 : vector<8x128xf32>
    %cst_57 = arith.constant 1.000000e+00 : f32
    %186 = vector.broadcast %cst_57 : f32 to vector<8x128xf32>
    %187 = arith.addf %186, %185 : vector<8x128xf32>
    %188 = arith.divf %186, %187 : vector<8x128xf32>
    %189 = vector.extract_strided_slice %157 {offsets = [0, 128], sizes = [8, 128], strides = [1, 1]} : vector<8x512xf32> to vector<8x128xf32>
    %190 = arith.negf %189 : vector<8x128xf32>
    %191 = math.exp %190 : vector<8x128xf32>
    %cst_58 = arith.constant 1.000000e+00 : f32
    %192 = vector.broadcast %cst_58 : f32 to vector<8x128xf32>
    %193 = arith.addf %192, %191 : vector<8x128xf32>
    %194 = arith.divf %192, %193 : vector<8x128xf32>
    %195 = vector.extract_strided_slice %157 {offsets = [0, 256], sizes = [8, 128], strides = [1, 1]} : vector<8x512xf32> to vector<8x128xf32>
    %196 = math.tanh %195 : vector<8x128xf32>
    %197 = vector.extract_strided_slice %157 {offsets = [0, 384], sizes = [8, 128], strides = [1, 1]} : vector<8x512xf32> to vector<8x128xf32>
    %198 = arith.negf %197 : vector<8x128xf32>
    %199 = math.exp %198 : vector<8x128xf32>
    %cst_59 = arith.constant 1.000000e+00 : f32
    %200 = vector.broadcast %cst_59 : f32 to vector<8x128xf32>
    %201 = arith.addf %200, %199 : vector<8x128xf32>
    %202 = arith.divf %200, %201 : vector<8x128xf32>
    %203 = arith.mulf %194, %137 : vector<8x128xf32>
    %204 = arith.mulf %188, %196 : vector<8x128xf32>
    %205 = arith.addf %203, %204 : vector<8x128xf32>
    %206 = math.tanh %205 : vector<8x128xf32>
    %207 = arith.mulf %202, %206 : vector<8x128xf32>
    %c2_60 = arith.constant 2 : index
    %c0_61 = arith.constant 0 : index
    %c0_62 = arith.constant 0 : index
    %208 = vector.load %arg13[%c2_60, %c0_61, %c0_62] : memref<8x8x256xf32, #tpu.memory_space<vmem>>, vector<1x8x128xf32>
    %209 = vector.shape_cast %208 : vector<1x8x128xf32> to vector<8x128xf32>
    %210 = vector.shape_cast %182 : vector<8x128xf32> to vector<1x8x128xf32>
    tpu.vector_store %arg13[%c2_60, %c0_61, %c0_62], %210 {strides = array<i32>} : memref<8x8x256xf32, #tpu.memory_space<vmem>>, vector<1x8x128xf32>,
    %c5_63 = arith.constant 5 : index
    %c0_64 = arith.constant 0 : index
    %c128_65 = arith.constant 128 : index
    %211 = vector.load %arg13[%c5_63, %c0_64, %c128_65] : memref<8x8x256xf32, #tpu.memory_space<vmem>>, vector<1x8x128xf32>
    %212 = vector.shape_cast %211 : vector<1x8x128xf32> to vector<8x128xf32>
    %213 = vector.shape_cast %207 : vector<8x128xf32> to vector<1x8x128xf32>
    tpu.vector_store %arg13[%c5_63, %c0_64, %c128_65], %213 {strides = array<i32>} : memref<8x8x256xf32, #tpu.memory_space<vmem>>, vector<1x8x128xf32>,
    %214 = tpu.concatenate %182, %207 in 0 : vector<8x128xf32>, vector<8x128xf32> -> vector<16x128xf32>
    %215 = arith.truncf %214 : vector<16x128xf32> to vector<16x128xbf16>
    %c0_66 = arith.constant 0 : index
    %c0_67 = arith.constant 0 : index
    %216 = vector.load %arg2[%c0_66, %c0_67] : memref<128x1024xbf16, #tpu.memory_space<vmem>>, vector<128x1024xbf16>
    %cst_68 = arith.constant dense<0.000000e+00> : vector<16x1024xf32>
    %217 = tpu.matmul %215, %216, %cst_68 {dimension_numbers = #tpu.dot_dimension_numbers<[1], [0], [0], [1], [0, 0, 1, 1], [], []>} : vector<16x128xbf16>, vector<128x1024xbf16>, vector<16x1024xf32> -> vector<16x1024xf32>
    %c3 = arith.constant 3 : index
    %c0_69 = arith.constant 0 : index
    %c0_70 = arith.constant 0 : index
    %218 = vector.load %arg12[%c3, %c0_69, %c0_70] : memref<8x8x1024xf32, #tpu.memory_space<vmem>>, vector<1x8x512xf32>
    %219 = vector.shape_cast %218 : vector<1x8x512xf32> to vector<8x512xf32>
    %220 = vector.extract_strided_slice %217 {offsets = [0, 0], sizes = [8, 512], strides = [1, 1]} : vector<16x1024xf32> to vector<8x512xf32>
    %221 = arith.addf %219, %220 : vector<8x512xf32>
    %c4 = arith.constant 4 : index
    %c0_71 = arith.constant 0 : index
    %c512_72 = arith.constant 512 : index
    %222 = vector.load %arg12[%c4, %c0_71, %c512_72] : memref<8x8x1024xf32, #tpu.memory_space<vmem>>, vector<1x8x512xf32>
    %223 = vector.shape_cast %222 : vector<1x8x512xf32> to vector<8x512xf32>
    %224 = vector.extract_strided_slice %217 {offsets = [8, 512], sizes = [8, 512], strides = [1, 1]} : vector<16x1024xf32> to vector<8x512xf32>
    %225 = arith.addf %223, %224 : vector<8x512xf32>
    %226 = vector.extract_strided_slice %221 {offsets = [0, 0], sizes = [8, 128], strides = [1, 1]} : vector<8x512xf32> to vector<8x128xf32>
    %227 = arith.negf %226 : vector<8x128xf32>
    %228 = math.exp %227 : vector<8x128xf32>
    %cst_73 = arith.constant 1.000000e+00 : f32
    %229 = vector.broadcast %cst_73 : f32 to vector<8x128xf32>
    %230 = arith.addf %229, %228 : vector<8x128xf32>
    %231 = arith.divf %229, %230 : vector<8x128xf32>
    %232 = vector.extract_strided_slice %221 {offsets = [0, 128], sizes = [8, 128], strides = [1, 1]} : vector<8x512xf32> to vector<8x128xf32>
    %233 = arith.negf %232 : vector<8x128xf32>
    %234 = math.exp %233 : vector<8x128xf32>
    %cst_74 = arith.constant 1.000000e+00 : f32
    %235 = vector.broadcast %cst_74 : f32 to vector<8x128xf32>
    %236 = arith.addf %235, %234 : vector<8x128xf32>
    %237 = arith.divf %235, %236 : vector<8x128xf32>
    %238 = vector.extract_strided_slice %221 {offsets = [0, 256], sizes = [8, 128], strides = [1, 1]} : vector<8x512xf32> to vector<8x128xf32>
    %239 = math.tanh %238 : vector<8x128xf32>
    %240 = vector.extract_strided_slice %221 {offsets = [0, 384], sizes = [8, 128], strides = [1, 1]} : vector<8x512xf32> to vector<8x128xf32>
    %241 = arith.negf %240 : vector<8x128xf32>
    %242 = math.exp %241 : vector<8x128xf32>
    %cst_75 = arith.constant 1.000000e+00 : f32
    %243 = vector.broadcast %cst_75 : f32 to vector<8x128xf32>
    %244 = arith.addf %243, %242 : vector<8x128xf32>
    %245 = arith.divf %243, %244 : vector<8x128xf32>
    %246 = arith.mulf %237, %180 : vector<8x128xf32>
    %247 = arith.mulf %231, %239 : vector<8x128xf32>
    %248 = arith.addf %246, %247 : vector<8x128xf32>
    %249 = math.tanh %248 : vector<8x128xf32>
    %250 = arith.mulf %245, %249 : vector<8x128xf32>
    %251 = vector.extract_strided_slice %225 {offsets = [0, 0], sizes = [8, 128], strides = [1, 1]} : vector<8x512xf32> to vector<8x128xf32>
    %252 = arith.negf %251 : vector<8x128xf32>
    %253 = math.exp %252 : vector<8x128xf32>
    %cst_76 = arith.constant 1.000000e+00 : f32
    %254 = vector.broadcast %cst_76 : f32 to vector<8x128xf32>
    %255 = arith.addf %254, %253 : vector<8x128xf32>
    %256 = arith.divf %254, %255 : vector<8x128xf32>
    %257 = vector.extract_strided_slice %225 {offsets = [0, 128], sizes = [8, 128], strides = [1, 1]} : vector<8x512xf32> to vector<8x128xf32>
    %258 = arith.negf %257 : vector<8x128xf32>
    %259 = math.exp %258 : vector<8x128xf32>
    %cst_77 = arith.constant 1.000000e+00 : f32
    %260 = vector.broadcast %cst_77 : f32 to vector<8x128xf32>
    %261 = arith.addf %260, %259 : vector<8x128xf32>
    %262 = arith.divf %260, %261 : vector<8x128xf32>
    %263 = vector.extract_strided_slice %225 {offsets = [0, 256], sizes = [8, 128], strides = [1, 1]} : vector<8x512xf32> to vector<8x128xf32>
    %264 = math.tanh %263 : vector<8x128xf32>
    %265 = vector.extract_strided_slice %225 {offsets = [0, 384], sizes = [8, 128], strides = [1, 1]} : vector<8x512xf32> to vector<8x128xf32>
    %266 = arith.negf %265 : vector<8x128xf32>
    %267 = math.exp %266 : vector<8x128xf32>
    %cst_78 = arith.constant 1.000000e+00 : f32
    %268 = vector.broadcast %cst_78 : f32 to vector<8x128xf32>
    %269 = arith.addf %268, %267 : vector<8x128xf32>
    %270 = arith.divf %268, %269 : vector<8x128xf32>
    %271 = arith.mulf %262, %205 : vector<8x128xf32>
    %272 = arith.mulf %256, %264 : vector<8x128xf32>
    %273 = arith.addf %271, %272 : vector<8x128xf32>
    %274 = math.tanh %273 : vector<8x128xf32>
    %275 = arith.mulf %270, %274 : vector<8x128xf32>
    %c3_79 = arith.constant 3 : index
    %c0_80 = arith.constant 0 : index
    %c0_81 = arith.constant 0 : index
    %276 = vector.load %arg13[%c3_79, %c0_80, %c0_81] : memref<8x8x256xf32, #tpu.memory_space<vmem>>, vector<1x8x128xf32>
    %277 = vector.shape_cast %276 : vector<1x8x128xf32> to vector<8x128xf32>
    %278 = vector.shape_cast %250 : vector<8x128xf32> to vector<1x8x128xf32>
    tpu.vector_store %arg13[%c3_79, %c0_80, %c0_81], %278 {strides = array<i32>} : memref<8x8x256xf32, #tpu.memory_space<vmem>>, vector<1x8x128xf32>,
    %c4_82 = arith.constant 4 : index
    %c0_83 = arith.constant 0 : index
    %c128_84 = arith.constant 128 : index
    %279 = vector.load %arg13[%c4_82, %c0_83, %c128_84] : memref<8x8x256xf32, #tpu.memory_space<vmem>>, vector<1x8x128xf32>
    %280 = vector.shape_cast %279 : vector<1x8x128xf32> to vector<8x128xf32>
    %281 = vector.shape_cast %275 : vector<8x128xf32> to vector<1x8x128xf32>
    tpu.vector_store %arg13[%c4_82, %c0_83, %c128_84], %281 {strides = array<i32>} : memref<8x8x256xf32, #tpu.memory_space<vmem>>, vector<1x8x128xf32>,
    %282 = tpu.concatenate %250, %275 in 0 : vector<8x128xf32>, vector<8x128xf32> -> vector<16x128xf32>
    %283 = arith.truncf %282 : vector<16x128xf32> to vector<16x128xbf16>
    %c0_85 = arith.constant 0 : index
    %c0_86 = arith.constant 0 : index
    %284 = vector.load %arg2[%c0_85, %c0_86] : memref<128x1024xbf16, #tpu.memory_space<vmem>>, vector<128x1024xbf16>
    %cst_87 = arith.constant dense<0.000000e+00> : vector<16x1024xf32>
    %285 = tpu.matmul %283, %284, %cst_87 {dimension_numbers = #tpu.dot_dimension_numbers<[1], [0], [0], [1], [0, 0, 1, 1], [], []>} : vector<16x128xbf16>, vector<128x1024xbf16>, vector<16x1024xf32> -> vector<16x1024xf32>
    %c4_88 = arith.constant 4 : index
    %c0_89 = arith.constant 0 : index
    %c0_90 = arith.constant 0 : index
    %286 = vector.load %arg12[%c4_88, %c0_89, %c0_90] : memref<8x8x1024xf32, #tpu.memory_space<vmem>>, vector<1x8x512xf32>
    %287 = vector.shape_cast %286 : vector<1x8x512xf32> to vector<8x512xf32>
    %288 = vector.extract_strided_slice %285 {offsets = [0, 0], sizes = [8, 512], strides = [1, 1]} : vector<16x1024xf32> to vector<8x512xf32>
    %289 = arith.addf %287, %288 : vector<8x512xf32>
    %c3_91 = arith.constant 3 : index
    %c0_92 = arith.constant 0 : index
    %c512_93 = arith.constant 512 : index
    %290 = vector.load %arg12[%c3_91, %c0_92, %c512_93] : memref<8x8x1024xf32, #tpu.memory_space<vmem>>, vector<1x8x512xf32>
    %291 = vector.shape_cast %290 : vector<1x8x512xf32> to vector<8x512xf32>
    %292 = vector.extract_strided_slice %285 {offsets = [8, 512], sizes = [8, 512], strides = [1, 1]} : vector<16x1024xf32> to vector<8x512xf32>
    %293 = arith.addf %291, %292 : vector<8x512xf32>
    %294 = vector.extract_strided_slice %289 {offsets = [0, 0], sizes = [8, 128], strides = [1, 1]} : vector<8x512xf32> to vector<8x128xf32>
    %295 = arith.negf %294 : vector<8x128xf32>
    %296 = math.exp %295 : vector<8x128xf32>
    %cst_94 = arith.constant 1.000000e+00 : f32
    %297 = vector.broadcast %cst_94 : f32 to vector<8x128xf32>
    %298 = arith.addf %297, %296 : vector<8x128xf32>
    %299 = arith.divf %297, %298 : vector<8x128xf32>
    %300 = vector.extract_strided_slice %289 {offsets = [0, 128], sizes = [8, 128], strides = [1, 1]} : vector<8x512xf32> to vector<8x128xf32>
    %301 = arith.negf %300 : vector<8x128xf32>
    %302 = math.exp %301 : vector<8x128xf32>
    %cst_95 = arith.constant 1.000000e+00 : f32
    %303 = vector.broadcast %cst_95 : f32 to vector<8x128xf32>
    %304 = arith.addf %303, %302 : vector<8x128xf32>
    %305 = arith.divf %303, %304 : vector<8x128xf32>
    %306 = vector.extract_strided_slice %289 {offsets = [0, 256], sizes = [8, 128], strides = [1, 1]} : vector<8x512xf32> to vector<8x128xf32>
    %307 = math.tanh %306 : vector<8x128xf32>
    %308 = vector.extract_strided_slice %289 {offsets = [0, 384], sizes = [8, 128], strides = [1, 1]} : vector<8x512xf32> to vector<8x128xf32>
    %309 = arith.negf %308 : vector<8x128xf32>
    %310 = math.exp %309 : vector<8x128xf32>
    %cst_96 = arith.constant 1.000000e+00 : f32
    %311 = vector.broadcast %cst_96 : f32 to vector<8x128xf32>
    %312 = arith.addf %311, %310 : vector<8x128xf32>
    %313 = arith.divf %311, %312 : vector<8x128xf32>
    %314 = arith.mulf %305, %248 : vector<8x128xf32>
    %315 = arith.mulf %299, %307 : vector<8x128xf32>
    %316 = arith.addf %314, %315 : vector<8x128xf32>
    %317 = math.tanh %316 : vector<8x128xf32>
    %318 = arith.mulf %313, %317 : vector<8x128xf32>
    %319 = vector.extract_strided_slice %293 {offsets = [0, 0], sizes = [8, 128], strides = [1, 1]} : vector<8x512xf32> to vector<8x128xf32>
    %320 = arith.negf %319 : vector<8x128xf32>
    %321 = math.exp %320 : vector<8x128xf32>
    %cst_97 = arith.constant 1.000000e+00 : f32
    %322 = vector.broadcast %cst_97 : f32 to vector<8x128xf32>
    %323 = arith.addf %322, %321 : vector<8x128xf32>
    %324 = arith.divf %322, %323 : vector<8x128xf32>
    %325 = vector.extract_strided_slice %293 {offsets = [0, 128], sizes = [8, 128], strides = [1, 1]} : vector<8x512xf32> to vector<8x128xf32>
    %326 = arith.negf %325 : vector<8x128xf32>
    %327 = math.exp %326 : vector<8x128xf32>
    %cst_98 = arith.constant 1.000000e+00 : f32
    %328 = vector.broadcast %cst_98 : f32 to vector<8x128xf32>
    %329 = arith.addf %328, %327 : vector<8x128xf32>
    %330 = arith.divf %328, %329 : vector<8x128xf32>
    %331 = vector.extract_strided_slice %293 {offsets = [0, 256], sizes = [8, 128], strides = [1, 1]} : vector<8x512xf32> to vector<8x128xf32>
    %332 = math.tanh %331 : vector<8x128xf32>
    %333 = vector.extract_strided_slice %293 {offsets = [0, 384], sizes = [8, 128], strides = [1, 1]} : vector<8x512xf32> to vector<8x128xf32>
    %334 = arith.negf %333 : vector<8x128xf32>
    %335 = math.exp %334 : vector<8x128xf32>
    %cst_99 = arith.constant 1.000000e+00 : f32
    %336 = vector.broadcast %cst_99 : f32 to vector<8x128xf32>
    %337 = arith.addf %336, %335 : vector<8x128xf32>
    %338 = arith.divf %336, %337 : vector<8x128xf32>
    %339 = arith.mulf %330, %273 : vector<8x128xf32>
    %340 = arith.mulf %324, %332 : vector<8x128xf32>
    %341 = arith.addf %339, %340 : vector<8x128xf32>
    %342 = math.tanh %341 : vector<8x128xf32>
    %343 = arith.mulf %338, %342 : vector<8x128xf32>
    %c4_100 = arith.constant 4 : index
    %c0_101 = arith.constant 0 : index
    %c0_102 = arith.constant 0 : index
    %344 = vector.load %arg13[%c4_100, %c0_101, %c0_102] : memref<8x8x256xf32, #tpu.memory_space<vmem>>, vector<1x8x128xf32>
    %345 = vector.shape_cast %344 : vector<1x8x128xf32> to vector<8x128xf32>
    %346 = vector.shape_cast %318 : vector<8x128xf32> to vector<1x8x128xf32>
    tpu.vector_store %arg13[%c4_100, %c0_101, %c0_102], %346 {strides = array<i32>} : memref<8x8x256xf32, #tpu.memory_space<vmem>>, vector<1x8x128xf32>,
    %c3_103 = arith.constant 3 : index
    %c0_104 = arith.constant 0 : index
    %c128_105 = arith.constant 128 : index
    %347 = vector.load %arg13[%c3_103, %c0_104, %c128_105] : memref<8x8x256xf32, #tpu.memory_space<vmem>>, vector<1x8x128xf32>
    %348 = vector.shape_cast %347 : vector<1x8x128xf32> to vector<8x128xf32>
    %349 = vector.shape_cast %343 : vector<8x128xf32> to vector<1x8x128xf32>
    tpu.vector_store %arg13[%c3_103, %c0_104, %c128_105], %349 {strides = array<i32>} : memref<8x8x256xf32, #tpu.memory_space<vmem>>, vector<1x8x128xf32>,
    %350 = tpu.concatenate %318, %343 in 0 : vector<8x128xf32>, vector<8x128xf32> -> vector<16x128xf32>
    %351 = arith.truncf %350 : vector<16x128xf32> to vector<16x128xbf16>
    %c0_106 = arith.constant 0 : index
    %c0_107 = arith.constant 0 : index
    %352 = vector.load %arg2[%c0_106, %c0_107] : memref<128x1024xbf16, #tpu.memory_space<vmem>>, vector<128x1024xbf16>
    %cst_108 = arith.constant dense<0.000000e+00> : vector<16x1024xf32>
    %353 = tpu.matmul %351, %352, %cst_108 {dimension_numbers = #tpu.dot_dimension_numbers<[1], [0], [0], [1], [0, 0, 1, 1], [], []>} : vector<16x128xbf16>, vector<128x1024xbf16>, vector<16x1024xf32> -> vector<16x1024xf32>
    %c5_109 = arith.constant 5 : index
    %c0_110 = arith.constant 0 : index
    %c0_111 = arith.constant 0 : index
    %354 = vector.load %arg12[%c5_109, %c0_110, %c0_111] : memref<8x8x1024xf32, #tpu.memory_space<vmem>>, vector<1x8x512xf32>
    %355 = vector.shape_cast %354 : vector<1x8x512xf32> to vector<8x512xf32>
    %356 = vector.extract_strided_slice %353 {offsets = [0, 0], sizes = [8, 512], strides = [1, 1]} : vector<16x1024xf32> to vector<8x512xf32>
    %357 = arith.addf %355, %356 : vector<8x512xf32>
    %c2_112 = arith.constant 2 : index
    %c0_113 = arith.constant 0 : index
    %c512_114 = arith.constant 512 : index
    %358 = vector.load %arg12[%c2_112, %c0_113, %c512_114] : memref<8x8x1024xf32, #tpu.memory_space<vmem>>, vector<1x8x512xf32>
    %359 = vector.shape_cast %358 : vector<1x8x512xf32> to vector<8x512xf32>
    %360 = vector.extract_strided_slice %353 {offsets = [8, 512], sizes = [8, 512], strides = [1, 1]} : vector<16x1024xf32> to vector<8x512xf32>
    %361 = arith.addf %359, %360 : vector<8x512xf32>
    %362 = vector.extract_strided_slice %357 {offsets = [0, 0], sizes = [8, 128], strides = [1, 1]} : vector<8x512xf32> to vector<8x128xf32>
    %363 = arith.negf %362 : vector<8x128xf32>
    %364 = math.exp %363 : vector<8x128xf32>
    %cst_115 = arith.constant 1.000000e+00 : f32
    %365 = vector.broadcast %cst_115 : f32 to vector<8x128xf32>
    %366 = arith.addf %365, %364 : vector<8x128xf32>
    %367 = arith.divf %365, %366 : vector<8x128xf32>
    %368 = vector.extract_strided_slice %357 {offsets = [0, 128], sizes = [8, 128], strides = [1, 1]} : vector<8x512xf32> to vector<8x128xf32>
    %369 = arith.negf %368 : vector<8x128xf32>
    %370 = math.exp %369 : vector<8x128xf32>
    %cst_116 = arith.constant 1.000000e+00 : f32
    %371 = vector.broadcast %cst_116 : f32 to vector<8x128xf32>
    %372 = arith.addf %371, %370 : vector<8x128xf32>
    %373 = arith.divf %371, %372 : vector<8x128xf32>
    %374 = vector.extract_strided_slice %357 {offsets = [0, 256], sizes = [8, 128], strides = [1, 1]} : vector<8x512xf32> to vector<8x128xf32>
    %375 = math.tanh %374 : vector<8x128xf32>
    %376 = vector.extract_strided_slice %357 {offsets = [0, 384], sizes = [8, 128], strides = [1, 1]} : vector<8x512xf32> to vector<8x128xf32>
    %377 = arith.negf %376 : vector<8x128xf32>
    %378 = math.exp %377 : vector<8x128xf32>
    %cst_117 = arith.constant 1.000000e+00 : f32
    %379 = vector.broadcast %cst_117 : f32 to vector<8x128xf32>
    %380 = arith.addf %379, %378 : vector<8x128xf32>
    %381 = arith.divf %379, %380 : vector<8x128xf32>
    %382 = arith.mulf %373, %316 : vector<8x128xf32>
    %383 = arith.mulf %367, %375 : vector<8x128xf32>
    %384 = arith.addf %382, %383 : vector<8x128xf32>
    %385 = math.tanh %384 : vector<8x128xf32>
    %386 = arith.mulf %381, %385 : vector<8x128xf32>
    %387 = vector.extract_strided_slice %361 {offsets = [0, 0], sizes = [8, 128], strides = [1, 1]} : vector<8x512xf32> to vector<8x128xf32>
    %388 = arith.negf %387 : vector<8x128xf32>
    %389 = math.exp %388 : vector<8x128xf32>
    %cst_118 = arith.constant 1.000000e+00 : f32
    %390 = vector.broadcast %cst_118 : f32 to vector<8x128xf32>
    %391 = arith.addf %390, %389 : vector<8x128xf32>
    %392 = arith.divf %390, %391 : vector<8x128xf32>
    %393 = vector.extract_strided_slice %361 {offsets = [0, 128], sizes = [8, 128], strides = [1, 1]} : vector<8x512xf32> to vector<8x128xf32>
    %394 = arith.negf %393 : vector<8x128xf32>
    %395 = math.exp %394 : vector<8x128xf32>
    %cst_119 = arith.constant 1.000000e+00 : f32
    %396 = vector.broadcast %cst_119 : f32 to vector<8x128xf32>
    %397 = arith.addf %396, %395 : vector<8x128xf32>
    %398 = arith.divf %396, %397 : vector<8x128xf32>
    %399 = vector.extract_strided_slice %361 {offsets = [0, 256], sizes = [8, 128], strides = [1, 1]} : vector<8x512xf32> to vector<8x128xf32>
    %400 = math.tanh %399 : vector<8x128xf32>
    %401 = vector.extract_strided_slice %361 {offsets = [0, 384], sizes = [8, 128], strides = [1, 1]} : vector<8x512xf32> to vector<8x128xf32>
    %402 = arith.negf %401 : vector<8x128xf32>
    %403 = math.exp %402 : vector<8x128xf32>
    %cst_120 = arith.constant 1.000000e+00 : f32
    %404 = vector.broadcast %cst_120 : f32 to vector<8x128xf32>
    %405 = arith.addf %404, %403 : vector<8x128xf32>
    %406 = arith.divf %404, %405 : vector<8x128xf32>
    %407 = arith.mulf %398, %341 : vector<8x128xf32>
    %408 = arith.mulf %392, %400 : vector<8x128xf32>
    %409 = arith.addf %407, %408 : vector<8x128xf32>
    %410 = math.tanh %409 : vector<8x128xf32>
    %411 = arith.mulf %406, %410 : vector<8x128xf32>
    %c5_121 = arith.constant 5 : index
    %c0_122 = arith.constant 0 : index
    %c0_123 = arith.constant 0 : index
    %412 = vector.load %arg13[%c5_121, %c0_122, %c0_123] : memref<8x8x256xf32, #tpu.memory_space<vmem>>, vector<1x8x128xf32>
    %413 = vector.shape_cast %412 : vector<1x8x128xf32> to vector<8x128xf32>
    %414 = vector.shape_cast %386 : vector<8x128xf32> to vector<1x8x128xf32>
    tpu.vector_store %arg13[%c5_121, %c0_122, %c0_123], %414 {strides = array<i32>} : memref<8x8x256xf32, #tpu.memory_space<vmem>>, vector<1x8x128xf32>,
    %c2_124 = arith.constant 2 : index
    %c0_125 = arith.constant 0 : index
    %c128_126 = arith.constant 128 : index
    %415 = vector.load %arg13[%c2_124, %c0_125, %c128_126] : memref<8x8x256xf32, #tpu.memory_space<vmem>>, vector<1x8x128xf32>
    %416 = vector.shape_cast %415 : vector<1x8x128xf32> to vector<8x128xf32>
    %417 = vector.shape_cast %411 : vector<8x128xf32> to vector<1x8x128xf32>
    tpu.vector_store %arg13[%c2_124, %c0_125, %c128_126], %417 {strides = array<i32>} : memref<8x8x256xf32, #tpu.memory_space<vmem>>, vector<1x8x128xf32>,
    %418 = tpu.concatenate %386, %411 in 0 : vector<8x128xf32>, vector<8x128xf32> -> vector<16x128xf32>
    %419 = arith.truncf %418 : vector<16x128xf32> to vector<16x128xbf16>
    %c0_127 = arith.constant 0 : index
    %c0_128 = arith.constant 0 : index
    %420 = vector.load %arg2[%c0_127, %c0_128] : memref<128x1024xbf16, #tpu.memory_space<vmem>>, vector<128x1024xbf16>
    %cst_129 = arith.constant dense<0.000000e+00> : vector<16x1024xf32>
    %421 = tpu.matmul %419, %420, %cst_129 {dimension_numbers = #tpu.dot_dimension_numbers<[1], [0], [0], [1], [0, 0, 1, 1], [], []>} : vector<16x128xbf16>, vector<128x1024xbf16>, vector<16x1024xf32> -> vector<16x1024xf32>
    %c6_130 = arith.constant 6 : index
    %c0_131 = arith.constant 0 : index
    %c0_132 = arith.constant 0 : index
    %422 = vector.load %arg12[%c6_130, %c0_131, %c0_132] : memref<8x8x1024xf32, #tpu.memory_space<vmem>>, vector<1x8x512xf32>
    %423 = vector.shape_cast %422 : vector<1x8x512xf32> to vector<8x512xf32>
    %424 = vector.extract_strided_slice %421 {offsets = [0, 0], sizes = [8, 512], strides = [1, 1]} : vector<16x1024xf32> to vector<8x512xf32>
    %425 = arith.addf %423, %424 : vector<8x512xf32>
    %c1_133 = arith.constant 1 : index
    %c0_134 = arith.constant 0 : index
    %c512_135 = arith.constant 512 : index
    %426 = vector.load %arg12[%c1_133, %c0_134, %c512_135] : memref<8x8x1024xf32, #tpu.memory_space<vmem>>, vector<1x8x512xf32>
    %427 = vector.shape_cast %426 : vector<1x8x512xf32> to vector<8x512xf32>
    %428 = vector.extract_strided_slice %421 {offsets = [8, 512], sizes = [8, 512], strides = [1, 1]} : vector<16x1024xf32> to vector<8x512xf32>
    %429 = arith.addf %427, %428 : vector<8x512xf32>
    %430 = vector.extract_strided_slice %425 {offsets = [0, 0], sizes = [8, 128], strides = [1, 1]} : vector<8x512xf32> to vector<8x128xf32>
    %431 = arith.negf %430 : vector<8x128xf32>
    %432 = math.exp %431 : vector<8x128xf32>
    %cst_136 = arith.constant 1.000000e+00 : f32
    %433 = vector.broadcast %cst_136 : f32 to vector<8x128xf32>
    %434 = arith.addf %433, %432 : vector<8x128xf32>
    %435 = arith.divf %433, %434 : vector<8x128xf32>
    %436 = vector.extract_strided_slice %425 {offsets = [0, 128], sizes = [8, 128], strides = [1, 1]} : vector<8x512xf32> to vector<8x128xf32>
    %437 = arith.negf %436 : vector<8x128xf32>
    %438 = math.exp %437 : vector<8x128xf32>
    %cst_137 = arith.constant 1.000000e+00 : f32
    %439 = vector.broadcast %cst_137 : f32 to vector<8x128xf32>
    %440 = arith.addf %439, %438 : vector<8x128xf32>
    %441 = arith.divf %439, %440 : vector<8x128xf32>
    %442 = vector.extract_strided_slice %425 {offsets = [0, 256], sizes = [8, 128], strides = [1, 1]} : vector<8x512xf32> to vector<8x128xf32>
    %443 = math.tanh %442 : vector<8x128xf32>
    %444 = vector.extract_strided_slice %425 {offsets = [0, 384], sizes = [8, 128], strides = [1, 1]} : vector<8x512xf32> to vector<8x128xf32>
    %445 = arith.negf %444 : vector<8x128xf32>
    %446 = math.exp %445 : vector<8x128xf32>
    %cst_138 = arith.constant 1.000000e+00 : f32
    %447 = vector.broadcast %cst_138 : f32 to vector<8x128xf32>
    %448 = arith.addf %447, %446 : vector<8x128xf32>
    %449 = arith.divf %447, %448 : vector<8x128xf32>
    %450 = arith.mulf %441, %384 : vector<8x128xf32>
    %451 = arith.mulf %435, %443 : vector<8x128xf32>
    %452 = arith.addf %450, %451 : vector<8x128xf32>
    %453 = math.tanh %452 : vector<8x128xf32>
    %454 = arith.mulf %449, %453 : vector<8x128xf32>
    %455 = vector.extract_strided_slice %429 {offsets = [0, 0], sizes = [8, 128], strides = [1, 1]} : vector<8x512xf32> to vector<8x128xf32>
    %456 = arith.negf %455 : vector<8x128xf32>
    %457 = math.exp %456 : vector<8x128xf32>
    %cst_139 = arith.constant 1.000000e+00 : f32
    %458 = vector.broadcast %cst_139 : f32 to vector<8x128xf32>
    %459 = arith.addf %458, %457 : vector<8x128xf32>
    %460 = arith.divf %458, %459 : vector<8x128xf32>
    %461 = vector.extract_strided_slice %429 {offsets = [0, 128], sizes = [8, 128], strides = [1, 1]} : vector<8x512xf32> to vector<8x128xf32>
    %462 = arith.negf %461 : vector<8x128xf32>
    %463 = math.exp %462 : vector<8x128xf32>
    %cst_140 = arith.constant 1.000000e+00 : f32
    %464 = vector.broadcast %cst_140 : f32 to vector<8x128xf32>
    %465 = arith.addf %464, %463 : vector<8x128xf32>
    %466 = arith.divf %464, %465 : vector<8x128xf32>
    %467 = vector.extract_strided_slice %429 {offsets = [0, 256], sizes = [8, 128], strides = [1, 1]} : vector<8x512xf32> to vector<8x128xf32>
    %468 = math.tanh %467 : vector<8x128xf32>
    %469 = vector.extract_strided_slice %429 {offsets = [0, 384], sizes = [8, 128], strides = [1, 1]} : vector<8x512xf32> to vector<8x128xf32>
    %470 = arith.negf %469 : vector<8x128xf32>
    %471 = math.exp %470 : vector<8x128xf32>
    %cst_141 = arith.constant 1.000000e+00 : f32
    %472 = vector.broadcast %cst_141 : f32 to vector<8x128xf32>
    %473 = arith.addf %472, %471 : vector<8x128xf32>
    %474 = arith.divf %472, %473 : vector<8x128xf32>
    %475 = arith.mulf %466, %409 : vector<8x128xf32>
    %476 = arith.mulf %460, %468 : vector<8x128xf32>
    %477 = arith.addf %475, %476 : vector<8x128xf32>
    %478 = math.tanh %477 : vector<8x128xf32>
    %479 = arith.mulf %474, %478 : vector<8x128xf32>
    %c6_142 = arith.constant 6 : index
    %c0_143 = arith.constant 0 : index
    %c0_144 = arith.constant 0 : index
    %480 = vector.load %arg13[%c6_142, %c0_143, %c0_144] : memref<8x8x256xf32, #tpu.memory_space<vmem>>, vector<1x8x128xf32>
    %481 = vector.shape_cast %480 : vector<1x8x128xf32> to vector<8x128xf32>
    %482 = vector.shape_cast %454 : vector<8x128xf32> to vector<1x8x128xf32>
    tpu.vector_store %arg13[%c6_142, %c0_143, %c0_144], %482 {strides = array<i32>} : memref<8x8x256xf32, #tpu.memory_space<vmem>>, vector<1x8x128xf32>,
    %c1_145 = arith.constant 1 : index
    %c0_146 = arith.constant 0 : index
    %c128_147 = arith.constant 128 : index
    %483 = vector.load %arg13[%c1_145, %c0_146, %c128_147] : memref<8x8x256xf32, #tpu.memory_space<vmem>>, vector<1x8x128xf32>
    %484 = vector.shape_cast %483 : vector<1x8x128xf32> to vector<8x128xf32>
    %485 = vector.shape_cast %479 : vector<8x128xf32> to vector<1x8x128xf32>
    tpu.vector_store %arg13[%c1_145, %c0_146, %c128_147], %485 {strides = array<i32>} : memref<8x8x256xf32, #tpu.memory_space<vmem>>, vector<1x8x128xf32>,
    %486 = tpu.concatenate %454, %479 in 0 : vector<8x128xf32>, vector<8x128xf32> -> vector<16x128xf32>
    %487 = arith.truncf %486 : vector<16x128xf32> to vector<16x128xbf16>
    %c0_148 = arith.constant 0 : index
    %c0_149 = arith.constant 0 : index
    %488 = vector.load %arg2[%c0_148, %c0_149] : memref<128x1024xbf16, #tpu.memory_space<vmem>>, vector<128x1024xbf16>
    %cst_150 = arith.constant dense<0.000000e+00> : vector<16x1024xf32>
    %489 = tpu.matmul %487, %488, %cst_150 {dimension_numbers = #tpu.dot_dimension_numbers<[1], [0], [0], [1], [0, 0, 1, 1], [], []>} : vector<16x128xbf16>, vector<128x1024xbf16>, vector<16x1024xf32> -> vector<16x1024xf32>
    %c7_151 = arith.constant 7 : index
    %c0_152 = arith.constant 0 : index
    %c0_153 = arith.constant 0 : index
    %490 = vector.load %arg12[%c7_151, %c0_152, %c0_153] : memref<8x8x1024xf32, #tpu.memory_space<vmem>>, vector<1x8x512xf32>
    %491 = vector.shape_cast %490 : vector<1x8x512xf32> to vector<8x512xf32>
    %492 = vector.extract_strided_slice %489 {offsets = [0, 0], sizes = [8, 512], strides = [1, 1]} : vector<16x1024xf32> to vector<8x512xf32>
    %493 = arith.addf %491, %492 : vector<8x512xf32>
    %c0_154 = arith.constant 0 : index
    %c0_155 = arith.constant 0 : index
    %c512_156 = arith.constant 512 : index
    %494 = vector.load %arg12[%c0_154, %c0_155, %c512_156] : memref<8x8x1024xf32, #tpu.memory_space<vmem>>, vector<1x8x512xf32>
    %495 = vector.shape_cast %494 : vector<1x8x512xf32> to vector<8x512xf32>
    %496 = vector.extract_strided_slice %489 {offsets = [8, 512], sizes = [8, 512], strides = [1, 1]} : vector<16x1024xf32> to vector<8x512xf32>
    %497 = arith.addf %495, %496 : vector<8x512xf32>
    %498 = vector.extract_strided_slice %493 {offsets = [0, 0], sizes = [8, 128], strides = [1, 1]} : vector<8x512xf32> to vector<8x128xf32>
    %499 = arith.negf %498 : vector<8x128xf32>
    %500 = math.exp %499 : vector<8x128xf32>
    %cst_157 = arith.constant 1.000000e+00 : f32
    %501 = vector.broadcast %cst_157 : f32 to vector<8x128xf32>
    %502 = arith.addf %501, %500 : vector<8x128xf32>
    %503 = arith.divf %501, %502 : vector<8x128xf32>
    %504 = vector.extract_strided_slice %493 {offsets = [0, 128], sizes = [8, 128], strides = [1, 1]} : vector<8x512xf32> to vector<8x128xf32>
    %505 = arith.negf %504 : vector<8x128xf32>
    %506 = math.exp %505 : vector<8x128xf32>
    %cst_158 = arith.constant 1.000000e+00 : f32
    %507 = vector.broadcast %cst_158 : f32 to vector<8x128xf32>
    %508 = arith.addf %507, %506 : vector<8x128xf32>
    %509 = arith.divf %507, %508 : vector<8x128xf32>
    %510 = vector.extract_strided_slice %493 {offsets = [0, 256], sizes = [8, 128], strides = [1, 1]} : vector<8x512xf32> to vector<8x128xf32>
    %511 = math.tanh %510 : vector<8x128xf32>
    %512 = vector.extract_strided_slice %493 {offsets = [0, 384], sizes = [8, 128], strides = [1, 1]} : vector<8x512xf32> to vector<8x128xf32>
    %513 = arith.negf %512 : vector<8x128xf32>
    %514 = math.exp %513 : vector<8x128xf32>
    %cst_159 = arith.constant 1.000000e+00 : f32
    %515 = vector.broadcast %cst_159 : f32 to vector<8x128xf32>
    %516 = arith.addf %515, %514 : vector<8x128xf32>
    %517 = arith.divf %515, %516 : vector<8x128xf32>
    %518 = arith.mulf %509, %452 : vector<8x128xf32>
    %519 = arith.mulf %503, %511 : vector<8x128xf32>
    %520 = arith.addf %518, %519 : vector<8x128xf32>
    %521 = math.tanh %520 : vector<8x128xf32>
    %522 = arith.mulf %517, %521 : vector<8x128xf32>
    %523 = vector.extract_strided_slice %497 {offsets = [0, 0], sizes = [8, 128], strides = [1, 1]} : vector<8x512xf32> to vector<8x128xf32>
    %524 = arith.negf %523 : vector<8x128xf32>
    %525 = math.exp %524 : vector<8x128xf32>
    %cst_160 = arith.constant 1.000000e+00 : f32
    %526 = vector.broadcast %cst_160 : f32 to vector<8x128xf32>
    %527 = arith.addf %526, %525 : vector<8x128xf32>
    %528 = arith.divf %526, %527 : vector<8x128xf32>
    %529 = vector.extract_strided_slice %497 {offsets = [0, 128], sizes = [8, 128], strides = [1, 1]} : vector<8x512xf32> to vector<8x128xf32>
    %530 = arith.negf %529 : vector<8x128xf32>
    %531 = math.exp %530 : vector<8x128xf32>
    %cst_161 = arith.constant 1.000000e+00 : f32
    %532 = vector.broadcast %cst_161 : f32 to vector<8x128xf32>
    %533 = arith.addf %532, %531 : vector<8x128xf32>
    %534 = arith.divf %532, %533 : vector<8x128xf32>
    %535 = vector.extract_strided_slice %497 {offsets = [0, 256], sizes = [8, 128], strides = [1, 1]} : vector<8x512xf32> to vector<8x128xf32>
    %536 = math.tanh %535 : vector<8x128xf32>
    %537 = vector.extract_strided_slice %497 {offsets = [0, 384], sizes = [8, 128], strides = [1, 1]} : vector<8x512xf32> to vector<8x128xf32>
    %538 = arith.negf %537 : vector<8x128xf32>
    %539 = math.exp %538 : vector<8x128xf32>
    %cst_162 = arith.constant 1.000000e+00 : f32
    %540 = vector.broadcast %cst_162 : f32 to vector<8x128xf32>
    %541 = arith.addf %540, %539 : vector<8x128xf32>
    %542 = arith.divf %540, %541 : vector<8x128xf32>
    %543 = arith.mulf %534, %477 : vector<8x128xf32>
    %544 = arith.mulf %528, %536 : vector<8x128xf32>
    %545 = arith.addf %543, %544 : vector<8x128xf32>
    %546 = math.tanh %545 : vector<8x128xf32>
    %547 = arith.mulf %542, %546 : vector<8x128xf32>
    %c7_163 = arith.constant 7 : index
    %c0_164 = arith.constant 0 : index
    %c0_165 = arith.constant 0 : index
    %548 = vector.load %arg13[%c7_163, %c0_164, %c0_165] : memref<8x8x256xf32, #tpu.memory_space<vmem>>, vector<1x8x128xf32>
    %549 = vector.shape_cast %548 : vector<1x8x128xf32> to vector<8x128xf32>
    %550 = vector.shape_cast %522 : vector<8x128xf32> to vector<1x8x128xf32>
    tpu.vector_store %arg13[%c7_163, %c0_164, %c0_165], %550 {strides = array<i32>} : memref<8x8x256xf32, #tpu.memory_space<vmem>>, vector<1x8x128xf32>,
    %c0_166 = arith.constant 0 : index
    %c0_167 = arith.constant 0 : index
    %c128_168 = arith.constant 128 : index
    %551 = vector.load %arg13[%c0_166, %c0_167, %c128_168] : memref<8x8x256xf32, #tpu.memory_space<vmem>>, vector<1x8x128xf32>
    %552 = vector.shape_cast %551 : vector<1x8x128xf32> to vector<8x128xf32>
    %553 = vector.shape_cast %547 : vector<8x128xf32> to vector<1x8x128xf32>
    tpu.vector_store %arg13[%c0_166, %c0_167, %c128_168], %553 {strides = array<i32>} : memref<8x8x256xf32, #tpu.memory_space<vmem>>, vector<1x8x128xf32>,
    %c0_169 = arith.constant 0 : index
    %c0_170 = arith.constant 0 : index
    %c0_171 = arith.constant 0 : index
    %554 = vector.load %arg13[%c0_169, %c0_170, %c0_171] : memref<8x8x256xf32, #tpu.memory_space<vmem>>, vector<8x8x256xf32>
    %555 = vector.shape_cast %554 : vector<8x8x256xf32> to vector<64x256xf32>
    %556 = arith.truncf %555 : vector<64x256xf32> to vector<64x256xbf16>
    %c0_172 = arith.constant 0 : index
    %c0_173 = arith.constant 0 : index
    %557 = vector.load %arg4[%c0_172, %c0_173] : memref<256x512xbf16, #tpu.memory_space<vmem>>, vector<256x512xbf16>
    %cst_174 = arith.constant dense<0.000000e+00> : vector<64x512xf32>
    %558 = tpu.matmul %556, %557, %cst_174 {dimension_numbers = #tpu.dot_dimension_numbers<[1], [0], [0], [1], [0, 0, 1, 1], [], []>} : vector<64x256xbf16>, vector<256x512xbf16>, vector<64x512xf32> -> vector<64x512xf32>
    %c0_175 = arith.constant 0 : index
    %c0_176 = arith.constant 0 : index
    %559 = vector.load %arg7[%c0_175, %c0_176] : memref<1x512xf32, #tpu.memory_space<vmem>>, vector<1x512xf32>
    %560 = vector.broadcast %559 : vector<1x512xf32> to vector<64x512xf32>
    %561 = arith.addf %558, %560 : vector<64x512xf32>
    %562 = vector.shape_cast %561 : vector<64x512xf32> to vector<8x8x512xf32>
    %c0_177 = arith.constant 0 : index
    %c0_178 = arith.constant 0 : index
    %c0_179 = arith.constant 0 : index
    %563 = vector.load %arg12[%c0_177, %c0_178, %c0_179] : memref<8x8x1024xf32, #tpu.memory_space<vmem>>, vector<8x8x512xf32>
    tpu.vector_store %arg12[%c0_177, %c0_178, %c0_179], %562 {strides = array<i32>} : memref<8x8x1024xf32, #tpu.memory_space<vmem>>, vector<8x8x512xf32>,
    %c0_180 = arith.constant 0 : index
    %c0_181 = arith.constant 0 : index
    %c0_182 = arith.constant 0 : index
    %564 = vector.load %arg12[%c0_180, %c0_181, %c0_182] : memref<8x8x1024xf32, #tpu.memory_space<vmem>>, vector<1x8x512xf32>
    %565 = vector.shape_cast %564 : vector<1x8x512xf32> to vector<8x512xf32>
    %566 = arith.truncf %9 : vector<8x128xf32> to vector<8x128xbf16>
    %c0_183 = arith.constant 0 : index
    %c0_184 = arith.constant 0 : index
    %567 = vector.load %arg6[%c0_183, %c0_184] : memref<128x512xbf16, #tpu.memory_space<vmem>>, vector<128x512xbf16>
    %cst_185 = arith.constant dense<0.000000e+00> : vector<8x512xf32>
    %568 = tpu.matmul %566, %567, %cst_185 {dimension_numbers = #tpu.dot_dimension_numbers<[1], [0], [0], [1], [0, 0, 1, 1], [], []>} : vector<8x128xbf16>, vector<128x512xbf16>, vector<8x512xf32> -> vector<8x512xf32>
    %569 = arith.addf %565, %568 : vector<8x512xf32>
    %570 = vector.extract_strided_slice %569 {offsets = [0, 0], sizes = [8, 128], strides = [1, 1]} : vector<8x512xf32> to vector<8x128xf32>
    %571 = arith.negf %570 : vector<8x128xf32>
    %572 = math.exp %571 : vector<8x128xf32>
    %cst_186 = arith.constant 1.000000e+00 : f32
    %573 = vector.broadcast %cst_186 : f32 to vector<8x128xf32>
    %574 = arith.addf %573, %572 : vector<8x128xf32>
    %575 = arith.divf %573, %574 : vector<8x128xf32>
    %576 = vector.extract_strided_slice %569 {offsets = [0, 128], sizes = [8, 128], strides = [1, 1]} : vector<8x512xf32> to vector<8x128xf32>
    %577 = arith.negf %576 : vector<8x128xf32>
    %578 = math.exp %577 : vector<8x128xf32>
    %cst_187 = arith.constant 1.000000e+00 : f32
    %579 = vector.broadcast %cst_187 : f32 to vector<8x128xf32>
    %580 = arith.addf %579, %578 : vector<8x128xf32>
    %581 = arith.divf %579, %580 : vector<8x128xf32>
    %582 = vector.extract_strided_slice %569 {offsets = [0, 256], sizes = [8, 128], strides = [1, 1]} : vector<8x512xf32> to vector<8x128xf32>
    %583 = math.tanh %582 : vector<8x128xf32>
    %584 = vector.extract_strided_slice %569 {offsets = [0, 384], sizes = [8, 128], strides = [1, 1]} : vector<8x512xf32> to vector<8x128xf32>
    %585 = arith.negf %584 : vector<8x128xf32>
    %586 = math.exp %585 : vector<8x128xf32>
    %cst_188 = arith.constant 1.000000e+00 : f32
    %587 = vector.broadcast %cst_188 : f32 to vector<8x128xf32>
    %588 = arith.addf %587, %586 : vector<8x128xf32>
    %589 = arith.divf %587, %588 : vector<8x128xf32>
    %590 = arith.mulf %581, %9 : vector<8x128xf32>
    %591 = arith.mulf %575, %583 : vector<8x128xf32>
    %592 = arith.addf %590, %591 : vector<8x128xf32>
    %593 = math.tanh %592 : vector<8x128xf32>
    %594 = arith.mulf %589, %593 : vector<8x128xf32>
    %c1_189 = arith.constant 1 : index
    %c0_190 = arith.constant 0 : index
    %c0_191 = arith.constant 0 : index
    %595 = vector.load %arg12[%c1_189, %c0_190, %c0_191] : memref<8x8x1024xf32, #tpu.memory_space<vmem>>, vector<1x8x512xf32>
    %596 = vector.shape_cast %595 : vector<1x8x512xf32> to vector<8x512xf32>
    %597 = arith.truncf %594 : vector<8x128xf32> to vector<8x128xbf16>
    %c0_192 = arith.constant 0 : index
    %c0_193 = arith.constant 0 : index
    %598 = vector.load %arg6[%c0_192, %c0_193] : memref<128x512xbf16, #tpu.memory_space<vmem>>, vector<128x512xbf16>
    %cst_194 = arith.constant dense<0.000000e+00> : vector<8x512xf32>
    %599 = tpu.matmul %597, %598, %cst_194 {dimension_numbers = #tpu.dot_dimension_numbers<[1], [0], [0], [1], [0, 0, 1, 1], [], []>} : vector<8x128xbf16>, vector<128x512xbf16>, vector<8x512xf32> -> vector<8x512xf32>
    %600 = arith.addf %596, %599 : vector<8x512xf32>
    %601 = vector.extract_strided_slice %600 {offsets = [0, 0], sizes = [8, 128], strides = [1, 1]} : vector<8x512xf32> to vector<8x128xf32>
    %602 = arith.negf %601 : vector<8x128xf32>
    %603 = math.exp %602 : vector<8x128xf32>
    %cst_195 = arith.constant 1.000000e+00 : f32
    %604 = vector.broadcast %cst_195 : f32 to vector<8x128xf32>
    %605 = arith.addf %604, %603 : vector<8x128xf32>
    %606 = arith.divf %604, %605 : vector<8x128xf32>
    %607 = vector.extract_strided_slice %600 {offsets = [0, 128], sizes = [8, 128], strides = [1, 1]} : vector<8x512xf32> to vector<8x128xf32>
    %608 = arith.negf %607 : vector<8x128xf32>
    %609 = math.exp %608 : vector<8x128xf32>
    %cst_196 = arith.constant 1.000000e+00 : f32
    %610 = vector.broadcast %cst_196 : f32 to vector<8x128xf32>
    %611 = arith.addf %610, %609 : vector<8x128xf32>
    %612 = arith.divf %610, %611 : vector<8x128xf32>
    %613 = vector.extract_strided_slice %600 {offsets = [0, 256], sizes = [8, 128], strides = [1, 1]} : vector<8x512xf32> to vector<8x128xf32>
    %614 = math.tanh %613 : vector<8x128xf32>
    %615 = vector.extract_strided_slice %600 {offsets = [0, 384], sizes = [8, 128], strides = [1, 1]} : vector<8x512xf32> to vector<8x128xf32>
    %616 = arith.negf %615 : vector<8x128xf32>
    %617 = math.exp %616 : vector<8x128xf32>
    %cst_197 = arith.constant 1.000000e+00 : f32
    %618 = vector.broadcast %cst_197 : f32 to vector<8x128xf32>
    %619 = arith.addf %618, %617 : vector<8x128xf32>
    %620 = arith.divf %618, %619 : vector<8x128xf32>
    %621 = arith.mulf %612, %592 : vector<8x128xf32>
    %622 = arith.mulf %606, %614 : vector<8x128xf32>
    %623 = arith.addf %621, %622 : vector<8x128xf32>
    %624 = math.tanh %623 : vector<8x128xf32>
    %625 = arith.mulf %620, %624 : vector<8x128xf32>
    %c2_198 = arith.constant 2 : index
    %c0_199 = arith.constant 0 : index
    %c0_200 = arith.constant 0 : index
    %626 = vector.load %arg12[%c2_198, %c0_199, %c0_200] : memref<8x8x1024xf32, #tpu.memory_space<vmem>>, vector<1x8x512xf32>
    %627 = vector.shape_cast %626 : vector<1x8x512xf32> to vector<8x512xf32>
    %628 = arith.truncf %625 : vector<8x128xf32> to vector<8x128xbf16>
    %c0_201 = arith.constant 0 : index
    %c0_202 = arith.constant 0 : index
    %629 = vector.load %arg6[%c0_201, %c0_202] : memref<128x512xbf16, #tpu.memory_space<vmem>>, vector<128x512xbf16>
    %cst_203 = arith.constant dense<0.000000e+00> : vector<8x512xf32>
    %630 = tpu.matmul %628, %629, %cst_203 {dimension_numbers = #tpu.dot_dimension_numbers<[1], [0], [0], [1], [0, 0, 1, 1], [], []>} : vector<8x128xbf16>, vector<128x512xbf16>, vector<8x512xf32> -> vector<8x512xf32>
    %631 = arith.addf %627, %630 : vector<8x512xf32>
    %632 = vector.extract_strided_slice %631 {offsets = [0, 0], sizes = [8, 128], strides = [1, 1]} : vector<8x512xf32> to vector<8x128xf32>
    %633 = arith.negf %632 : vector<8x128xf32>
    %634 = math.exp %633 : vector<8x128xf32>
    %cst_204 = arith.constant 1.000000e+00 : f32
    %635 = vector.broadcast %cst_204 : f32 to vector<8x128xf32>
    %636 = arith.addf %635, %634 : vector<8x128xf32>
    %637 = arith.divf %635, %636 : vector<8x128xf32>
    %638 = vector.extract_strided_slice %631 {offsets = [0, 128], sizes = [8, 128], strides = [1, 1]} : vector<8x512xf32> to vector<8x128xf32>
    %639 = arith.negf %638 : vector<8x128xf32>
    %640 = math.exp %639 : vector<8x128xf32>
    %cst_205 = arith.constant 1.000000e+00 : f32
    %641 = vector.broadcast %cst_205 : f32 to vector<8x128xf32>
    %642 = arith.addf %641, %640 : vector<8x128xf32>
    %643 = arith.divf %641, %642 : vector<8x128xf32>
    %644 = vector.extract_strided_slice %631 {offsets = [0, 256], sizes = [8, 128], strides = [1, 1]} : vector<8x512xf32> to vector<8x128xf32>
    %645 = math.tanh %644 : vector<8x128xf32>
    %646 = vector.extract_strided_slice %631 {offsets = [0, 384], sizes = [8, 128], strides = [1, 1]} : vector<8x512xf32> to vector<8x128xf32>
    %647 = arith.negf %646 : vector<8x128xf32>
    %648 = math.exp %647 : vector<8x128xf32>
    %cst_206 = arith.constant 1.000000e+00 : f32
    %649 = vector.broadcast %cst_206 : f32 to vector<8x128xf32>
    %650 = arith.addf %649, %648 : vector<8x128xf32>
    %651 = arith.divf %649, %650 : vector<8x128xf32>
    %652 = arith.mulf %643, %623 : vector<8x128xf32>
    %653 = arith.mulf %637, %645 : vector<8x128xf32>
    %654 = arith.addf %652, %653 : vector<8x128xf32>
    %655 = math.tanh %654 : vector<8x128xf32>
    %656 = arith.mulf %651, %655 : vector<8x128xf32>
    %c3_207 = arith.constant 3 : index
    %c0_208 = arith.constant 0 : index
    %c0_209 = arith.constant 0 : index
    %657 = vector.load %arg12[%c3_207, %c0_208, %c0_209] : memref<8x8x1024xf32, #tpu.memory_space<vmem>>, vector<1x8x512xf32>
    %658 = vector.shape_cast %657 : vector<1x8x512xf32> to vector<8x512xf32>
    %659 = arith.truncf %656 : vector<8x128xf32> to vector<8x128xbf16>
    %c0_210 = arith.constant 0 : index
    %c0_211 = arith.constant 0 : index
    %660 = vector.load %arg6[%c0_210, %c0_211] : memref<128x512xbf16, #tpu.memory_space<vmem>>, vector<128x512xbf16>
    %cst_212 = arith.constant dense<0.000000e+00> : vector<8x512xf32>
    %661 = tpu.matmul %659, %660, %cst_212 {dimension_numbers = #tpu.dot_dimension_numbers<[1], [0], [0], [1], [0, 0, 1, 1], [], []>} : vector<8x128xbf16>, vector<128x512xbf16>, vector<8x512xf32> -> vector<8x512xf32>
    %662 = arith.addf %658, %661 : vector<8x512xf32>
    %663 = vector.extract_strided_slice %662 {offsets = [0, 0], sizes = [8, 128], strides = [1, 1]} : vector<8x512xf32> to vector<8x128xf32>
    %664 = arith.negf %663 : vector<8x128xf32>
    %665 = math.exp %664 : vector<8x128xf32>
    %cst_213 = arith.constant 1.000000e+00 : f32
    %666 = vector.broadcast %cst_213 : f32 to vector<8x128xf32>
    %667 = arith.addf %666, %665 : vector<8x128xf32>
    %668 = arith.divf %666, %667 : vector<8x128xf32>
    %669 = vector.extract_strided_slice %662 {offsets = [0, 128], sizes = [8, 128], strides = [1, 1]} : vector<8x512xf32> to vector<8x128xf32>
    %670 = arith.negf %669 : vector<8x128xf32>
    %671 = math.exp %670 : vector<8x128xf32>
    %cst_214 = arith.constant 1.000000e+00 : f32
    %672 = vector.broadcast %cst_214 : f32 to vector<8x128xf32>
    %673 = arith.addf %672, %671 : vector<8x128xf32>
    %674 = arith.divf %672, %673 : vector<8x128xf32>
    %675 = vector.extract_strided_slice %662 {offsets = [0, 256], sizes = [8, 128], strides = [1, 1]} : vector<8x512xf32> to vector<8x128xf32>
    %676 = math.tanh %675 : vector<8x128xf32>
    %677 = vector.extract_strided_slice %662 {offsets = [0, 384], sizes = [8, 128], strides = [1, 1]} : vector<8x512xf32> to vector<8x128xf32>
    %678 = arith.negf %677 : vector<8x128xf32>
    %679 = math.exp %678 : vector<8x128xf32>
    %cst_215 = arith.constant 1.000000e+00 : f32
    %680 = vector.broadcast %cst_215 : f32 to vector<8x128xf32>
    %681 = arith.addf %680, %679 : vector<8x128xf32>
    %682 = arith.divf %680, %681 : vector<8x128xf32>
    %683 = arith.mulf %674, %654 : vector<8x128xf32>
    %684 = arith.mulf %668, %676 : vector<8x128xf32>
    %685 = arith.addf %683, %684 : vector<8x128xf32>
    %686 = math.tanh %685 : vector<8x128xf32>
    %687 = arith.mulf %682, %686 : vector<8x128xf32>
    %c4_216 = arith.constant 4 : index
    %c0_217 = arith.constant 0 : index
    %c0_218 = arith.constant 0 : index
    %688 = vector.load %arg12[%c4_216, %c0_217, %c0_218] : memref<8x8x1024xf32, #tpu.memory_space<vmem>>, vector<1x8x512xf32>
    %689 = vector.shape_cast %688 : vector<1x8x512xf32> to vector<8x512xf32>
    %690 = arith.truncf %687 : vector<8x128xf32> to vector<8x128xbf16>
    %c0_219 = arith.constant 0 : index
    %c0_220 = arith.constant 0 : index
    %691 = vector.load %arg6[%c0_219, %c0_220] : memref<128x512xbf16, #tpu.memory_space<vmem>>, vector<128x512xbf16>
    %cst_221 = arith.constant dense<0.000000e+00> : vector<8x512xf32>
    %692 = tpu.matmul %690, %691, %cst_221 {dimension_numbers = #tpu.dot_dimension_numbers<[1], [0], [0], [1], [0, 0, 1, 1], [], []>} : vector<8x128xbf16>, vector<128x512xbf16>, vector<8x512xf32> -> vector<8x512xf32>
    %693 = arith.addf %689, %692 : vector<8x512xf32>
    %694 = vector.extract_strided_slice %693 {offsets = [0, 0], sizes = [8, 128], strides = [1, 1]} : vector<8x512xf32> to vector<8x128xf32>
    %695 = arith.negf %694 : vector<8x128xf32>
    %696 = math.exp %695 : vector<8x128xf32>
    %cst_222 = arith.constant 1.000000e+00 : f32
    %697 = vector.broadcast %cst_222 : f32 to vector<8x128xf32>
    %698 = arith.addf %697, %696 : vector<8x128xf32>
    %699 = arith.divf %697, %698 : vector<8x128xf32>
    %700 = vector.extract_strided_slice %693 {offsets = [0, 128], sizes = [8, 128], strides = [1, 1]} : vector<8x512xf32> to vector<8x128xf32>
    %701 = arith.negf %700 : vector<8x128xf32>
    %702 = math.exp %701 : vector<8x128xf32>
    %cst_223 = arith.constant 1.000000e+00 : f32
    %703 = vector.broadcast %cst_223 : f32 to vector<8x128xf32>
    %704 = arith.addf %703, %702 : vector<8x128xf32>
    %705 = arith.divf %703, %704 : vector<8x128xf32>
    %706 = vector.extract_strided_slice %693 {offsets = [0, 256], sizes = [8, 128], strides = [1, 1]} : vector<8x512xf32> to vector<8x128xf32>
    %707 = math.tanh %706 : vector<8x128xf32>
    %708 = vector.extract_strided_slice %693 {offsets = [0, 384], sizes = [8, 128], strides = [1, 1]} : vector<8x512xf32> to vector<8x128xf32>
    %709 = arith.negf %708 : vector<8x128xf32>
    %710 = math.exp %709 : vector<8x128xf32>
    %cst_224 = arith.constant 1.000000e+00 : f32
    %711 = vector.broadcast %cst_224 : f32 to vector<8x128xf32>
    %712 = arith.addf %711, %710 : vector<8x128xf32>
    %713 = arith.divf %711, %712 : vector<8x128xf32>
    %714 = arith.mulf %705, %685 : vector<8x128xf32>
    %715 = arith.mulf %699, %707 : vector<8x128xf32>
    %716 = arith.addf %714, %715 : vector<8x128xf32>
    %717 = math.tanh %716 : vector<8x128xf32>
    %718 = arith.mulf %713, %717 : vector<8x128xf32>
    %c5_225 = arith.constant 5 : index
    %c0_226 = arith.constant 0 : index
    %c0_227 = arith.constant 0 : index
    %719 = vector.load %arg12[%c5_225, %c0_226, %c0_227] : memref<8x8x1024xf32, #tpu.memory_space<vmem>>, vector<1x8x512xf32>
    %720 = vector.shape_cast %719 : vector<1x8x512xf32> to vector<8x512xf32>
    %721 = arith.truncf %718 : vector<8x128xf32> to vector<8x128xbf16>
    %c0_228 = arith.constant 0 : index
    %c0_229 = arith.constant 0 : index
    %722 = vector.load %arg6[%c0_228, %c0_229] : memref<128x512xbf16, #tpu.memory_space<vmem>>, vector<128x512xbf16>
    %cst_230 = arith.constant dense<0.000000e+00> : vector<8x512xf32>
    %723 = tpu.matmul %721, %722, %cst_230 {dimension_numbers = #tpu.dot_dimension_numbers<[1], [0], [0], [1], [0, 0, 1, 1], [], []>} : vector<8x128xbf16>, vector<128x512xbf16>, vector<8x512xf32> -> vector<8x512xf32>
    %724 = arith.addf %720, %723 : vector<8x512xf32>
    %725 = vector.extract_strided_slice %724 {offsets = [0, 0], sizes = [8, 128], strides = [1, 1]} : vector<8x512xf32> to vector<8x128xf32>
    %726 = arith.negf %725 : vector<8x128xf32>
    %727 = math.exp %726 : vector<8x128xf32>
    %cst_231 = arith.constant 1.000000e+00 : f32
    %728 = vector.broadcast %cst_231 : f32 to vector<8x128xf32>
    %729 = arith.addf %728, %727 : vector<8x128xf32>
    %730 = arith.divf %728, %729 : vector<8x128xf32>
    %731 = vector.extract_strided_slice %724 {offsets = [0, 128], sizes = [8, 128], strides = [1, 1]} : vector<8x512xf32> to vector<8x128xf32>
    %732 = arith.negf %731 : vector<8x128xf32>
    %733 = math.exp %732 : vector<8x128xf32>
    %cst_232 = arith.constant 1.000000e+00 : f32
    %734 = vector.broadcast %cst_232 : f32 to vector<8x128xf32>
    %735 = arith.addf %734, %733 : vector<8x128xf32>
    %736 = arith.divf %734, %735 : vector<8x128xf32>
    %737 = vector.extract_strided_slice %724 {offsets = [0, 256], sizes = [8, 128], strides = [1, 1]} : vector<8x512xf32> to vector<8x128xf32>
    %738 = math.tanh %737 : vector<8x128xf32>
    %739 = vector.extract_strided_slice %724 {offsets = [0, 384], sizes = [8, 128], strides = [1, 1]} : vector<8x512xf32> to vector<8x128xf32>
    %740 = arith.negf %739 : vector<8x128xf32>
    %741 = math.exp %740 : vector<8x128xf32>
    %cst_233 = arith.constant 1.000000e+00 : f32
    %742 = vector.broadcast %cst_233 : f32 to vector<8x128xf32>
    %743 = arith.addf %742, %741 : vector<8x128xf32>
    %744 = arith.divf %742, %743 : vector<8x128xf32>
    %745 = arith.mulf %736, %716 : vector<8x128xf32>
    %746 = arith.mulf %730, %738 : vector<8x128xf32>
    %747 = arith.addf %745, %746 : vector<8x128xf32>
    %748 = math.tanh %747 : vector<8x128xf32>
    %749 = arith.mulf %744, %748 : vector<8x128xf32>
    %c6_234 = arith.constant 6 : index
    %c0_235 = arith.constant 0 : index
    %c0_236 = arith.constant 0 : index
    %750 = vector.load %arg12[%c6_234, %c0_235, %c0_236] : memref<8x8x1024xf32, #tpu.memory_space<vmem>>, vector<1x8x512xf32>
    %751 = vector.shape_cast %750 : vector<1x8x512xf32> to vector<8x512xf32>
    %752 = arith.truncf %749 : vector<8x128xf32> to vector<8x128xbf16>
    %c0_237 = arith.constant 0 : index
    %c0_238 = arith.constant 0 : index
    %753 = vector.load %arg6[%c0_237, %c0_238] : memref<128x512xbf16, #tpu.memory_space<vmem>>, vector<128x512xbf16>
    %cst_239 = arith.constant dense<0.000000e+00> : vector<8x512xf32>
    %754 = tpu.matmul %752, %753, %cst_239 {dimension_numbers = #tpu.dot_dimension_numbers<[1], [0], [0], [1], [0, 0, 1, 1], [], []>} : vector<8x128xbf16>, vector<128x512xbf16>, vector<8x512xf32> -> vector<8x512xf32>
    %755 = arith.addf %751, %754 : vector<8x512xf32>
    %756 = vector.extract_strided_slice %755 {offsets = [0, 0], sizes = [8, 128], strides = [1, 1]} : vector<8x512xf32> to vector<8x128xf32>
    %757 = arith.negf %756 : vector<8x128xf32>
    %758 = math.exp %757 : vector<8x128xf32>
    %cst_240 = arith.constant 1.000000e+00 : f32
    %759 = vector.broadcast %cst_240 : f32 to vector<8x128xf32>
    %760 = arith.addf %759, %758 : vector<8x128xf32>
    %761 = arith.divf %759, %760 : vector<8x128xf32>
    %762 = vector.extract_strided_slice %755 {offsets = [0, 128], sizes = [8, 128], strides = [1, 1]} : vector<8x512xf32> to vector<8x128xf32>
    %763 = arith.negf %762 : vector<8x128xf32>
    %764 = math.exp %763 : vector<8x128xf32>
    %cst_241 = arith.constant 1.000000e+00 : f32
    %765 = vector.broadcast %cst_241 : f32 to vector<8x128xf32>
    %766 = arith.addf %765, %764 : vector<8x128xf32>
    %767 = arith.divf %765, %766 : vector<8x128xf32>
    %768 = vector.extract_strided_slice %755 {offsets = [0, 256], sizes = [8, 128], strides = [1, 1]} : vector<8x512xf32> to vector<8x128xf32>
    %769 = math.tanh %768 : vector<8x128xf32>
    %770 = vector.extract_strided_slice %755 {offsets = [0, 384], sizes = [8, 128], strides = [1, 1]} : vector<8x512xf32> to vector<8x128xf32>
    %771 = arith.negf %770 : vector<8x128xf32>
    %772 = math.exp %771 : vector<8x128xf32>
    %cst_242 = arith.constant 1.000000e+00 : f32
    %773 = vector.broadcast %cst_242 : f32 to vector<8x128xf32>
    %774 = arith.addf %773, %772 : vector<8x128xf32>
    %775 = arith.divf %773, %774 : vector<8x128xf32>
    %776 = arith.mulf %767, %747 : vector<8x128xf32>
    %777 = arith.mulf %761, %769 : vector<8x128xf32>
    %778 = arith.addf %776, %777 : vector<8x128xf32>
    %779 = math.tanh %778 : vector<8x128xf32>
    %780 = arith.mulf %775, %779 : vector<8x128xf32>
    %c7_243 = arith.constant 7 : index
    %c0_244 = arith.constant 0 : index
    %c0_245 = arith.constant 0 : index
    %781 = vector.load %arg12[%c7_243, %c0_244, %c0_245] : memref<8x8x1024xf32, #tpu.memory_space<vmem>>, vector<1x8x512xf32>
    %782 = vector.shape_cast %781 : vector<1x8x512xf32> to vector<8x512xf32>
    %783 = arith.truncf %780 : vector<8x128xf32> to vector<8x128xbf16>
    %c0_246 = arith.constant 0 : index
    %c0_247 = arith.constant 0 : index
    %784 = vector.load %arg6[%c0_246, %c0_247] : memref<128x512xbf16, #tpu.memory_space<vmem>>, vector<128x512xbf16>
    %cst_248 = arith.constant dense<0.000000e+00> : vector<8x512xf32>
    %785 = tpu.matmul %783, %784, %cst_248 {dimension_numbers = #tpu.dot_dimension_numbers<[1], [0], [0], [1], [0, 0, 1, 1], [], []>} : vector<8x128xbf16>, vector<128x512xbf16>, vector<8x512xf32> -> vector<8x512xf32>
    %786 = arith.addf %782, %785 : vector<8x512xf32>
    %787 = vector.extract_strided_slice %786 {offsets = [0, 0], sizes = [8, 128], strides = [1, 1]} : vector<8x512xf32> to vector<8x128xf32>
    %788 = arith.negf %787 : vector<8x128xf32>
    %789 = math.exp %788 : vector<8x128xf32>
    %cst_249 = arith.constant 1.000000e+00 : f32
    %790 = vector.broadcast %cst_249 : f32 to vector<8x128xf32>
    %791 = arith.addf %790, %789 : vector<8x128xf32>
    %792 = arith.divf %790, %791 : vector<8x128xf32>
    %793 = vector.extract_strided_slice %786 {offsets = [0, 128], sizes = [8, 128], strides = [1, 1]} : vector<8x512xf32> to vector<8x128xf32>
    %794 = arith.negf %793 : vector<8x128xf32>
    %795 = math.exp %794 : vector<8x128xf32>
    %cst_250 = arith.constant 1.000000e+00 : f32
    %796 = vector.broadcast %cst_250 : f32 to vector<8x128xf32>
    %797 = arith.addf %796, %795 : vector<8x128xf32>
    %798 = arith.divf %796, %797 : vector<8x128xf32>
    %799 = vector.extract_strided_slice %786 {offsets = [0, 256], sizes = [8, 128], strides = [1, 1]} : vector<8x512xf32> to vector<8x128xf32>
    %800 = math.tanh %799 : vector<8x128xf32>
    %801 = vector.extract_strided_slice %786 {offsets = [0, 384], sizes = [8, 128], strides = [1, 1]} : vector<8x512xf32> to vector<8x128xf32>
    %802 = arith.negf %801 : vector<8x128xf32>
    %803 = math.exp %802 : vector<8x128xf32>
    %cst_251 = arith.constant 1.000000e+00 : f32
    %804 = vector.broadcast %cst_251 : f32 to vector<8x128xf32>
    %805 = arith.addf %804, %803 : vector<8x128xf32>
    %806 = arith.divf %804, %805 : vector<8x128xf32>
    %807 = arith.mulf %798, %778 : vector<8x128xf32>
    %808 = arith.mulf %792, %800 : vector<8x128xf32>
    %809 = arith.addf %807, %808 : vector<8x128xf32>
    %810 = math.tanh %809 : vector<8x128xf32>
    %811 = arith.mulf %806, %810 : vector<8x128xf32>
    %c7_252 = arith.constant 7 : index
    %c0_253 = arith.constant 0 : index
    %c0_254 = arith.constant 0 : index
    %812 = vector.load %arg13[%c7_252, %c0_253, %c0_254] : memref<8x8x256xf32, #tpu.memory_space<vmem>>, vector<1x8x256xf32>
    %813 = vector.shape_cast %812 : vector<1x8x256xf32> to vector<8x256xf32>
    %814 = arith.truncf %813 : vector<8x256xf32> to vector<8x256xbf16>
    %c0_255 = arith.constant 0 : index
    %c0_256 = arith.constant 0 : index
    %815 = vector.load %arg5[%c0_255, %c0_256] : memref<256x512xbf16, #tpu.memory_space<vmem>>, vector<256x512xbf16>
    %cst_257 = arith.constant dense<0.000000e+00> : vector<8x512xf32>
    %816 = tpu.matmul %814, %815, %cst_257 {dimension_numbers = #tpu.dot_dimension_numbers<[1], [0], [0], [1], [0, 0, 1, 1], [], []>} : vector<8x256xbf16>, vector<256x512xbf16>, vector<8x512xf32> -> vector<8x512xf32>
    %c0_258 = arith.constant 0 : index
    %c0_259 = arith.constant 0 : index
    %817 = vector.load %arg8[%c0_258, %c0_259] : memref<1x512xf32, #tpu.memory_space<vmem>>, vector<1x512xf32>
    %818 = vector.broadcast %817 : vector<1x512xf32> to vector<8x512xf32>
    %819 = arith.addf %816, %818 : vector<8x512xf32>
    %820 = vector.extract_strided_slice %819 {offsets = [0, 0], sizes = [8, 128], strides = [1, 1]} : vector<8x512xf32> to vector<8x128xf32>
    %821 = arith.negf %820 : vector<8x128xf32>
    %822 = math.exp %821 : vector<8x128xf32>
    %cst_260 = arith.constant 1.000000e+00 : f32
    %823 = vector.broadcast %cst_260 : f32 to vector<8x128xf32>
    %824 = arith.addf %823, %822 : vector<8x128xf32>
    %825 = arith.divf %823, %824 : vector<8x128xf32>
    %826 = vector.extract_strided_slice %819 {offsets = [0, 128], sizes = [8, 128], strides = [1, 1]} : vector<8x512xf32> to vector<8x128xf32>
    %827 = arith.negf %826 : vector<8x128xf32>
    %828 = math.exp %827 : vector<8x128xf32>
    %cst_261 = arith.constant 1.000000e+00 : f32
    %829 = vector.broadcast %cst_261 : f32 to vector<8x128xf32>
    %830 = arith.addf %829, %828 : vector<8x128xf32>
    %831 = arith.divf %829, %830 : vector<8x128xf32>
    %832 = vector.extract_strided_slice %819 {offsets = [0, 256], sizes = [8, 128], strides = [1, 1]} : vector<8x512xf32> to vector<8x128xf32>
    %833 = math.tanh %832 : vector<8x128xf32>
    %834 = vector.extract_strided_slice %819 {offsets = [0, 384], sizes = [8, 128], strides = [1, 1]} : vector<8x512xf32> to vector<8x128xf32>
    %835 = arith.negf %834 : vector<8x128xf32>
    %836 = math.exp %835 : vector<8x128xf32>
    %cst_262 = arith.constant 1.000000e+00 : f32
    %837 = vector.broadcast %cst_262 : f32 to vector<8x128xf32>
    %838 = arith.addf %837, %836 : vector<8x128xf32>
    %839 = arith.divf %837, %838 : vector<8x128xf32>
    %840 = arith.mulf %831, %9 : vector<8x128xf32>
    %841 = arith.mulf %825, %833 : vector<8x128xf32>
    %842 = arith.addf %840, %841 : vector<8x128xf32>
    %843 = math.tanh %842 : vector<8x128xf32>
    %844 = arith.mulf %839, %843 : vector<8x128xf32>
    %845 = tpu.concatenate %811, %844 in 1 : vector<8x128xf32>, vector<8x128xf32> -> vector<8x256xf32>
    %846 = arith.truncf %845 : vector<8x256xf32> to vector<8x256xbf16>
    %c0_263 = arith.constant 0 : index
    %c0_264 = arith.constant 0 : index
    %847 = vector.load %arg9[%c0_263, %c0_264] : memref<256x2xbf16, #tpu.memory_space<vmem>>, vector<256x2xbf16>
    %cst_265 = arith.constant dense<0.000000e+00> : vector<8x2xf32>
    %848 = tpu.matmul %846, %847, %cst_265 {dimension_numbers = #tpu.dot_dimension_numbers<[1], [0], [0], [1], [0, 0, 1, 1], [], []>} : vector<8x256xbf16>, vector<256x2xbf16>, vector<8x2xf32> -> vector<8x2xf32>
    %c0_266 = arith.constant 0 : index
    %c0_267 = arith.constant 0 : index
    %849 = vector.load %arg10[%c0_266, %c0_267] : memref<1x2xf32, #tpu.memory_space<vmem>>, vector<1x2xf32>
    %850 = vector.broadcast %849 : vector<1x2xf32> to vector<8x2xf32>
    %851 = arith.addf %848, %850 : vector<8x2xf32>
    %cst_268 = arith.constant dense<0xFF800000> : vector<8xf32>
    %852 = vector.multi_reduction <maximumf>, %851, %cst_268 [1] : vector<8x2xf32> to vector<8xf32>
    %853 = vector.shape_cast %852 : vector<8xf32> to vector<8x1xf32>
    %854 = vector.broadcast %853 : vector<8x1xf32> to vector<8x2xf32>
    %855 = arith.subf %851, %854 : vector<8x2xf32>
    %856 = math.exp %855 : vector<8x2xf32>
    %cst_269 = arith.constant dense<0.000000e+00> : vector<8xf32>
    %857 = vector.multi_reduction <add>, %856, %cst_269 [1] : vector<8x2xf32> to vector<8xf32>
    %858 = vector.shape_cast %857 : vector<8xf32> to vector<8x1xf32>
    %859 = math.log %858 : vector<8x1xf32>
    %860 = vector.broadcast %859 : vector<8x1xf32> to vector<8x2xf32>
    %861 = arith.subf %855, %860 : vector<8x2xf32>
    %c0_270 = arith.constant 0 : index
    %c0_271 = arith.constant 0 : index
    %862 = vector.load %arg11[%c0_270, %c0_271] : memref<8x2xf32, #tpu.memory_space<vmem>>, vector<8x2xf32>
    tpu.vector_store %arg11[%c0_270, %c0_271], %861 {strides = array<i32>} : memref<8x2xf32, #tpu.memory_space<vmem>>, vector<8x2xf32>,
    return
  }
}

</mosaic_0001>

<bundles_post_ra>
// kernel: textrnn_forward.1
= control target key start
LH: loop header
LB: loop body
LE: loop exit
PB: predicated region body
PF: predicated region fallthrough
CT: control target
= control target key end

     0   :  { %v15024_v3 = vmov 0   ;;  %vm1074_vm0 = vcmask 1045504   ;;  %vm1061_vm1 = vcmask 359424   ;;  %vm9093_vm2 = vcmask 15360   ;;  %s15012_s1 = inlined_call_operand.vmem [shape: bf16[300,1024], index: 1, kind: input, shape index: {}]   ;;  %s15013_s0 = inlined_call_operand.vmem [shape: bf16[8,8,300], index: 0, kind: input, shape index: {}]   ;;  %s15014_s2 = inlined_call_operand.vmem [shape: bf16[128,1024], index: 2, kind: input, shape index: {}]   ;;  %s15015_s3 = inlined_call_operand.vmem [shape: f32[1,1024], index: 3, kind: input, shape index: {}]   ;;  %s15016_s4 = inlined_call_operand.vmem [shape: bf16[256,512], index: 4, kind: input, shape index: {}]   ;;  %s15017_s6 = inlined_call_operand.vmem [shape: bf16[128,512], index: 6, kind: input, shape index: {}]   ;;  %s15018_s7 = inlined_call_operand.vmem [shape: f32[1,512], index: 7, kind: input, shape index: {}]   ;;  %s15019_s5 = inlined_call_operand.vmem [shape: bf16[256,512], index: 5, kind: input, shape index: {}]   ;;  %s15020_s9 = inlined_call_operand.vmem [shape: bf16[256,2], index: 9, kind: input, shape index: {}]   ;;  %s15021_s8 = inlined_call_operand.vmem [shape: f32[1,512], index: 8, kind: input, shape index: {}]   ;;  %s15022_s10 = inlined_call_operand.vmem [shape: f32[1,2], index: 10, kind: input, shape index: {}]   ;;  %s15023_s11 = inlined_call_operand.vmem [shape: f32[8,2], index: 11, kind: output, shape index: {}]  }
   0x1   :  { %v55_v0 = vld [vmem:[%s15012_s1] sm:$0xff]  ;;  %1204 = vmatprep.mubr.bf16.mxu1 %v15024_v3  ;;  %v56_v26 = vld [vmem:[%s15012_s1 + $0x8] sm:$0xff] }
   0x2   :  { %v59_v1 = vld [vmem:[%s15012_s1 + $0x20] sm:$0xff]  ;;  %v60_v27 = vld [vmem:[%s15012_s1 + $0x28] sm:$0xff] }
   0x3   :  { %v183_v2 = vld [vmem:[%s15012_s1 + $0x400] sm:$0xff]  ;;  %v9124_v4 = vcombine.high %v55_v0, %v59_v1  ;;  %v9123_v6 = vcombine.low %v55_v0, %v59_v1  ;;  %v9126_v31 = vcombine.high %v56_v26, %v60_v27  ;;  %v64_v34 = vld [vmem:[%s15012_s1 + $0x48] sm:$0xff]  ;;  %v9125_v38 = vcombine.low %v56_v26, %v60_v27  ;;  %v11153_v26 = vld [vmem:[%s15013_s0 + $0x50] ss:$12 sps:$4 sm:$0xff]  }
   0x4   :  { %v187_v5 = vld [vmem:[%s15012_s1 + $0x420] sm:$0xff]  ;;  %v68_v35 = vld [vmem:[%s15012_s1 + $0x68] sm:$0xff] }
   0x5   :  { %v63_v7 = vld [vmem:[%s15012_s1 + $0x40] sm:$0xff]  ;;  %v9252_v9 = vcombine.high %v183_v2, %v187_v5  ;;  %v9251_v10 = vcombine.low %v183_v2, %v187_v5  ;;  %1099 = vmatprep.subr.bf16.mxu0 %v9124_v4  ;;  %v11051_v36 = vld [vmem:[%s15013_s0 + $0x8] ss:$12 sps:$4 sm:$0xff]   ;;  %v9134_v40 = vcombine.high %v64_v34, %v68_v35  ;;  %v9133_v46 = vcombine.low %v64_v34, %v68_v35 }
   0x6   :  { %v67_v8 = vld [vmem:[%s15012_s1 + $0x60] sm:$0xff]  ;;  %1100 = vmatpush1.bf16.msra.mxu0 %v9123_v6  ;;  %v72_v43 = vld [vmem:[%s15012_s1 + $0x88] sm:$0xff] }
   0x7   :  { %v9132_v11 = vcombine.high %v63_v7, %v67_v8  ;;  %v191_v12 = vld [vmem:[%s15012_s1 + $0x440] sm:$0xff]  ;;  %1172 = vmatprep.subr.bf16.mxu1 %v9252_v9  ;;  %v9131_v19 = vcombine.low %v63_v7, %v67_v8  ;;  %v76_v44 = vld [vmem:[%s15012_s1 + $0xa8] sm:$0xff] }
   0x8   :  { %v195_v13 = vld [vmem:[%s15012_s1 + $0x460] sm:$0xff]  ;;  %1173 = vmatpush1.bf16.msra.mxu1 %v9251_v10  ;;  %v9142_v49 = vcombine.high %v72_v43, %v76_v44  ;;  %v80_v51 = vld [vmem:[%s15012_s1 + $0xc8] sm:$0xff]  ;;  %v9141_v55 = vcombine.low %v72_v43, %v76_v44 }
   0x9   :  { %v71_v14 = vld [vmem:[%s15012_s1 + $0x80] sm:$0xff]  ;;  %v9260_v15 = vcombine.high %v191_v12, %v195_v13  ;;  %1101 = vmatprep.subr.bf16.mxu0 %v9132_v11  ;;  %v9259_v20 = vcombine.low %v191_v12, %v195_v13  ;;  %v84_v52 = vld [vmem:[%s15012_s1 + $0xe8] sm:$0xff] }
   0xa   :  { %v75_v16 = vld [vmem:[%s15012_s1 + $0xa0] sm:$0xff]  ;;  %1102 = vmatpush1.bf16.msra.mxu0 %v9131_v19  ;;  %v9150_v58 = vcombine.high %v80_v51, %v84_v52  ;;  %v88_v60 = vld [vmem:[%s15012_s1 + $0x108] sm:$0xff]  ;;  %v9149_v63 = vcombine.low %v80_v51, %v84_v52 }
   0xb   :  { %v199_v17 = vld [vmem:[%s15012_s1 + $0x480] sm:$0xff]  ;;  %v9140_v21 = vcombine.high %v71_v14, %v75_v16  ;;  %1174 = vmatprep.subr.bf16.mxu1 %v9260_v15  ;;  %v9139_v28 = vcombine.low %v71_v14, %v75_v16  ;;  %v92_v61 = vld [vmem:[%s15012_s1 + $0x128] sm:$0xff] }
   0xc   :  { %v203_v18 = vld [vmem:[%s15012_s1 + $0x4a0] sm:$0x33]  ;;  %1175 = vmatpush1.bf16.msra.mxu1 %v9259_v20  ;;  %v9158_v2 = vcombine.high %v88_v60, %v92_v61  ;;  %v96_v6 = vld [vmem:[%s15012_s1 + $0x148] sm:$0xff]  ;;  %v9157_v10 = vcombine.low %v88_v60, %v92_v61 }
   0xd   :  { %v9268_v22 = vcombine.high %v199_v17, %v203_v18  ;;  %v9267_v23 = vcombine.low %v199_v17, %v203_v18  ;;  %v79_v24 = vld [vmem:[%s15012_s1 + $0xc0] sm:$0xff]  ;;  %1103 = vmatprep.subr.bf16.mxu0 %v9140_v21  ;;  %v100_v7 = vld [vmem:[%s15012_s1 + $0x168] sm:$0xff] }
   0xe   :  { %v83_v25 = vld [vmem:[%s15012_s1 + $0xe0] sm:$0xff]  ;;  %1104 = vmatpush1.bf16.msra.mxu0 %v9139_v28  ;;  %v9166_v12 = vcombine.high %v96_v6, %v100_v7  ;;  %v104_v15 = vld [vmem:[%s15012_s1 + $0x188] sm:$0xff]  ;;  %v9165_v18 = vcombine.low %v96_v6, %v100_v7 }
   0xf   :  { %v9148_v29 = vcombine.high %v79_v24, %v83_v25  ;;  %9275 = vmatprep.subr.msk.bf16.mxu1 %vm1074_vm0, %v9268_v22  ;;  %v1076_v30 = vsel %vm1074_vm0, %v9267_v23, 0  ;;  %v87_v32 = vld [vmem:[%s15012_s1 + $0x100] sm:$0xff]  ;;  %v9147_v37 = vcombine.low %v79_v24, %v83_v25  ;;  %v108_v16 = vld [vmem:[%s15012_s1 + $0x1a8] sm:$0xff] }
  0x10   :  { %v91_v33 = vld [vmem:[%s15012_s1 + $0x120] sm:$0xff]  ;;  %1177 = vmatpush1.bf16.msra.mxu1 %v1076_v30  ;;  %v9174_v20 = vcombine.high %v104_v15, %v108_v16  ;;  %v112_v23 = vld [vmem:[%s15012_s1 + $0x1c8] sm:$0xff]  ;;  %v9173_v27 = vcombine.low %v104_v15, %v108_v16 }
  0x11   :  { %1105 = vmatprep.subr.bf16.mxu0 %v9148_v29  ;;  %v9156_v39 = vcombine.high %v87_v32, %v91_v33  ;;  %1245 = vmatprep.subr.bf16.mxu1 %v9126_v31  ;;  %v95_v41 = vld [vmem:[%s15012_s1 + $0x140] sm:$0xff]  ;;  %v9155_v45 = vcombine.low %v87_v32, %v91_v33  ;;  %v116_v24 = vld [vmem:[%s15012_s1 + $0x1e8] sm:$0xff] }
  0x12   :  { %v99_v42 = vld [vmem:[%s15012_s1 + $0x160] sm:$0xff]  ;;  %1106 = vmatpush1.bf16.msra.mxu0 %v9147_v37  ;;  %v9182_v29 = vcombine.high %v112_v23, %v116_v24  ;;  %v120_v32 = vld [vmem:[%s15012_s1 + $0x208] sm:$0xff]  ;;  %v9181_v35 = vcombine.low %v112_v23, %v116_v24 }
  0x13   :  { %9276 = vmatmul.mubr.msk.bf16.vlgmr.msra.gmra.mrb[0].mxu1 %vm1061_vm1, %v11051_v36  ;;  %1107 = vmatprep.subr.bf16.mxu0 %v9156_v39  ;;  %v9164_v47 = vcombine.high %v95_v41, %v99_v42  ;;  %v103_v48 = vld [vmem:[%s15012_s1 + $0x180] sm:$0xff]  ;;  %v9163_v53 = vcombine.low %v95_v41, %v99_v42  ;;  %v124_v33 = vld [vmem:[%s15012_s1 + $0x228] sm:$0xff] }
  0x14   :  { %1246 = vmatpush1.bf16.msra.mxu1 %v9125_v38  ;;  %v107_v50 = vld [vmem:[%s15012_s1 + $0x1a0] sm:$0xff]  ;;  %1214 = vmatprep.mubr.bf16.mxu1 %v15024_v3  ;;  %v9190_v38 = vcombine.high %v120_v32, %v124_v33  ;;  %v128_v41 = vld [vmem:[%s15012_s1 + $0x248] sm:$0xff]  ;;  %v9189_v44 = vcombine.low %v120_v32, %v124_v33 }
  0x15   :  { %1247 = vmatprep.subr.bf16.mxu1 %v9134_v40  ;;  %v11083_v54 = vld [vmem:[%s15013_s0 + $0x20] ss:$12 sps:$4 sm:$0xff]   ;;  %v9172_v56 = vcombine.high %v103_v48, %v107_v50  ;;  %v9171_v62 = vcombine.low %v103_v48, %v107_v50  ;;  %v11102_v1 = vld [vmem:[%s15013_s0 + $0x4] ss:$12 sps:$4 sm:$0xff]  }
  0x16   :  { %1108 = vmatpush1.bf16.msra.mxu0 %v9155_v45  ;;  %v111_v57 = vld [vmem:[%s15012_s1 + $0x1c0] sm:$0xff]  ;;  %1131 = vmatprep.mubr.bf16.mxu0 %v11102_v1  ;;  %v132_v42 = vld [vmem:[%s15012_s1 + $0x268] sm:$0xff] }
  0x17   :  { %1109 = vmatprep.subr.bf16.mxu0 %v9164_v47  ;;  %v115_v59 = vld [vmem:[%s15012_s1 + $0x1e0] sm:$0xff]  ;;  %v140_v50 = vld [vmem:[%s15012_s1 + $0x2a8] sm:$0xff]  ;;  %v9197_v52 = vcombine.low %v128_v41, %v132_v42 }
  0x18   :  { %1248 = vmatpush1.bf16.msra.mxu1 %v9133_v46  ;;  %v9180_v0 = vcombine.high %v111_v57, %v115_v59  ;;  %v119_v4 = vld [vmem:[%s15012_s1 + $0x200] sm:$0xff]  ;;  %v9179_v8 = vcombine.low %v111_v57, %v115_v59  ;;  %v9198_v46 = vcombine.high %v128_v41, %v132_v42  ;;  %v148_v59 = vld [vmem:[%s15012_s1 + $0x2e8] sm:$0xff] }
  0x19   :  { %1249 = vmatprep.subr.bf16.mxu1 %v9142_v49  ;;  %v123_v5 = vld [vmem:[%s15012_s1 + $0x220] sm:$0xff]  ;;  %v136_v49 = vld [vmem:[%s15012_s1 + $0x288] sm:$0xff] }
  0x1a   :  { %1110 = vmatpush1.bf16.msra.mxu0 %v9163_v53  ;;  %v11121_v9 = vld [vmem:[%s15013_s0 + $0x38] ss:$12 sps:$4 sm:$0xff]   ;;  %v9188_v11 = vcombine.high %v119_v4, %v123_v5  ;;  %v9187_v17 = vcombine.low %v119_v4, %v123_v5  ;;  %v9205_v61 = vcombine.low %v136_v49, %v140_v50  ;;  %v152_v4 = vld [vmem:[%s15012_s1 + $0x308] sm:$0xff] }
  0x1b   :  { %9277 = vmatmul.mubr.msk.bf16.gmra.mrb[4].mxu1 %vm1061_vm1, %v11083_v54  ;;  %1111 = vmatprep.subr.bf16.mxu0 %v9172_v56  ;;  %v127_v13 = vld [vmem:[%s15012_s1 + $0x240] sm:$0xff]  ;;  %v156_v5 = vld [vmem:[%s15012_s1 + $0x328] sm:$0xff] }
  0x1c   :  { %1250 = vmatpush1.bf16.msra.mxu1 %v9141_v55  ;;  %1224 = vmatprep.mubr.bf16.mxu1 %v15024_v3  ;;  %v131_v14 = vld [vmem:[%s15012_s1 + $0x260] sm:$0xff]  ;;  %v9206_v55 = vcombine.high %v136_v49, %v140_v50  ;;  %v9221_v16 = vcombine.low %v152_v4, %v156_v5  ;;  %v172_v23 = vld [vmem:[%s15012_s1 + $0x3a8] sm:$0xff]  ;;  %v89_v49 = vld [vmem:[%s15012_s1 + $0x110] sm:$0xff] }
  0x1d   :  { %1251 = vmatprep.subr.bf16.mxu1 %v9150_v58  ;;  %v9196_v19 = vcombine.high %v127_v13, %v131_v14  ;;  %v135_v21 = vld [vmem:[%s15012_s1 + $0x280] sm:$0xff]  ;;  %v9195_v25 = vcombine.low %v127_v13, %v131_v14  ;;  %v144_v58 = vld [vmem:[%s15012_s1 + $0x2c8] sm:$0xff]  ;;  %v93_v50 = vld [vmem:[%s15012_s1 + $0x130] sm:$0xff] }
  0x1e   :  { %1112 = vmatpush1.bf16.msra.mxu0 %v9171_v62  ;;  %v139_v22 = vld [vmem:[%s15012_s1 + $0x2a0] sm:$0xff]  ;;  %v9213_v7 = vcombine.low %v144_v58, %v148_v59  ;;  %v160_v13 = vld [vmem:[%s15012_s1 + $0x348] sm:$0xff] }
  0x1f   :  { %1113 = vmatprep.subr.bf16.mxu0 %v9180_v0  ;;  %v9204_v28 = vcombine.high %v135_v21, %v139_v22  ;;  %v143_v30 = vld [vmem:[%s15012_s1 + $0x2c0] sm:$0xff]  ;;  %v9203_v34 = vcombine.low %v135_v21, %v139_v22  ;;  %v164_v14 = vld [vmem:[%s15012_s1 + $0x368] sm:$0xff] }
  0x20   :  { %1252 = vmatpush1.bf16.msra.mxu1 %v9149_v63  ;;  %v147_v31 = vld [vmem:[%s15012_s1 + $0x2e0] sm:$0xff]  ;;  %v9214_v63 = vcombine.high %v144_v58, %v148_v59  ;;  %v168_v22 = vld [vmem:[%s15012_s1 + $0x388] sm:$0xff]  ;;  %v101_v58 = vld [vmem:[%s15012_s1 + $0x170] sm:$0xff] }
  0x21   :  { %1253 = vmatprep.subr.bf16.mxu1 %v9158_v2  ;;  %v9212_v37 = vcombine.high %v143_v30, %v147_v31  ;;  %v151_v39 = vld [vmem:[%s15012_s1 + $0x300] sm:$0xff]  ;;  %v9211_v43 = vcombine.low %v143_v30, %v147_v31  ;;  %v73_v30 = vld [vmem:[%s15012_s1 + $0x90] sm:$0xff]  ;;  %v176_v32 = vld [vmem:[%s15012_s1 + $0x3c8] sm:$0xff] }
  0x22   :  { %1114 = vmatpush1.bf16.msra.mxu0 %v9179_v8  ;;  %v155_v40 = vld [vmem:[%s15012_s1 + $0x320] sm:$0xff]  ;;  %v77_v31 = vld [vmem:[%s15012_s1 + $0xb0] sm:$0xff]  ;;  %v180_v33 = vld [vmem:[%s15012_s1 + $0x3e8] sm:$0xff] }
  0x23   :  { %9278 = vmatmul.mubr.msk.bf16.gmra.mrb[8].mxu1 %vm1061_vm1, %v11121_v9  ;;  %1115 = vmatprep.subr.bf16.mxu0 %v9188_v11  ;;  %v9220_v45 = vcombine.high %v151_v39, %v155_v40  ;;  %v159_v47 = vld [vmem:[%s15012_s1 + $0x340] sm:$0xff]  ;;  %v9219_v51 = vcombine.low %v151_v39, %v155_v40  ;;  %v57_v11 = vld [vmem:[%s15012_s1 + $0x10] sm:$0xff]  ;;  %v184_v42 = vld [vmem:[%s15012_s1 + $0x408] sm:$0xff] }
  0x24   :  { %1254 = vmatpush1.bf16.msra.mxu1 %v9157_v10  ;;  %1234 = vmatprep.mubr.bf16.mxu1 %v15024_v3  ;;  %v163_v48 = vld [vmem:[%s15012_s1 + $0x360] sm:$0xff]  ;;  %v9222_v10 = vcombine.high %v152_v4, %v156_v5  ;;  %v81_v39 = vld [vmem:[%s15012_s1 + $0xd0] sm:$0xff] }
  0x25   :  { %1255 = vmatprep.subr.bf16.mxu1 %v9166_v12  ;;  %v9228_v53 = vcombine.high %v159_v47, %v163_v48  ;;  %v167_v56 = vld [vmem:[%s15012_s1 + $0x380] sm:$0xff]  ;;  %v9227_v60 = vcombine.low %v159_v47, %v163_v48  ;;  %v61_v12 = vld [vmem:[%s15012_s1 + $0x30] sm:$0xff] }
  0x26   :  { %1116 = vmatpush1.bf16.msra.mxu0 %v9187_v17  ;;  %v171_v57 = vld [vmem:[%s15012_s1 + $0x3a0] sm:$0xff]  ;;  %v9128_v17 = vcombine.high %v57_v11, %v61_v12  ;;  %v9127_v24 = vcombine.low %v57_v11, %v61_v12  ;;  %v85_v40 = vld [vmem:[%s15012_s1 + $0xf0] sm:$0xff]  ;;  %v11337_v11 = vld [vmem:[%s15012_s1 + $0x18] sm:$0xff] }
  0x27   :  { %1117 = vmatprep.subr.bf16.mxu0 %v9196_v19  ;;  %v9236_v62 = vcombine.high %v167_v56, %v171_v57  ;;  %v175_v0 = vld [vmem:[%s15012_s1 + $0x3c0] sm:$0xff]  ;;  %v9235_v6 = vcombine.low %v167_v56, %v171_v57  ;;  %v65_v19 = vld [vmem:[%s15012_s1 + $0x50] sm:$0xff]  ;;  %v9152_v47 = vcombine.high %v81_v39, %v85_v40  ;;  %v9160_v56 = vcombine.high %v89_v49, %v93_v50  ;;  %v11342_v12 = vld [vmem:[%s15012_s1 + $0x38] sm:$0xff] }
  0x28   :  { %1256 = vmatpush1.bf16.msra.mxu1 %v9165_v18  ;;  %v179_v2 = vld [vmem:[%s15012_s1 + $0x3e0] sm:$0xff]  ;;  %v9230_v18 = vcombine.high %v160_v13, %v164_v14  ;;  %v97_v57 = vld [vmem:[%s15012_s1 + $0x150] sm:$0xff] }
  0x29   :  { %1257 = vmatprep.subr.bf16.mxu1 %v9174_v20  ;;  %v9244_v8 = vcombine.high %v175_v0, %v179_v2  ;;  %v9243_v15 = vcombine.low %v175_v0, %v179_v2  ;;  %v69_v20 = vld [vmem:[%s15012_s1 + $0x70] sm:$0xff]  ;;  %v11239_v21 = vld [vmem:[%s15013_s0] ss:$12 sps:$4 sm:$0xff]   ;;  %v11275_v41 = vld [vmem:[%s15013_s0 + $0x18] ss:$12 sps:$4 sm:$0xff]   ;;  %v9168_v2 = vcombine.high %v97_v57, %v101_v58 }
  0x2a   :  { %1118 = vmatpush1.bf16.msra.mxu0 %v9195_v25  ;;  %v11250_v25 = vld [vmem:[%s15013_s0 + $0x1c] ss:$12 sps:$4 sm:$0xff]   ;;  %v11323_v0 = vld [vmem:[%s15013_s0 + $0x4c] ss:$12 sps:$4 sm:$0xff]   ;;  %v105_v5 = vld [vmem:[%s15012_s1 + $0x190] sm:$0xff] }
  0x2b   :  { %9279 = vmatmul.mubr.msk.bf16.gmra.mrb[12].mxu1 %vm1061_vm1, %v11153_v26  ;;  %1119 = vmatprep.subr.bf16.mxu0 %v9204_v28  ;;  %v9136_v28 = vcombine.high %v65_v19, %v69_v20 }
  0x2c   :  { %1258 = vmatpush1.bf16.msra.mxu1 %v9173_v27  ;;  %1277 = vmatprep.mubr.bf16.mxu1 %v11102_v1  ;;  %v9229_v27 = vcombine.low %v160_v13, %v164_v14  ;;  %v113_v14 = vld [vmem:[%s15012_s1 + $0x1d0] sm:$0xff] }
  0x2d   :  { %1259 = vmatprep.subr.bf16.mxu1 %v9182_v29  ;;  %v9238_v29 = vcombine.high %v168_v22, %v172_v23 }
  0x2e   :  { %1120 = vmatpush1.bf16.msra.mxu0 %v9203_v34  ;;  %v9135_v34 = vcombine.low %v65_v19, %v69_v20 }
  0x2f   :  { %1121 = vmatprep.subr.bf16.mxu0 %v9212_v37  ;;  %v9144_v37 = vcombine.high %v73_v30, %v77_v31 }
  0x30   :  { %1260 = vmatpush1.bf16.msra.mxu1 %v9181_v35  ;;  %v9237_v35 = vcombine.low %v168_v22, %v172_v23  ;;  %v121_v22 = vld [vmem:[%s15012_s1 + $0x210] sm:$0xff] }
  0x31   :  { %1261 = vmatprep.subr.bf16.mxu1 %v9190_v38  ;;  %v9246_v38 = vcombine.high %v176_v32, %v180_v33  ;;  %v125_v23 = vld [vmem:[%s15012_s1 + $0x230] sm:$0xff] }
  0x32   :  { %1122 = vmatpush1.bf16.msra.mxu0 %v9211_v43  ;;  %v188_v43 = vld [vmem:[%s15012_s1 + $0x428] sm:$0xff] }
  0x33   :  { %1123 = vmatprep.subr.bf16.mxu0 %v9220_v45  ;;  %v11286_v45 = vld [vmem:[%s15013_s0 + $0x34] ss:$12 sps:$4 sm:$0xff]   ;;  %v9254_v48 = vcombine.high %v184_v42, %v188_v43 }
  0x34   :  { %1262 = vmatpush1.bf16.msra.mxu1 %v9189_v44  ;;  %v9143_v44 = vcombine.low %v73_v30, %v77_v31  ;;  %v9191_v30 = vcombine.low %v121_v22, %v125_v23 }
  0x35   :  { %1263 = vmatprep.subr.bf16.mxu1 %v9198_v46  ;;  %v9245_v46 = vcombine.low %v176_v32, %v180_v33  ;;  %v137_v32 = vld [vmem:[%s15012_s1 + $0x290] sm:$0xff] }
  0x36   :  { %1124 = vmatpush1.bf16.msra.mxu0 %v9219_v51  ;;  %v192_v51 = vld [vmem:[%s15012_s1 + $0x448] sm:$0xff]  ;;  %v141_v33 = vld [vmem:[%s15012_s1 + $0x2b0] sm:$0xff] }
  0x37   :  { %1125 = vmatprep.subr.bf16.mxu0 %v9228_v53  ;;  %v9151_v53 = vcombine.low %v81_v39, %v85_v40  ;;  %v9207_v39 = vcombine.low %v137_v32, %v141_v33 }
  0x38   :  { %1264 = vmatpush1.bf16.msra.mxu1 %v9197_v52  ;;  %v196_v52 = vld [vmem:[%s15012_s1 + $0x468] sm:$0xff] }
  0x39   :  { %1265 = vmatprep.subr.bf16.mxu1 %v9206_v55  ;;  %v9253_v55 = vcombine.low %v184_v42, %v188_v43  ;;  %v9262_v59 = vcombine.high %v192_v51, %v196_v52  ;;  %v9261_v4 = vcombine.low %v192_v51, %v196_v52  ;;  %v153_v42 = vld [vmem:[%s15012_s1 + $0x310] sm:$0xff] }
  0x3a   :  { %1126 = vmatpush1.bf16.msra.mxu0 %v9227_v60  ;;  %v11311_v60 = vld [vmem:[%s15013_s0 + $0x30] ss:$12 sps:$4 sm:$0xff]  }
  0x3b   :  { %1127 = vmatprep.subr.bf16.mxu0 %v9236_v62  ;;  %v204_v62 = vld [vmem:[%s15012_s1 + $0x4a8] sm:$0x33]  ;;  %v157_v43 = vld [vmem:[%s15012_s1 + $0x330] sm:$0xff] }
  0x3c   :  { %1266 = vmatpush1.bf16.msra.mxu1 %v9205_v61  ;;  %v200_v61 = vld [vmem:[%s15012_s1 + $0x488] sm:$0xff]  ;;  %v161_v51 = vld [vmem:[%s15012_s1 + $0x350] sm:$0xff] }
  0x3d   :  { %1267 = vmatprep.subr.bf16.mxu1 %v9214_v63  ;;  %v9159_v63 = vcombine.low %v89_v49, %v93_v50  ;;  %v9224_v49 = vcombine.high %v153_v42, %v157_v43  ;;  %v165_v52 = vld [vmem:[%s15012_s1 + $0x370] sm:$0xff] }
  0x3e   :  { %1128 = vmatpush1.bf16.msra.mxu0 %v9235_v6  ;;  %v109_v6 = vld [vmem:[%s15012_s1 + $0x1b0] sm:$0xff] }
  0x3f   :  { %1129 = vmatprep.subr.bf16.mxu0 %v9244_v8  ;;  %v9269_v8 = vcombine.low %v200_v61, %v204_v62  ;;  %v9176_v13 = vcombine.high %v105_v5, %v109_v6  ;;  %v9175_v19 = vcombine.low %v105_v5, %v109_v6 }
  0x40   :  { %1268 = vmatpush1.bf16.msra.mxu1 %v9213_v7  ;;  %v9270_v7 = vcombine.high %v200_v61, %v204_v62  ;;  %v169_v61 = vld [vmem:[%s15012_s1 + $0x390] sm:$0xff] }
  0x41   :  { %1269 = vmatprep.subr.bf16.mxu1 %v9222_v10  ;;  %v9167_v10 = vcombine.low %v97_v57, %v101_v58  ;;  %v9232_v58 = vcombine.high %v161_v51, %v165_v52  ;;  %v173_v62 = vld [vmem:[%s15012_s1 + $0x3b0] sm:$0xff] }
  0x42   :  { %1130 = vmatpush1.bf16.msra.mxu0 %v9243_v15  ;;  %v117_v15 = vld [vmem:[%s15012_s1 + $0x1f0] sm:$0xff]  ;;  %v9240_v6 = vcombine.high %v169_v61, %v173_v62 }
  0x43   :  { %1391 = vmatprep.subr.bf16.mxu0 %v9128_v17  ;;  %v1082_v17 = vsel %vm1074_vm0, %v9269_v8, 0  ;;  %v9184_v20 = vcombine.high %v113_v14, %v117_v15  ;;  %v177_v8 = vld [vmem:[%s15012_s1 + $0x3d0] sm:$0xff] }
  0x44   :  { %1270 = vmatpush1.bf16.msra.mxu1 %v9221_v16  ;;  %v11354_v16 = vld [vmem:[%s15013_s0 + $0x48] ss:$12 sps:$4 sm:$0xff]  }
  0x45   :  { %1271 = vmatprep.subr.bf16.mxu1 %v9230_v18  ;;  %1132 = vmatmul.mubr.bf16.vlgmr.msra.gmra.mrb[0].mxu0 %v11239_v21  ;;  %v9130_v18 = vcombine.high %v11337_v11, %v11342_v12 }
  0x46   :  { %1392 = vmatpush1.bf16.msra.mxu0 %v9127_v24  ;;  %1141 = vmatprep.mubr.bf16.mxu0 %v11250_v25  ;;  %v9183_v24 = vcombine.low %v113_v14, %v117_v15 }
  0x47   :  { %1393 = vmatprep.subr.bf16.mxu0 %v9136_v28  ;;  %v129_v28 = vld [vmem:[%s15012_s1 + $0x250] sm:$0xff] }
  0x48   :  { %1272 = vmatpush1.bf16.msra.mxu1 %v9229_v27  ;;  %v9192_v27 = vcombine.high %v121_v22, %v125_v23  ;;  %v189_v22 = vld [vmem:[%s15012_s1 + $0x430] sm:$0xff] }
  0x49   :  { %1273 = vmatprep.subr.bf16.mxu1 %v9238_v29  ;;  %v133_v29 = vld [vmem:[%s15012_s1 + $0x270] sm:$0xff] }
  0x4a   :  { %1394 = vmatpush1.bf16.msra.mxu0 %v9135_v34  ;;  %v9200_v31 = vcombine.high %v129_v28, %v133_v29  ;;  %v9199_v34 = vcombine.low %v129_v28, %v133_v29  ;;  %v193_v29 = vld [vmem:[%s15012_s1 + $0x450] sm:$0xff] }
  0x4b   :  { %1395 = vmatprep.subr.bf16.mxu0 %v9144_v37  ;;  %v145_v37 = vld [vmem:[%s15012_s1 + $0x2d0] sm:$0xff] }
  0x4c   :  { %1274 = vmatpush1.bf16.msra.mxu1 %v9237_v35  ;;  %v9208_v35 = vcombine.high %v137_v32, %v141_v33  ;;  %v110_v32 = vld [vmem:[%s15012_s1 + $0x1b8] sm:$0xff] }
  0x4d   :  { %1275 = vmatprep.subr.bf16.mxu1 %v9246_v38  ;;  %1142 = vmatmul.mubr.bf16.gmra.mrb[4].mxu0 %v11275_v41  ;;  %v149_v38 = vld [vmem:[%s15012_s1 + $0x2f0] sm:$0xff] }
  0x4e   :  { %1396 = vmatpush1.bf16.msra.mxu0 %v9143_v44  ;;  %1151 = vmatprep.mubr.bf16.mxu0 %v11286_v45  ;;  %v9216_v40 = vcombine.high %v145_v37, %v149_v38  ;;  %v66_v44 = vld [vmem:[%s15012_s1 + $0x58] sm:$0xff] }
  0x4f   :  { %1397 = vmatprep.subr.bf16.mxu0 %v9152_v47  ;;  %v9215_v47 = vcombine.low %v145_v37, %v149_v38  ;;  %v201_v38 = vld [vmem:[%s15012_s1 + $0x490] sm:$0xff] }
  0x50   :  { %1276 = vmatpush1.bf16.msra.mxu1 %v9245_v46  ;;  %v70_v46 = vld [vmem:[%s15012_s1 + $0x78] sm:$0xff] }
  0x51   :  { %1318 = vmatprep.subr.bf16.mxu1 %v9254_v48  ;;  %v9129_v48 = vcombine.low %v11337_v11, %v11342_v12  ;;  %v9138_v50 = vcombine.high %v66_v44, %v70_v46  ;;  %v9137_v57 = vcombine.low %v66_v44, %v70_v46  ;;  %v90_v11 = vld [vmem:[%s15012_s1 + $0x118] sm:$0xff] }
  0x52   :  { %1398 = vmatpush1.bf16.msra.mxu0 %v9151_v53  ;;  %v74_v53 = vld [vmem:[%s15012_s1 + $0x98] sm:$0xff] }
  0x53   :  { %1278 = vmatmul.mubr.bf16.vlgmr.msra.gmra.mrb[16].mxu1 %v11239_v21  ;;  %1399 = vmatprep.subr.bf16.mxu0 %v9160_v56  ;;  %v9223_v56 = vcombine.low %v153_v42, %v157_v43  ;;  %v94_v12 = vld [vmem:[%s15012_s1 + $0x138] sm:$0xff] }
  0x54   :  { %1319 = vmatpush1.bf16.msra.mxu1 %v9253_v55  ;;  %1287 = vmatprep.mubr.bf16.mxu1 %v11250_v25  ;;  %v78_v55 = vld [vmem:[%s15012_s1 + $0xb8] sm:$0xff] }
  0x55   :  { %1320 = vmatprep.subr.bf16.mxu1 %v9262_v59  ;;  %1152 = vmatmul.mubr.bf16.gmra.mrb[8].mxu0 %v11311_v60  ;;  %v9146_v59 = vcombine.high %v74_v53, %v78_v55  ;;  %v9145_v5 = vcombine.low %v74_v53, %v78_v55  ;;  %v118_v42 = vld [vmem:[%s15012_s1 + $0x1f8] sm:$0xff] }
  0x56   :  { %1400 = vmatpush1.bf16.msra.mxu0 %v9159_v63  ;;  %1161 = vmatprep.mubr.bf16.mxu0 %v11323_v0  ;;  %v82_v63 = vld [vmem:[%s15012_s1 + $0xd8] sm:$0xff] }
  0x57   :  { %1401 = vmatprep.subr.bf16.mxu0 %v9168_v2  ;;  %v86_v2 = vld [vmem:[%s15012_s1 + $0xf8] sm:$0xff] }
  0x58   :  { %1321 = vmatpush1.bf16.msra.mxu1 %v9261_v4  ;;  %v9231_v4 = vcombine.low %v161_v51, %v165_v52  ;;  %v9153_v14 = vcombine.low %v82_v63, %v86_v2  ;;  %v122_v51 = vld [vmem:[%s15012_s1 + $0x218] sm:$0xff] }
  0x59   :  { %9280 = vmatprep.subr.msk.bf16.mxu1 %vm1074_vm0, %v9270_v7  ;;  %v9154_v7 = vcombine.high %v82_v63, %v86_v2  ;;  %v126_v52 = vld [vmem:[%s15012_s1 + $0x238] sm:$0xff] }
  0x5a   :  { %1402 = vmatpush1.bf16.msra.mxu0 %v9167_v10  ;;  %v181_v10 = vld [vmem:[%s15012_s1 + $0x3f0] sm:$0xff]  ;;  %v142_v63 = vld [vmem:[%s15012_s1 + $0x2b8] sm:$0xff] }
  0x5b   :  { %1288 = vmatmul.mubr.bf16.gmra.mrb[20].mxu1 %v11275_v41  ;;  %1403 = vmatprep.subr.bf16.mxu0 %v9176_v13  ;;  %v9239_v13 = vcombine.low %v169_v61, %v173_v62  ;;  %v9248_v15 = vcombine.high %v177_v8, %v181_v10  ;;  %v9247_v23 = vcombine.low %v177_v8, %v181_v10  ;;  %v154_v10 = vld [vmem:[%s15012_s1 + $0x318] sm:$0xff] }
  0x5c   :  { %1297 = vmatprep.mubr.bf16.mxu1 %v11286_v45  ;;  %1323 = vmatpush1.bf16.msra.mxu1 %v1082_v17  ;;  %v9162_v17 = vcombine.high %v90_v11, %v94_v12  ;;  %v9193_v61 = vcombine.low %v122_v51, %v126_v52 }
  0x5d   :  { %1162 = vmatmul.mubr.bf16.gmra.mrb[12].mxu0 %v11354_v16  ;;  %1537 = vmatprep.subr.bf16.mxu1 %v9130_v18  ;;  %v98_v18 = vld [vmem:[%s15012_s1 + $0x158] sm:$0xff] }
  0x5e   :  { %1404 = vmatpush1.bf16.msra.mxu0 %v9175_v19  ;;  %1423 = vmatprep.mubr.bf16.mxu0 %v11102_v1  ;;  %v102_v19 = vld [vmem:[%s15012_s1 + $0x178] sm:$0xff] }
  0x5f   :  { %1405 = vmatprep.subr.bf16.mxu0 %v9184_v20  ;;  %v185_v20 = vld [vmem:[%s15012_s1 + $0x410] sm:$0xff] }
  0x60   :  { %v9256_v28 = vcombine.high %v185_v20, %v189_v22  ;;  %v9255_v33 = vcombine.low %v185_v20, %v189_v22  ;;  %v1760_v20 = vld [vmem:[%s15014_s2 + $0x60] sm:$0xff]  ;;  %v170_v22 = vld [vmem:[%s15012_s1 + $0x398] sm:$0xff] }
  0x62   :  { %1406 = vmatpush1.bf16.msra.mxu0 %v9183_v24  ;;  %v9161_v24 = vcombine.low %v90_v11, %v94_v12  ;;  %v158_v11 = vld [vmem:[%s15012_s1 + $0x338] sm:$0xff] }
  0x63   :  { %1298 = vmatmul.mubr.bf16.gmra.mrb[24].mxu1 %v11311_v60  ;;  %1407 = vmatprep.subr.bf16.mxu0 %v9192_v27  ;;  %v9170_v27 = vcombine.high %v98_v18, %v102_v19 }
  0x64   :  { %1307 = vmatprep.mubr.bf16.mxu1 %v11323_v0 }
  0x66   :  { %1408 = vmatpush1.bf16.msra.mxu0 %v9191_v30  ;;  %v197_v30 = vld [vmem:[%s15012_s1 + $0x470] sm:$0xff] }
  0x67   :  { %1409 = vmatprep.subr.bf16.mxu0 %v9200_v31  ;;  %v106_v31 = vld [vmem:[%s15012_s1 + $0x198] sm:$0xff]  ;;  %v9263_v43 = vcombine.low %v193_v29, %v197_v30 }
  0x68   :  { %v9178_v37 = vcombine.high %v106_v31, %v110_v32  ;;  %v9177_v44 = vcombine.low %v106_v31, %v110_v32  ;;  %v1768_v31 = vld [vmem:[%s15014_s2 + $0xa0] sm:$0xff]  ;;  %v178_v32 = vld [vmem:[%s15012_s1 + $0x3d8] sm:$0xff] }
  0x6a   :  { %1410 = vmatpush1.bf16.msra.mxu0 %v9199_v34  ;;  %v9169_v34 = vcombine.low %v98_v18, %v102_v19  ;;  %v1756_v19 = vld [vmem:[%s15014_s2 + $0x40] sm:$0xff] }
  0x6b   :  { %1308 = vmatmul.mubr.bf16.gmra.mrb[28].mxu1 %v11354_v16  ;;  %1411 = vmatprep.subr.bf16.mxu0 %v9208_v35  ;;  %v9264_v35 = vcombine.high %v193_v29, %v197_v30  ;;  %v1764_v30 = vld [vmem:[%s15014_s2 + $0x80] sm:$0xff] }
  0x6c   :  { %1350 = vmatprep.mubr.bf16.mxu1 %v15024_v3 }
  0x6e   :  { %1412 = vmatpush1.bf16.msra.mxu0 %v9207_v39  ;;  %v205_v39 = vld [vmem:[%s15012_s1 + $0x4b0] sm:$0x33] }
  0x6f   :  { %1413 = vmatprep.subr.bf16.mxu0 %v9216_v40  ;;  %v114_v40 = vld [vmem:[%s15012_s1 + $0x1d8] sm:$0xff]  ;;  %v9272_v46 = vcombine.high %v201_v38, %v205_v39 }
  0x70   :  { %v9185_v53 = vcombine.low %v114_v40, %v118_v42 }
  0x72   :  { %1414 = vmatpush1.bf16.msra.mxu0 %v9215_v47  ;;  %v9271_v47 = vcombine.low %v201_v38, %v205_v39  ;;  %v1772_v38 = vld [vmem:[%s15014_s2 + $0xc0] sm:$0xff] }
  0x73   :  { %9281 = vmatmul.mubr.msk.bf16.vlgmr.msra.gmra.mrb[16].mxu1 %vm1061_vm1, %v11051_v36  ;;  %1415 = vmatprep.subr.bf16.mxu0 %v9224_v49  ;;  %v1748_v49 = vld [vmem:[%s15014_s2] sm:$0xff] }
  0x74   :  { %1538 = vmatpush1.bf16.msra.mxu1 %v9129_v48  ;;  %1360 = vmatprep.mubr.bf16.mxu1 %v15024_v3  ;;  %v9186_v48 = vcombine.high %v114_v40, %v118_v42  ;;  %v1088_v55 = vsel %vm1074_vm0, %v9271_v47, 0  ;;  %v1776_v39 = vld [vmem:[%s15014_s2 + $0xe0] sm:$0xff]  ;;  %v186_v40 = vld [vmem:[%s15012_s1 + $0x418] sm:$0xff] }
  0x75   :  { %1539 = vmatprep.subr.bf16.mxu1 %v9138_v50  ;;  %v1752_v50 = vld [vmem:[%s15014_s2 + $0x20] sm:$0xff]  ;;  %v190_v42 = vld [vmem:[%s15012_s1 + $0x438] sm:$0xff] }
  0x76   :  { %1416 = vmatpush1.bf16.msra.mxu0 %v9223_v56  ;;  %v11504_v56 = vcombine.high %v1748_v49, %v1752_v50  ;;  %v9258_v47 = vcombine.high %v186_v40, %v190_v42 }
  0x77   :  { %1417 = vmatprep.subr.bf16.mxu0 %v9232_v58  ;;  %v130_v58 = vld [vmem:[%s15012_s1 + $0x258] sm:$0xff] }
  0x78   :  { %1540 = vmatpush1.bf16.msra.mxu1 %v9137_v57  ;;  %v9194_v57 = vcombine.high %v122_v51, %v126_v52  ;;  %v198_v51 = vld [vmem:[%s15012_s1 + $0x478] sm:$0xff]  ;;  %v11614_v52 = vcombine.low %v1772_v38, %v1776_v39 }
  0x79   :  { %1541 = vmatprep.subr.bf16.mxu1 %v9146_v59  ;;  %v134_v59 = vld [vmem:[%s15012_s1 + $0x278] sm:$0xff] }
  0x7a   :  { %1418 = vmatpush1.bf16.msra.mxu0 %v9231_v4  ;;  %v9202_v62 = vcombine.high %v130_v58, %v134_v59  ;;  %v9201_v2 = vcombine.low %v130_v58, %v134_v59  ;;  %v202_v59 = vld [vmem:[%s15012_s1 + $0x498] sm:$0xff] }
  0x7b   :  { %9282 = vmatmul.mubr.msk.bf16.gmra.mrb[20].mxu1 %vm1061_vm1, %v11083_v54  ;;  %1419 = vmatprep.subr.bf16.mxu0 %v9240_v6  ;;  %v150_v6 = vld [vmem:[%s15012_s1 + $0x2f8] sm:$0xff] }
  0x7c   :  { %1542 = vmatpush1.bf16.msra.mxu1 %v9145_v5  ;;  %1370 = vmatprep.mubr.bf16.mxu1 %v15024_v3  ;;  %v146_v5 = vld [vmem:[%s15012_s1 + $0x2d8] sm:$0xff] }
  0x7d   :  { %1543 = vmatprep.subr.bf16.mxu1 %v9154_v7  ;;  %v9218_v8 = vcombine.high %v146_v5, %v150_v6  ;;  %v9217_v12 = vcombine.low %v146_v5, %v150_v6 }
  0x7e   :  { %1420 = vmatpush1.bf16.msra.mxu0 %v9239_v13  ;;  %v9226_v13 = vcombine.high %v154_v10, %v158_v11 }
  0x7f   :  { %1421 = vmatprep.subr.bf16.mxu0 %v9248_v15  ;;  %v166_v15 = vld [vmem:[%s15012_s1 + $0x378] sm:$0xff] }
  0x80   :  { %1544 = vmatpush1.bf16.msra.mxu1 %v9153_v14  ;;  %v162_v14 = vld [vmem:[%s15012_s1 + $0x358] sm:$0xff] }
  0x81   :  { %1545 = vmatprep.subr.bf16.mxu1 %v9162_v17  ;;  %v9225_v17 = vcombine.low %v154_v10, %v158_v11  ;;  %v9234_v18 = vcombine.high %v162_v14, %v166_v15  ;;  %v1808_v10 = vld [vmem:[%s15014_s2 + $0x1e0] sm:$0xff] }
  0x82   :  { %1422 = vmatpush1.bf16.msra.mxu0 %v9247_v23  ;;  %v174_v23 = vld [vmem:[%s15012_s1 + $0x3b8] sm:$0xff] }
  0x83   :  { %9283 = vmatmul.mubr.msk.bf16.gmra.mrb[24].mxu1 %vm1061_vm1, %v11121_v9  ;;  %1464 = vmatprep.subr.bf16.mxu0 %v9256_v28  ;;  %v11558_v28 = vcombine.high %v1756_v19, %v1760_v20  ;;  %v9242_v29 = vcombine.high %v170_v22, %v174_v23 }
  0x84   :  { %1546 = vmatpush1.bf16.msra.mxu1 %v9161_v24  ;;  %1380 = vmatprep.mubr.bf16.mxu1 %v15024_v3  ;;  %v11556_v24 = vcombine.low %v1748_v49, %v1752_v50  ;;  %v1784_v49 = vld [vmem:[%s15014_s2 + $0x120] sm:$0xff]  ;;  %v194_v50 = vld [vmem:[%s15012_s1 + $0x458] sm:$0xff] }
  0x85   :  { %1547 = vmatprep.subr.bf16.mxu1 %v9170_v27  ;;  %1424 = vmatmul.mubr.bf16.vlgmr.msra.gmra.mrb[16].mxu0 %v11239_v21  ;;  %v9233_v27 = vcombine.low %v162_v14, %v166_v15  ;;  %v9266_v58 = vcombine.high %v194_v50, %v198_v51  ;;  %v1750_v15 = vld [vmem:[%s15014_s2 + $0x10] sm:$0xff] }
  0x86   :  { %1433 = vmatprep.mubr.bf16.mxu0 %v11250_v25  ;;  %1465 = vmatpush1.bf16.msra.mxu0 %v9255_v33  ;;  %v182_v33 = vld [vmem:[%s15012_s1 + $0x3f8] sm:$0xff] }
  0x87   :  { %1466 = vmatprep.subr.bf16.mxu0 %v9264_v35  ;;  %v9241_v35 = vcombine.low %v170_v22, %v174_v23  ;;  %v1766_v22 = vld [vmem:[%s15014_s2 + $0x90] sm:$0xff] }
  0x88   :  { %1548 = vmatpush1.bf16.msra.mxu1 %v9169_v34  ;;  %v11575_v34 = vcombine.low %v1756_v19, %v1760_v20  ;;  %v1770_v23 = vld [vmem:[%s15014_s2 + $0xb0] sm:$0xff] }
  0x89   :  { %1549 = vmatprep.subr.bf16.mxu1 %v9178_v37  ;;  %v11579_v37 = vcombine.high %v1764_v30, %v1768_v31 }
  0x8a   :  { %1467 = vmatpush1.bf16.msra.mxu0 %v9263_v43  ;;  %v11594_v43 = vcombine.low %v1764_v30, %v1768_v31  ;;  %v1778_v30 = vld [vmem:[%s15014_s2 + $0xf0] sm:$0xff]  ;;  %v11731_v31 = vcombine.low %v1766_v22, %v1770_v23 }
  0x8b   :  { %9284 = vmatmul.mubr.msk.bf16.gmra.mrb[28].mxu1 %vm1061_vm1, %v11153_v26  ;;  %9285 = vmatprep.subr.msk.bf16.mxu0 %vm1074_vm0, %v9272_v46  ;;  %v11597_v46 = vcombine.high %v1772_v38, %v1776_v39 }
  0x8c   :  { %1550 = vmatpush1.bf16.msra.mxu1 %v9177_v44  ;;  %1569 = vmatprep.mubr.bf16.mxu1 %v11102_v1  ;;  %v138_v1 = vld [vmem:[%s15012_s1 + $0x298] sm:$0xff]  ;;  %v9249_v44 = vcombine.low %v178_v32, %v182_v33 }
  0x8d   :  { %1551 = vmatprep.subr.bf16.mxu1 %v9186_v48  ;;  %1434 = vmatmul.mubr.bf16.gmra.mrb[20].mxu0 %v11275_v41  ;;  %v9210_v4 = vcombine.high %v138_v1, %v142_v63  ;;  %v9209_v7 = vcombine.low %v138_v1, %v142_v63  ;;  %v1780_v48 = vld [vmem:[%s15014_s2 + $0x100] sm:$0xff]  ;;  %v9265_v63 = vcombine.low %v194_v50, %v198_v51  ;;  %v10887_v50 = vld [vmem:[%s15013_s0 + $0x8] ss:$12 sps:$4 sm:$0xff]  }
  0x8e   :  { %1443 = vmatprep.mubr.bf16.mxu0 %v11286_v45  ;;  %1469 = vmatpush1.bf16.msra.mxu0 %v1088_v55  ;;  %v11618_v55 = vcombine.high %v1780_v48, %v1784_v49 }
  0x8f   :  { %2132 = vmatprep.subr.bf16.mxu0 %v11504_v56 }
  0x90   :  { %1552 = vmatpush1.bf16.msra.mxu1 %v9185_v53  ;;  %v9257_v53 = vcombine.low %v186_v40, %v190_v42 }
  0x91   :  { %1553 = vmatprep.subr.bf16.mxu1 %v9194_v57  ;;  %v1792_v57 = vld [vmem:[%s15014_s2 + $0x160] sm:$0xff] }
  0x94   :  { %1554 = vmatpush1.bf16.msra.mxu1 %v9193_v61  ;;  %v206_v61 = vld [vmem:[%s15012_s1 + $0x4b8] sm:$0x33] }
  0x95   :  { %1555 = vmatprep.subr.bf16.mxu1 %v9202_v62  ;;  %1444 = vmatmul.mubr.bf16.gmra.mrb[24].mxu0 %v11311_v60  ;;  %v11634_v62 = vcombine.low %v1780_v48, %v1784_v49  ;;  %v9273_v5 = vcombine.low %v202_v59, %v206_v61  ;;  %v1765_v48 = vld [vmem:[%s15014_s2 + $0x88] sm:$0xff] }
  0x96   :  { %1453 = vmatprep.mubr.bf16.mxu0 %v11323_v0  ;;  %v1769_v49 = vld [vmem:[%s15014_s2 + $0xa8] sm:$0xff] }
  0x97   :  { %v1094_v11 = vsel %vm1074_vm0, %v9273_v5, 0 }
  0x98   :  { %1556 = vmatpush1.bf16.msra.mxu1 %v9201_v2  ;;  %v1796_v2 = vld [vmem:[%s15014_s2 + $0x180] sm:$0xff] }
  0x99   :  { %1557 = vmatprep.subr.bf16.mxu1 %v9210_v4  ;;  %v9274_v4 = vcombine.high %v202_v59, %v206_v61  ;;  %v1802_v59 = vld [vmem:[%s15014_s2 + $0x1b0] sm:$0xff]  ;;  %v1773_v61 = vld [vmem:[%s15014_s2 + $0xc8] sm:$0xff] }
  0x9c   :  { %1558 = vmatpush1.bf16.msra.mxu1 %v9209_v7  ;;  %v1753_v7 = vld [vmem:[%s15014_s2 + $0x28] sm:$0xff] }
  0x9d   :  { %1559 = vmatprep.subr.bf16.mxu1 %v9218_v8  ;;  %1454 = vmatmul.mubr.bf16.gmra.mrb[28].mxu0 %v11354_v16 }
  0x9e   :  { %1496 = vmatprep.mubr.bf16.mxu0 %v15024_v3 }
  0xa0   :  { %1560 = vmatpush1.bf16.msra.mxu1 %v9217_v12 }
  0xa1   :  { %1561 = vmatprep.subr.bf16.mxu1 %v9226_v13 }
  0xa4   :  { %1562 = vmatpush1.bf16.msra.mxu1 %v9225_v17  ;;  %v1754_v17 = vld [vmem:[%s15014_s2 + $0x30] sm:$0xff] }
  0xa5   :  { %1563 = vmatprep.subr.bf16.mxu1 %v9234_v18  ;;  %9286 = vmatmul.mubr.msk.bf16.vlgmr.msra.gmra.mrb[16].mxu0 %vm1061_vm1, %v11051_v36  ;;  %v9250_v36 = vcombine.high %v178_v32, %v182_v33  ;;  %v1758_v18 = vld [vmem:[%s15014_s2 + $0x50] sm:$0xff]  ;;  %v11703_v19 = vcombine.low %v1750_v15, %v1754_v17 }
  0xa6   :  { %2133 = vmatpush1.bf16.msra.mxu0 %v11556_v24  ;;  %1506 = vmatprep.mubr.bf16.mxu0 %v15024_v3  ;;  %v1782_v33 = vld [vmem:[%s15014_s2 + $0x110] sm:$0xff] }
  0xa7   :  { %2134 = vmatprep.subr.bf16.mxu0 %v11558_v28 }
  0xa8   :  { %1564 = vmatpush1.bf16.msra.mxu1 %v9233_v27  ;;  %v15026_v27 = vmov 0.0|0.0  }
  0xa9   :  { %1565 = vmatprep.subr.bf16.mxu1 %v9242_v29  ;;  %v1774_v29 = vld [vmem:[%s15014_s2 + $0xd0] sm:$0xff] }
  0xaa   :  { %2135 = vmatpush1.bf16.msra.mxu0 %v11575_v34  ;;  %v11735_v32 = vcombine.high %v1774_v29, %v1778_v30  ;;  %v11750_v38 = vcombine.low %v1774_v29, %v1778_v30 }
  0xab   :  { %2136 = vmatprep.subr.bf16.mxu0 %v11579_v37 }
  0xac   :  { %1566 = vmatpush1.bf16.msra.mxu1 %v9241_v35  ;;  %v1786_v35 = vld [vmem:[%s15014_s2 + $0x130] sm:$0xff] }
  0xad   :  { %1567 = vmatprep.subr.bf16.mxu1 %v9250_v36  ;;  %9287 = vmatmul.mubr.msk.bf16.gmra.mrb[20].mxu0 %vm1061_vm1, %v11083_v54  ;;  %v1788_v54 = vld [vmem:[%s15014_s2 + $0x140] sm:$0xff]  ;;  %v1761_v36 = vld [vmem:[%s15014_s2 + $0x68] sm:$0xff]  ;;  %v11755_v40 = vcombine.high %v1782_v33, %v1786_v35  ;;  %v11776_v51 = vcombine.low %v1782_v33, %v1786_v35 }
  0xae   :  { %2137 = vmatpush1.bf16.msra.mxu0 %v11594_v43  ;;  %1516 = vmatprep.mubr.bf16.mxu0 %v15024_v3  ;;  %v11637_v1 = vcombine.high %v1788_v54, %v1792_v57  ;;  %v11649_v6 = vcombine.low %v1788_v54, %v1792_v57  ;;  %v11786_v57 = vcombine.high %v1765_v48, %v1769_v49  ;;  %v1797_v35 = vld [vmem:[%s15014_s2 + $0x188] sm:$0xff] }
  0xaf   :  { %2138 = vmatprep.subr.bf16.mxu0 %v11597_v46 }
  0xb0   :  { %1568 = vmatpush1.bf16.msra.mxu1 %v9249_v44  ;;  %v1790_v44 = vld [vmem:[%s15014_s2 + $0x150] sm:$0xff] }
  0xb1   :  { %1610 = vmatprep.subr.bf16.mxu1 %v9258_v47  ;;  %v1794_v47 = vld [vmem:[%s15014_s2 + $0x170] sm:$0xff] }
  0xb2   :  { %2139 = vmatpush1.bf16.msra.mxu0 %v11614_v52  ;;  %v11782_v54 = vcombine.high %v1790_v44, %v1794_v47 }
  0xb3   :  { %1570 = vmatmul.mubr.bf16.vlgmr.msra.gmra.mrb[32].mxu1 %v11239_v21  ;;  %2140 = vmatprep.subr.bf16.mxu0 %v11618_v55  ;;  %v1800_v21 = vld [vmem:[%s15014_s2 + $0x1a0] sm:$0xff] }
  0xb4   :  { %1611 = vmatpush1.bf16.msra.mxu1 %v9257_v53  ;;  %1579 = vmatprep.mubr.bf16.mxu1 %v11250_v25  ;;  %v1749_v25 = vld [vmem:[%s15014_s2 + $0x8] sm:$0xff]  ;;  %v11659_v8 = vcombine.high %v1796_v2, %v1800_v21  ;;  %v11673_v13 = vcombine.low %v1796_v2, %v1800_v21  ;;  %15097 = vst [vmem:[#allocation4_spill] sm:$0xff] %v11782_v54 }
  0xb5   :  { %1612 = vmatprep.subr.bf16.mxu1 %v9266_v58  ;;  %9288 = vmatmul.mubr.msk.bf16.gmra.mrb[24].mxu0 %vm1061_vm1, %v11121_v9  ;;  %v1804_v9 = vld [vmem:[%s15014_s2 + $0x1c0] sm:$0xff]  ;;  %v11669_v12 = vcombine.high %v1749_v25, %v1753_v7  ;;  %v11752_v39 = vcombine.low %v1749_v25, %v1753_v7  ;;  %v1798_v58 = vld [vmem:[%s15014_s2 + $0x190] sm:$0xff]  ;;  %v11801_v2 = vcombine.low %v1790_v44, %v1794_v47 }
  0xb6   :  { %2141 = vmatpush1.bf16.msra.mxu0 %v11634_v62  ;;  %1526 = vmatprep.mubr.bf16.mxu0 %v15024_v3  ;;  %v11677_v14 = vcombine.high %v1804_v9, %v1808_v10  ;;  %v11804_v21 = vcombine.low %v1765_v48, %v1769_v49  ;;  %v1806_v25 = vld [vmem:[%s15014_s2 + $0x1d0] sm:$0xff]  ;;  %v1805_v49 = vld [vmem:[%s15014_s2 + $0x1c8] sm:$0xff] }
  0xb7   :  { %2142 = vmatprep.subr.bf16.mxu0 %v11637_v1  ;;  %15098 = vst [vmem:[#allocation5_spill] sm:$0xff] %v11801_v2  ;;  %v1810_v7 = vld [vmem:[%s15014_s2 + $0x1f0] sm:$0xff] }
  0xb8   :  { %1613 = vmatpush1.bf16.msra.mxu1 %v9265_v63  ;;  %v1777_v63 = vld [vmem:[%s15014_s2 + $0xe8] sm:$0xff]  ;;  %v11848_v29 = vcombine.low %v1806_v25, %v1810_v7 }
  0xb9   :  { %9290 = vmatprep.subr.msk.bf16.mxu1 %vm1074_vm0, %v9274_v4  ;;  %v11807_v4 = vcombine.high %v1798_v58, %v1802_v59  ;;  %v11810_v5 = vcombine.high %v1773_v61, %v1777_v63 }
  0xba   :  { %2143 = vmatpush1.bf16.msra.mxu0 %v11649_v6  ;;  %15102 = vst [vmem:[#allocation9_spill] sm:$0xff] %v11848_v29 }
  0xbb   :  { %1580 = vmatmul.mubr.bf16.gmra.mrb[36].mxu1 %v11275_v41  ;;  %2144 = vmatprep.subr.bf16.mxu0 %v11659_v8  ;;  %v11689_v41 = vcombine.low %v1804_v9, %v1808_v10  ;;  %15099 = vst [vmem:[#allocation6_spill] sm:$0xff] %v11807_v4  ;;  %v1781_v9 = vld [vmem:[%s15014_s2 + $0x108] sm:$0xff] }
  0xbc   :  { %1589 = vmatprep.mubr.bf16.mxu1 %v11286_v45  ;;  %1615 = vmatpush1.bf16.msra.mxu1 %v1094_v11  ;;  %v11693_v45 = vcombine.high %v1750_v15, %v1754_v17  ;;  %v1785_v10 = vld [vmem:[%s15014_s2 + $0x128] sm:$0xff]  ;;  %v11829_v15 = vcombine.low %v1798_v58, %v1802_v59  ;;  %v11832_v17 = vcombine.low %v1773_v61, %v1777_v63 }
  0xbd   :  { %9289 = vmatmul.mubr.msk.bf16.gmra.mrb[28].mxu0 %vm1061_vm1, %v11153_v26  ;;  %2173 = vmatprep.subr.bf16.mxu1 %v11669_v12  ;;  %v1762_v26 = vld [vmem:[%s15014_s2 + $0x70] sm:$0xff]  ;;  %v10888_v11 = vld [vmem:[%s15013_s0 + $0x20] ss:$12 sps:$4 sm:$0xff]   ;;  %v11851_v30 = vcombine.low %v1781_v9, %v1785_v10 }
  0xbe   :  { %2145 = vmatpush1.bf16.msra.mxu0 %v11673_v13  ;;  %2164 = vmatprep.mubr.bf16.mxu0 %v15024_v3  ;;  %v11707_v20 = vcombine.high %v1758_v18, %v1762_v26  ;;  %15100 = vst [vmem:[#allocation7_spill] sm:$0xff] %v11829_v15 }
  0xbf   :  { %2146 = vmatprep.subr.bf16.mxu0 %v11677_v14 }
  0xc2   :  { %2147 = vmatpush1.bf16.msra.mxu0 %v11689_v41 }
  0xc3   :  { %1590 = vmatmul.mubr.bf16.gmra.mrb[40].mxu1 %v11311_v60  ;;  %2214 = vmatprep.subr.bf16.mxu0 %v11693_v45  ;;  %v11717_v60 = vcombine.low %v1758_v18, %v1762_v26  ;;  %v11835_v18 = vcombine.high %v1806_v25, %v1810_v7  ;;  %v11839_v26 = vcombine.high %v1781_v9, %v1785_v10  ;;  %v1755_v25 = vld [vmem:[%s15014_s2 + $0x38] sm:$0xff] }
  0xc4   :  { %1599 = vmatprep.mubr.bf16.mxu1 %v11323_v0  ;;  %v11721_v0 = vcombine.high %v1766_v22, %v1770_v23  ;;  %v1789_v22 = vld [vmem:[%s15014_s2 + $0x148] sm:$0xff]  ;;  %v10890_v7 = vld [vmem:[%s15013_s0 + $0x50] ss:$12 sps:$4 sm:$0xff]  }
  0xc5   :  { %2165 = vmatmul.mubr.bf16.vlgmr.msra.gmra.mrb[32].mxu0 %v15026_v27  ;;  %15101 = vst [vmem:[#allocation8_spill] sm:$0xff] %v11835_v18  ;;  %v1793_v23 = vld [vmem:[%s15014_s2 + $0x168] sm:$0xff]  ;;  %v1759_v10 = vld [vmem:[%s15014_s2 + $0x58] sm:$0xff] }
  0xc6   :  { %2215 = vmatpush1.bf16.msra.mxu0 %v11703_v19  ;;  %2246 = vmatprep.mubr.bf16.mxu0 %v15024_v3  ;;  %v11855_v33 = vcombine.high %v1789_v22, %v1793_v23  ;;  %v11869_v44 = vcombine.low %v1789_v22, %v1793_v23 }
  0xc7   :  { %2216 = vmatprep.subr.bf16.mxu0 %v11707_v20 }
  0xca   :  { %2217 = vmatpush1.bf16.msra.mxu0 %v11717_v60 }
  0xcb   :  { %1600 = vmatmul.mubr.bf16.gmra.mrb[44].mxu1 %v11354_v16  ;;  %2218 = vmatprep.subr.bf16.mxu0 %v11721_v0  ;;  %v1757_v16 = vld [vmem:[%s15014_s2 + $0x48] sm:$0xff] }
  0xcc   :  { %1642 = vmatprep.mubr.bf16.mxu1 %v15024_v3  ;;  %v11757_v42 = vcombine.high %v1757_v16, %v1761_v36  ;;  %v11779_v53 = vcombine.low %v1757_v16, %v1761_v36  ;;  %v1801_v16 = vld [vmem:[%s15014_s2 + $0x1a8] sm:$0xff]  ;;  %v10889_v36 = vld [vmem:[%s15013_s0 + $0x38] ss:$12 sps:$4 sm:$0xff]  }
  0xcd   :  { %v11873_v47 = vcombine.high %v1797_v35, %v1801_v16  ;;  %v11892_v59 = vcombine.low %v1797_v35, %v1801_v16 }
  0xce   :  { %2219 = vmatpush1.bf16.msra.mxu0 %v11731_v31 }
  0xcf   :  { %2220 = vmatprep.subr.bf16.mxu0 %v11735_v32 }
  0xd2   :  { %2221 = vmatpush1.bf16.msra.mxu0 %v11750_v38 }
  0xd3   :  { %9291 = vmatmul.mubr.msk.bf16.vlgmr.msra.gmra.mrb[32].mxu1 %vm1061_vm1, %v10887_v50  ;;  %2222 = vmatprep.subr.bf16.mxu0 %v11755_v40  ;;  %v1809_v50 = vld [vmem:[%s15014_s2 + $0x1e8] sm:$0xff] }
  0xd4   :  { %2174 = vmatpush1.bf16.msra.mxu1 %v11752_v39  ;;  %1652 = vmatprep.mubr.bf16.mxu1 %v15024_v3  ;;  %v11898_v63 = vcombine.high %v1805_v49, %v1809_v50 }
  0xd5   :  { %2175 = vmatprep.subr.bf16.mxu1 %v11757_v42 }
  0xd6   :  { %2223 = vmatpush1.bf16.msra.mxu0 %v11776_v51 }
  0xd7   :  { %2224 = vmatprep.subr.bf16.mxu0 %v11782_v54 }
  0xd8   :  { %2176 = vmatpush1.bf16.msra.mxu1 %v11779_v53 }
  0xd9   :  { %2177 = vmatprep.subr.bf16.mxu1 %v11786_v57 }
  0xda   :  { %2225 = vmatpush1.bf16.msra.mxu0 %v11801_v2 }
  0xdb   :  { %9292 = vmatmul.mubr.msk.bf16.gmra.mrb[36].mxu1 %vm1061_vm1, %v10888_v11  ;;  %2226 = vmatprep.subr.bf16.mxu0 %v11807_v4  ;;  %v1811_v4 = vld [vmem:[%s15014_s2 + $0x1f8] sm:$0xff] }
  0xdc   :  { %2178 = vmatpush1.bf16.msra.mxu1 %v11804_v21  ;;  %1662 = vmatprep.mubr.bf16.mxu1 %v15024_v3 }
  0xdd   :  { %2179 = vmatprep.subr.bf16.mxu1 %v11810_v5 }
  0xde   :  { %2227 = vmatpush1.bf16.msra.mxu0 %v11829_v15  ;;  %v1799_v15 = vld [vmem:[%s15014_s2 + $0x198] sm:$0xff] }
  0xdf   :  { %2228 = vmatprep.subr.bf16.mxu0 %v11835_v18 }
  0xe0   :  { %2180 = vmatpush1.bf16.msra.mxu1 %v11832_v17 }
  0xe1   :  { %2181 = vmatprep.subr.bf16.mxu1 %v11839_v26 }
  0xe2   :  { %2229 = vmatpush1.bf16.msra.mxu0 %v11848_v29 }
  0xe3   :  { %9293 = vmatmul.mubr.msk.bf16.gmra.mrb[40].mxu1 %vm1061_vm1, %v10889_v36  ;;  %2749 = vmatprep.subr.bf16.mxu0 %v11504_v56  ;;  %v1767_v36 = vld [vmem:[%s15014_s2 + $0x98] sm:$0xff] }
  0xe4   :  { %2182 = vmatpush1.bf16.msra.mxu1 %v11851_v30  ;;  %1672 = vmatprep.mubr.bf16.mxu1 %v15024_v3 }
  0xe5   :  { %2183 = vmatprep.subr.bf16.mxu1 %v11855_v33  ;;  %2247 = vmatmul.mubr.bf16.vlgmr.msra.gmra.mrb[36].mxu0 %v15026_v27 }
  0xe6   :  { %v11876_v48 = vpop.f32.mrb[0].mxu1  ;;  %2750 = vmatpush1.bf16.msra.mxu0 %v11556_v24  ;;  %2781 = vmatprep.mubr.bf16.mxu0 %v15024_v3  ;;  %v1751_v24 = vld [vmem:[%s15014_s2 + $0x18] sm:$0xff] }
  0xe7   :  { %v11885_v58 = vpop.f32.mrb[1].mxu1  ;;  %2751 = vmatprep.subr.bf16.mxu0 %v11558_v28  ;;  %v11912_v28 = vcombine.low %v1805_v49, %v1809_v50  ;;  %v11916_v9 = vcombine.high %v1751_v24, %v1755_v25  ;;  %v11931_v23 = vcombine.low %v1751_v24, %v1755_v25  ;;  %v1775_v50 = vld [vmem:[%s15014_s2 + $0xd8] sm:$0xff] }
  0xe8   :  { %2184 = vmatpush1.bf16.msra.mxu1 %v11869_v44  ;;  %v11890_v56 = vpop.f32.mrb[2].mxu1 }
  0xe9   :  { %v11895_v61 = vpop.f32.mrb[3].mxu1  ;;  %2185 = vmatprep.subr.bf16.mxu1 %v11873_v47 }
  0xea   :  { %2752 = vmatpush1.bf16.msra.mxu0 %v11575_v34  ;;  %v1763_v34 = vld [vmem:[%s15014_s2 + $0x78] sm:$0xff] }
  0xeb   :  { %9294 = vmatmul.mubr.msk.bf16.gmra.mrb[44].mxu1 %vm1061_vm1, %v10890_v7  ;;  %2753 = vmatprep.subr.bf16.mxu0 %v11579_v37  ;;  %v11937_v37 = vcombine.high %v1759_v10, %v1763_v34 }
  0xec   :  { %2186 = vmatpush1.bf16.msra.mxu1 %v11892_v59  ;;  %2205 = vmatprep.mubr.bf16.mxu1 %v15024_v3 }
  0xed   :  { %2187 = vmatprep.subr.bf16.mxu1 %v11898_v63 }
  0xee   :  { %v11925_v11 = vpop.f32.mrb[4].mxu1  ;;  %2754 = vmatpush1.bf16.msra.mxu0 %v11594_v43  ;;  %v1771_v43 = vld [vmem:[%s15014_s2 + $0xb8] sm:$0xff] }
  0xef   :  { %v11927_v22 = vpop.f32.mrb[5].mxu1  ;;  %2755 = vmatprep.subr.bf16.mxu0 %v11597_v46  ;;  %v11950_v46 = vcombine.low %v1759_v10, %v1763_v34  ;;  %v11954_v49 = vcombine.high %v1767_v36, %v1771_v43  ;;  %v11969_v7 = vcombine.low %v1767_v36, %v1771_v43  ;;  %v1791_v43 = vld [vmem:[%s15014_s2 + $0x158] sm:$0xff] }
  0xf0   :  { %2188 = vmatpush1.bf16.msra.mxu1 %v11912_v28  ;;  %v11933_v35 = vpop.f32.mrb[6].mxu1 }
  0xf1   :  { %2255 = vmatprep.subr.bf16.mxu1 %v11916_v9  ;;  %v11939_v16 = vpop.f32.mrb[7].mxu1 }
  0xf2   :  { %2756 = vmatpush1.bf16.msra.mxu0 %v11614_v52  ;;  %v1779_v52 = vld [vmem:[%s15014_s2 + $0xf8] sm:$0xff] }
  0xf3   :  { %2206 = vmatmul.mubr.bf16.vlgmr.msra.gmra.mrb[48].mxu1 %v15026_v27  ;;  %2757 = vmatprep.subr.bf16.mxu0 %v11618_v55  ;;  %v11975_v55 = vcombine.high %v1775_v50, %v1779_v52  ;;  %v11987_v36 = vcombine.low %v1775_v50, %v1779_v52  ;;  %v1795_v27 = vld [vmem:[%s15014_s2 + $0x178] sm:$0xff] }
  0xf4   :  { %2256 = vmatpush1.bf16.msra.mxu1 %v11931_v23  ;;  %2287 = vmatprep.mubr.bf16.mxu1 %v15024_v3  ;;  %v1783_v3 = vld [vmem:[%s15014_s2 + $0x118] sm:$0xff]  ;;  %v12011_v52 = vcombine.high %v1791_v43, %v1795_v27 }
  0xf5   :  { %2257 = vmatprep.subr.bf16.mxu1 %v11937_v37 }
  0xf6   :  { %v11963_v24 = vpop.f32.mrb[8].mxu1  ;;  %2758 = vmatpush1.bf16.msra.mxu0 %v11634_v62  ;;  %v1787_v62 = vld [vmem:[%s15014_s2 + $0x138] sm:$0xff]  ;;  %15103 = vst [vmem:[#allocation10_spill] sm:$0xff] %v12011_v52 }
  0xf7   :  { %v11965_v25 = vpop.f32.mrb[9].mxu1  ;;  %2759 = vmatprep.subr.bf16.mxu0 %v11637_v1  ;;  %v11991_v1 = vcombine.high %v1783_v3, %v1787_v62 }
  0xf8   :  { %2258 = vmatpush1.bf16.msra.mxu1 %v11950_v46  ;;  %v11971_v10 = vpop.f32.mrb[10].mxu1 }
  0xf9   :  { %2259 = vmatprep.subr.bf16.mxu1 %v11954_v49  ;;  %v11977_v34 = vpop.f32.mrb[11].mxu1 }
  0xfa   :  { %2760 = vmatpush1.bf16.msra.mxu0 %v11649_v6 }
  0xfb   :  { %2761 = vmatprep.subr.bf16.mxu0 %v11659_v8  ;;  %v12005_v8 = vcombine.low %v1783_v3, %v1787_v62  ;;  %v12023_v3 = vcombine.low %v1791_v43, %v1795_v27  ;;  %v1807_v62 = vld [vmem:[%s15014_s2 + $0x1d8] sm:$0xff] }
  0xfc   :  { %2260 = vmatpush1.bf16.msra.mxu1 %v11969_v7  ;;  %v12039_v27 = vcombine.high %v1807_v62, %v1811_v4  ;;  %v12042_v43 = vcombine.low %v1807_v62, %v1811_v4  ;;  %v15112_v62 = vmov 0  }
  0xfd   :  { %2261 = vmatprep.subr.bf16.mxu1 %v11975_v55  ;;  %15104 = vst [vmem:[#allocation11_spill] sm:$0xff] %v12023_v3 }
  0xfe   :  { %v11999_v29 = vpop.f32.mrb[12].mxu1  ;;  %2762 = vmatpush1.bf16.msra.mxu0 %v11673_v13  ;;  %v1803_v13 = vld [vmem:[%s15014_s2 + $0x1b8] sm:$0xff]  ;;  %15107 = vst [vmem:[#allocation14_spill] sm:$0xff] %v12039_v27  ;;  %15108 = vst [vmem:[#allocation15_spill] sm:$0xff] %v12042_v43 }
  0xff   :  { %v12001_v6 = vpop.f32.mrb[13].mxu1  ;;  %2763 = vmatprep.subr.bf16.mxu0 %v11677_v14  ;;  %v12027_v14 = vcombine.high %v1799_v15, %v1803_v13 }
 0x100   :  { %2262 = vmatpush1.bf16.msra.mxu1 %v11987_v36  ;;  %v12007_v50 = vpop.f32.mrb[14].mxu1 }
 0x101   :  { %2263 = vmatprep.subr.bf16.mxu1 %v11991_v1  ;;  %v12013_v18 = vpop.f32.mrb[15].mxu1  ;;  %15105 = vst [vmem:[#allocation12_spill] sm:$0xff] %v12027_v14 }
 0x102   :  { %2764 = vmatpush1.bf16.msra.mxu0 %v11689_v41  ;;  %v12036_v41 = vcombine.low %v1799_v15, %v1803_v13  ;;  %v15110_v13 = vmov 0.0|0.0  }
 0x103   :  { %2831 = vmatprep.subr.bf16.mxu0 %v11693_v45  ;;  %v209_v45 = vlaneseq }
 0x104   :  { %2264 = vmatpush1.bf16.msra.mxu1 %v12005_v8  ;;  %15106 = vst [vmem:[#allocation13_spill] sm:$0xff] %v12036_v41 }
 0x105   :  { %2265 = vmatprep.subr.bf16.mxu1 %v12011_v52  ;;  %v12045_v2 = vshrl.u32 %v209_v45, 7 }
 0x107   :  { %v12050_v15 = vsub.s32 0, %v12045_v2  ;;  %v12059_v4 = vsub.s32 1, %v12045_v2 }
 0x108   :  { %2266 = vmatpush1.bf16.msra.mxu1 %v12023_v3 }
 0x109   :  { %2267 = vmatprep.subr.bf16.mxu1 %v12027_v14  ;;  %15109 = vst [vmem:[#allocation16_spill] sm:$0xff] %v12050_v15  ;;  %v12056_v14 = vld [vmem:[%s15015_s3] sm:$0xff]  ;;  %15111 = vst [vmem:[#allocation17_spill] sm:$0xff] %v12059_v4 }
 0x10a   :  { %v216_v45 = vrot.slane %v12056_v14, %v12059_v4 }
 0x10c   :  { %2268 = vmatpush1.bf16.msra.mxu1 %v12036_v41 }
 0x10d   :  { %2269 = vmatprep.subr.bf16.mxu1 %v12039_v27 }
 0x110   :  { %2270 = vmatpush1.bf16.msra.mxu1 %v12042_v43 }
 0x111   :  { %2790 = vmatprep.subr.bf16.mxu1 %v11669_v12  ;;  %v212_v12 = vrot.slane %v12056_v14, %v12050_v15 }
 0x113   :  { %2288 = vmatmul.mubr.bf16.vlgmr.msra.gmra.mrb[52].mxu1 %v15110_v13 }
 0x114   :  { %2791 = vmatpush1.bf16.msra.mxu1 %v11752_v39  ;;  %2822 = vmatprep.mubr.bf16.mxu1 %v15112_v62 }
 0x115   :  { %2792 = vmatprep.subr.bf16.mxu1 %v11757_v42 }
 0x118   :  { %2793 = vmatpush1.bf16.msra.mxu1 %v11779_v53  ;;  %v1133_v13 = vpop.f32.mrb[0].mxu0 }
 0x119   :  { %2794 = vmatprep.subr.bf16.mxu1 %v11786_v57  ;;  %v1134_v43 = vadd.f32 %v1133_v13, %v212_v12  ;;  %v1135_v27 = vpop.f32.mrb[1].mxu0 }
 0x11a   :  { %v1136_v41 = vadd.f32 %v1135_v27, %v216_v45  ;;  %v1137_v3 = vpop.f32.mrb[2].mxu0 }
 0x11b   :  { %v1138_v39 = vadd.f32 %v1137_v3, %v212_v12  ;;  %v1139_v52 = vpop.f32.mrb[3].mxu0  ;;  %v12071_v54 = vadd.f32 %v11876_v48, %v1134_v43 }
 0x11c   :  { %2795 = vmatpush1.bf16.msra.mxu1 %v11804_v21  ;;  %v1140_v42 = vadd.f32 %v1139_v52, %v216_v45  ;;  %v12075_v15 = vadd.f32 %v11885_v58, %v1136_v41 }
 0x11d   :  { %2796 = vmatprep.subr.bf16.mxu1 %v11810_v5  ;;  %v12079_v53 = vadd.f32 %v11890_v56, %v1138_v39 }
 0x11e   :  { %v12082_v57 = vadd.f32 %v11895_v61, %v1140_v42 }
 0x120   :  { %2797 = vmatpush1.bf16.msra.mxu1 %v11832_v17  ;;  %v1143_v3 = vpop.f32.mrb[4].mxu0 }
 0x121   :  { %2798 = vmatprep.subr.bf16.mxu1 %v11839_v26  ;;  %v1144_v48 = vadd.f32 %v1143_v3, %v212_v12  ;;  %v1145_v27 = vpop.f32.mrb[5].mxu0 }
 0x122   :  { %v1146_v21 = vadd.f32 %v1145_v27, %v216_v45  ;;  %v1147_v52 = vpop.f32.mrb[6].mxu0 }
 0x123   :  { %v1148_v43 = vadd.f32 %v1147_v52, %v212_v12  ;;  %v1149_v58 = vpop.f32.mrb[7].mxu0  ;;  %v12088_v5 = vadd.f32 %v11925_v11, %v1144_v48 }
 0x124   :  { %2799 = vmatpush1.bf16.msra.mxu1 %v11851_v30  ;;  %v1150_v56 = vadd.f32 %v1149_v58, %v216_v45  ;;  %v12092_v61 = vadd.f32 %v11927_v22, %v1146_v21 }
 0x125   :  { %15113 = vst [vmem:[#allocation18_spill] sm:$0xff] %v12088_v5  ;;  %2800 = vmatprep.subr.bf16.mxu1 %v11855_v33  ;;  %v12095_v17 = vadd.f32 %v11933_v35, %v1148_v43  ;;  %v12134_v43 = vsub.s32 3, %v12045_v2 }
 0x126   :  { %15114 = vst [vmem:[#allocation19_spill] sm:$0xff] %v12092_v61  ;;  %v12098_v26 = vadd.f32 %v11939_v16, %v1150_v56 }
 0x127   :  { %15115 = vst [vmem:[#allocation20_spill] sm:$0xff] %v12095_v17  ;;  %15126 = vst [vmem:[#allocation31_spill] sm:$0xff] %v12134_v43 }
 0x128   :  { %15116 = vst [vmem:[#allocation21_spill] sm:$0xff] %v12098_v26  ;;  %2801 = vmatpush1.bf16.msra.mxu1 %v11869_v44  ;;  %v1153_v41 = vpop.f32.mrb[8].mxu0 }
 0x129   :  { %2802 = vmatprep.subr.bf16.mxu1 %v11873_v47  ;;  %v1154_v30 = vadd.f32 %v1153_v41, %v212_v12  ;;  %v1155_v11 = vpop.f32.mrb[9].mxu0 }
 0x12a   :  { %v1156_v13 = vadd.f32 %v1155_v11, %v216_v45  ;;  %v1157_v39 = vpop.f32.mrb[10].mxu0 }
 0x12b   :  { %v1158_v42 = vadd.f32 %v1157_v39, %v212_v12  ;;  %v1159_v33 = vpop.f32.mrb[11].mxu0  ;;  %v12104_v22 = vadd.f32 %v11963_v24, %v1154_v30 }
 0x12c   :  { %2803 = vmatpush1.bf16.msra.mxu1 %v11892_v59  ;;  %v1160_v35 = vadd.f32 %v1159_v33, %v216_v45  ;;  %v12108_v16 = vadd.f32 %v11965_v25, %v1156_v13 }
 0x12d   :  { %15117 = vst [vmem:[#allocation22_spill] sm:$0xff] %v12104_v22  ;;  %2804 = vmatprep.subr.bf16.mxu1 %v11898_v63  ;;  %v12111_v44 = vadd.f32 %v11971_v10, %v1158_v42 }
 0x12e   :  { %15118 = vst [vmem:[#allocation23_spill] sm:$0xff] %v12108_v16  ;;  %v12114_v47 = vadd.f32 %v11977_v34, %v1160_v35 }
 0x12f   :  { %15119 = vst [vmem:[#allocation24_spill] sm:$0xff] %v12111_v44 }
 0x130   :  { %15120 = vst [vmem:[#allocation25_spill] sm:$0xff] %v12114_v47  ;;  %2805 = vmatpush1.bf16.msra.mxu1 %v11912_v28  ;;  %v1163_v3 = vpop.f32.mrb[12].mxu0 }
 0x131   :  { %2872 = vmatprep.subr.bf16.mxu1 %v11916_v9  ;;  %v1164_v59 = vadd.f32 %v1163_v3, %v212_v12  ;;  %v1165_v24 = vpop.f32.mrb[13].mxu0  ;;  %v12131_v9 = vsub.s32 2, %v12045_v2 }
 0x132   :  { %v1166_v48 = vadd.f32 %v1165_v24, %v216_v45  ;;  %v1167_v27 = vpop.f32.mrb[14].mxu0 }
 0x133   :  { %v1168_v21 = vadd.f32 %v1167_v27, %v212_v12  ;;  %v1169_v63 = vpop.f32.mrb[15].mxu0  ;;  %v12119_v25 = vadd.f32 %v11999_v29, %v1164_v59  ;;  %15125 = vst [vmem:[#allocation30_spill] sm:$0xff] %v12131_v9  ;;  %v12140_v29 = vrot.slane %v12056_v14, %v12131_v9 }
 0x134   :  { %v1170_v52 = vadd.f32 %v1169_v63, %v216_v45  ;;  %v12122_v10 = vadd.f32 %v12001_v6, %v1166_v48 }
 0x135   :  { %15121 = vst [vmem:[#allocation26_spill] sm:$0xff] %v12119_v25  ;;  %v12125_v34 = vadd.f32 %v12007_v50, %v1168_v21  ;;  %v12146_v50 = vrot.slane %v12056_v14, %v12134_v43 }
 0x136   :  { %15122 = vst [vmem:[#allocation27_spill] sm:$0xff] %v12122_v10  ;;  %v12128_v28 = vadd.f32 %v12013_v18, %v1170_v52 }
 0x137   :  { %15123 = vst [vmem:[#allocation28_spill] sm:$0xff] %v12125_v34 }
 0x138   :  { %15124 = vst [vmem:[#allocation29_spill] sm:$0xff] %v12128_v28 }
 0x146   :  { %v12136_v12 = vpop.f32.mrb[16].mxu1 }
 0x147   :  { %v12142_v6 = vpop.f32.mrb[17].mxu1 }
 0x148   :  { %v1356_v18 = vpop.f32.mrb[18].mxu1 }
 0x149   :  { %v12149_v45 = vadd.f32 %v1356_v18, %v12140_v29  ;;  %v1358_v58 = vpop.f32.mrb[19].mxu1 }
 0x14a   :  { %v12152_v56 = vadd.f32 %v1358_v58, %v12146_v50 }
 0x14e   :  { %v1362_v41 = vpop.f32.mrb[20].mxu1 }
 0x14f   :  { %v12155_v30 = vadd.f32 %v1362_v41, %v12140_v29  ;;  %v1364_v11 = vpop.f32.mrb[21].mxu1 }
 0x150   :  { %v12158_v13 = vadd.f32 %v1364_v11, %v12146_v50  ;;  %v1366_v39 = vpop.f32.mrb[22].mxu1 }
 0x151   :  { %15127 = vst [vmem:[#allocation32_spill] sm:$0xff] %v12155_v30  ;;  %v12161_v42 = vadd.f32 %v1366_v39, %v12140_v29  ;;  %v1368_v33 = vpop.f32.mrb[23].mxu1 }
 0x152   :  { %15128 = vst [vmem:[#allocation33_spill] sm:$0xff] %v12158_v13  ;;  %v12164_v35 = vadd.f32 %v1368_v33, %v12146_v50 }
 0x153   :  { %15129 = vst [vmem:[#allocation34_spill] sm:$0xff] %v12161_v42 }
 0x154   :  { %15130 = vst [vmem:[#allocation35_spill] sm:$0xff] %v12164_v35 }
 0x156   :  { %v1372_v3 = vpop.f32.mrb[24].mxu1 }
 0x157   :  { %v12167_v59 = vadd.f32 %v1372_v3, %v12140_v29  ;;  %v1374_v24 = vpop.f32.mrb[25].mxu1 }
 0x158   :  { %v12170_v48 = vadd.f32 %v1374_v24, %v12146_v50  ;;  %v1376_v27 = vpop.f32.mrb[26].mxu1 }
 0x159   :  { %15131 = vst [vmem:[#allocation36_spill] sm:$0xff] %v12167_v59  ;;  %v12173_v21 = vadd.f32 %v1376_v27, %v12140_v29  ;;  %v1378_v63 = vpop.f32.mrb[27].mxu1  ;;  %v227_v27 = vsub.s32 4, %v12045_v2 }
 0x15a   :  { %15132 = vst [vmem:[#allocation37_spill] sm:$0xff] %v12170_v48  ;;  %v12176_v52 = vadd.f32 %v1378_v63, %v12146_v50  ;;  %v231_v63 = vsub.s32 5, %v12045_v2 }
 0x15b   :  { %15133 = vst [vmem:[#allocation38_spill] sm:$0xff] %v12173_v21  ;;  %v12193_v43 = vrot.slane %v12056_v14, %v227_v27 }
 0x15c   :  { %15134 = vst [vmem:[#allocation39_spill] sm:$0xff] %v12176_v52 }
 0x15e   :  { %v1382_v18 = vpop.f32.mrb[28].mxu1 }
 0x15f   :  { %v12179_v58 = vadd.f32 %v1382_v18, %v12140_v29  ;;  %v1384_v41 = vpop.f32.mrb[29].mxu1  ;;  %v12196_v18 = vrot.slane %v12056_v14, %v231_v63 }
 0x160   :  { %v12182_v11 = vadd.f32 %v1384_v41, %v12146_v50  ;;  %v1386_v39 = vpop.f32.mrb[30].mxu1 }
 0x161   :  { %15135 = vst [vmem:[#allocation40_spill] sm:$0xff] %v12179_v58  ;;  %v12185_v33 = vadd.f32 %v1386_v39, %v12140_v29  ;;  %v1388_v3 = vpop.f32.mrb[31].mxu1 }
 0x162   :  { %15136 = vst [vmem:[#allocation41_spill] sm:$0xff] %v12182_v11  ;;  %v12188_v24 = vadd.f32 %v1388_v3, %v12146_v50 }
 0x163   :  { %15137 = vst [vmem:[#allocation42_spill] sm:$0xff] %v12185_v33 }
 0x164   :  { %15138 = vst [vmem:[#allocation43_spill] sm:$0xff] %v12188_v24 }
 0x178   :  { %v1498_v41 = vpop.f32.mrb[16].mxu0 }
 0x179   :  { %v12199_v4 = vadd.f32 %v1498_v41, %v12193_v43  ;;  %v1500_v39 = vpop.f32.mrb[17].mxu0 }
 0x17a   :  { %v12202_v9 = vadd.f32 %v1500_v39, %v12196_v18  ;;  %v1502_v3 = vpop.f32.mrb[18].mxu0 }
 0x17b   :  { %15139 = vst [vmem:[#allocation44_spill] sm:$0xff] %v12199_v4  ;;  %v12205_v24 = vadd.f32 %v1502_v3, %v12193_v43  ;;  %v1504_v28 = vpop.f32.mrb[19].mxu0 }
 0x17c   :  { %15140 = vst [vmem:[#allocation45_spill] sm:$0xff] %v12202_v9  ;;  %v12208_v33 = vadd.f32 %v1504_v28, %v12196_v18 }
 0x17d   :  { %15141 = vst [vmem:[#allocation46_spill] sm:$0xff] %v12205_v24 }
 0x17e   :  { %15142 = vst [vmem:[#allocation47_spill] sm:$0xff] %v12208_v33 }
 0x180   :  { %v1508_v27 = vpop.f32.mrb[20].mxu0 }
 0x181   :  { %v12211_v63 = vadd.f32 %v1508_v27, %v12193_v43  ;;  %v1510_v34 = vpop.f32.mrb[21].mxu0 }
 0x182   :  { %v12214_v41 = vadd.f32 %v1510_v34, %v12196_v18  ;;  %v1512_v4 = vpop.f32.mrb[22].mxu0 }
 0x183   :  { %15143 = vst [vmem:[#allocation48_spill] sm:$0xff] %v12211_v63  ;;  %v12217_v39 = vadd.f32 %v1512_v4, %v12193_v43  ;;  %v1514_v9 = vpop.f32.mrb[23].mxu0 }
 0x184   :  { %15144 = vst [vmem:[#allocation49_spill] sm:$0xff] %v12214_v41  ;;  %v12220_v3 = vadd.f32 %v1514_v9, %v12196_v18 }
 0x185   :  { %15145 = vst [vmem:[#allocation50_spill] sm:$0xff] %v12217_v39 }
 0x186   :  { %15146 = vst [vmem:[#allocation51_spill] sm:$0xff] %v12220_v3  ;;  %v239_v3 = vsub.s32 7, %v12045_v2 }
 0x188   :  { %v1518_v24 = vpop.f32.mrb[24].mxu0 }
 0x189   :  { %v12223_v28 = vadd.f32 %v1518_v24, %v12193_v43  ;;  %v1520_v33 = vpop.f32.mrb[25].mxu0 }
 0x18a   :  { %v12226_v27 = vadd.f32 %v1520_v33, %v12196_v18  ;;  %v1522_v11 = vpop.f32.mrb[26].mxu0 }
 0x18b   :  { %15147 = vst [vmem:[#allocation52_spill] sm:$0xff] %v12223_v28  ;;  %v12229_v34 = vadd.f32 %v1522_v11, %v12193_v43  ;;  %v1524_v10 = vpop.f32.mrb[27].mxu0 }
 0x18c   :  { %15148 = vst [vmem:[#allocation53_spill] sm:$0xff] %v12226_v27  ;;  %v12232_v4 = vadd.f32 %v1524_v10, %v12196_v18  ;;  %v235_v10 = vsub.s32 6, %v12045_v2 }
 0x18d   :  { %15149 = vst [vmem:[#allocation54_spill] sm:$0xff] %v12229_v34 }
 0x18e   :  { %15150 = vst [vmem:[#allocation55_spill] sm:$0xff] %v12232_v4 }
 0x190   :  { %v1528_v58 = vpop.f32.mrb[28].mxu0 }
 0x191   :  { %v12235_v9 = vadd.f32 %v1528_v58, %v12193_v43  ;;  %v1530_v25 = vpop.f32.mrb[29].mxu0  ;;  %v12245_v58 = vrot.slane %v12056_v14, %v235_v10 }
 0x192   :  { %v12238_v24 = vadd.f32 %v1530_v25, %v12196_v18  ;;  %v1532_v41 = vpop.f32.mrb[30].mxu0  ;;  %v12248_v25 = vrot.slane %v12056_v14, %v239_v3 }
 0x193   :  { %v1534_v63 = vpop.f32.mrb[31].mxu0 }
 0x198   :  { %v2166_v33 = vpop.f32.mrb[32].mxu0 }
 0x199   :  { %v2300_v52 = vadd.f32 %v2166_v33, %v12071_v54  ;;  %v2168_v47 = vpop.f32.mrb[33].mxu0 }
 0x19a   :  { %v2301_v11 = vadd.f32 %v2168_v47, %v12075_v15  ;;  %v2170_v21 = vpop.f32.mrb[34].mxu0 }
 0x19b   :  { %v2171_v44 = vpop.f32.mrb[35].mxu0 }
 0x1a6   :  { %v1644_v39 = vpop.f32.mrb[32].mxu1 }
 0x1a7   :  { %v12251_v48 = vadd.f32 %v1644_v39, %v12245_v58  ;;  %v1646_v54 = vpop.f32.mrb[33].mxu1 }
 0x1a8   :  { %v12254_v33 = vadd.f32 %v1646_v54, %v12248_v25  ;;  %v1648_v15 = vpop.f32.mrb[34].mxu1 }
 0x1a9   :  { %15151 = vst [vmem:[#allocation56_spill] sm:$0xff] %v12251_v48  ;;  %v12257_v44 = vadd.f32 %v1648_v15, %v12245_v58  ;;  %v1650_v47 = vpop.f32.mrb[35].mxu1  ;;  %v9360_v48 = vmul.f32 -1.442695, %v2301_v11 }
 0x1aa   :  { %15152 = vst [vmem:[#allocation57_spill] sm:$0xff] %v12254_v33  ;;  %v12260_v2 = vadd.f32 %v1650_v47, %v12248_v25 }
 0x1ab   :  { %15153 = vst [vmem:[#allocation58_spill] sm:$0xff] %v12257_v44  ;;  %v9359_v44 = vmul.f32 -1.442695, %v2300_v52  ;;  %10483 = vpow2.f32 %v9360_v48 }
 0x1ac   :  { %15154 = vst [vmem:[#allocation59_spill] sm:$0xff] %v12260_v2 }
 0x1ad   :  { %10485 = vpow2.f32 %v9359_v44  ;;  %v10144_v44 = vadd.f32 %v1534_v63, %v12196_v18  ;;  %v10113_v18 = vadd.f32 %v12136_v12, %v12140_v29  ;;  %v10114_v63 = vadd.f32 %v12142_v6, %v12146_v50 }
 0x1ae   :  { %v1654_v21 = vpop.f32.mrb[36].mxu1 }
 0x1af   :  { %v12263_v14 = vadd.f32 %v1654_v21, %v12245_v58  ;;  %v1656_v3 = vpop.f32.mrb[37].mxu1 }
 0x1b0   :  { %v12266_v39 = vadd.f32 %v1656_v3, %v12248_v25  ;;  %v1658_v10 = vpop.f32.mrb[38].mxu1 }
 0x1b1   :  { %15155 = vst [vmem:[#allocation60_spill] sm:$0xff] %v12263_v14  ;;  %v12269_v54 = vadd.f32 %v1658_v10, %v12245_v58  ;;  %v1660_v33 = vpop.f32.mrb[39].mxu1 }
 0x1b2   :  { %15156 = vst [vmem:[#allocation61_spill] sm:$0xff] %v12266_v39  ;;  %v12272_v15 = vadd.f32 %v1660_v33, %v12248_v25  ;;  %v10143_v33 = vadd.f32 %v1532_v41, %v12193_v43 }
 0x1b3   :  { %15157 = vst [vmem:[#allocation62_spill] sm:$0xff] %v12269_v54 }
 0x1b4   :  { %15158 = vst [vmem:[#allocation63_spill] sm:$0xff] %v12272_v15 }
 0x1b5   :  { %v10484_v22 = vpop.eup %10483 }
 0x1b6   :  { %v1664_v47 = vpop.f32.mrb[40].mxu1 }
 0x1b7   :  { %v12275_v21 = vadd.f32 %v1664_v47, %v12245_v58  ;;  %v1666_v2 = vpop.f32.mrb[41].mxu1  ;;  %v10486_v41 = vpop.eup %10485 }
 0x1b8   :  { %v12278_v3 = vadd.f32 %v1666_v2, %v12248_v25  ;;  %v1668_v39 = vpop.f32.mrb[42].mxu1  ;;  %v2248_v11 = vpop.f32.mrb[36].mxu0 }
 0x1b9   :  { %15159 = vst [vmem:[#allocation64_spill] sm:$0xff] %v12275_v21  ;;  %v12281_v10 = vadd.f32 %v1668_v39, %v12245_v58  ;;  %v1670_v14 = vpop.f32.mrb[43].mxu1  ;;  %v2249_v48 = vpop.f32.mrb[37].mxu0 }
 0x1ba   :  { %15160 = vst [vmem:[#allocation65_spill] sm:$0xff] %v12278_v3  ;;  %v12285_v52 = vadd.f32 %v1670_v14, %v12248_v25  ;;  %v2250_v47 = vpop.f32.mrb[38].mxu0  ;;  %v2322_v3 = vadd.f32 1.0, %v10484_v22  ;;  %v2316_v48 = vadd.f32 1.0, %v10486_v41 }
 0x1bb   :  { %15161 = vst [vmem:[#allocation66_spill] sm:$0xff] %v12281_v10  ;;  %v2309_v15 = vadd.f32 %v10143_v33, %v2250_v47  ;;  %v2252_v54 = vpop.f32.mrb[39].mxu0 }
 0x1bc   :  { %15162 = vst [vmem:[#allocation67_spill] sm:$0xff] %v12285_v52  ;;  %v2310_v16 = vadd.f32 %v10144_v44, %v2252_v54  ;;  %10487 = vrcp.f32 %v2322_v3 }
 0x1bd   :  { %10489 = vrcp.f32 %v2316_v48  ;;  %v9362_v26 = vmul.f32 -1.442695, %v2309_v15 }
 0x1be   :  { %v1674_v2 = vpop.f32.mrb[44].mxu1  ;;  %v9363_v41 = vmul.f32 -1.442695, %v2310_v16 }
 0x1bf   :  { %v12289_v59 = vadd.f32 %v1674_v2, %v12245_v58  ;;  %v1676_v39 = vpop.f32.mrb[45].mxu1 }
 0x1c0   :  { %v12292_v11 = vadd.f32 %v1676_v39, %v12248_v25  ;;  %v1678_v43 = vpop.f32.mrb[46].mxu1 }
 0x1c1   :  { %v1680_v14 = vpop.f32.mrb[47].mxu1 }
 0x1c6   :  { %v2207_v54 = vpop.f32.mrb[48].mxu1  ;;  %v10488_v27 = vpop.eup %10487 }
 0x1c7   :  { %v2302_v33 = vadd.f32 %v10113_v18, %v2207_v54  ;;  %v2209_v44 = vpop.f32.mrb[49].mxu1  ;;  %v10490_v21 = vpop.eup %10489  ;;  %v2332_v22 = vmul.f32 0.0, %v10488_v27 }
 0x1c8   :  { %v2303_v47 = vadd.f32 %v10114_v63, %v2209_v44  ;;  %v2211_v2 = vpop.f32.mrb[50].mxu1  ;;  %v10159_v63 = vadd.f32 %v1678_v43, %v12245_v58 }
 0x1c9   :  { %10491 = vtanh.f32 %v2302_v33  ;;  %v2212_v39 = vpop.f32.mrb[51].mxu1  ;;  %v10160_v33 = vadd.f32 %v1680_v14, %v12248_v25 }
 0x1ca   :  { %10493 = vpow2.f32 %v9363_v41  ;;  %v9361_v50 = vmul.f32 -1.442695, %v2303_v47 }
 0x1cb   :  { %10495 = vpow2.f32 %v9362_v26 }
 0x1cc   :  { %10497 = vpow2.f32 %v9361_v50 }
 0x1d3   :  { %v10492_v28 = vpop.eup %10491 }
 0x1d4   :  { %v2333_v35 = vmul.f32 %v10492_v28, %v10490_v21  ;;  %v10494_v29 = vpop.eup %10493 }
 0x1d5   :  { %v10496_v6 = vpop.eup %10495  ;;  %v2346_v3 = vadd.f32 1.0, %v10494_v29 }
 0x1d6   :  { %v12298_v12 = vadd.f32 %v2333_v35, %v2332_v22  ;;  %v2340_v48 = vadd.f32 1.0, %v10496_v6  ;;  %v10498_v15 = vpop.eup %10497 }
 0x1d7   :  { %10499 = vrcp.f32 %v2346_v3  ;;  %v2329_v2 = vadd.f32 1.0, %v10498_v15 }
 0x1d8   :  { %10501 = vrcp.f32 %v2340_v48 }
 0x1e1   :  { %v10500_v21 = vpop.eup %10499 }
 0x1e2   :  { %v10502_v44 = vpop.eup %10501  ;;  %v2356_v39 = vmul.f32 0.0, %v10500_v21  ;;  %v3000_v21 = vld [vmem:[%s15014_s2 + $0x80] sm:$0xff] }
 0x1e6   :  { %v2289_v18 = vpop.f32.mrb[52].mxu1 }
 0x1e7   :  { %v2290_v54 = vpop.f32.mrb[53].mxu1 }
 0x1e8   :  { %v2291_v27 = vpop.f32.mrb[54].mxu1  ;;  %v2992_v54 = vld [vmem:[%s15014_s2 + $0x40] sm:$0xff] }
 0x1e9   :  { %v2311_v16 = vadd.f32 %v10159_v63, %v2291_v27  ;;  %v2293_v28 = vpop.f32.mrb[55].mxu1  ;;  %v2993_v27 = vld [vmem:[%s15014_s2 + $0x48] sm:$0xff] }
 0x1ea   :  { %v2312_v35 = vadd.f32 %v10160_v33, %v2293_v28  ;;  %v2996_v33 = vld [vmem:[%s15014_s2 + $0x60] sm:$0xff]  ;;  %v2997_v28 = vld [vmem:[%s15014_s2 + $0x68] sm:$0xff] }
 0x1eb   :  { %10503 = vtanh.f32 %v2311_v16  ;;  %v12379_v16 = vcombine.high %v2992_v54, %v2996_v33  ;;  %v12388_v15 = vcombine.high %v2993_v27, %v2997_v28 }
 0x1ec   :  { %v9364_v26 = vmul.f32 -1.442695, %v2312_v35  ;;  %v12384_v35 = vcombine.low %v2992_v54, %v2996_v33  ;;  %v3029_v54 = vld [vmem:[%s15014_s2 + $0x168] sm:$0xff]  ;;  %v3032_v33 = vld [vmem:[%s15014_s2 + $0x180] sm:$0xff] }
 0x1ee   :  { %10505 = vpow2.f32 %v9364_v26  ;;  %v12386_v26 = vcombine.low %v2993_v27, %v2997_v28  ;;  %v3036_v27 = vld [vmem:[%s15014_s2 + $0x1a0] sm:$0xff] }
 0x1ef   :  { %10507 = vtanh.f32 %v12298_v12 }
 0x1f0   :  { %10509 = vrcp.f32 %v2329_v2 }
 0x1f5   :  { %v10504_v47 = vpop.eup %10503 }
 0x1f6   :  { %v2357_v58 = vmul.f32 %v10504_v47, %v10502_v44  ;;  %v3004_v44 = vld [vmem:[%s15014_s2 + $0xa0] sm:$0xff]  ;;  %v3001_v47 = vld [vmem:[%s15014_s2 + $0x88] sm:$0xff] }
 0x1f7   :  { %v12403_v2 = vcombine.high %v3000_v21, %v3004_v44 }
 0x1f8   :  { %v10506_v43 = vpop.eup %10505  ;;  %v12303_v25 = vadd.f32 %v2357_v58, %v2356_v39  ;;  %v3005_v39 = vld [vmem:[%s15014_s2 + $0xa8] sm:$0xff]  ;;  %v12408_v58 = vcombine.low %v3000_v21, %v3004_v44  ;;  %v12492_v44 = vcombine.high %v3032_v33, %v3036_v27 }
 0x1f9   :  { %v2353_v14 = vadd.f32 1.0, %v10506_v43  ;;  %v10508_v22 = vpop.eup %10507  ;;  %v12410_v43 = vcombine.low %v3001_v47, %v3005_v39 }
 0x1fa   :  { %10511 = vtanh.f32 %v12303_v25  ;;  %v10510_v41 = vpop.eup %10509 }
 0x1fb   :  { %10513 = vrcp.f32 %v2353_v14  ;;  %v12306_v50 = vmul.f32 %v10510_v41, %v10508_v22  ;;  %v12412_v14 = vcombine.high %v3001_v47, %v3005_v39  ;;  %v3008_v22 = vld [vmem:[%s15014_s2 + $0xc0] sm:$0xff]  ;;  %v3033_v47 = vld [vmem:[%s15014_s2 + $0x188] sm:$0xff] }
 0x1fc   :  { %v3012_v41 = vld [vmem:[%s15014_s2 + $0xe0] sm:$0xff]  ;;  %v3037_v39 = vld [vmem:[%s15014_s2 + $0x1a8] sm:$0xff] }
 0x1fd   :  { %15163 = vst [vmem:[#allocation68_spill] sm:$0xff] %v12306_v50 }
 0x204   :  { %v10512_v29 = vpop.eup %10511 }
 0x205   :  { %v10514_v6 = vpop.eup %10513 }
 0x206   :  { %v12308_v3 = vmul.f32 %v10514_v6, %v10512_v29  ;;  %v3009_v29 = vld [vmem:[%s15014_s2 + $0xc8] sm:$0xff]  ;;  %v12427_v6 = vcombine.high %v3008_v22, %v3012_v41 }
 0x208   :  { %15164 = vst [vmem:[#allocation69_spill] sm:$0xff] %v12308_v3  ;;  %v2364_v48 = vpack.c.bf16 %v12308_v3, %v12306_v50 }
 0x20a   :  { %2782 = vmatmul.mubr.bf16.vlgmr.msra.gmra.mrb[40].mxu0 %v2364_v48  ;;  %2823 = vmatmul.mubr.bf16.vlgmr.msra.gmra.mrb[56].mxu1 %v2364_v48 }
 0x20b   :  { %2832 = vmatpush1.bf16.msra.mxu0 %v11703_v19  ;;  %2873 = vmatpush1.bf16.msra.mxu1 %v11931_v23  ;;  %v15165_v19 = vld [vmem:[#allocation4_spill] sm:$0xff] }
 0x20c   :  { %2833 = vmatprep.subr.bf16.mxu0 %v11707_v20  ;;  %2874 = vmatprep.subr.bf16.mxu1 %v11937_v37  ;;  %v15166_v20 = vld [vmem:[#allocation10_spill] sm:$0xff]  ;;  %v15173_v23 = vld [vmem:[#allocation8_spill] sm:$0xff]  ;;  %v15175_v37 = vld [vmem:[#allocation9_spill] sm:$0xff] }
 0x20d   :  { %2863 = vmatprep.mubr.bf16.mxu0 %v15112_v62  ;;  %2904 = vmatprep.mubr.bf16.mxu1 %v15112_v62 }
 0x20f   :  { %2834 = vmatpush1.bf16.msra.mxu0 %v11717_v60  ;;  %2875 = vmatpush1.bf16.msra.mxu1 %v11950_v46  ;;  %v15167_v60 = vld [vmem:[#allocation5_spill] sm:$0xff]  ;;  %v15176_v46 = vld [vmem:[#allocation15_spill] sm:$0xff] }
 0x210   :  { %2835 = vmatprep.subr.bf16.mxu0 %v11721_v0  ;;  %2876 = vmatprep.subr.bf16.mxu1 %v11954_v49  ;;  %v15168_v0 = vld [vmem:[#allocation11_spill] sm:$0xff]  ;;  %v2984_v49 = vld [vmem:[%s15014_s2] sm:$0xff] }
 0x213   :  { %2836 = vmatpush1.bf16.msra.mxu0 %v11731_v31  ;;  %2877 = vmatpush1.bf16.msra.mxu1 %v11969_v7  ;;  %v15169_v31 = vld [vmem:[#allocation6_spill] sm:$0xff]  ;;  %v2988_v7 = vld [vmem:[%s15014_s2 + $0x20] sm:$0xff] }
 0x214   :  { %2837 = vmatprep.subr.bf16.mxu0 %v11735_v32  ;;  %2878 = vmatprep.subr.bf16.mxu1 %v11975_v55  ;;  %v15170_v32 = vld [vmem:[#allocation12_spill] sm:$0xff]  ;;  %v2985_v55 = vld [vmem:[%s15014_s2 + $0x8] sm:$0xff] }
 0x217   :  { %2838 = vmatpush1.bf16.msra.mxu0 %v11750_v38  ;;  %2879 = vmatpush1.bf16.msra.mxu1 %v11987_v36  ;;  %v15171_v38 = vld [vmem:[#allocation7_spill] sm:$0xff]  ;;  %v12355_v36 = vcombine.high %v2984_v49, %v2988_v7 }
 0x218   :  { %2839 = vmatprep.subr.bf16.mxu0 %v11755_v40  ;;  %2880 = vmatprep.subr.bf16.mxu1 %v11991_v1  ;;  %v15172_v40 = vld [vmem:[#allocation13_spill] sm:$0xff] }
 0x219   :  { %v2989_v1 = vld [vmem:[%s15014_s2 + $0x28] sm:$0xff] }
 0x21a   :  { %v12362_v18 = vcombine.low %v2985_v55, %v2989_v1  ;;  %v12364_v63 = vcombine.high %v2985_v55, %v2989_v1 }
 0x21b   :  { %2840 = vmatpush1.bf16.msra.mxu0 %v11776_v51  ;;  %2881 = vmatpush1.bf16.msra.mxu1 %v12005_v8  ;;  %v15174_v51 = vld [vmem:[#allocation14_spill] sm:$0xff]  ;;  %v12360_v8 = vcombine.low %v2984_v49, %v2988_v7  ;;  %v3028_v49 = vld [vmem:[%s15014_s2 + $0x160] sm:$0xff]  ;;  %v3025_v7 = vld [vmem:[%s15014_s2 + $0x148] sm:$0xff] }
 0x21c   :  { %2841 = vmatprep.subr.bf16.mxu0 %v15165_v19  ;;  %2882 = vmatprep.subr.bf16.mxu1 %v15166_v20  ;;  %v12432_v19 = vcombine.low %v3008_v22, %v3012_v41  ;;  %v12488_v28 = vcombine.low %v3025_v7, %v3029_v54  ;;  %v12490_v21 = vcombine.high %v3025_v7, %v3029_v54  ;;  %v3040_v22 = vld [vmem:[%s15014_s2 + $0x1c0] sm:$0xff] }
 0x21d   :  { %v12504_v41 = vcombine.high %v3033_v47, %v3037_v39 }
 0x21f   :  { %2842 = vmatpush1.bf16.msra.mxu0 %v15167_v60  ;;  %2883 = vmatpush1.bf16.msra.mxu1 %v15168_v0  ;;  %v3016_v0 = vld [vmem:[%s15014_s2 + $0x100] sm:$0xff] }
 0x220   :  { %2843 = vmatprep.subr.bf16.mxu0 %v15169_v31  ;;  %2884 = vmatprep.subr.bf16.mxu1 %v15170_v32  ;;  %v3020_v31 = vld [vmem:[%s15014_s2 + $0x120] sm:$0xff]  ;;  %v3017_v32 = vld [vmem:[%s15014_s2 + $0x108] sm:$0xff] }
 0x223   :  { %2844 = vmatpush1.bf16.msra.mxu0 %v15171_v38  ;;  %2885 = vmatpush1.bf16.msra.mxu1 %v15172_v40  ;;  %v12451_v38 = vcombine.high %v3016_v0, %v3020_v31  ;;  %v3021_v40 = vld [vmem:[%s15014_s2 + $0x128] sm:$0xff] }
 0x224   :  { %2845 = vmatprep.subr.bf16.mxu0 %v15173_v23  ;;  %2886 = vmatprep.subr.bf16.mxu1 %v15174_v51  ;;  %v12456_v23 = vcombine.low %v3016_v0, %v3020_v31  ;;  %v12458_v51 = vcombine.low %v3017_v32, %v3021_v40  ;;  %v3045_v0 = vld [vmem:[%s15014_s2 + $0x1e8] sm:$0xff]  ;;  %v12517_v31 = vcombine.low %v3032_v33, %v3036_v27  ;;  %v2991_v33 = vld [vmem:[%s15014_s2 + $0x38] sm:$0xff] }
 0x227   :  { %2846 = vmatpush1.bf16.msra.mxu0 %v15175_v37  ;;  %2887 = vmatpush1.bf16.msra.mxu1 %v15176_v46  ;;  %v12460_v37 = vcombine.high %v3017_v32, %v3021_v40  ;;  %v3024_v46 = vld [vmem:[%s15014_s2 + $0x140] sm:$0xff]  ;;  %v2986_v32 = vld [vmem:[%s15014_s2 + $0x10] sm:$0xff] }
 0x228   :  { %3368 = vmatprep.subr.bf16.mxu0 %v12355_v36  ;;  %3409 = vmatprep.subr.bf16.mxu1 %v12364_v63  ;;  %v12475_v55 = vcombine.low %v3024_v46, %v3028_v49  ;;  %v12477_v1 = vcombine.high %v3024_v46, %v3028_v49  ;;  %v2990_v40 = vld [vmem:[%s15014_s2 + $0x30] sm:$0xff]  ;;  %v2987_v46 = vld [vmem:[%s15014_s2 + $0x18] sm:$0xff]  ;;  %v12530_v49 = vcombine.low %v3033_v47, %v3037_v39 }
 0x229   :  { %v12534_v54 = vcombine.low %v2986_v32, %v2990_v40  ;;  %v12542_v3 = vcombine.low %v2987_v46, %v2991_v33  ;;  %v12551_v39 = vcombine.high %v2986_v32, %v2990_v40  ;;  %v12554_v42 = vcombine.high %v2987_v46, %v2991_v33 }
 0x22a   :  { %2864 = vmatmul.mubr.bf16.vlgmr.msra.gmra.mrb[44].mxu0 %v2364_v48  ;;  %2905 = vmatmul.mubr.bf16.vlgmr.msra.gmra.mrb[60].mxu1 %v2364_v48  ;;  %v3013_v48 = vld [vmem:[%s15014_s2 + $0xe8] sm:$0xff] }
 0x22b   :  { %3400 = vmatprep.mubr.bf16.mxu0 %v15112_v62  ;;  %3441 = vmatprep.mubr.bf16.mxu1 %v15112_v62  ;;  %v12434_v20 = vcombine.low %v3009_v29, %v3013_v48  ;;  %v12436_v60 = vcombine.high %v3009_v29, %v3013_v48  ;;  %v3044_v29 = vld [vmem:[%s15014_s2 + $0x1e0] sm:$0xff]  ;;  %v3041_v48 = vld [vmem:[%s15014_s2 + $0x1c8] sm:$0xff] }
 0x22c   :  { %3369 = vmatpush1.bf16.msra.mxu0 %v12360_v8  ;;  %3410 = vmatpush1.bf16.msra.mxu1 %v12362_v18  ;;  %v12532_v7 = vcombine.high %v3040_v22, %v3044_v29  ;;  %v12540_v27 = vcombine.high %v3041_v48, %v3045_v0  ;;  %v12545_v50 = vcombine.low %v3040_v22, %v3044_v29 }
 0x22d   :  { %3370 = vmatprep.subr.bf16.mxu0 %v12379_v16  ;;  %3411 = vmatprep.subr.bf16.mxu1 %v12388_v15  ;;  %v12549_v47 = vcombine.low %v3041_v48, %v3045_v0 }
 0x230   :  { %3371 = vmatpush1.bf16.msra.mxu0 %v12384_v35  ;;  %3412 = vmatpush1.bf16.msra.mxu1 %v12386_v26 }
 0x231   :  { %3372 = vmatprep.subr.bf16.mxu0 %v12403_v2  ;;  %3413 = vmatprep.subr.bf16.mxu1 %v12412_v14 }
 0x234   :  { %3373 = vmatpush1.bf16.msra.mxu0 %v12408_v58  ;;  %3414 = vmatpush1.bf16.msra.mxu1 %v12410_v43 }
 0x235   :  { %3374 = vmatprep.subr.bf16.mxu0 %v12427_v6  ;;  %3415 = vmatprep.subr.bf16.mxu1 %v12436_v60 }
 0x238   :  { %3375 = vmatpush1.bf16.msra.mxu0 %v12432_v19  ;;  %3416 = vmatpush1.bf16.msra.mxu1 %v12434_v20 }
 0x239   :  { %3376 = vmatprep.subr.bf16.mxu0 %v12451_v38  ;;  %3417 = vmatprep.subr.bf16.mxu1 %v12460_v37 }
 0x23c   :  { %3377 = vmatpush1.bf16.msra.mxu0 %v12456_v23  ;;  %3418 = vmatpush1.bf16.msra.mxu1 %v12458_v51 }
 0x23d   :  { %3378 = vmatprep.subr.bf16.mxu0 %v12477_v1  ;;  %3419 = vmatprep.subr.bf16.mxu1 %v12490_v21 }
 0x240   :  { %3379 = vmatpush1.bf16.msra.mxu0 %v12475_v55  ;;  %3420 = vmatpush1.bf16.msra.mxu1 %v12488_v28 }
 0x241   :  { %3380 = vmatprep.subr.bf16.mxu0 %v12492_v44  ;;  %3421 = vmatprep.subr.bf16.mxu1 %v12504_v41 }
 0x244   :  { %3381 = vmatpush1.bf16.msra.mxu0 %v12517_v31  ;;  %3422 = vmatpush1.bf16.msra.mxu1 %v12530_v49 }
 0x245   :  { %3382 = vmatprep.subr.bf16.mxu0 %v12532_v7  ;;  %3423 = vmatprep.subr.bf16.mxu1 %v12540_v27 }
 0x248   :  { %3383 = vmatpush1.bf16.msra.mxu0 %v12545_v50  ;;  %3424 = vmatpush1.bf16.msra.mxu1 %v12549_v47 }
 0x249   :  { %3450 = vmatprep.subr.bf16.mxu0 %v12551_v39  ;;  %3491 = vmatprep.subr.bf16.mxu1 %v12554_v42 }
 0x2dd   :  { %v2783_v22 = vpop.f32.mrb[40].mxu0  ;;  %v2824_v29 = vpop.f32.mrb[56].mxu1 }
 0x2de   :  { %v2918_v17 = vadd.f32 %v2783_v22, %v12079_v53  ;;  %v2920_v48 = vadd.f32 %v12149_v45, %v2824_v29  ;;  %v2785_v0 = vpop.f32.mrb[41].mxu0  ;;  %v2826_v32 = vpop.f32.mrb[57].mxu1 }
 0x2df   :  { %v2919_v40 = vadd.f32 %v2785_v0, %v12082_v57  ;;  %v2921_v46 = vadd.f32 %v12152_v56, %v2826_v32  ;;  %v2787_v33 = vpop.f32.mrb[42].mxu0  ;;  %v2828_v52 = vpop.f32.mrb[58].mxu1 }
 0x2e0   :  { %v9429_v4 = vmul.f32 -1.442695, %v2918_v17  ;;  %v2788_v10 = vpop.f32.mrb[43].mxu0  ;;  %v2829_v34 = vpop.f32.mrb[59].mxu1 }
 0x2e1   :  { %v9430_v13 = vmul.f32 -1.442695, %v2919_v40 }
 0x2e2   :  { %10515 = vpow2.f32 %v9429_v4 }
 0x2e3   :  { %10517 = vpow2.f32 %v9430_v13 }
 0x2e4   :  { %10519 = vtanh.f32 %v2920_v48 }
 0x2ec   :  { %v10516_v61 = vpop.eup %10515 }
 0x2ed   :  { %v10518_v30 = vpop.eup %10517  ;;  %v2934_v5 = vadd.f32 1.0, %v10516_v61 }
 0x2ee   :  { %v2940_v53 = vadd.f32 1.0, %v10518_v30  ;;  %v10520_v45 = vpop.eup %10519 }
 0x2ef   :  { %10521 = vrcp.f32 %v2934_v5 }
 0x2f0   :  { %10523 = vrcp.f32 %v2940_v53  ;;  %v9431_v53 = vmul.f32 -1.442695, %v2921_v46 }
 0x2f9   :  { %v10522_v22 = vpop.eup %10521 }
 0x2fa   :  { %v10524_v57 = vpop.eup %10523  ;;  %v2951_v29 = vmul.f32 %v10522_v22, %v10520_v45 }
 0x2fb   :  { %v2950_v56 = vmul.f32 %v10524_v57, %v12298_v12 }
 0x2fd   :  { %v12565_v52 = vadd.f32 %v2951_v29, %v2950_v56  ;;  %v2865_v17 = vpop.f32.mrb[44].mxu0  ;;  %v2906_v34 = vpop.f32.mrb[60].mxu1 }
 0x2fe   :  { %v2866_v10 = vpop.f32.mrb[45].mxu0  ;;  %v2907_v4 = vpop.f32.mrb[61].mxu1 }
 0x2ff   :  { %v2867_v13 = vpop.f32.mrb[46].mxu0  ;;  %v2908_v0 = vpop.f32.mrb[62].mxu1 }
 0x300   :  { %v2927_v61 = vadd.f32 %v12235_v9, %v2867_v13  ;;  %v2929_v30 = vadd.f32 %v12289_v59, %v2908_v0  ;;  %v2869_v5 = vpop.f32.mrb[47].mxu0  ;;  %v2910_v48 = vpop.f32.mrb[63].mxu1 }
 0x301   :  { %v2928_v32 = vadd.f32 %v12238_v24, %v2869_v5  ;;  %v2930_v40 = vadd.f32 %v12292_v11, %v2910_v48  ;;  %v2994_v5 = vld [vmem:[%s15014_s2 + $0x50] sm:$0xff] }
 0x302   :  { %v9432_v33 = vmul.f32 -1.442695, %v2927_v61 }
 0x303   :  { %v9433_v12 = vmul.f32 -1.442695, %v2928_v32  ;;  %v9434_v45 = vmul.f32 -1.442695, %v2930_v40  ;;  %v2995_v32 = vld [vmem:[%s15014_s2 + $0x58] sm:$0xff] }
 0x304   :  { %10525 = vpow2.f32 %v9432_v33  ;;  %v2999_v40 = vld [vmem:[%s15014_s2 + $0x78] sm:$0xff] }
 0x305   :  { %10527 = vpow2.f32 %v9433_v12 }
 0x306   :  { %10529 = vpow2.f32 %v9431_v53 }
 0x307   :  { %10531 = vpow2.f32 %v9434_v45 }
 0x308   :  { %10533 = vtanh.f32 %v2929_v30 }
 0x30e   :  { %v10526_v22 = vpop.eup %10525 }
 0x30f   :  { %v10528_v57 = vpop.eup %10527  ;;  %v2958_v29 = vadd.f32 1.0, %v10526_v22  ;;  %v12598_v22 = vcombine.high %v2995_v32, %v2999_v40 }
 0x310   :  { %v2964_v9 = vadd.f32 1.0, %v10528_v57  ;;  %v10530_v59 = vpop.eup %10529  ;;  %v3002_v57 = vld [vmem:[%s15014_s2 + $0x90] sm:$0xff] }
 0x311   :  { %10535 = vrcp.f32 %v2958_v29  ;;  %v10532_v56 = vpop.eup %10531  ;;  %v2947_v17 = vadd.f32 1.0, %v10530_v59  ;;  %v3006_v29 = vld [vmem:[%s15014_s2 + $0xb0] sm:$0xff]  ;;  %v3007_v59 = vld [vmem:[%s15014_s2 + $0xb8] sm:$0xff] }
 0x312   :  { %10537 = vrcp.f32 %v2964_v9  ;;  %v10534_v24 = vpop.eup %10533  ;;  %v2971_v4 = vadd.f32 1.0, %v10532_v56  ;;  %v3003_v9 = vld [vmem:[%s15014_s2 + $0x98] sm:$0xff] }
 0x313   :  { %10539 = vrcp.f32 %v2947_v17  ;;  %v12622_v17 = vcombine.high %v3002_v57, %v3006_v29 }
 0x314   :  { %10541 = vtanh.f32 %v12565_v52 }
 0x315   :  { %10543 = vrcp.f32 %v2971_v4  ;;  %v3011_v4 = vld [vmem:[%s15014_s2 + $0xd8] sm:$0xff] }
 0x31b   :  { %v10536_v11 = vpop.eup %10535 }
 0x31c   :  { %v10538_v34 = vpop.eup %10537  ;;  %v2975_v10 = vmul.f32 %v10536_v11, %v10534_v24  ;;  %v12618_v24 = vcombine.low %v2995_v32, %v2999_v40  ;;  %v12624_v11 = vcombine.high %v3003_v9, %v3007_v59  ;;  %v3019_v32 = vld [vmem:[%s15014_s2 + $0x118] sm:$0xff] }
 0x31d   :  { %v2974_v46 = vmul.f32 %v10538_v34, %v12303_v25  ;;  %v10540_v0 = vpop.eup %10539  ;;  %v2998_v25 = vld [vmem:[%s15014_s2 + $0x70] sm:$0xff]  ;;  %v3023_v40 = vld [vmem:[%s15014_s2 + $0x138] sm:$0xff] }
 0x31e   :  { %v10542_v61 = vpop.eup %10541  ;;  %v12596_v45 = vcombine.high %v2994_v5, %v2998_v25  ;;  %v12616_v56 = vcombine.low %v2994_v5, %v2998_v25  ;;  %v3010_v34 = vld [vmem:[%s15014_s2 + $0xd0] sm:$0xff] }
 0x31f   :  { %v12573_v13 = vadd.f32 %v2975_v10, %v2974_v46  ;;  %v10544_v30 = vpop.eup %10543  ;;  %v12588_v33 = vmul.f32 %v10542_v61, %v10540_v0  ;;  %v3014_v10 = vld [vmem:[%s15014_s2 + $0xf0] sm:$0xff]  ;;  %v3015_v46 = vld [vmem:[%s15014_s2 + $0xf8] sm:$0xff]  ;;  %v12642_v0 = vcombine.low %v3002_v57, %v3006_v29  ;;  %v12644_v61 = vcombine.low %v3003_v9, %v3007_v59 }
 0x320   :  { %v12650_v5 = vcombine.high %v3011_v4, %v3015_v46  ;;  %v3022_v25 = vld [vmem:[%s15014_s2 + $0x130] sm:$0xff]  ;;  %v12666_v57 = vcombine.low %v3010_v34, %v3014_v10  ;;  %v12668_v29 = vcombine.low %v3011_v4, %v3015_v46  ;;  %v12674_v59 = vcombine.high %v3019_v32, %v3023_v40 }
 0x321   :  { %10545 = vtanh.f32 %v12573_v13  ;;  %15177 = vst [vmem:[#allocation4_spill] sm:$0xff] %v12588_v33  ;;  %15179 = vst [vmem:[#allocation5_spill] sm:$0xff] %v12644_v61  ;;  %v12692_v46 = vcombine.low %v3019_v32, %v3023_v40 }
 0x322   :  { %15181 = vst [vmem:[#allocation6_spill] sm:$0xff] %v12650_v5  ;;  %15182 = vst [vmem:[#allocation12_spill] sm:$0xff] %v12666_v57 }
 0x323   :  { %15183 = vst [vmem:[#allocation7_spill] sm:$0xff] %v12668_v29  ;;  %15185 = vst [vmem:[#allocation8_spill] sm:$0xff] %v12674_v59 }
 0x324   :  { %15187 = vst [vmem:[#allocation9_spill] sm:$0xff] %v12692_v46 }
 0x32b   :  { %v10546_v48 = vpop.eup %10545 }
 0x32c   :  { %v12590_v12 = vmul.f32 %v10546_v48, %v10544_v30  ;;  %v12648_v30 = vcombine.high %v3010_v34, %v3014_v10  ;;  %v3018_v48 = vld [vmem:[%s15014_s2 + $0x110] sm:$0xff]  ;;  %v3027_v34 = vld [vmem:[%s15014_s2 + $0x158] sm:$0xff] }
 0x32d   :  { %v12672_v9 = vcombine.high %v3018_v48, %v3022_v25  ;;  %v3031_v10 = vld [vmem:[%s15014_s2 + $0x178] sm:$0xff]  ;;  %v12690_v4 = vcombine.low %v3018_v48, %v3022_v25 }
 0x32e   :  { %15178 = vst [vmem:[#allocation10_spill] sm:$0xff] %v12590_v12  ;;  %v12594_v53 = vpack.c.bf16 %v12590_v12, %v12588_v33  ;;  %15180 = vst [vmem:[#allocation11_spill] sm:$0xff] %v12648_v30  ;;  %v3026_v12 = vld [vmem:[%s15014_s2 + $0x150] sm:$0xff]  ;;  %v3035_v48 = vld [vmem:[%s15014_s2 + $0x198] sm:$0xff]  ;;  %v12716_v40 = vcombine.low %v3027_v34, %v3031_v10 }
 0x32f   :  { %15184 = vst [vmem:[#allocation13_spill] sm:$0xff] %v12672_v9  ;;  %v3030_v33 = vld [vmem:[%s15014_s2 + $0x170] sm:$0xff]  ;;  %15186 = vst [vmem:[#allocation14_spill] sm:$0xff] %v12690_v4  ;;  %v3039_v25 = vld [vmem:[%s15014_s2 + $0x1b8] sm:$0xff] }
 0x330   :  { %3401 = vmatmul.mubr.bf16.vlgmr.msra.gmra.mrb[48].mxu0 %v12594_v53  ;;  %3442 = vmatmul.mubr.bf16.vlgmr.msra.gmra.mrb[64].mxu1 %v12594_v53  ;;  %v12714_v32 = vcombine.low %v3026_v12, %v3030_v33 }
 0x331   :  { %3451 = vmatpush1.bf16.msra.mxu0 %v12534_v54  ;;  %3492 = vmatpush1.bf16.msra.mxu1 %v12542_v3 }
 0x332   :  { %3452 = vmatprep.subr.bf16.mxu0 %v12596_v45  ;;  %3493 = vmatprep.subr.bf16.mxu1 %v12598_v22  ;;  %15190 = vst [vmem:[#allocation71_spill] sm:$0xff] %v12714_v32 }
 0x333   :  { %3482 = vmatprep.mubr.bf16.mxu0 %v15112_v62  ;;  %3523 = vmatprep.mubr.bf16.mxu1 %v15112_v62 }
 0x335   :  { %3453 = vmatpush1.bf16.msra.mxu0 %v12616_v56  ;;  %3494 = vmatpush1.bf16.msra.mxu1 %v12618_v24 }
 0x336   :  { %3454 = vmatprep.subr.bf16.mxu0 %v12622_v17  ;;  %3495 = vmatprep.subr.bf16.mxu1 %v12624_v11 }
 0x339   :  { %3455 = vmatpush1.bf16.msra.mxu0 %v12642_v0  ;;  %3496 = vmatpush1.bf16.msra.mxu1 %v12644_v61  ;;  %v3034_v61 = vld [vmem:[%s15014_s2 + $0x190] sm:$0xff] }
 0x33a   :  { %3456 = vmatprep.subr.bf16.mxu0 %v12648_v30  ;;  %3497 = vmatprep.subr.bf16.mxu1 %v12650_v5  ;;  %v12696_v5 = vcombine.high %v3026_v12, %v3030_v33  ;;  %v12698_v30 = vcombine.high %v3027_v34, %v3031_v10  ;;  %v3043_v33 = vld [vmem:[%s15014_s2 + $0x1d8] sm:$0xff]  ;;  %v12740_v10 = vcombine.low %v3035_v48, %v3039_v25 }
 0x33b   :  { %v3047_v12 = vld [vmem:[%s15014_s2 + $0x1f8] sm:$0xff] }
 0x33c   :  { %15188 = vst [vmem:[#allocation15_spill] sm:$0xff] %v12696_v5  ;;  %15189 = vst [vmem:[#allocation70_spill] sm:$0xff] %v12698_v30 }
 0x33d   :  { %3457 = vmatpush1.bf16.msra.mxu0 %v12666_v57  ;;  %3498 = vmatpush1.bf16.msra.mxu1 %v12668_v29  ;;  %v3038_v29 = vld [vmem:[%s15014_s2 + $0x1b0] sm:$0xff] }
 0x33e   :  { %3458 = vmatprep.subr.bf16.mxu0 %v12672_v9  ;;  %3499 = vmatprep.subr.bf16.mxu1 %v12674_v59  ;;  %v12720_v59 = vcombine.high %v3034_v61, %v3038_v29  ;;  %v12722_v9 = vcombine.high %v3035_v48, %v3039_v25  ;;  %v3042_v57 = vld [vmem:[%s15014_s2 + $0x1d0] sm:$0xff]  ;;  %v12738_v34 = vcombine.low %v3034_v61, %v3038_v29  ;;  %v15197_v25 = vld [vmem:[#allocation55_spill] sm:$0xff] }
 0x341   :  { %3459 = vmatpush1.bf16.msra.mxu0 %v12690_v4  ;;  %3500 = vmatpush1.bf16.msra.mxu1 %v12692_v46  ;;  %v3046_v46 = vld [vmem:[%s15014_s2 + $0x1f0] sm:$0xff] }
 0x342   :  { %3460 = vmatprep.subr.bf16.mxu0 %v12696_v5  ;;  %3501 = vmatprep.subr.bf16.mxu1 %v12698_v30  ;;  %v12744_v30 = vcombine.high %v3042_v57, %v3046_v46  ;;  %v12746_v5 = vcombine.high %v3043_v33, %v3047_v12  ;;  %v12750_v4 = vcombine.low %v3042_v57, %v3046_v46  ;;  %v15196_v57 = vld [vmem:[#allocation66_spill] sm:$0xff] }
 0x345   :  { %3461 = vmatpush1.bf16.msra.mxu0 %v12714_v32  ;;  %3502 = vmatpush1.bf16.msra.mxu1 %v12716_v40  ;;  %v12752_v32 = vcombine.low %v3043_v33, %v3047_v12  ;;  %v15198_v12 = vld [vmem:[#allocation67_spill] sm:$0xff] }
 0x346   :  { %3462 = vmatprep.subr.bf16.mxu0 %v12720_v59  ;;  %3503 = vmatprep.subr.bf16.mxu1 %v12722_v9 }
 0x349   :  { %3463 = vmatpush1.bf16.msra.mxu0 %v12738_v34  ;;  %3504 = vmatpush1.bf16.msra.mxu1 %v12740_v10 }
 0x34a   :  { %3464 = vmatprep.subr.bf16.mxu0 %v12744_v30  ;;  %3505 = vmatprep.subr.bf16.mxu1 %v12746_v5 }
 0x34d   :  { %3465 = vmatpush1.bf16.msra.mxu0 %v12750_v4  ;;  %3506 = vmatpush1.bf16.msra.mxu1 %v12752_v32 }
 0x34e   :  { %3987 = vmatprep.subr.bf16.mxu0 %v12355_v36  ;;  %4028 = vmatprep.subr.bf16.mxu1 %v12364_v63 }
 0x350   :  { %3483 = vmatmul.mubr.bf16.vlgmr.msra.gmra.mrb[52].mxu0 %v12594_v53  ;;  %3524 = vmatmul.mubr.bf16.vlgmr.msra.gmra.mrb[68].mxu1 %v12594_v53  ;;  %v15195_v53 = vld [vmem:[#allocation54_spill] sm:$0xff] }
 0x351   :  { %3988 = vmatpush1.bf16.msra.mxu0 %v12360_v8  ;;  %4029 = vmatpush1.bf16.msra.mxu1 %v12362_v18  ;;  %v15191_v18 = vld [vmem:[#allocation18_spill] sm:$0xff] }
 0x352   :  { %3989 = vmatprep.subr.bf16.mxu0 %v12379_v16  ;;  %4030 = vmatprep.subr.bf16.mxu1 %v12388_v15  ;;  %v15192_v16 = vld [vmem:[#allocation32_spill] sm:$0xff] }
 0x353   :  { %4019 = vmatprep.mubr.bf16.mxu0 %v15112_v62  ;;  %4060 = vmatprep.mubr.bf16.mxu1 %v15112_v62 }
 0x355   :  { %3990 = vmatpush1.bf16.msra.mxu0 %v12384_v35  ;;  %4031 = vmatpush1.bf16.msra.mxu1 %v12386_v26 }
 0x356   :  { %3991 = vmatprep.subr.bf16.mxu0 %v12403_v2  ;;  %4032 = vmatprep.subr.bf16.mxu1 %v12412_v14  ;;  %v15193_v2 = vld [vmem:[#allocation19_spill] sm:$0xff] }
 0x359   :  { %3992 = vmatpush1.bf16.msra.mxu0 %v12408_v58  ;;  %4033 = vmatpush1.bf16.msra.mxu1 %v12410_v43  ;;  %v15194_v43 = vld [vmem:[#allocation33_spill] sm:$0xff] }
 0x35a   :  { %3993 = vmatprep.subr.bf16.mxu0 %v12427_v6  ;;  %4034 = vmatprep.subr.bf16.mxu1 %v12436_v60 }
 0x35d   :  { %3994 = vmatpush1.bf16.msra.mxu0 %v12432_v19  ;;  %4035 = vmatpush1.bf16.msra.mxu1 %v12434_v20 }
 0x35e   :  { %3995 = vmatprep.subr.bf16.mxu0 %v12451_v38  ;;  %4036 = vmatprep.subr.bf16.mxu1 %v12460_v37 }
 0x361   :  { %3996 = vmatpush1.bf16.msra.mxu0 %v12456_v23  ;;  %4037 = vmatpush1.bf16.msra.mxu1 %v12458_v51 }
 0x362   :  { %3997 = vmatprep.subr.bf16.mxu0 %v12477_v1  ;;  %4038 = vmatprep.subr.bf16.mxu1 %v12490_v21 }
 0x365   :  { %3998 = vmatpush1.bf16.msra.mxu0 %v12475_v55  ;;  %4039 = vmatpush1.bf16.msra.mxu1 %v12488_v28 }
 0x366   :  { %3999 = vmatprep.subr.bf16.mxu0 %v12492_v44  ;;  %4040 = vmatprep.subr.bf16.mxu1 %v12504_v41 }
 0x369   :  { %4000 = vmatpush1.bf16.msra.mxu0 %v12517_v31  ;;  %4041 = vmatpush1.bf16.msra.mxu1 %v12530_v49 }
 0x36a   :  { %4001 = vmatprep.subr.bf16.mxu0 %v12532_v7  ;;  %4042 = vmatprep.subr.bf16.mxu1 %v12540_v27 }
 0x36d   :  { %4002 = vmatpush1.bf16.msra.mxu0 %v12545_v50  ;;  %4043 = vmatpush1.bf16.msra.mxu1 %v12549_v47 }
 0x36e   :  { %4069 = vmatprep.subr.bf16.mxu0 %v12551_v39  ;;  %4110 = vmatprep.subr.bf16.mxu1 %v12554_v42 }
 0x403   :  { %v3402_v36 = vpop.f32.mrb[48].mxu0  ;;  %v3443_v8 = vpop.f32.mrb[64].mxu1 }
 0x404   :  { %v3537_v63 = vadd.f32 %v3402_v36, %v15191_v18  ;;  %v3539_v35 = vadd.f32 %v15192_v16, %v3443_v8  ;;  %v3404_v26 = vpop.f32.mrb[49].mxu0  ;;  %v3445_v15 = vpop.f32.mrb[65].mxu1 }
 0x405   :  { %v3538_v58 = vadd.f32 %v3404_v26, %v15193_v2  ;;  %v3540_v14 = vadd.f32 %v15194_v43, %v3445_v15  ;;  %v3406_v6 = vpop.f32.mrb[50].mxu0  ;;  %v3447_v50 = vpop.f32.mrb[66].mxu1 }
 0x406   :  { %v9499_v19 = vmul.f32 -1.442695, %v3537_v63  ;;  %v3407_v20 = vpop.f32.mrb[51].mxu0  ;;  %v3448_v60 = vpop.f32.mrb[67].mxu1 }
 0x407   :  { %v9500_v38 = vmul.f32 -1.442695, %v3538_v58  ;;  %v9501_v18 = vmul.f32 -1.442695, %v3540_v14 }
 0x408   :  { %10547 = vpow2.f32 %v9499_v19 }
 0x409   :  { %10549 = vpow2.f32 %v9500_v38 }
 0x40a   :  { %10551 = vtanh.f32 %v3539_v35 }
 0x412   :  { %v10548_v42 = vpop.eup %10547 }
 0x413   :  { %v10550_v23 = vpop.eup %10549  ;;  %v3553_v51 = vadd.f32 1.0, %v10548_v42 }
 0x414   :  { %v3559_v37 = vadd.f32 1.0, %v10550_v23  ;;  %v10552_v55 = vpop.eup %10551 }
 0x415   :  { %10553 = vrcp.f32 %v3553_v51 }
 0x416   :  { %10555 = vrcp.f32 %v3559_v37 }
 0x41f   :  { %v10554_v1 = vpop.eup %10553 }
 0x420   :  { %v10556_v28 = vpop.eup %10555  ;;  %v3570_v21 = vmul.f32 %v10554_v1, %v10552_v55 }
 0x421   :  { %v3569_v44 = vmul.f32 %v10556_v28, %v12565_v52 }
 0x423   :  { %v12801_v41 = vadd.f32 %v3570_v21, %v3569_v44  ;;  %v3484_v31 = vpop.f32.mrb[52].mxu0  ;;  %v3525_v49 = vpop.f32.mrb[68].mxu1  ;;  %v15206_v21 = vld [vmem:[#allocation13_spill] sm:$0xff]  ;;  %v15212_v44 = vld [vmem:[#allocation71_spill] sm:$0xff] }
 0x424   :  { %v3485_v7 = vpop.f32.mrb[53].mxu0  ;;  %v3526_v27 = vpop.f32.mrb[69].mxu1  ;;  %v4234_v31 = vld [vmem:[%s15014_s2 + $0x60] sm:$0xff]  ;;  %v4231_v49 = vld [vmem:[%s15014_s2 + $0x48] sm:$0xff] }
 0x425   :  { %v3486_v47 = vpop.f32.mrb[54].mxu0  ;;  %v3527_v39 = vpop.f32.mrb[70].mxu1  ;;  %v4235_v27 = vld [vmem:[%s15014_s2 + $0x68] sm:$0xff] }
 0x426   :  { %v3546_v61 = vadd.f32 %v15195_v53, %v3486_v47  ;;  %v3548_v29 = vadd.f32 %v15196_v57, %v3527_v39  ;;  %v3488_v46 = vpop.f32.mrb[55].mxu0  ;;  %v3529_v48 = vpop.f32.mrb[71].mxu1  ;;  %v12892_v39 = vcombine.low %v4231_v49, %v4235_v27  ;;  %v12894_v53 = vcombine.high %v4231_v49, %v4235_v27  ;;  %v4242_v57 = vld [vmem:[%s15014_s2 + $0xa0] sm:$0xff]  ;;  %v4229_v49 = vld [vmem:[%s15014_s2 + $0x38] sm:$0xff] }
 0x427   :  { %v3547_v33 = vadd.f32 %v15197_v25, %v3488_v46  ;;  %v3549_v36 = vadd.f32 %v15198_v12, %v3529_v48  ;;  %v4243_v48 = vld [vmem:[%s15014_s2 + $0xa8] sm:$0xff] }
 0x428   :  { %v9502_v8 = vmul.f32 -1.442695, %v3546_v61  ;;  %v4238_v61 = vld [vmem:[%s15014_s2 + $0x80] sm:$0xff] }
 0x429   :  { %v9503_v52 = vmul.f32 -1.442695, %v3547_v33  ;;  %v9504_v63 = vmul.f32 -1.442695, %v3549_v36  ;;  %v12909_v46 = vcombine.high %v4238_v61, %v4242_v57  ;;  %v12914_v25 = vcombine.low %v4238_v61, %v4242_v57  ;;  %v4246_v36 = vld [vmem:[%s15014_s2 + $0xc0] sm:$0xff] }
 0x42a   :  { %10557 = vpow2.f32 %v9502_v8  ;;  %v4250_v8 = vld [vmem:[%s15014_s2 + $0xe0] sm:$0xff] }
 0x42b   :  { %10559 = vpow2.f32 %v9503_v52  ;;  %v4247_v52 = vld [vmem:[%s15014_s2 + $0xc8] sm:$0xff] }
 0x42c   :  { %10561 = vpow2.f32 %v9501_v18  ;;  %v12933_v18 = vcombine.high %v4246_v36, %v4250_v8 }
 0x42d   :  { %10563 = vpow2.f32 %v9504_v63  ;;  %v4251_v63 = vld [vmem:[%s15014_s2 + $0xe8] sm:$0xff] }
 0x42e   :  { %10565 = vtanh.f32 %v3548_v29  ;;  %v4239_v29 = vld [vmem:[%s15014_s2 + $0x88] sm:$0xff] }
 0x42f   :  { %v12916_v33 = vcombine.low %v4239_v29, %v4243_v48  ;;  %v12918_v12 = vcombine.high %v4239_v29, %v4243_v48 }
 0x434   :  { %v10558_v16 = vpop.eup %10557 }
 0x435   :  { %v10560_v35 = vpop.eup %10559  ;;  %v3577_v26 = vadd.f32 1.0, %v10558_v16  ;;  %v12938_v16 = vcombine.low %v4246_v36, %v4250_v8 }
 0x436   :  { %v3583_v15 = vadd.f32 1.0, %v10560_v35  ;;  %v10562_v2 = vpop.eup %10561  ;;  %v12940_v35 = vcombine.low %v4247_v52, %v4251_v63 }
 0x437   :  { %10567 = vrcp.f32 %v3577_v26  ;;  %v10564_v58 = vpop.eup %10563  ;;  %v3566_v6 = vadd.f32 1.0, %v10562_v2  ;;  %v12942_v26 = vcombine.high %v4247_v52, %v4251_v63  ;;  %v4258_v2 = vld [vmem:[%s15014_s2 + $0x120] sm:$0xff] }
 0x438   :  { %10569 = vrcp.f32 %v3583_v15  ;;  %v10566_v43 = vpop.eup %10565  ;;  %v3590_v60 = vadd.f32 1.0, %v10564_v58  ;;  %v4254_v15 = vld [vmem:[%s15014_s2 + $0x100] sm:$0xff]  ;;  %v4255_v58 = vld [vmem:[%s15014_s2 + $0x108] sm:$0xff] }
 0x439   :  { %10571 = vrcp.f32 %v3566_v6  ;;  %v4259_v6 = vld [vmem:[%s15014_s2 + $0x128] sm:$0xff]  ;;  %v15213_v63 = vld [vmem:[#allocation20_spill] sm:$0xff] }
 0x43a   :  { %10573 = vtanh.f32 %v12801_v41 }
 0x43b   :  { %10575 = vrcp.f32 %v3590_v60  ;;  %v4262_v60 = vld [vmem:[%s15014_s2 + $0x140] sm:$0xff] }
 0x441   :  { %v10568_v50 = vpop.eup %10567 }
 0x442   :  { %v10570_v19 = vpop.eup %10569  ;;  %v3594_v20 = vmul.f32 %v10568_v50, %v10566_v43  ;;  %v12957_v43 = vcombine.high %v4254_v15, %v4258_v2  ;;  %v12962_v50 = vcombine.low %v4254_v15, %v4258_v2  ;;  %v15214_v2 = vld [vmem:[#allocation34_spill] sm:$0xff] }
 0x443   :  { %v3593_v14 = vmul.f32 %v10570_v19, %v12573_v13  ;;  %v10572_v42 = vpop.eup %10571  ;;  %v15203_v13 = vld [vmem:[#allocation6_spill] sm:$0xff]  ;;  %v12964_v19 = vcombine.low %v4255_v58, %v4259_v6 }
 0x444   :  { %v10574_v23 = vpop.eup %10573 }
 0x445   :  { %v12809_v38 = vadd.f32 %v3594_v20, %v3593_v14  ;;  %v10576_v51 = vpop.eup %10575  ;;  %v12812_v55 = vmul.f32 %v10574_v23, %v10572_v42  ;;  %v12966_v20 = vcombine.high %v4255_v58, %v4259_v6  ;;  %v4266_v14 = vld [vmem:[%s15014_s2 + $0x160] sm:$0xff]  ;;  %v4263_v42 = vld [vmem:[%s15014_s2 + $0x148] sm:$0xff] }
 0x446   :  { %v12981_v23 = vcombine.low %v4262_v60, %v4266_v14 }
 0x447   :  { %10577 = vtanh.f32 %v12809_v38  ;;  %15199 = vst [vmem:[#allocation18_spill] sm:$0xff] %v12812_v55 }
 0x451   :  { %v10578_v37 = vpop.eup %10577 }
 0x452   :  { %v12814_v1 = vmul.f32 %v10578_v37, %v10576_v51  ;;  %v12983_v51 = vcombine.high %v4262_v60, %v4266_v14  ;;  %v4267_v37 = vld [vmem:[%s15014_s2 + $0x168] sm:$0xff] }
 0x453   :  { %v15215_v14 = vld [vmem:[#allocation21_spill] sm:$0xff] }
 0x454   :  { %15200 = vst [vmem:[#allocation32_spill] sm:$0xff] %v12814_v1  ;;  %v3602_v28 = vpack.c.bf16 %v12814_v1, %v12812_v55  ;;  %v4268_v55 = vld [vmem:[%s15014_s2 + $0x170] sm:$0xff] }
 0x456   :  { %4020 = vmatmul.mubr.bf16.vlgmr.msra.gmra.mrb[56].mxu0 %v3602_v28  ;;  %4061 = vmatmul.mubr.bf16.vlgmr.msra.gmra.mrb[72].mxu1 %v3602_v28 }
 0x457   :  { %4070 = vmatpush1.bf16.msra.mxu0 %v12534_v54  ;;  %4111 = vmatpush1.bf16.msra.mxu1 %v12542_v3  ;;  %v15201_v54 = vld [vmem:[#allocation5_spill] sm:$0xff]  ;;  %v15202_v3 = vld [vmem:[#allocation11_spill] sm:$0xff] }
 0x458   :  { %4071 = vmatprep.subr.bf16.mxu0 %v12596_v45  ;;  %4112 = vmatprep.subr.bf16.mxu1 %v12598_v22  ;;  %v15204_v45 = vld [vmem:[#allocation12_spill] sm:$0xff]  ;;  %v15205_v22 = vld [vmem:[#allocation7_spill] sm:$0xff] }
 0x459   :  { %4101 = vmatprep.mubr.bf16.mxu0 %v15112_v62  ;;  %4142 = vmatprep.mubr.bf16.mxu1 %v15112_v62 }
 0x45b   :  { %4072 = vmatpush1.bf16.msra.mxu0 %v12616_v56  ;;  %4113 = vmatpush1.bf16.msra.mxu1 %v12618_v24  ;;  %v15207_v56 = vld [vmem:[#allocation8_spill] sm:$0xff]  ;;  %v15208_v24 = vld [vmem:[#allocation14_spill] sm:$0xff] }
 0x45c   :  { %4073 = vmatprep.subr.bf16.mxu0 %v12622_v17  ;;  %4114 = vmatprep.subr.bf16.mxu1 %v12624_v11  ;;  %v15209_v17 = vld [vmem:[#allocation9_spill] sm:$0xff]  ;;  %v15210_v11 = vld [vmem:[#allocation15_spill] sm:$0xff] }
 0x45f   :  { %4074 = vmatpush1.bf16.msra.mxu0 %v12642_v0  ;;  %4115 = vmatpush1.bf16.msra.mxu1 %v15201_v54  ;;  %v15211_v0 = vld [vmem:[#allocation70_spill] sm:$0xff]  ;;  %v4274_v54 = vld [vmem:[%s15014_s2 + $0x1a0] sm:$0xff] }
 0x460   :  { %4075 = vmatprep.subr.bf16.mxu0 %v15202_v3  ;;  %4116 = vmatprep.subr.bf16.mxu1 %v15203_v13  ;;  %v12994_v3 = vcombine.low %v4263_v42, %v4267_v37  ;;  %v12996_v13 = vcombine.high %v4263_v42, %v4267_v37  ;;  %v15216_v37 = vld [vmem:[#allocation35_spill] sm:$0xff] }
 0x463   :  { %4076 = vmatpush1.bf16.msra.mxu0 %v15204_v45  ;;  %4117 = vmatpush1.bf16.msra.mxu1 %v15205_v22  ;;  %v4271_v22 = vld [vmem:[%s15014_s2 + $0x188] sm:$0xff] }
 0x464   :  { %4077 = vmatprep.subr.bf16.mxu0 %v15206_v21  ;;  %4118 = vmatprep.subr.bf16.mxu1 %v15207_v56  ;;  %v4275_v21 = vld [vmem:[%s15014_s2 + $0x1a8] sm:$0xff]  ;;  %v4278_v56 = vld [vmem:[%s15014_s2 + $0x1c0] sm:$0xff] }
 0x467   :  { %4078 = vmatpush1.bf16.msra.mxu0 %v15208_v24  ;;  %4119 = vmatpush1.bf16.msra.mxu1 %v15209_v17  ;;  %v13010_v24 = vcombine.high %v4271_v22, %v4275_v21  ;;  %v4282_v17 = vld [vmem:[%s15014_s2 + $0x1e0] sm:$0xff] }
 0x468   :  { %4079 = vmatprep.subr.bf16.mxu0 %v15210_v11  ;;  %4120 = vmatprep.subr.bf16.mxu1 %v15211_v0  ;;  %v4279_v11 = vld [vmem:[%s15014_s2 + $0x1c8] sm:$0xff]  ;;  %v13051_v57 = vcombine.low %v4278_v56, %v4282_v17 }
 0x469   :  { %v4283_v0 = vld [vmem:[%s15014_s2 + $0x1e8] sm:$0xff] }
 0x46a   :  { %v13046_v27 = vcombine.high %v4279_v11, %v4283_v0  ;;  %v13055_v29 = vcombine.low %v4279_v11, %v4283_v0 }
 0x46b   :  { %4080 = vmatpush1.bf16.msra.mxu0 %v15212_v44  ;;  %4121 = vmatpush1.bf16.msra.mxu1 %v12716_v40 }
 0x46c   :  { %4081 = vmatprep.subr.bf16.mxu0 %v12720_v59  ;;  %4122 = vmatprep.subr.bf16.mxu1 %v12722_v9  ;;  %v4222_v9 = vld [vmem:[%s15014_s2] sm:$0xff] }
 0x46f   :  { %4082 = vmatpush1.bf16.msra.mxu0 %v12738_v34  ;;  %4123 = vmatpush1.bf16.msra.mxu1 %v12740_v10  ;;  %v4230_v10 = vld [vmem:[%s15014_s2 + $0x40] sm:$0xff] }
 0x470   :  { %4083 = vmatprep.subr.bf16.mxu0 %v12744_v30  ;;  %4124 = vmatprep.subr.bf16.mxu1 %v12746_v5  ;;  %v4226_v30 = vld [vmem:[%s15014_s2 + $0x20] sm:$0xff]  ;;  %v4223_v5 = vld [vmem:[%s15014_s2 + $0x8] sm:$0xff]  ;;  %v12885_v7 = vcombine.high %v4230_v10, %v4234_v31  ;;  %v12890_v47 = vcombine.low %v4230_v10, %v4234_v31  ;;  %v13038_v10 = vcombine.high %v4278_v56, %v4282_v17 }
 0x471   :  { %v12861_v59 = vcombine.high %v4222_v9, %v4226_v30 }
 0x473   :  { %4084 = vmatpush1.bf16.msra.mxu0 %v12750_v4  ;;  %4125 = vmatpush1.bf16.msra.mxu1 %v12752_v32  ;;  %v4227_v4 = vld [vmem:[%s15014_s2 + $0x28] sm:$0xff]  ;;  %v12866_v32 = vcombine.low %v4222_v9, %v4226_v30  ;;  %v4224_v9 = vld [vmem:[%s15014_s2 + $0x10] sm:$0xff] }
 0x474   :  { %v12868_v40 = vcombine.low %v4223_v5, %v4227_v4  ;;  %v12870_v34 = vcombine.high %v4223_v5, %v4227_v4  ;;  %4606 = vmatprep.subr.bf16.mxu0 %v12861_v59  ;;  %v4228_v30 = vld [vmem:[%s15014_s2 + $0x30] sm:$0xff]  ;;  %v4225_v5 = vld [vmem:[%s15014_s2 + $0x18] sm:$0xff]  ;;  %v13036_v4 = vcombine.low %v4271_v22, %v4275_v21 }
 0x475   :  { %v13040_v31 = vcombine.low %v4224_v9, %v4228_v30  ;;  %v13048_v61 = vcombine.low %v4225_v5, %v4229_v49  ;;  %v13057_v48 = vcombine.high %v4224_v9, %v4228_v30  ;;  %v13060_v36 = vcombine.high %v4225_v5, %v4229_v49 }
 0x476   :  { %4102 = vmatmul.mubr.bf16.vlgmr.msra.gmra.mrb[60].mxu0 %v3602_v28  ;;  %4143 = vmatmul.mubr.bf16.vlgmr.msra.gmra.mrb[76].mxu1 %v3602_v28  ;;  %v4270_v28 = vld [vmem:[%s15014_s2 + $0x180] sm:$0xff] }
 0x477   :  { %4638 = vmatprep.mubr.bf16.mxu0 %v15112_v62  ;;  %4679 = vmatprep.mubr.bf16.mxu1 %v15112_v62  ;;  %v12998_v45 = vcombine.high %v4270_v28, %v4274_v54  ;;  %v13023_v44 = vcombine.low %v4270_v28, %v4274_v54 }
 0x478   :  { %4647 = vmatprep.subr.bf16.mxu1 %v12870_v34  ;;  %4607 = vmatpush1.bf16.msra.mxu0 %v12866_v32 }
 0x479   :  { %4648 = vmatpush1.bf16.msra.mxu1 %v12868_v40  ;;  %4608 = vmatprep.subr.bf16.mxu0 %v12885_v7 }
 0x47a   :  { %4649 = vmatprep.subr.bf16.mxu1 %v12894_v53 }
 0x47c   :  { %4609 = vmatpush1.bf16.msra.mxu0 %v12890_v47 }
 0x47d   :  { %4650 = vmatpush1.bf16.msra.mxu1 %v12892_v39  ;;  %4610 = vmatprep.subr.bf16.mxu0 %v12909_v46 }
 0x47e   :  { %4651 = vmatprep.subr.bf16.mxu1 %v12918_v12 }
 0x480   :  { %4611 = vmatpush1.bf16.msra.mxu0 %v12914_v25 }
 0x481   :  { %4652 = vmatpush1.bf16.msra.mxu1 %v12916_v33  ;;  %4612 = vmatprep.subr.bf16.mxu0 %v12933_v18 }
 0x482   :  { %4653 = vmatprep.subr.bf16.mxu1 %v12942_v26 }
 0x484   :  { %4613 = vmatpush1.bf16.msra.mxu0 %v12938_v16 }
 0x485   :  { %4654 = vmatpush1.bf16.msra.mxu1 %v12940_v35  ;;  %4614 = vmatprep.subr.bf16.mxu0 %v12957_v43 }
 0x486   :  { %4655 = vmatprep.subr.bf16.mxu1 %v12966_v20 }
 0x488   :  { %4615 = vmatpush1.bf16.msra.mxu0 %v12962_v50 }
 0x489   :  { %4656 = vmatpush1.bf16.msra.mxu1 %v12964_v19  ;;  %4616 = vmatprep.subr.bf16.mxu0 %v12983_v51 }
 0x48a   :  { %4657 = vmatprep.subr.bf16.mxu1 %v12996_v13 }
 0x48c   :  { %4617 = vmatpush1.bf16.msra.mxu0 %v12981_v23 }
 0x48d   :  { %4658 = vmatpush1.bf16.msra.mxu1 %v12994_v3  ;;  %4618 = vmatprep.subr.bf16.mxu0 %v12998_v45 }
 0x48e   :  { %4659 = vmatprep.subr.bf16.mxu1 %v13010_v24 }
 0x490   :  { %4619 = vmatpush1.bf16.msra.mxu0 %v13023_v44 }
 0x491   :  { %4660 = vmatpush1.bf16.msra.mxu1 %v13036_v4  ;;  %4620 = vmatprep.subr.bf16.mxu0 %v13038_v10 }
 0x492   :  { %4661 = vmatprep.subr.bf16.mxu1 %v13046_v27 }
 0x494   :  { %4621 = vmatpush1.bf16.msra.mxu0 %v13051_v57 }
 0x495   :  { %4662 = vmatpush1.bf16.msra.mxu1 %v13055_v29  ;;  %4688 = vmatprep.subr.bf16.mxu0 %v13057_v48 }
 0x496   :  { %4729 = vmatprep.subr.bf16.mxu1 %v13060_v36 }
 0x529   :  { %v4021_v8 = vpop.f32.mrb[56].mxu0  ;;  %v4062_v52 = vpop.f32.mrb[72].mxu1 }
 0x52a   :  { %v4156_v15 = vadd.f32 %v4021_v8, %v15213_v63  ;;  %v4158_v58 = vadd.f32 %v15214_v2, %v4062_v52  ;;  %v4023_v6 = vpop.f32.mrb[57].mxu0  ;;  %v4064_v60 = vpop.f32.mrb[73].mxu1 }
 0x52b   :  { %v4157_v42 = vadd.f32 %v4023_v6, %v15215_v14  ;;  %v4159_v28 = vadd.f32 %v15216_v37, %v4064_v60  ;;  %v4025_v54 = vpop.f32.mrb[58].mxu0  ;;  %v4066_v22 = vpop.f32.mrb[74].mxu1 }
 0x52c   :  { %v9569_v21 = vmul.f32 -1.442695, %v4156_v15  ;;  %v4026_v56 = vpop.f32.mrb[59].mxu0  ;;  %v4067_v17 = vpop.f32.mrb[75].mxu1  ;;  %v15217_v22 = vld [vmem:[#allocation52_spill] sm:$0xff] }
 0x52d   :  { %v9570_v11 = vmul.f32 -1.442695, %v4157_v42 }
 0x52e   :  { %10579 = vpow2.f32 %v9569_v21 }
 0x52f   :  { %10581 = vpow2.f32 %v9570_v11 }
 0x530   :  { %10583 = vtanh.f32 %v4158_v58  ;;  %v15218_v58 = vld [vmem:[#allocation64_spill] sm:$0xff] }
 0x538   :  { %v10580_v0 = vpop.eup %10579 }
 0x539   :  { %v10582_v9 = vpop.eup %10581  ;;  %v4172_v30 = vadd.f32 1.0, %v10580_v0  ;;  %v15219_v0 = vld [vmem:[#allocation53_spill] sm:$0xff] }
 0x53a   :  { %v4178_v5 = vadd.f32 1.0, %v10582_v9  ;;  %v10584_v49 = vpop.eup %10583 }
 0x53b   :  { %10585 = vrcp.f32 %v4172_v30  ;;  %v15220_v30 = vld [vmem:[#allocation65_spill] sm:$0xff] }
 0x53c   :  { %10587 = vrcp.f32 %v4178_v5 }
 0x545   :  { %v10586_v8 = vpop.eup %10585 }
 0x546   :  { %v10588_v52 = vpop.eup %10587  ;;  %v4189_v63 = vmul.f32 %v10586_v8, %v10584_v49  ;;  %v9571_v8 = vmul.f32 -1.442695, %v4159_v28 }
 0x547   :  { %v4188_v2 = vmul.f32 %v10588_v52, %v12801_v41 }
 0x549   :  { %v13071_v6 = vadd.f32 %v4189_v63, %v4188_v2  ;;  %v4103_v15 = vpop.f32.mrb[60].mxu0  ;;  %v4144_v60 = vpop.f32.mrb[76].mxu1 }
 0x54a   :  { %v4104_v14 = vpop.f32.mrb[61].mxu0  ;;  %v4145_v42 = vpop.f32.mrb[77].mxu1 }
 0x54b   :  { %v4105_v37 = vpop.f32.mrb[62].mxu0  ;;  %v4146_v54 = vpop.f32.mrb[78].mxu1 }
 0x54c   :  { %v4165_v21 = vadd.f32 %v15217_v22, %v4105_v37  ;;  %v4167_v56 = vadd.f32 %v15218_v58, %v4146_v54  ;;  %v4107_v17 = vpop.f32.mrb[63].mxu0  ;;  %v4148_v11 = vpop.f32.mrb[79].mxu1 }
 0x54d   :  { %v4166_v9 = vadd.f32 %v15219_v0, %v4107_v17  ;;  %v4168_v5 = vadd.f32 %v15220_v30, %v4148_v11  ;;  %v4232_v30 = vld [vmem:[%s15014_s2 + $0x50] sm:$0xff] }
 0x54e   :  { %v9572_v49 = vmul.f32 -1.442695, %v4165_v21 }
 0x54f   :  { %v9573_v41 = vmul.f32 -1.442695, %v4166_v9  ;;  %v9574_v52 = vmul.f32 -1.442695, %v4168_v5 }
 0x550   :  { %10589 = vpow2.f32 %v9572_v49  ;;  %v4233_v49 = vld [vmem:[%s15014_s2 + $0x58] sm:$0xff] }
 0x551   :  { %10591 = vpow2.f32 %v9573_v41  ;;  %v4237_v41 = vld [vmem:[%s15014_s2 + $0x78] sm:$0xff] }
 0x552   :  { %10593 = vpow2.f32 %v9571_v8 }
 0x553   :  { %10595 = vpow2.f32 %v9574_v52 }
 0x554   :  { %10597 = vtanh.f32 %v4167_v56 }
 0x55a   :  { %v10590_v63 = vpop.eup %10589 }
 0x55b   :  { %v10592_v2 = vpop.eup %10591  ;;  %v4196_v15 = vadd.f32 1.0, %v10590_v63 }
 0x55c   :  { %v4202_v60 = vadd.f32 1.0, %v10592_v2  ;;  %v10594_v14 = vpop.eup %10593 }
 0x55d   :  { %10599 = vrcp.f32 %v4196_v15  ;;  %v10596_v42 = vpop.eup %10595  ;;  %v4185_v54 = vadd.f32 1.0, %v10594_v14  ;;  %v13104_v15 = vcombine.high %v4233_v49, %v4237_v41  ;;  %v4244_v14 = vld [vmem:[%s15014_s2 + $0xb0] sm:$0xff] }
 0x55e   :  { %10601 = vrcp.f32 %v4202_v60  ;;  %v10598_v37 = vpop.eup %10597  ;;  %v4209_v17 = vadd.f32 1.0, %v10596_v42  ;;  %v4240_v60 = vld [vmem:[%s15014_s2 + $0x90] sm:$0xff]  ;;  %v4241_v42 = vld [vmem:[%s15014_s2 + $0x98] sm:$0xff] }
 0x55f   :  { %10603 = vrcp.f32 %v4185_v54 }
 0x560   :  { %10605 = vtanh.f32 %v13071_v6 }
 0x561   :  { %10607 = vrcp.f32 %v4209_v17  ;;  %v4248_v17 = vld [vmem:[%s15014_s2 + $0xd0] sm:$0xff] }
 0x567   :  { %v10600_v22 = vpop.eup %10599 }
 0x568   :  { %v10602_v21 = vpop.eup %10601  ;;  %v4213_v58 = vmul.f32 %v10600_v22, %v10598_v37  ;;  %v4245_v37 = vld [vmem:[%s15014_s2 + $0xb8] sm:$0xff]  ;;  %v13124_v22 = vcombine.low %v4233_v49, %v4237_v41  ;;  %v4256_v49 = vld [vmem:[%s15014_s2 + $0x110] sm:$0xff] }
 0x569   :  { %v4212_v28 = vmul.f32 %v10602_v21, %v12809_v38  ;;  %v10604_v56 = vpop.eup %10603  ;;  %v4236_v38 = vld [vmem:[%s15014_s2 + $0x70] sm:$0xff]  ;;  %v13128_v21 = vcombine.high %v4240_v60, %v4244_v14 }
 0x56a   :  { %v10606_v0 = vpop.eup %10605  ;;  %v13102_v2 = vcombine.high %v4232_v30, %v4236_v38  ;;  %v13122_v54 = vcombine.low %v4232_v30, %v4236_v38  ;;  %v13150_v30 = vcombine.low %v4241_v42, %v4245_v37  ;;  %v4260_v41 = vld [vmem:[%s15014_s2 + $0x130] sm:$0xff] }
 0x56b   :  { %v13079_v11 = vadd.f32 %v4213_v58, %v4212_v28  ;;  %v10608_v9 = vpop.eup %10607  ;;  %v13094_v8 = vmul.f32 %v10606_v0, %v10604_v56  ;;  %v13130_v58 = vcombine.high %v4241_v42, %v4245_v37  ;;  %v4252_v28 = vld [vmem:[%s15014_s2 + $0xf0] sm:$0xff]  ;;  %v4249_v56 = vld [vmem:[%s15014_s2 + $0xd8] sm:$0xff]  ;;  %v13178_v1 = vcombine.high %v4256_v49, %v4260_v41 }
 0x56c   :  { %v4253_v0 = vld [vmem:[%s15014_s2 + $0xf8] sm:$0xff]  ;;  %15223 = vst [vmem:[#allocation54_spill] sm:$0xff] %v13150_v30  ;;  %v13172_v42 = vcombine.low %v4248_v17, %v4252_v28 }
 0x56d   :  { %10609 = vtanh.f32 %v13079_v11  ;;  %15221 = vst [vmem:[#allocation19_spill] sm:$0xff] %v13094_v8  ;;  %v13156_v38 = vcombine.high %v4249_v56, %v4253_v0  ;;  %v13174_v37 = vcombine.low %v4249_v56, %v4253_v0  ;;  %15228 = vst [vmem:[#allocation11_spill] sm:$0xff] %v13178_v1  ;;  %v13196_v56 = vcombine.low %v4256_v49, %v4260_v41  ;;  %v4273_v49 = vld [vmem:[%s15014_s2 + $0x198] sm:$0xff] }
 0x56e   :  { %15226 = vst [vmem:[#allocation67_spill] sm:$0xff] %v13172_v42  ;;  %v4277_v41 = vld [vmem:[%s15014_s2 + $0x1b8] sm:$0xff] }
 0x56f   :  { %15225 = vst [vmem:[#allocation55_spill] sm:$0xff] %v13156_v38  ;;  %15227 = vst [vmem:[#allocation5_spill] sm:$0xff] %v13174_v37 }
 0x570   :  { %15230 = vst [vmem:[#allocation12_spill] sm:$0xff] %v13196_v56 }
 0x577   :  { %v10610_v5 = vpop.eup %10609 }
 0x578   :  { %v13096_v52 = vmul.f32 %v10610_v5, %v10608_v9  ;;  %v13148_v9 = vcombine.low %v4240_v60, %v4244_v14  ;;  %v13154_v5 = vcombine.high %v4248_v17, %v4252_v28  ;;  %v4257_v60 = vld [vmem:[%s15014_s2 + $0x118] sm:$0xff] }
 0x579   :  { %v4261_v14 = vld [vmem:[%s15014_s2 + $0x138] sm:$0xff] }
 0x57a   :  { %15222 = vst [vmem:[#allocation33_spill] sm:$0xff] %v13096_v52  ;;  %v13100_v63 = vpack.c.bf16 %v13096_v52, %v13094_v8  ;;  %15224 = vst [vmem:[#allocation66_spill] sm:$0xff] %v13154_v5  ;;  %v13180_v52 = vcombine.high %v4257_v60, %v4261_v14  ;;  %v4264_v8 = vld [vmem:[%s15014_s2 + $0x150] sm:$0xff]  ;;  %v4265_v17 = vld [vmem:[%s15014_s2 + $0x158] sm:$0xff]  ;;  %v13198_v0 = vcombine.low %v4257_v60, %v4261_v14 }
 0x57b   :  { %v4269_v28 = vld [vmem:[%s15014_s2 + $0x178] sm:$0xff]  ;;  %v13220_v60 = vcombine.low %v4264_v8, %v4268_v55 }
 0x57c   :  { %4639 = vmatmul.mubr.bf16.vlgmr.msra.gmra.mrb[64].mxu0 %v13100_v63  ;;  %4680 = vmatmul.mubr.bf16.vlgmr.msra.gmra.mrb[80].mxu1 %v13100_v63  ;;  %15229 = vst [vmem:[#allocation6_spill] sm:$0xff] %v13180_v52  ;;  %15231 = vst [vmem:[#allocation7_spill] sm:$0xff] %v13198_v0  ;;  %v13222_v14 = vcombine.low %v4265_v17, %v4269_v28 }
 0x57d   :  { %4689 = vmatpush1.bf16.msra.mxu0 %v13040_v31  ;;  %4730 = vmatpush1.bf16.msra.mxu1 %v13048_v61  ;;  %15234 = vst [vmem:[#allocation14_spill] sm:$0xff] %v13220_v60 }
 0x57e   :  { %4690 = vmatprep.subr.bf16.mxu0 %v13102_v2  ;;  %4731 = vmatprep.subr.bf16.mxu1 %v13104_v15 }
 0x57f   :  { %4720 = vmatprep.mubr.bf16.mxu0 %v15112_v62  ;;  %4761 = vmatprep.mubr.bf16.mxu1 %v15112_v62 }
 0x581   :  { %4691 = vmatpush1.bf16.msra.mxu0 %v13122_v54  ;;  %4732 = vmatpush1.bf16.msra.mxu1 %v13124_v22 }
 0x582   :  { %4692 = vmatprep.subr.bf16.mxu0 %v13128_v21  ;;  %4733 = vmatprep.subr.bf16.mxu1 %v13130_v58 }
 0x585   :  { %4693 = vmatpush1.bf16.msra.mxu0 %v13148_v9  ;;  %4734 = vmatpush1.bf16.msra.mxu1 %v13150_v30  ;;  %v4272_v30 = vld [vmem:[%s15014_s2 + $0x190] sm:$0xff] }
 0x586   :  { %4694 = vmatprep.subr.bf16.mxu0 %v13154_v5  ;;  %4735 = vmatprep.subr.bf16.mxu1 %v13156_v38  ;;  %v13202_v38 = vcombine.high %v4264_v8, %v4268_v55  ;;  %v13204_v5 = vcombine.high %v4265_v17, %v4269_v28  ;;  %v4281_v55 = vld [vmem:[%s15014_s2 + $0x1d8] sm:$0xff]  ;;  %v13246_v28 = vcombine.low %v4273_v49, %v4277_v41 }
 0x587   :  { %v4285_v8 = vld [vmem:[%s15014_s2 + $0x1f8] sm:$0xff] }
 0x588   :  { %15232 = vst [vmem:[#allocation13_spill] sm:$0xff] %v13202_v38  ;;  %15233 = vst [vmem:[#allocation8_spill] sm:$0xff] %v13204_v5 }
 0x589   :  { %4695 = vmatpush1.bf16.msra.mxu0 %v13172_v42  ;;  %4736 = vmatpush1.bf16.msra.mxu1 %v13174_v37  ;;  %v4276_v37 = vld [vmem:[%s15014_s2 + $0x1b0] sm:$0xff] }
 0x58a   :  { %4696 = vmatprep.subr.bf16.mxu0 %v13178_v1  ;;  %4737 = vmatprep.subr.bf16.mxu1 %v13180_v52  ;;  %v13226_v52 = vcombine.high %v4272_v30, %v4276_v37  ;;  %v13228_v1 = vcombine.high %v4273_v49, %v4277_v41  ;;  %v4280_v42 = vld [vmem:[%s15014_s2 + $0x1d0] sm:$0xff]  ;;  %v13244_v17 = vcombine.low %v4272_v30, %v4276_v37  ;;  %v15241_v41 = vld [vmem:[#allocation51_spill] sm:$0xff] }
 0x58d   :  { %4697 = vmatpush1.bf16.msra.mxu0 %v13196_v56  ;;  %4738 = vmatpush1.bf16.msra.mxu1 %v13198_v0  ;;  %v4284_v0 = vld [vmem:[%s15014_s2 + $0x1f0] sm:$0xff] }
 0x58e   :  { %4698 = vmatprep.subr.bf16.mxu0 %v13202_v38  ;;  %4739 = vmatprep.subr.bf16.mxu1 %v13204_v5  ;;  %v13250_v5 = vcombine.high %v4280_v42, %v4284_v0  ;;  %v13252_v38 = vcombine.high %v4281_v55, %v4285_v8  ;;  %v13256_v56 = vcombine.low %v4280_v42, %v4284_v0  ;;  %v15240_v42 = vld [vmem:[#allocation62_spill] sm:$0xff] }
 0x591   :  { %4699 = vmatpush1.bf16.msra.mxu0 %v13220_v60  ;;  %4740 = vmatpush1.bf16.msra.mxu1 %v13222_v14  ;;  %v13258_v60 = vcombine.low %v4281_v55, %v4285_v8  ;;  %v15242_v8 = vld [vmem:[#allocation63_spill] sm:$0xff] }
 0x592   :  { %4700 = vmatprep.subr.bf16.mxu0 %v13226_v52  ;;  %4741 = vmatprep.subr.bf16.mxu1 %v13228_v1 }
 0x595   :  { %4701 = vmatpush1.bf16.msra.mxu0 %v13244_v17  ;;  %4742 = vmatpush1.bf16.msra.mxu1 %v13246_v28 }
 0x596   :  { %4702 = vmatprep.subr.bf16.mxu0 %v13250_v5  ;;  %4743 = vmatprep.subr.bf16.mxu1 %v13252_v38 }
 0x599   :  { %4703 = vmatpush1.bf16.msra.mxu0 %v13256_v56  ;;  %4744 = vmatpush1.bf16.msra.mxu1 %v13258_v60 }
 0x59a   :  { %5221 = vmatprep.subr.bf16.mxu0 %v12861_v59  ;;  %5262 = vmatprep.subr.bf16.mxu1 %v12870_v34 }
 0x59c   :  { %4721 = vmatmul.mubr.bf16.vlgmr.msra.gmra.mrb[68].mxu0 %v13100_v63  ;;  %4762 = vmatmul.mubr.bf16.vlgmr.msra.gmra.mrb[84].mxu1 %v13100_v63  ;;  %v15239_v63 = vld [vmem:[#allocation50_spill] sm:$0xff] }
 0x59d   :  { %5222 = vmatpush1.bf16.msra.mxu0 %v12866_v32  ;;  %5263 = vmatpush1.bf16.msra.mxu1 %v12868_v40  ;;  %v15235_v40 = vld [vmem:[#allocation22_spill] sm:$0xff] }
 0x59e   :  { %5223 = vmatprep.subr.bf16.mxu0 %v12885_v7  ;;  %5264 = vmatprep.subr.bf16.mxu1 %v12894_v53  ;;  %v15236_v7 = vld [vmem:[#allocation36_spill] sm:$0xff] }
 0x59f   :  { %5253 = vmatprep.mubr.bf16.mxu0 %v15112_v62  ;;  %5294 = vmatprep.mubr.bf16.mxu1 %v15112_v62 }
 0x5a1   :  { %5224 = vmatpush1.bf16.msra.mxu0 %v12890_v47  ;;  %5265 = vmatpush1.bf16.msra.mxu1 %v12892_v39 }
 0x5a2   :  { %5225 = vmatprep.subr.bf16.mxu0 %v12909_v46  ;;  %5266 = vmatprep.subr.bf16.mxu1 %v12918_v12  ;;  %v15237_v46 = vld [vmem:[#allocation23_spill] sm:$0xff] }
 0x5a5   :  { %5226 = vmatpush1.bf16.msra.mxu0 %v12914_v25  ;;  %5267 = vmatpush1.bf16.msra.mxu1 %v12916_v33  ;;  %v15238_v33 = vld [vmem:[#allocation37_spill] sm:$0xff] }
 0x5a6   :  { %5227 = vmatprep.subr.bf16.mxu0 %v12933_v18  ;;  %5268 = vmatprep.subr.bf16.mxu1 %v12942_v26 }
 0x5a9   :  { %5228 = vmatpush1.bf16.msra.mxu0 %v12938_v16  ;;  %5269 = vmatpush1.bf16.msra.mxu1 %v12940_v35 }
 0x5aa   :  { %5229 = vmatprep.subr.bf16.mxu0 %v12957_v43  ;;  %5270 = vmatprep.subr.bf16.mxu1 %v12966_v20 }
 0x5ad   :  { %5230 = vmatpush1.bf16.msra.mxu0 %v12962_v50  ;;  %5271 = vmatpush1.bf16.msra.mxu1 %v12964_v19 }
 0x5ae   :  { %5231 = vmatprep.subr.bf16.mxu0 %v12983_v51  ;;  %5272 = vmatprep.subr.bf16.mxu1 %v12996_v13 }
 0x5b1   :  { %5232 = vmatpush1.bf16.msra.mxu0 %v12981_v23  ;;  %5273 = vmatpush1.bf16.msra.mxu1 %v12994_v3 }
 0x5b2   :  { %5233 = vmatprep.subr.bf16.mxu0 %v12998_v45  ;;  %5274 = vmatprep.subr.bf16.mxu1 %v13010_v24 }
 0x5b5   :  { %5234 = vmatpush1.bf16.msra.mxu0 %v13023_v44  ;;  %5275 = vmatpush1.bf16.msra.mxu1 %v13036_v4 }
 0x5b6   :  { %5235 = vmatprep.subr.bf16.mxu0 %v13038_v10  ;;  %5276 = vmatprep.subr.bf16.mxu1 %v13046_v27 }
 0x5b9   :  { %5236 = vmatpush1.bf16.msra.mxu0 %v13051_v57  ;;  %5277 = vmatpush1.bf16.msra.mxu1 %v13055_v29 }
 0x5ba   :  { %5303 = vmatprep.subr.bf16.mxu0 %v13057_v48  ;;  %5344 = vmatprep.subr.bf16.mxu1 %v13060_v36 }
 0x64f   :  { %v4640_v59 = vpop.f32.mrb[64].mxu0  ;;  %v4681_v32 = vpop.f32.mrb[80].mxu1 }
 0x650   :  { %v4774_v34 = vadd.f32 %v4640_v59, %v15235_v40  ;;  %v4776_v47 = vadd.f32 %v15236_v7, %v4681_v32  ;;  %v4642_v39 = vpop.f32.mrb[65].mxu0  ;;  %v4683_v53 = vpop.f32.mrb[81].mxu1 }
 0x651   :  { %v4775_v25 = vadd.f32 %v4642_v39, %v15237_v46  ;;  %v4777_v12 = vadd.f32 %v15238_v33, %v4683_v53  ;;  %v4644_v18 = vpop.f32.mrb[66].mxu0  ;;  %v4685_v16 = vpop.f32.mrb[82].mxu1 }
 0x652   :  { %v9639_v35 = vmul.f32 -1.442695, %v4774_v34  ;;  %v4645_v26 = vpop.f32.mrb[67].mxu0  ;;  %v4686_v43 = vpop.f32.mrb[83].mxu1 }
 0x653   :  { %v9640_v50 = vmul.f32 -1.442695, %v4775_v25  ;;  %v9641_v40 = vmul.f32 -1.442695, %v4777_v12 }
 0x654   :  { %10611 = vpow2.f32 %v9639_v35 }
 0x655   :  { %10613 = vpow2.f32 %v9640_v50 }
 0x656   :  { %10615 = vtanh.f32 %v4776_v47 }
 0x65e   :  { %v10612_v19 = vpop.eup %10611 }
 0x65f   :  { %v10614_v20 = vpop.eup %10613  ;;  %v4789_v23 = vadd.f32 1.0, %v10612_v19 }
 0x660   :  { %v4795_v51 = vadd.f32 1.0, %v10614_v20  ;;  %v10616_v3 = vpop.eup %10615 }
 0x661   :  { %10617 = vrcp.f32 %v4789_v23 }
 0x662   :  { %10619 = vrcp.f32 %v4795_v51 }
 0x66b   :  { %v10618_v13 = vpop.eup %10617 }
 0x66c   :  { %v10620_v45 = vpop.eup %10619  ;;  %v4806_v24 = vmul.f32 %v10618_v13, %v10616_v3 }
 0x66d   :  { %v4805_v44 = vmul.f32 %v10620_v45, %v13071_v6 }
 0x66f   :  { %v13307_v4 = vadd.f32 %v4806_v24, %v4805_v44  ;;  %v4722_v10 = vpop.f32.mrb[68].mxu0  ;;  %v4763_v27 = vpop.f32.mrb[84].mxu1  ;;  %v15250_v24 = vld [vmem:[#allocation11_spill] sm:$0xff]  ;;  %v15256_v44 = vld [vmem:[#allocation14_spill] sm:$0xff] }
 0x670   :  { %v4723_v57 = vpop.f32.mrb[69].mxu0  ;;  %v4764_v29 = vpop.f32.mrb[85].mxu1  ;;  %v5464_v10 = vld [vmem:[%s15014_s2 + $0x60] sm:$0xff]  ;;  %v5461_v27 = vld [vmem:[%s15014_s2 + $0x48] sm:$0xff] }
 0x671   :  { %v4724_v48 = vpop.f32.mrb[70].mxu0  ;;  %v4765_v36 = vpop.f32.mrb[86].mxu1  ;;  %v5465_v29 = vld [vmem:[%s15014_s2 + $0x68] sm:$0xff] }
 0x672   :  { %v4782_v30 = vadd.f32 %v15239_v63, %v4724_v48  ;;  %v4784_v37 = vadd.f32 %v15240_v42, %v4765_v36  ;;  %v4726_v0 = vpop.f32.mrb[71].mxu0  ;;  %v4767_v49 = vpop.f32.mrb[87].mxu1  ;;  %v13398_v36 = vcombine.low %v5461_v27, %v5465_v29  ;;  %v13400_v63 = vcombine.high %v5461_v27, %v5465_v29  ;;  %v5472_v42 = vld [vmem:[%s15014_s2 + $0xa0] sm:$0xff]  ;;  %v5459_v27 = vld [vmem:[%s15014_s2 + $0x38] sm:$0xff] }
 0x673   :  { %v4783_v55 = vadd.f32 %v15241_v41, %v4726_v0  ;;  %v4785_v59 = vadd.f32 %v15242_v8, %v4767_v49  ;;  %v5473_v49 = vld [vmem:[%s15014_s2 + $0xa8] sm:$0xff] }
 0x674   :  { %v9642_v32 = vmul.f32 -1.442695, %v4782_v30  ;;  %v5468_v30 = vld [vmem:[%s15014_s2 + $0x80] sm:$0xff] }
 0x675   :  { %v9643_v6 = vmul.f32 -1.442695, %v4783_v55  ;;  %v9644_v34 = vmul.f32 -1.442695, %v4785_v59  ;;  %v13415_v0 = vcombine.high %v5468_v30, %v5472_v42  ;;  %v13420_v41 = vcombine.low %v5468_v30, %v5472_v42  ;;  %v5476_v59 = vld [vmem:[%s15014_s2 + $0xc0] sm:$0xff] }
 0x676   :  { %10621 = vpow2.f32 %v9642_v32  ;;  %v5480_v32 = vld [vmem:[%s15014_s2 + $0xe0] sm:$0xff] }
 0x677   :  { %10623 = vpow2.f32 %v9643_v6  ;;  %v5477_v6 = vld [vmem:[%s15014_s2 + $0xc8] sm:$0xff] }
 0x678   :  { %10625 = vpow2.f32 %v9641_v40  ;;  %v13439_v40 = vcombine.high %v5476_v59, %v5480_v32 }
 0x679   :  { %10627 = vpow2.f32 %v9644_v34  ;;  %v5481_v34 = vld [vmem:[%s15014_s2 + $0xe8] sm:$0xff] }
 0x67a   :  { %10629 = vtanh.f32 %v4784_v37  ;;  %v5469_v37 = vld [vmem:[%s15014_s2 + $0x88] sm:$0xff] }
 0x67b   :  { %v13422_v55 = vcombine.low %v5469_v37, %v5473_v49  ;;  %v13424_v8 = vcombine.high %v5469_v37, %v5473_v49 }
 0x680   :  { %v10622_v7 = vpop.eup %10621 }
 0x681   :  { %v10624_v47 = vpop.eup %10623  ;;  %v4813_v39 = vadd.f32 1.0, %v10622_v7  ;;  %v13444_v7 = vcombine.low %v5476_v59, %v5480_v32 }
 0x682   :  { %v4819_v53 = vadd.f32 1.0, %v10624_v47  ;;  %v10626_v46 = vpop.eup %10625  ;;  %v13446_v47 = vcombine.low %v5477_v6, %v5481_v34 }
 0x683   :  { %10631 = vrcp.f32 %v4813_v39  ;;  %v10628_v25 = vpop.eup %10627  ;;  %v4802_v18 = vadd.f32 1.0, %v10626_v46  ;;  %v13448_v39 = vcombine.high %v5477_v6, %v5481_v34  ;;  %v5488_v46 = vld [vmem:[%s15014_s2 + $0x120] sm:$0xff] }
 0x684   :  { %10633 = vrcp.f32 %v4819_v53  ;;  %v10630_v33 = vpop.eup %10629  ;;  %v4826_v43 = vadd.f32 1.0, %v10628_v25  ;;  %v5484_v53 = vld [vmem:[%s15014_s2 + $0x100] sm:$0xff]  ;;  %v5485_v25 = vld [vmem:[%s15014_s2 + $0x108] sm:$0xff] }
 0x685   :  { %10635 = vrcp.f32 %v4802_v18  ;;  %v5489_v18 = vld [vmem:[%s15014_s2 + $0x128] sm:$0xff]  ;;  %v15257_v34 = vld [vmem:[#allocation24_spill] sm:$0xff] }
 0x686   :  { %10637 = vtanh.f32 %v13307_v4 }
 0x687   :  { %10639 = vrcp.f32 %v4826_v43  ;;  %v5492_v43 = vld [vmem:[%s15014_s2 + $0x140] sm:$0xff] }
 0x68d   :  { %v10632_v16 = vpop.eup %10631 }
 0x68e   :  { %v10634_v35 = vpop.eup %10633  ;;  %v4830_v26 = vmul.f32 %v10632_v16, %v10630_v33  ;;  %v13463_v33 = vcombine.high %v5484_v53, %v5488_v46  ;;  %v13468_v16 = vcombine.low %v5484_v53, %v5488_v46  ;;  %v15258_v46 = vld [vmem:[#allocation38_spill] sm:$0xff] }
 0x68f   :  { %v4829_v12 = vmul.f32 %v10634_v35, %v13079_v11  ;;  %v10636_v19 = vpop.eup %10635  ;;  %v15247_v11 = vld [vmem:[#allocation55_spill] sm:$0xff]  ;;  %v13470_v35 = vcombine.low %v5485_v25, %v5489_v18 }
 0x690   :  { %v10638_v20 = vpop.eup %10637 }
 0x691   :  { %v13315_v50 = vadd.f32 %v4830_v26, %v4829_v12  ;;  %v10640_v23 = vpop.eup %10639  ;;  %v13318_v3 = vmul.f32 %v10638_v20, %v10636_v19  ;;  %v13472_v26 = vcombine.high %v5485_v25, %v5489_v18  ;;  %v5496_v12 = vld [vmem:[%s15014_s2 + $0x160] sm:$0xff]  ;;  %v5493_v19 = vld [vmem:[%s15014_s2 + $0x148] sm:$0xff] }
 0x692   :  { %v13487_v20 = vcombine.low %v5492_v43, %v5496_v12 }
 0x693   :  { %10641 = vtanh.f32 %v13315_v50  ;;  %15243 = vst [vmem:[#allocation9_spill] sm:$0xff] %v13318_v3 }
 0x69d   :  { %v10642_v51 = vpop.eup %10641 }
 0x69e   :  { %v13320_v13 = vmul.f32 %v10642_v51, %v10640_v23  ;;  %v13489_v23 = vcombine.high %v5492_v43, %v5496_v12  ;;  %v5497_v51 = vld [vmem:[%s15014_s2 + $0x168] sm:$0xff] }
 0x69f   :  { %v15259_v12 = vld [vmem:[#allocation25_spill] sm:$0xff] }
 0x6a0   :  { %15244 = vst [vmem:[#allocation15_spill] sm:$0xff] %v13320_v13  ;;  %v4836_v45 = vpack.c.bf16 %v13320_v13, %v13318_v3  ;;  %v5494_v13 = vld [vmem:[%s15014_s2 + $0x150] sm:$0xff] }
 0x6a2   :  { %5254 = vmatmul.mubr.bf16.vlgmr.msra.gmra.mrb[72].mxu0 %v4836_v45  ;;  %5295 = vmatmul.mubr.bf16.vlgmr.msra.gmra.mrb[88].mxu1 %v4836_v45 }
 0x6a3   :  { %5304 = vmatpush1.bf16.msra.mxu0 %v13040_v31  ;;  %5345 = vmatpush1.bf16.msra.mxu1 %v13048_v61  ;;  %v15245_v31 = vld [vmem:[#allocation54_spill] sm:$0xff] }
 0x6a4   :  { %5305 = vmatprep.subr.bf16.mxu0 %v13102_v2  ;;  %5346 = vmatprep.subr.bf16.mxu1 %v13104_v15  ;;  %v15246_v61 = vld [vmem:[#allocation66_spill] sm:$0xff]  ;;  %v15248_v2 = vld [vmem:[#allocation67_spill] sm:$0xff]  ;;  %v15249_v15 = vld [vmem:[#allocation5_spill] sm:$0xff] }
 0x6a5   :  { %5335 = vmatprep.mubr.bf16.mxu0 %v15112_v62  ;;  %5376 = vmatprep.mubr.bf16.mxu1 %v15112_v62 }
 0x6a7   :  { %5306 = vmatpush1.bf16.msra.mxu0 %v13122_v54  ;;  %5347 = vmatpush1.bf16.msra.mxu1 %v13124_v22  ;;  %v15251_v54 = vld [vmem:[#allocation6_spill] sm:$0xff]  ;;  %v15252_v22 = vld [vmem:[#allocation12_spill] sm:$0xff] }
 0x6a8   :  { %5307 = vmatprep.subr.bf16.mxu0 %v13128_v21  ;;  %5348 = vmatprep.subr.bf16.mxu1 %v13130_v58  ;;  %v15253_v21 = vld [vmem:[#allocation7_spill] sm:$0xff]  ;;  %v15254_v58 = vld [vmem:[#allocation13_spill] sm:$0xff] }
 0x6ab   :  { %5308 = vmatpush1.bf16.msra.mxu0 %v13148_v9  ;;  %5349 = vmatpush1.bf16.msra.mxu1 %v15245_v31  ;;  %v15255_v9 = vld [vmem:[#allocation8_spill] sm:$0xff] }
 0x6ac   :  { %5309 = vmatprep.subr.bf16.mxu0 %v15246_v61  ;;  %5350 = vmatprep.subr.bf16.mxu1 %v15247_v11  ;;  %v5504_v31 = vld [vmem:[%s15014_s2 + $0x1a0] sm:$0xff]  ;;  %v13500_v61 = vcombine.low %v5493_v19, %v5497_v51  ;;  %v13502_v11 = vcombine.high %v5493_v19, %v5497_v51  ;;  %v15260_v51 = vld [vmem:[#allocation39_spill] sm:$0xff] }
 0x6af   :  { %5310 = vmatpush1.bf16.msra.mxu0 %v15248_v2  ;;  %5351 = vmatpush1.bf16.msra.mxu1 %v15249_v15  ;;  %v5501_v15 = vld [vmem:[%s15014_s2 + $0x188] sm:$0xff] }
 0x6b0   :  { %5311 = vmatprep.subr.bf16.mxu0 %v15250_v24  ;;  %5352 = vmatprep.subr.bf16.mxu1 %v15251_v54  ;;  %v5505_v24 = vld [vmem:[%s15014_s2 + $0x1a8] sm:$0xff]  ;;  %v5508_v54 = vld [vmem:[%s15014_s2 + $0x1c0] sm:$0xff] }
 0x6b3   :  { %5312 = vmatpush1.bf16.msra.mxu0 %v15252_v22  ;;  %5353 = vmatpush1.bf16.msra.mxu1 %v15253_v21  ;;  %v13516_v22 = vcombine.high %v5501_v15, %v5505_v24  ;;  %v5512_v21 = vld [vmem:[%s15014_s2 + $0x1e0] sm:$0xff] }
 0x6b4   :  { %5313 = vmatprep.subr.bf16.mxu0 %v15254_v58  ;;  %5354 = vmatprep.subr.bf16.mxu1 %v15255_v9  ;;  %v5509_v58 = vld [vmem:[%s15014_s2 + $0x1c8] sm:$0xff]  ;;  %v13557_v42 = vcombine.low %v5508_v54, %v5512_v21 }
 0x6b5   :  { %v5513_v9 = vld [vmem:[%s15014_s2 + $0x1e8] sm:$0xff] }
 0x6b6   :  { %v13552_v29 = vcombine.high %v5509_v58, %v5513_v9  ;;  %v13561_v37 = vcombine.low %v5509_v58, %v5513_v9 }
 0x6b7   :  { %5314 = vmatpush1.bf16.msra.mxu0 %v15256_v44  ;;  %5355 = vmatpush1.bf16.msra.mxu1 %v13222_v14 }
 0x6b8   :  { %5315 = vmatprep.subr.bf16.mxu0 %v13226_v52  ;;  %5356 = vmatprep.subr.bf16.mxu1 %v13228_v1  ;;  %v5452_v1 = vld [vmem:[%s15014_s2] sm:$0xff] }
 0x6b9   :  { %v5456_v52 = vld [vmem:[%s15014_s2 + $0x20] sm:$0xff] }
 0x6bb   :  { %5316 = vmatpush1.bf16.msra.mxu0 %v13244_v17  ;;  %5357 = vmatpush1.bf16.msra.mxu1 %v13246_v28  ;;  %v5460_v28 = vld [vmem:[%s15014_s2 + $0x40] sm:$0xff] }
 0x6bc   :  { %5317 = vmatprep.subr.bf16.mxu0 %v13250_v5  ;;  %5358 = vmatprep.subr.bf16.mxu1 %v13252_v38  ;;  %v5453_v5 = vld [vmem:[%s15014_s2 + $0x8] sm:$0xff]  ;;  %v13367_v38 = vcombine.high %v5452_v1, %v5456_v52  ;;  %v13391_v57 = vcombine.high %v5460_v28, %v5464_v10  ;;  %v13396_v48 = vcombine.low %v5460_v28, %v5464_v10 }
 0x6bd   :  { %v13544_v28 = vcombine.high %v5508_v54, %v5512_v21 }
 0x6bf   :  { %5318 = vmatpush1.bf16.msra.mxu0 %v13256_v56  ;;  %5359 = vmatpush1.bf16.msra.mxu1 %v13258_v60  ;;  %v5457_v56 = vld [vmem:[%s15014_s2 + $0x28] sm:$0xff]  ;;  %v13372_v60 = vcombine.low %v5452_v1, %v5456_v52  ;;  %v5454_v1 = vld [vmem:[%s15014_s2 + $0x10] sm:$0xff] }
 0x6c0   :  { %v13374_v14 = vcombine.low %v5453_v5, %v5457_v56  ;;  %v13376_v17 = vcombine.high %v5453_v5, %v5457_v56  ;;  %5836 = vmatprep.subr.bf16.mxu0 %v13367_v38  ;;  %v5458_v52 = vld [vmem:[%s15014_s2 + $0x30] sm:$0xff]  ;;  %v5455_v5 = vld [vmem:[%s15014_s2 + $0x18] sm:$0xff]  ;;  %v13542_v56 = vcombine.low %v5501_v15, %v5505_v24 }
 0x6c1   :  { %v13546_v10 = vcombine.low %v5454_v1, %v5458_v52  ;;  %v13554_v30 = vcombine.low %v5455_v5, %v5459_v27  ;;  %v13563_v49 = vcombine.high %v5454_v1, %v5458_v52  ;;  %v13566_v59 = vcombine.high %v5455_v5, %v5459_v27 }
 0x6c2   :  { %5336 = vmatmul.mubr.bf16.vlgmr.msra.gmra.mrb[76].mxu0 %v4836_v45  ;;  %5377 = vmatmul.mubr.bf16.vlgmr.msra.gmra.mrb[92].mxu1 %v4836_v45  ;;  %v5500_v45 = vld [vmem:[%s15014_s2 + $0x180] sm:$0xff] }
 0x6c3   :  { %5868 = vmatprep.mubr.bf16.mxu0 %v15112_v62  ;;  %5909 = vmatprep.mubr.bf16.mxu1 %v15112_v62  ;;  %v13504_v2 = vcombine.high %v5500_v45, %v5504_v31  ;;  %v13529_v44 = vcombine.low %v5500_v45, %v5504_v31 }
 0x6c4   :  { %5877 = vmatprep.subr.bf16.mxu1 %v13376_v17  ;;  %5837 = vmatpush1.bf16.msra.mxu0 %v13372_v60 }
 0x6c5   :  { %5878 = vmatpush1.bf16.msra.mxu1 %v13374_v14  ;;  %5838 = vmatprep.subr.bf16.mxu0 %v13391_v57 }
 0x6c6   :  { %5879 = vmatprep.subr.bf16.mxu1 %v13400_v63 }
 0x6c8   :  { %5839 = vmatpush1.bf16.msra.mxu0 %v13396_v48 }
 0x6c9   :  { %5880 = vmatpush1.bf16.msra.mxu1 %v13398_v36  ;;  %5840 = vmatprep.subr.bf16.mxu0 %v13415_v0 }
 0x6ca   :  { %5881 = vmatprep.subr.bf16.mxu1 %v13424_v8 }
 0x6cc   :  { %5841 = vmatpush1.bf16.msra.mxu0 %v13420_v41 }
 0x6cd   :  { %5882 = vmatpush1.bf16.msra.mxu1 %v13422_v55  ;;  %5842 = vmatprep.subr.bf16.mxu0 %v13439_v40 }
 0x6ce   :  { %5883 = vmatprep.subr.bf16.mxu1 %v13448_v39 }
 0x6d0   :  { %5843 = vmatpush1.bf16.msra.mxu0 %v13444_v7 }
 0x6d1   :  { %5884 = vmatpush1.bf16.msra.mxu1 %v13446_v47  ;;  %5844 = vmatprep.subr.bf16.mxu0 %v13463_v33 }
 0x6d2   :  { %5885 = vmatprep.subr.bf16.mxu1 %v13472_v26 }
 0x6d4   :  { %5845 = vmatpush1.bf16.msra.mxu0 %v13468_v16 }
 0x6d5   :  { %5886 = vmatpush1.bf16.msra.mxu1 %v13470_v35  ;;  %5846 = vmatprep.subr.bf16.mxu0 %v13489_v23 }
 0x6d6   :  { %5887 = vmatprep.subr.bf16.mxu1 %v13502_v11 }
 0x6d8   :  { %5847 = vmatpush1.bf16.msra.mxu0 %v13487_v20 }
 0x6d9   :  { %5888 = vmatpush1.bf16.msra.mxu1 %v13500_v61  ;;  %5848 = vmatprep.subr.bf16.mxu0 %v13504_v2 }
 0x6da   :  { %5889 = vmatprep.subr.bf16.mxu1 %v13516_v22 }
 0x6dc   :  { %5849 = vmatpush1.bf16.msra.mxu0 %v13529_v44 }
 0x6dd   :  { %5890 = vmatpush1.bf16.msra.mxu1 %v13542_v56  ;;  %5850 = vmatprep.subr.bf16.mxu0 %v13544_v28 }
 0x6de   :  { %5891 = vmatprep.subr.bf16.mxu1 %v13552_v29 }
 0x6e0   :  { %5851 = vmatpush1.bf16.msra.mxu0 %v13557_v42 }
 0x6e1   :  { %5892 = vmatpush1.bf16.msra.mxu1 %v13561_v37  ;;  %5918 = vmatprep.subr.bf16.mxu0 %v13563_v49 }
 0x6e2   :  { %5959 = vmatprep.subr.bf16.mxu1 %v13566_v59 }
 0x775   :  { %v5255_v32 = vpop.f32.mrb[72].mxu0  ;;  %v5296_v6 = vpop.f32.mrb[88].mxu1 }
 0x776   :  { %v5389_v53 = vadd.f32 %v5255_v32, %v15257_v34  ;;  %v5391_v25 = vadd.f32 %v15258_v46, %v5296_v6  ;;  %v5257_v18 = vpop.f32.mrb[73].mxu0  ;;  %v5298_v43 = vpop.f32.mrb[89].mxu1 }
 0x777   :  { %v5390_v19 = vadd.f32 %v5257_v18, %v15259_v12  ;;  %v5392_v45 = vadd.f32 %v15260_v51, %v5298_v43  ;;  %v5259_v31 = vpop.f32.mrb[74].mxu0  ;;  %v5300_v15 = vpop.f32.mrb[90].mxu1 }
 0x778   :  { %v9709_v24 = vmul.f32 -1.442695, %v5389_v53  ;;  %v5260_v54 = vpop.f32.mrb[75].mxu0  ;;  %v5301_v21 = vpop.f32.mrb[91].mxu1  ;;  %v15261_v15 = vld [vmem:[#allocation48_spill] sm:$0xff] }
 0x779   :  { %v9710_v58 = vmul.f32 -1.442695, %v5390_v19 }
 0x77a   :  { %10643 = vpow2.f32 %v9709_v24 }
 0x77b   :  { %10645 = vpow2.f32 %v9710_v58 }
 0x77c   :  { %10647 = vtanh.f32 %v5391_v25  ;;  %v15262_v25 = vld [vmem:[#allocation60_spill] sm:$0xff] }
 0x784   :  { %v10644_v9 = vpop.eup %10643 }
 0x785   :  { %v10646_v1 = vpop.eup %10645  ;;  %v5404_v52 = vadd.f32 1.0, %v10644_v9  ;;  %v15263_v9 = vld [vmem:[#allocation49_spill] sm:$0xff] }
 0x786   :  { %v5410_v5 = vadd.f32 1.0, %v10646_v1  ;;  %v10648_v27 = vpop.eup %10647 }
 0x787   :  { %10649 = vrcp.f32 %v5404_v52  ;;  %v15264_v52 = vld [vmem:[#allocation61_spill] sm:$0xff] }
 0x788   :  { %10651 = vrcp.f32 %v5410_v5 }
 0x791   :  { %v10650_v32 = vpop.eup %10649 }
 0x792   :  { %v10652_v6 = vpop.eup %10651  ;;  %v5421_v34 = vmul.f32 %v10650_v32, %v10648_v27  ;;  %v9711_v32 = vmul.f32 -1.442695, %v5392_v45 }
 0x793   :  { %v5420_v46 = vmul.f32 %v10652_v6, %v13307_v4 }
 0x795   :  { %v13577_v18 = vadd.f32 %v5421_v34, %v5420_v46  ;;  %v5337_v53 = vpop.f32.mrb[76].mxu0  ;;  %v5378_v43 = vpop.f32.mrb[92].mxu1 }
 0x796   :  { %v5338_v12 = vpop.f32.mrb[77].mxu0  ;;  %v5379_v19 = vpop.f32.mrb[93].mxu1 }
 0x797   :  { %v5339_v51 = vpop.f32.mrb[78].mxu0  ;;  %v5380_v31 = vpop.f32.mrb[94].mxu1 }
 0x798   :  { %v5397_v24 = vadd.f32 %v15261_v15, %v5339_v51  ;;  %v5399_v54 = vadd.f32 %v15262_v25, %v5380_v31  ;;  %v5341_v21 = vpop.f32.mrb[79].mxu0  ;;  %v5382_v58 = vpop.f32.mrb[95].mxu1 }
 0x799   :  { %v5398_v1 = vadd.f32 %v15263_v9, %v5341_v21  ;;  %v5400_v5 = vadd.f32 %v15264_v52, %v5382_v58  ;;  %v5462_v52 = vld [vmem:[%s15014_s2 + $0x50] sm:$0xff] }
 0x79a   :  { %v9712_v27 = vmul.f32 -1.442695, %v5397_v24 }
 0x79b   :  { %v9713_v4 = vmul.f32 -1.442695, %v5398_v1  ;;  %v9714_v6 = vmul.f32 -1.442695, %v5400_v5 }
 0x79c   :  { %10653 = vpow2.f32 %v9712_v27  ;;  %v5463_v27 = vld [vmem:[%s15014_s2 + $0x58] sm:$0xff] }
 0x79d   :  { %10655 = vpow2.f32 %v9713_v4  ;;  %v5467_v4 = vld [vmem:[%s15014_s2 + $0x78] sm:$0xff] }
 0x79e   :  { %10657 = vpow2.f32 %v9711_v32 }
 0x79f   :  { %10659 = vpow2.f32 %v9714_v6 }
 0x7a0   :  { %10661 = vtanh.f32 %v5399_v54 }
 0x7a6   :  { %v10654_v34 = vpop.eup %10653 }
 0x7a7   :  { %v10656_v46 = vpop.eup %10655  ;;  %v5428_v53 = vadd.f32 1.0, %v10654_v34 }
 0x7a8   :  { %v5434_v43 = vadd.f32 1.0, %v10656_v46  ;;  %v10658_v12 = vpop.eup %10657 }
 0x7a9   :  { %10663 = vrcp.f32 %v5428_v53  ;;  %v10660_v19 = vpop.eup %10659  ;;  %v5417_v31 = vadd.f32 1.0, %v10658_v12  ;;  %v13610_v53 = vcombine.high %v5463_v27, %v5467_v4  ;;  %v5474_v12 = vld [vmem:[%s15014_s2 + $0xb0] sm:$0xff] }
 0x7aa   :  { %10665 = vrcp.f32 %v5434_v43  ;;  %v10662_v51 = vpop.eup %10661  ;;  %v5441_v21 = vadd.f32 1.0, %v10660_v19  ;;  %v5470_v43 = vld [vmem:[%s15014_s2 + $0x90] sm:$0xff]  ;;  %v5471_v19 = vld [vmem:[%s15014_s2 + $0x98] sm:$0xff] }
 0x7ab   :  { %10667 = vrcp.f32 %v5417_v31 }
 0x7ac   :  { %10669 = vtanh.f32 %v13577_v18 }
 0x7ad   :  { %10671 = vrcp.f32 %v5441_v21  ;;  %v5478_v21 = vld [vmem:[%s15014_s2 + $0xd0] sm:$0xff] }
 0x7b3   :  { %v10664_v15 = vpop.eup %10663 }
 0x7b4   :  { %v10666_v24 = vpop.eup %10665  ;;  %v5445_v25 = vmul.f32 %v10664_v15, %v10662_v51  ;;  %v5475_v51 = vld [vmem:[%s15014_s2 + $0xb8] sm:$0xff]  ;;  %v13630_v15 = vcombine.low %v5463_v27, %v5467_v4  ;;  %v5486_v27 = vld [vmem:[%s15014_s2 + $0x110] sm:$0xff] }
 0x7b5   :  { %v5444_v45 = vmul.f32 %v10666_v24, %v13315_v50  ;;  %v10668_v54 = vpop.eup %10667  ;;  %v5466_v50 = vld [vmem:[%s15014_s2 + $0x70] sm:$0xff]  ;;  %v13634_v24 = vcombine.high %v5470_v43, %v5474_v12 }
 0x7b6   :  { %v10670_v9 = vpop.eup %10669  ;;  %v13608_v46 = vcombine.high %v5462_v52, %v5466_v50  ;;  %v13628_v31 = vcombine.low %v5462_v52, %v5466_v50  ;;  %v13656_v52 = vcombine.low %v5471_v19, %v5475_v51  ;;  %v5490_v4 = vld [vmem:[%s15014_s2 + $0x130] sm:$0xff] }
 0x7b7   :  { %v13585_v58 = vadd.f32 %v5445_v25, %v5444_v45  ;;  %v10672_v1 = vpop.eup %10671  ;;  %v13600_v32 = vmul.f32 %v10670_v9, %v10668_v54  ;;  %v13636_v25 = vcombine.high %v5471_v19, %v5475_v51  ;;  %v5482_v45 = vld [vmem:[%s15014_s2 + $0xf0] sm:$0xff]  ;;  %v5479_v54 = vld [vmem:[%s15014_s2 + $0xd8] sm:$0xff] }
 0x7b8   :  { %v5483_v9 = vld [vmem:[%s15014_s2 + $0xf8] sm:$0xff]  ;;  %15267 = vst [vmem:[#allocation20_spill] sm:$0xff] %v13656_v52  ;;  %v13678_v19 = vcombine.low %v5478_v21, %v5482_v45 }
 0x7b9   :  { %10673 = vtanh.f32 %v13585_v58  ;;  %15265 = vst [vmem:[#allocation70_spill] sm:$0xff] %v13600_v32  ;;  %v13662_v50 = vcombine.high %v5479_v54, %v5483_v9  ;;  %v13680_v51 = vcombine.low %v5479_v54, %v5483_v9  ;;  %v13702_v54 = vcombine.low %v5486_v27, %v5490_v4 }
 0x7ba   :  { %15270 = vst [vmem:[#allocation35_spill] sm:$0xff] %v13678_v19 }
 0x7bb   :  { %15269 = vst [vmem:[#allocation21_spill] sm:$0xff] %v13662_v50  ;;  %15271 = vst [vmem:[#allocation52_spill] sm:$0xff] %v13680_v51 }
 0x7bc   :  { %15274 = vst [vmem:[#allocation65_spill] sm:$0xff] %v13702_v54 }
 0x7c3   :  { %v10674_v5 = vpop.eup %10673 }
 0x7c4   :  { %v13602_v6 = vmul.f32 %v10674_v5, %v10672_v1  ;;  %v13654_v1 = vcombine.low %v5470_v43, %v5474_v12  ;;  %v13660_v5 = vcombine.high %v5478_v21, %v5482_v45  ;;  %v5487_v43 = vld [vmem:[%s15014_s2 + $0x118] sm:$0xff] }
 0x7c5   :  { %v5491_v12 = vld [vmem:[%s15014_s2 + $0x138] sm:$0xff] }
 0x7c6   :  { %15266 = vst [vmem:[#allocation71_spill] sm:$0xff] %v13602_v6  ;;  %v13606_v34 = vpack.c.bf16 %v13602_v6, %v13600_v32  ;;  %15268 = vst [vmem:[#allocation34_spill] sm:$0xff] %v13660_v5  ;;  %v13684_v32 = vcombine.high %v5486_v27, %v5490_v4  ;;  %v13686_v3 = vcombine.high %v5487_v43, %v5491_v12  ;;  %v5498_v6 = vld [vmem:[%s15014_s2 + $0x170] sm:$0xff]  ;;  %v5495_v21 = vld [vmem:[%s15014_s2 + $0x158] sm:$0xff] }
 0x7c7   :  { %v5499_v45 = vld [vmem:[%s15014_s2 + $0x178] sm:$0xff]  ;;  %v13704_v9 = vcombine.low %v5487_v43, %v5491_v12  ;;  %v13726_v43 = vcombine.low %v5494_v13, %v5498_v6 }
 0x7c8   :  { %5869 = vmatmul.mubr.bf16.vlgmr.msra.gmra.mrb[80].mxu0 %v13606_v34  ;;  %5910 = vmatmul.mubr.bf16.vlgmr.msra.gmra.mrb[96].mxu1 %v13606_v34  ;;  %15272 = vst [vmem:[#allocation64_spill] sm:$0xff] %v13684_v32  ;;  %15273 = vst [vmem:[#allocation53_spill] sm:$0xff] %v13686_v3  ;;  %v5503_v27 = vld [vmem:[%s15014_s2 + $0x198] sm:$0xff]  ;;  %v13728_v12 = vcombine.low %v5495_v21, %v5499_v45 }
 0x7c9   :  { %5919 = vmatpush1.bf16.msra.mxu0 %v13546_v10  ;;  %5960 = vmatpush1.bf16.msra.mxu1 %v13554_v30  ;;  %15275 = vst [vmem:[#allocation22_spill] sm:$0xff] %v13704_v9  ;;  %v5507_v4 = vld [vmem:[%s15014_s2 + $0x1b8] sm:$0xff]  ;;  %15278 = vst [vmem:[#allocation37_spill] sm:$0xff] %v13726_v43 }
 0x7ca   :  { %5920 = vmatprep.subr.bf16.mxu0 %v13608_v46  ;;  %5961 = vmatprep.subr.bf16.mxu1 %v13610_v53 }
 0x7cb   :  { %5950 = vmatprep.mubr.bf16.mxu0 %v15112_v62  ;;  %5991 = vmatprep.mubr.bf16.mxu1 %v15112_v62 }
 0x7cd   :  { %5921 = vmatpush1.bf16.msra.mxu0 %v13628_v31  ;;  %5962 = vmatpush1.bf16.msra.mxu1 %v13630_v15 }
 0x7ce   :  { %5922 = vmatprep.subr.bf16.mxu0 %v13634_v24  ;;  %5963 = vmatprep.subr.bf16.mxu1 %v13636_v25 }
 0x7d1   :  { %5923 = vmatpush1.bf16.msra.mxu0 %v13654_v1  ;;  %5964 = vmatpush1.bf16.msra.mxu1 %v13656_v52  ;;  %v5502_v52 = vld [vmem:[%s15014_s2 + $0x190] sm:$0xff] }
 0x7d2   :  { %5924 = vmatprep.subr.bf16.mxu0 %v13660_v5  ;;  %5965 = vmatprep.subr.bf16.mxu1 %v13662_v50  ;;  %v13708_v50 = vcombine.high %v5494_v13, %v5498_v6  ;;  %v13710_v5 = vcombine.high %v5495_v21, %v5499_v45  ;;  %v5511_v13 = vld [vmem:[%s15014_s2 + $0x1d8] sm:$0xff]  ;;  %v13752_v45 = vcombine.low %v5503_v27, %v5507_v4 }
 0x7d3   :  { %v5515_v6 = vld [vmem:[%s15014_s2 + $0x1f8] sm:$0xff] }
 0x7d4   :  { %15276 = vst [vmem:[#allocation36_spill] sm:$0xff] %v13708_v50  ;;  %15277 = vst [vmem:[#allocation23_spill] sm:$0xff] %v13710_v5 }
 0x7d5   :  { %5925 = vmatpush1.bf16.msra.mxu0 %v13678_v19  ;;  %5966 = vmatpush1.bf16.msra.mxu1 %v13680_v51  ;;  %v5506_v51 = vld [vmem:[%s15014_s2 + $0x1b0] sm:$0xff] }
 0x7d6   :  { %5926 = vmatprep.subr.bf16.mxu0 %v13684_v32  ;;  %5967 = vmatprep.subr.bf16.mxu1 %v13686_v3  ;;  %v13732_v3 = vcombine.high %v5502_v52, %v5506_v51  ;;  %v13734_v32 = vcombine.high %v5503_v27, %v5507_v4  ;;  %v5510_v19 = vld [vmem:[%s15014_s2 + $0x1d0] sm:$0xff]  ;;  %v13750_v21 = vcombine.low %v5502_v52, %v5506_v51  ;;  %v15285_v4 = vld [vmem:[#allocation47_spill] sm:$0xff] }
 0x7d9   :  { %5927 = vmatpush1.bf16.msra.mxu0 %v13702_v54  ;;  %5968 = vmatpush1.bf16.msra.mxu1 %v13704_v9  ;;  %v5514_v9 = vld [vmem:[%s15014_s2 + $0x1f0] sm:$0xff] }
 0x7da   :  { %5928 = vmatprep.subr.bf16.mxu0 %v13708_v50  ;;  %5969 = vmatprep.subr.bf16.mxu1 %v13710_v5  ;;  %v13756_v5 = vcombine.high %v5510_v19, %v5514_v9  ;;  %v13758_v50 = vcombine.high %v5511_v13, %v5515_v6  ;;  %v13762_v54 = vcombine.low %v5510_v19, %v5514_v9  ;;  %v15284_v19 = vld [vmem:[#allocation58_spill] sm:$0xff] }
 0x7dd   :  { %5929 = vmatpush1.bf16.msra.mxu0 %v13726_v43  ;;  %5970 = vmatpush1.bf16.msra.mxu1 %v13728_v12  ;;  %v13764_v43 = vcombine.low %v5511_v13, %v5515_v6  ;;  %v15286_v6 = vld [vmem:[#allocation59_spill] sm:$0xff] }
 0x7de   :  { %5930 = vmatprep.subr.bf16.mxu0 %v13732_v3  ;;  %5971 = vmatprep.subr.bf16.mxu1 %v13734_v32 }
 0x7e1   :  { %5931 = vmatpush1.bf16.msra.mxu0 %v13750_v21  ;;  %5972 = vmatpush1.bf16.msra.mxu1 %v13752_v45 }
 0x7e2   :  { %5932 = vmatprep.subr.bf16.mxu0 %v13756_v5  ;;  %5973 = vmatprep.subr.bf16.mxu1 %v13758_v50 }
 0x7e5   :  { %5933 = vmatpush1.bf16.msra.mxu0 %v13762_v54  ;;  %5974 = vmatpush1.bf16.msra.mxu1 %v13764_v43 }
 0x7e6   :  { %6451 = vmatprep.subr.bf16.mxu0 %v13367_v38  ;;  %6492 = vmatprep.subr.bf16.mxu1 %v13376_v17 }
 0x7e8   :  { %5951 = vmatmul.mubr.bf16.vlgmr.msra.gmra.mrb[84].mxu0 %v13606_v34  ;;  %5992 = vmatmul.mubr.bf16.vlgmr.msra.gmra.mrb[100].mxu1 %v13606_v34  ;;  %v15283_v34 = vld [vmem:[#allocation46_spill] sm:$0xff] }
 0x7e9   :  { %6452 = vmatpush1.bf16.msra.mxu0 %v13372_v60  ;;  %6493 = vmatpush1.bf16.msra.mxu1 %v13374_v14  ;;  %v15279_v14 = vld [vmem:[#allocation26_spill] sm:$0xff] }
 0x7ea   :  { %6453 = vmatprep.subr.bf16.mxu0 %v13391_v57  ;;  %6494 = vmatprep.subr.bf16.mxu1 %v13400_v63  ;;  %v15280_v57 = vld [vmem:[#allocation40_spill] sm:$0xff] }
 0x7eb   :  { %6483 = vmatprep.mubr.bf16.mxu0 %v15112_v62  ;;  %6524 = vmatprep.mubr.bf16.mxu1 %v15112_v62 }
 0x7ed   :  { %6454 = vmatpush1.bf16.msra.mxu0 %v13396_v48  ;;  %6495 = vmatpush1.bf16.msra.mxu1 %v13398_v36 }
 0x7ee   :  { %6455 = vmatprep.subr.bf16.mxu0 %v13415_v0  ;;  %6496 = vmatprep.subr.bf16.mxu1 %v13424_v8  ;;  %v15281_v0 = vld [vmem:[#allocation27_spill] sm:$0xff] }
 0x7f1   :  { %6456 = vmatpush1.bf16.msra.mxu0 %v13420_v41  ;;  %6497 = vmatpush1.bf16.msra.mxu1 %v13422_v55  ;;  %v15282_v55 = vld [vmem:[#allocation41_spill] sm:$0xff] }
 0x7f2   :  { %6457 = vmatprep.subr.bf16.mxu0 %v13439_v40  ;;  %6498 = vmatprep.subr.bf16.mxu1 %v13448_v39 }
 0x7f5   :  { %6458 = vmatpush1.bf16.msra.mxu0 %v13444_v7  ;;  %6499 = vmatpush1.bf16.msra.mxu1 %v13446_v47 }
 0x7f6   :  { %6459 = vmatprep.subr.bf16.mxu0 %v13463_v33  ;;  %6500 = vmatprep.subr.bf16.mxu1 %v13472_v26 }
 0x7f9   :  { %6460 = vmatpush1.bf16.msra.mxu0 %v13468_v16  ;;  %6501 = vmatpush1.bf16.msra.mxu1 %v13470_v35 }
 0x7fa   :  { %6461 = vmatprep.subr.bf16.mxu0 %v13489_v23  ;;  %6502 = vmatprep.subr.bf16.mxu1 %v13502_v11 }
 0x7fd   :  { %6462 = vmatpush1.bf16.msra.mxu0 %v13487_v20  ;;  %6503 = vmatpush1.bf16.msra.mxu1 %v13500_v61 }
 0x7fe   :  { %6463 = vmatprep.subr.bf16.mxu0 %v13504_v2  ;;  %6504 = vmatprep.subr.bf16.mxu1 %v13516_v22 }
 0x801   :  { %6464 = vmatpush1.bf16.msra.mxu0 %v13529_v44  ;;  %6505 = vmatpush1.bf16.msra.mxu1 %v13542_v56 }
 0x802   :  { %6465 = vmatprep.subr.bf16.mxu0 %v13544_v28  ;;  %6506 = vmatprep.subr.bf16.mxu1 %v13552_v29 }
 0x805   :  { %6466 = vmatpush1.bf16.msra.mxu0 %v13557_v42  ;;  %6507 = vmatpush1.bf16.msra.mxu1 %v13561_v37 }
 0x806   :  { %6533 = vmatprep.subr.bf16.mxu0 %v13563_v49  ;;  %6574 = vmatprep.subr.bf16.mxu1 %v13566_v59 }
 0x89b   :  { %v5870_v38 = vpop.f32.mrb[80].mxu0  ;;  %v5911_v60 = vpop.f32.mrb[96].mxu1 }
 0x89c   :  { %v6004_v17 = vadd.f32 %v5870_v38, %v15279_v14  ;;  %v6006_v48 = vadd.f32 %v15280_v57, %v5911_v60  ;;  %v5872_v36 = vpop.f32.mrb[81].mxu0  ;;  %v5913_v63 = vpop.f32.mrb[97].mxu1 }
 0x89d   :  { %v6005_v41 = vadd.f32 %v5872_v36, %v15281_v0  ;;  %v6007_v8 = vadd.f32 %v15282_v55, %v5913_v63  ;;  %v5874_v40 = vpop.f32.mrb[82].mxu0  ;;  %v5915_v7 = vpop.f32.mrb[98].mxu1 }
 0x89e   :  { %v9779_v47 = vmul.f32 -1.442695, %v6004_v17  ;;  %v5875_v39 = vpop.f32.mrb[83].mxu0  ;;  %v5916_v33 = vpop.f32.mrb[99].mxu1 }
 0x89f   :  { %v9780_v16 = vmul.f32 -1.442695, %v6005_v41  ;;  %v9781_v14 = vmul.f32 -1.442695, %v6007_v8 }
 0x8a0   :  { %10675 = vpow2.f32 %v9779_v47 }
 0x8a1   :  { %10677 = vpow2.f32 %v9780_v16 }
 0x8a2   :  { %10679 = vtanh.f32 %v6006_v48 }
 0x8aa   :  { %v10676_v35 = vpop.eup %10675 }
 0x8ab   :  { %v10678_v26 = vpop.eup %10677  ;;  %v6019_v20 = vadd.f32 1.0, %v10676_v35 }
 0x8ac   :  { %v6025_v23 = vadd.f32 1.0, %v10678_v26  ;;  %v10680_v61 = vpop.eup %10679 }
 0x8ad   :  { %10681 = vrcp.f32 %v6019_v20 }
 0x8ae   :  { %10683 = vrcp.f32 %v6025_v23 }
 0x8b7   :  { %v10682_v11 = vpop.eup %10681 }
 0x8b8   :  { %v10684_v2 = vpop.eup %10683  ;;  %v6036_v22 = vmul.f32 %v10682_v11, %v10680_v61 }
 0x8b9   :  { %v6035_v44 = vmul.f32 %v10684_v2, %v13577_v18 }
 0x8bb   :  { %v13813_v56 = vadd.f32 %v6036_v22, %v6035_v44  ;;  %v5952_v28 = vpop.f32.mrb[84].mxu0  ;;  %v5993_v29 = vpop.f32.mrb[100].mxu1  ;;  %v15292_v22 = vld [vmem:[#allocation64_spill] sm:$0xff]  ;;  %v15298_v44 = vld [vmem:[#allocation37_spill] sm:$0xff] }
 0x8bc   :  { %v5953_v42 = vpop.f32.mrb[85].mxu0  ;;  %v5994_v37 = vpop.f32.mrb[101].mxu1  ;;  %v10244_v28 = vld [vmem:[%s15016_s4 + $0x4c] ss:$16 sps:$4 sm:$0xff]   ;;  %v10239_v29 = vld [vmem:[%s15016_s4 + $0x40] ss:$16 sps:$4 sm:$0xff]  }
 0x8bd   :  { %v5954_v49 = vpop.f32.mrb[86].mxu0  ;;  %v5995_v59 = vpop.f32.mrb[102].mxu1  ;;  %v10242_v42 = vld [vmem:[%s15016_s4 + $0x48] ss:$16 sps:$4 sm:$0xff]   ;;  %v10247_v37 = vld [vmem:[%s15016_s4 + $0x64] ss:$16 sps:$4 sm:$0xff]  }
 0x8be   :  { %v6012_v52 = vadd.f32 %v15283_v34, %v5954_v49  ;;  %v6014_v51 = vadd.f32 %v15284_v19, %v5995_v59  ;;  %v5956_v9 = vpop.f32.mrb[87].mxu0  ;;  %v5997_v27 = vpop.f32.mrb[103].mxu1  ;;  %v10250_v49 = vld [vmem:[%s15016_s4 + $0x6c] ss:$16 sps:$4 sm:$0xff]   ;;  %v10245_v59 = vld [vmem:[%s15016_s4 + $0x60] ss:$16 sps:$4 sm:$0xff]  }
 0x8bf   :  { %v6013_v13 = vadd.f32 %v15285_v4, %v5956_v9  ;;  %v6015_v38 = vadd.f32 %v15286_v6, %v5997_v27  ;;  %v10248_v34 = vld [vmem:[%s15016_s4 + $0x68] ss:$16 sps:$4 sm:$0xff]   ;;  %v10256_v19 = vld [vmem:[%s15016_s4 + $0x8c] ss:$16 sps:$4 sm:$0xff]   ;;  %v10259_v27 = vld [vmem:[%s15016_s4 + $0xa4] ss:$16 sps:$4 sm:$0xff]  }
 0x8c0   :  { %v9782_v60 = vmul.f32 -1.442695, %v6012_v52  ;;  %v10253_v52 = vld [vmem:[%s15016_s4 + $0x84] ss:$16 sps:$4 sm:$0xff]   ;;  %v10254_v9 = vld [vmem:[%s15016_s4 + $0x88] ss:$16 sps:$4 sm:$0xff]  }
 0x8c1   :  { %v9783_v18 = vmul.f32 -1.442695, %v6013_v13  ;;  %v9784_v17 = vmul.f32 -1.442695, %v6015_v38  ;;  %v10262_v4 = vld [vmem:[%s15016_s4 + $0xac] ss:$16 sps:$4 sm:$0xff]  }
 0x8c2   :  { %10685 = vpow2.f32 %v9782_v60  ;;  %v10257_v13 = vld [vmem:[%s15016_s4 + $0xa0] ss:$16 sps:$4 sm:$0xff]   ;;  %v10260_v6 = vld [vmem:[%s15016_s4 + $0xa8] ss:$16 sps:$4 sm:$0xff]   ;;  %v10265_v38 = vld [vmem:[%s15016_s4 + $0xc4] ss:$16 sps:$4 sm:$0xff]  }
 0x8c3   :  { %10687 = vpow2.f32 %v9783_v18  ;;  %v10268_v60 = vld [vmem:[%s15016_s4 + $0xcc] ss:$16 sps:$4 sm:$0xff]   ;;  %v10263_v18 = vld [vmem:[%s15016_s4 + $0xc0] ss:$16 sps:$4 sm:$0xff]  }
 0x8c4   :  { %10689 = vpow2.f32 %v9781_v14  ;;  %v10266_v14 = vld [vmem:[%s15016_s4 + $0xc8] ss:$16 sps:$4 sm:$0xff]  }
 0x8c5   :  { %10691 = vpow2.f32 %v9784_v17  ;;  %v10271_v17 = vld [vmem:[%s15016_s4 + $0xe4] ss:$16 sps:$4 sm:$0xff]  }
 0x8c6   :  { %10693 = vtanh.f32 %v6014_v51  ;;  %v10251_v51 = vld [vmem:[%s15016_s4 + $0x80] ss:$16 sps:$4 sm:$0xff]  }
 0x8cc   :  { %v10686_v57 = vpop.eup %10685 }
 0x8cd   :  { %v10688_v48 = vpop.eup %10687  ;;  %v6043_v36 = vadd.f32 1.0, %v10686_v57  ;;  %v10274_v57 = vld [vmem:[%s15016_s4 + $0xec] ss:$16 sps:$4 sm:$0xff]  }
 0x8ce   :  { %v6049_v63 = vadd.f32 1.0, %v10688_v48  ;;  %v10690_v0 = vpop.eup %10689  ;;  %v10269_v48 = vld [vmem:[%s15016_s4 + $0xe0] ss:$16 sps:$4 sm:$0xff]  }
 0x8cf   :  { %10695 = vrcp.f32 %v6043_v36  ;;  %v10692_v41 = vpop.eup %10691  ;;  %v6032_v40 = vadd.f32 1.0, %v10690_v0  ;;  %v10272_v36 = vld [vmem:[%s15016_s4 + $0xe8] ss:$16 sps:$4 sm:$0xff]   ;;  %v10280_v0 = vld [vmem:[%s15016_s4 + $0x10c] ss:$16 sps:$4 sm:$0xff]  }
 0x8d0   :  { %10697 = vrcp.f32 %v6049_v63  ;;  %v10694_v55 = vpop.eup %10693  ;;  %v6056_v33 = vadd.f32 1.0, %v10692_v41  ;;  %v10277_v63 = vld [vmem:[%s15016_s4 + $0x104] ss:$16 sps:$4 sm:$0xff]   ;;  %v10275_v41 = vld [vmem:[%s15016_s4 + $0x100] ss:$16 sps:$4 sm:$0xff]  }
 0x8d1   :  { %10699 = vrcp.f32 %v6032_v40  ;;  %v10283_v40 = vld [vmem:[%s15016_s4 + $0x124] ss:$16 sps:$4 sm:$0xff]  }
 0x8d2   :  { %10701 = vtanh.f32 %v13813_v56 }
 0x8d3   :  { %10703 = vrcp.f32 %v6056_v33  ;;  %v10289_v33 = vld [vmem:[%s15016_s4 + $0x144] ss:$16 sps:$4 sm:$0xff]  }
 0x8d9   :  { %v10696_v7 = vpop.eup %10695 }
 0x8da   :  { %v10698_v47 = vpop.eup %10697  ;;  %v6060_v39 = vmul.f32 %v10696_v7, %v10694_v55  ;;  %v10278_v55 = vld [vmem:[%s15016_s4 + $0x108] ss:$16 sps:$4 sm:$0xff]   ;;  %v10286_v7 = vld [vmem:[%s15016_s4 + $0x12c] ss:$16 sps:$4 sm:$0xff]  }
 0x8db   :  { %v6059_v8 = vmul.f32 %v10698_v47, %v13585_v58  ;;  %v10700_v35 = vpop.eup %10699  ;;  %v15289_v58 = vld [vmem:[#allocation21_spill] sm:$0xff]  ;;  %v10281_v47 = vld [vmem:[%s15016_s4 + $0x120] ss:$16 sps:$4 sm:$0xff]  }
 0x8dc   :  { %v10702_v26 = vpop.eup %10701 }
 0x8dd   :  { %v13821_v16 = vadd.f32 %v6060_v39, %v6059_v8  ;;  %v10704_v20 = vpop.eup %10703  ;;  %v13824_v61 = vmul.f32 %v10702_v26, %v10700_v35  ;;  %v10284_v39 = vld [vmem:[%s15016_s4 + $0x128] ss:$16 sps:$4 sm:$0xff]   ;;  %v10292_v8 = vld [vmem:[%s15016_s4 + $0x14c] ss:$16 sps:$4 sm:$0xff]   ;;  %v10287_v35 = vld [vmem:[%s15016_s4 + $0x140] ss:$16 sps:$4 sm:$0xff]  }
 0x8de   :  { %v10290_v26 = vld [vmem:[%s15016_s4 + $0x148] ss:$16 sps:$4 sm:$0xff]  }
 0x8df   :  { %10705 = vtanh.f32 %v13821_v16 }
 0x8e9   :  { %v10706_v23 = vpop.eup %10705 }
 0x8ea   :  { %v13826_v11 = vmul.f32 %v10706_v23, %v10704_v20  ;;  %v10295_v20 = vld [vmem:[%s15016_s4 + $0x164] ss:$16 sps:$4 sm:$0xff]   ;;  %v10298_v23 = vld [vmem:[%s15016_s4 + $0x16c] ss:$16 sps:$4 sm:$0xff]  }
 0x8ec   :  { %v6066_v2 = vpack.c.bf16 %v13826_v11, %v13824_v61 }
 0x8ee   :  { %6484 = vmatmul.mubr.bf16.vlgmr.msra.gmra.mrb[88].mxu0 %v6066_v2  ;;  %6525 = vmatmul.mubr.bf16.vlgmr.msra.gmra.mrb[104].mxu1 %v6066_v2 }
 0x8ef   :  { %6534 = vmatpush1.bf16.msra.mxu0 %v13546_v10  ;;  %6575 = vmatpush1.bf16.msra.mxu1 %v13554_v30  ;;  %v15287_v10 = vld [vmem:[#allocation20_spill] sm:$0xff]  ;;  %v15288_v30 = vld [vmem:[#allocation34_spill] sm:$0xff] }
 0x8f0   :  { %6535 = vmatprep.subr.bf16.mxu0 %v13608_v46  ;;  %6576 = vmatprep.subr.bf16.mxu1 %v13610_v53  ;;  %v15290_v46 = vld [vmem:[#allocation35_spill] sm:$0xff]  ;;  %v15291_v53 = vld [vmem:[#allocation52_spill] sm:$0xff] }
 0x8f1   :  { %6565 = vmatprep.mubr.bf16.mxu0 %v15112_v62  ;;  %6606 = vmatprep.mubr.bf16.mxu1 %v15112_v62 }
 0x8f3   :  { %6536 = vmatpush1.bf16.msra.mxu0 %v13628_v31  ;;  %6577 = vmatpush1.bf16.msra.mxu1 %v13630_v15  ;;  %v15293_v31 = vld [vmem:[#allocation53_spill] sm:$0xff] }
 0x8f4   :  { %6537 = vmatprep.subr.bf16.mxu0 %v13634_v24  ;;  %6578 = vmatprep.subr.bf16.mxu1 %v13636_v25  ;;  %v15294_v15 = vld [vmem:[#allocation65_spill] sm:$0xff]  ;;  %v15295_v24 = vld [vmem:[#allocation22_spill] sm:$0xff]  ;;  %v15296_v25 = vld [vmem:[#allocation36_spill] sm:$0xff] }
 0x8f7   :  { %6538 = vmatpush1.bf16.msra.mxu0 %v13654_v1  ;;  %6579 = vmatpush1.bf16.msra.mxu1 %v15287_v10  ;;  %v15297_v1 = vld [vmem:[#allocation23_spill] sm:$0xff] }
 0x8f8   :  { %6539 = vmatprep.subr.bf16.mxu0 %v15288_v30  ;;  %6580 = vmatprep.subr.bf16.mxu1 %v15289_v58  ;;  %v10296_v10 = vld [vmem:[%s15016_s4 + $0x168] ss:$16 sps:$4 sm:$0xff]   ;;  %v10301_v30 = vld [vmem:[%s15016_s4 + $0x184] ss:$16 sps:$4 sm:$0xff]   ;;  %v10304_v58 = vld [vmem:[%s15016_s4 + $0x18c] ss:$16 sps:$4 sm:$0xff]  }
 0x8fb   :  { %6540 = vmatpush1.bf16.msra.mxu0 %v15290_v46  ;;  %6581 = vmatpush1.bf16.msra.mxu1 %v15291_v53  ;;  %v10299_v46 = vld [vmem:[%s15016_s4 + $0x180] ss:$16 sps:$4 sm:$0xff]   ;;  %v10302_v53 = vld [vmem:[%s15016_s4 + $0x188] ss:$16 sps:$4 sm:$0xff]  }
 0x8fc   :  { %6541 = vmatprep.subr.bf16.mxu0 %v15292_v22  ;;  %6582 = vmatprep.subr.bf16.mxu1 %v15293_v31  ;;  %v10307_v22 = vld [vmem:[%s15016_s4 + $0x1a4] ss:$16 sps:$4 sm:$0xff]   ;;  %v10310_v31 = vld [vmem:[%s15016_s4 + $0x1ac] ss:$16 sps:$4 sm:$0xff]  }
 0x8ff   :  { %6542 = vmatpush1.bf16.msra.mxu0 %v15294_v15  ;;  %6583 = vmatpush1.bf16.msra.mxu1 %v15295_v24  ;;  %v10305_v15 = vld [vmem:[%s15016_s4 + $0x1a0] ss:$16 sps:$4 sm:$0xff]   ;;  %v10308_v24 = vld [vmem:[%s15016_s4 + $0x1a8] ss:$16 sps:$4 sm:$0xff]  }
 0x900   :  { %6543 = vmatprep.subr.bf16.mxu0 %v15296_v25  ;;  %6584 = vmatprep.subr.bf16.mxu1 %v15297_v1  ;;  %v10313_v25 = vld [vmem:[%s15016_s4 + $0x1c4] ss:$16 sps:$4 sm:$0xff]   ;;  %v10316_v1 = vld [vmem:[%s15016_s4 + $0x1cc] ss:$16 sps:$4 sm:$0xff]  }
 0x903   :  { %6544 = vmatpush1.bf16.msra.mxu0 %v15298_v44  ;;  %6585 = vmatpush1.bf16.msra.mxu1 %v13728_v12  ;;  %v10233_v12 = vld [vmem:[%s15016_s4 + $0x20] ss:$16 sps:$4 sm:$0xff]  }
 0x904   :  { %6545 = vmatprep.subr.bf16.mxu0 %v13732_v3  ;;  %6586 = vmatprep.subr.bf16.mxu1 %v13734_v32  ;;  %v10229_v3 = vld [vmem:[%s15016_s4 + $0x4] ss:$16 sps:$4 sm:$0xff]   ;;  %v10227_v32 = vld [vmem:[%s15016_s4] ss:$16 sps:$4 sm:$0xff]  }
 0x905   :  { %v10311_v44 = vld [vmem:[%s15016_s4 + $0x1c0] ss:$16 sps:$4 sm:$0xff]  }
 0x907   :  { %6546 = vmatpush1.bf16.msra.mxu0 %v13750_v21  ;;  %6587 = vmatpush1.bf16.msra.mxu1 %v13752_v45  ;;  %v10236_v21 = vld [vmem:[%s15016_s4 + $0x28] ss:$16 sps:$4 sm:$0xff]   ;;  %v10241_v45 = vld [vmem:[%s15016_s4 + $0x44] ss:$16 sps:$4 sm:$0xff]  }
 0x908   :  { %6547 = vmatprep.subr.bf16.mxu0 %v13756_v5  ;;  %6588 = vmatprep.subr.bf16.mxu1 %v13758_v50  ;;  %v10230_v5 = vld [vmem:[%s15016_s4 + $0x8] ss:$16 sps:$4 sm:$0xff]   ;;  %v10232_v50 = vld [vmem:[%s15016_s4 + $0xc] ss:$16 sps:$4 sm:$0xff]  }
 0x90b   :  { %6548 = vmatpush1.bf16.msra.mxu0 %v13762_v54  ;;  %6589 = vmatpush1.bf16.msra.mxu1 %v13764_v43  ;;  %v10235_v54 = vld [vmem:[%s15016_s4 + $0x24] ss:$16 sps:$4 sm:$0xff]   ;;  %v10238_v43 = vld [vmem:[%s15016_s4 + $0x2c] ss:$16 sps:$4 sm:$0xff]  }
 0x90c   :  { %7111 = vmatprep.subr.bf16.mxu0 %v10229_v3  ;;  %7184 = vmatprep.subr.bf16.mxu1 %v10232_v50  ;;  %v10314_v3 = vld [vmem:[%s15016_s4 + $0x1c8] ss:$16 sps:$4 sm:$0xff]   ;;  %v10317_v50 = vld [vmem:[%s15016_s4 + $0x1e0] ss:$16 sps:$4 sm:$0xff]  }
 0x90e   :  { %6566 = vmatmul.mubr.bf16.vlgmr.msra.gmra.mrb[92].mxu0 %v6066_v2  ;;  %6607 = vmatmul.mubr.bf16.vlgmr.msra.gmra.mrb[108].mxu1 %v6066_v2  ;;  %v10293_v2 = vld [vmem:[%s15016_s4 + $0x160] ss:$16 sps:$4 sm:$0xff]  }
 0x90f   :  { %7112 = vmatpush1.bf16.msra.mxu0 %v10227_v32  ;;  %7185 = vmatpush1.bf16.msra.mxu1 %v10230_v5  ;;  %v10319_v32 = vld [vmem:[%s15016_s4 + $0x1e4] ss:$16 sps:$4 sm:$0xff]   ;;  %v10322_v5 = vld [vmem:[%s15016_s4 + $0x1ec] ss:$16 sps:$4 sm:$0xff]  }
 0x910   :  { %7113 = vmatprep.subr.bf16.mxu0 %v10235_v54  ;;  %7186 = vmatprep.subr.bf16.mxu1 %v10238_v43  ;;  %v10320_v54 = vld [vmem:[%s15016_s4 + $0x1e8] ss:$16 sps:$4 sm:$0xff]   ;;  %v14057_v43 = vld [vmem:[%s15017_s6 + $0x4] ss:$16 sps:$4 sm:$0xff]  }
 0x913   :  { %7114 = vmatpush1.bf16.msra.mxu0 %v10233_v12  ;;  %7187 = vmatpush1.bf16.msra.mxu1 %v10236_v21  ;;  %v14062_v12 = vld [vmem:[%s15017_s6 + $0xc] ss:$16 sps:$4 sm:$0xff]  }
 0x914   :  { %7115 = vmatprep.subr.bf16.mxu0 %v10241_v45  ;;  %7188 = vmatprep.subr.bf16.mxu1 %v10244_v28  ;;  %v15299_v28 = vld [vmem:[#allocation28_spill] sm:$0xff] }
 0x917   :  { %7116 = vmatpush1.bf16.msra.mxu0 %v10239_v29  ;;  %7189 = vmatpush1.bf16.msra.mxu1 %v10242_v42  ;;  %v15300_v42 = vld [vmem:[#allocation42_spill] sm:$0xff] }
 0x918   :  { %7117 = vmatprep.subr.bf16.mxu0 %v10247_v37  ;;  %7190 = vmatprep.subr.bf16.mxu1 %v10250_v49 }
 0x91b   :  { %7118 = vmatpush1.bf16.msra.mxu0 %v10245_v59  ;;  %7191 = vmatpush1.bf16.msra.mxu1 %v10248_v34  ;;  %v15301_v34 = vld [vmem:[#allocation29_spill] sm:$0xff] }
 0x91c   :  { %7119 = vmatprep.subr.bf16.mxu0 %v10253_v52  ;;  %7192 = vmatprep.subr.bf16.mxu1 %v10256_v19  ;;  %v15302_v19 = vld [vmem:[#allocation43_spill] sm:$0xff] }
 0x91f   :  { %7120 = vmatpush1.bf16.msra.mxu0 %v10251_v51  ;;  %7193 = vmatpush1.bf16.msra.mxu1 %v10254_v9 }
 0x920   :  { %7121 = vmatprep.subr.bf16.mxu0 %v10259_v27  ;;  %7194 = vmatprep.subr.bf16.mxu1 %v10262_v4 }
 0x923   :  { %7122 = vmatpush1.bf16.msra.mxu0 %v10257_v13  ;;  %7195 = vmatpush1.bf16.msra.mxu1 %v10260_v6 }
 0x924   :  { %7123 = vmatprep.subr.bf16.mxu0 %v10265_v38  ;;  %7196 = vmatprep.subr.bf16.mxu1 %v10268_v60 }
 0x927   :  { %7124 = vmatpush1.bf16.msra.mxu0 %v10263_v18  ;;  %7197 = vmatpush1.bf16.msra.mxu1 %v10266_v14 }
 0x928   :  { %7125 = vmatprep.subr.bf16.mxu0 %v10271_v17  ;;  %7198 = vmatprep.subr.bf16.mxu1 %v10274_v57 }
 0x92b   :  { %7126 = vmatpush1.bf16.msra.mxu0 %v10269_v48  ;;  %7199 = vmatpush1.bf16.msra.mxu1 %v10272_v36 }
 0x92c   :  { %7127 = vmatprep.subr.bf16.mxu0 %v10277_v63  ;;  %7200 = vmatprep.subr.bf16.mxu1 %v10280_v0 }
 0x92f   :  { %7128 = vmatpush1.bf16.msra.mxu0 %v10275_v41  ;;  %7201 = vmatpush1.bf16.msra.mxu1 %v10278_v55 }
 0x930   :  { %7129 = vmatprep.subr.bf16.mxu0 %v10283_v40  ;;  %7202 = vmatprep.subr.bf16.mxu1 %v10286_v7 }
 0x933   :  { %7130 = vmatpush1.bf16.msra.mxu0 %v10281_v47  ;;  %7203 = vmatpush1.bf16.msra.mxu1 %v10284_v39 }
 0x934   :  { %7131 = vmatprep.subr.bf16.mxu0 %v10289_v33  ;;  %7204 = vmatprep.subr.bf16.mxu1 %v10292_v8 }
 0x937   :  { %7132 = vmatpush1.bf16.msra.mxu0 %v10287_v35  ;;  %7205 = vmatpush1.bf16.msra.mxu1 %v10290_v26 }
 0x938   :  { %7133 = vmatprep.subr.bf16.mxu0 %v10295_v20  ;;  %7206 = vmatprep.subr.bf16.mxu1 %v10298_v23  ;;  %v15303_v20 = vld [vmem:[#allocation44_spill] sm:$0xff] }
 0x93b   :  { %7134 = vmatpush1.bf16.msra.mxu0 %v10293_v2  ;;  %7207 = vmatpush1.bf16.msra.mxu1 %v10296_v10  ;;  %v15304_v2 = vld [vmem:[#allocation56_spill] sm:$0xff] }
 0x93c   :  { %7135 = vmatprep.subr.bf16.mxu0 %v10301_v30  ;;  %7208 = vmatprep.subr.bf16.mxu1 %v10304_v58 }
 0x93f   :  { %7136 = vmatpush1.bf16.msra.mxu0 %v10299_v46  ;;  %7209 = vmatpush1.bf16.msra.mxu1 %v10302_v53  ;;  %v15305_v46 = vld [vmem:[#allocation45_spill] sm:$0xff] }
 0x940   :  { %7137 = vmatprep.subr.bf16.mxu0 %v10307_v22  ;;  %7210 = vmatprep.subr.bf16.mxu1 %v10310_v31  ;;  %v15306_v22 = vld [vmem:[#allocation57_spill] sm:$0xff] }
 0x943   :  { %7138 = vmatpush1.bf16.msra.mxu0 %v10305_v15  ;;  %7211 = vmatpush1.bf16.msra.mxu1 %v10308_v24 }
 0x944   :  { %7139 = vmatprep.subr.bf16.mxu0 %v10313_v25  ;;  %7212 = vmatprep.subr.bf16.mxu1 %v10316_v1 }
 0x947   :  { %7140 = vmatpush1.bf16.msra.mxu0 %v10311_v44  ;;  %7213 = vmatpush1.bf16.msra.mxu1 %v10314_v3 }
 0x948   :  { %7141 = vmatprep.subr.bf16.mxu0 %v10319_v32  ;;  %7214 = vmatprep.subr.bf16.mxu1 %v10322_v5 }
 0x94b   :  { %7142 = vmatpush1.bf16.msra.mxu0 %v10317_v50  ;;  %7215 = vmatpush1.bf16.msra.mxu1 %v10320_v54 }
 0x94c   :  { %7485 = vmatprep.subr.bf16.mxu0 %v14057_v43  ;;  %7526 = vmatprep.subr.bf16.mxu1 %v14062_v12 }
 0x9c1   :  { %v6485_v21 = vpop.f32.mrb[88].mxu0  ;;  %v6526_v45 = vpop.f32.mrb[104].mxu1 }
 0x9c2   :  { %v6619_v29 = vadd.f32 %v6485_v21, %v15299_v28  ;;  %v6621_v37 = vadd.f32 %v15300_v42, %v6526_v45  ;;  %v6487_v49 = vpop.f32.mrb[89].mxu0  ;;  %v6528_v59 = vpop.f32.mrb[105].mxu1 }
 0x9c3   :  { %v6620_v52 = vadd.f32 %v6487_v49, %v15301_v34  ;;  %v6622_v51 = vadd.f32 %v15302_v19, %v6528_v59  ;;  %v6489_v9 = vpop.f32.mrb[90].mxu0  ;;  %v6530_v27 = vpop.f32.mrb[106].mxu1 }
 0x9c4   :  { %v9849_v4 = vmul.f32 -1.442695, %v6619_v29  ;;  %v6490_v13 = vpop.f32.mrb[91].mxu0  ;;  %v6531_v6 = vpop.f32.mrb[107].mxu1  ;;  %v15309_v9 = vld [vmem:[#allocation4_spill] sm:$0xff] }
 0x9c5   :  { %v9850_v38 = vmul.f32 -1.442695, %v6620_v52  ;;  %v9851_v60 = vmul.f32 -1.442695, %v6622_v51  ;;  %v15308_v51 = vld [vmem:[#allocation68_spill] sm:$0xff]  ;;  %v15310_v13 = vld [vmem:[#allocation71_spill] sm:$0xff] }
 0x9c6   :  { %10707 = vpow2.f32 %v9849_v4  ;;  %v6697_v27 = vpack.c.bf16 %v15309_v9, %v15308_v51  ;;  %v14084_v4 = vld [vmem:[%s15017_s6] ss:$16 sps:$4 sm:$0xff]   ;;  %v15311_v6 = vld [vmem:[#allocation15_spill] sm:$0xff] }
 0x9c7   :  { %10709 = vpow2.f32 %v9850_v38  ;;  %v6700_v38 = vpack.c.bf16 %v15311_v6, %v15310_v13  ;;  %v15323_v51 = vld [vmem:[#allocation31_spill] sm:$0xff] }
 0x9c8   :  { %10711 = vpow2.f32 %v9851_v60  ;;  %v14101_v60 = vld [vmem:[%s15017_s6 + $0x2c] ss:$16 sps:$4 sm:$0xff]  }
 0x9c9   :  { %10713 = vtanh.f32 %v6621_v37 }
 0x9d0   :  { %v10708_v18 = vpop.eup %10707 }
 0x9d1   :  { %v10710_v14 = vpop.eup %10709  ;;  %v6634_v17 = vadd.f32 1.0, %v10708_v18  ;;  %v14108_v18 = vld [vmem:[%s15017_s6 + $0x20] ss:$16 sps:$4 sm:$0xff]  }
 0x9d2   :  { %v6640_v57 = vadd.f32 1.0, %v10710_v14  ;;  %v10712_v48 = vpop.eup %10711  ;;  %v14113_v14 = vld [vmem:[%s15017_s6 + $0x28] ss:$16 sps:$4 sm:$0xff]  }
 0x9d3   :  { %10715 = vrcp.f32 %v6634_v17  ;;  %v10714_v36 = vpop.eup %10713  ;;  %v6647_v55 = vadd.f32 1.0, %v10712_v48  ;;  %v14120_v17 = vld [vmem:[%s15017_s6 + $0x44] ss:$16 sps:$4 sm:$0xff]  }
 0x9d4   :  { %10717 = vrcp.f32 %v6640_v57  ;;  %v14125_v57 = vld [vmem:[%s15017_s6 + $0x4c] ss:$16 sps:$4 sm:$0xff]   ;;  %v15312_v48 = vld [vmem:[#allocation18_spill] sm:$0xff] }
 0x9d5   :  { %10719 = vrcp.f32 %v6647_v55  ;;  %v15314_v55 = vld [vmem:[#allocation33_spill] sm:$0xff] }
 0x9dd   :  { %v10716_v63 = vpop.eup %10715 }
 0x9de   :  { %v10718_v0 = vpop.eup %10717  ;;  %v6651_v41 = vmul.f32 %v10716_v63, %v10714_v36  ;;  %v15313_v36 = vld [vmem:[#allocation19_spill] sm:$0xff] }
 0x9df   :  { %v6650_v40 = vmul.f32 %v10718_v0, %v13813_v56  ;;  %v10720_v24 = vpop.eup %10719  ;;  %v6699_v63 = vpack.c.bf16 %v15313_v36, %v15312_v48  ;;  %v14134_v0 = vld [vmem:[%s15017_s6 + $0x40] ss:$16 sps:$4 sm:$0xff]  }
 0x9e1   :  { %v6567_v7 = vpop.f32.mrb[92].mxu0  ;;  %v6608_v47 = vpop.f32.mrb[108].mxu1  ;;  %v6652_v39 = vadd.f32 %v6651_v41, %v6650_v40  ;;  %v14139_v41 = vld [vmem:[%s15017_s6 + $0x48] ss:$16 sps:$4 sm:$0xff]   ;;  %v15315_v40 = vld [vmem:[#allocation32_spill] sm:$0xff] }
 0x9e2   :  { %v6568_v33 = vpop.f32.mrb[93].mxu0  ;;  %v6609_v8 = vpop.f32.mrb[109].mxu1  ;;  %v6702_v7 = vpack.c.bf16 %v15315_v40, %v15314_v55  ;;  %v14148_v47 = vld [vmem:[%s15017_s6 + $0x64] ss:$16 sps:$4 sm:$0xff]  }
 0x9e3   :  { %v6569_v35 = vpop.f32.mrb[94].mxu0  ;;  %v6610_v26 = vpop.f32.mrb[110].mxu1  ;;  %10721 = vtanh.f32 %v6652_v39  ;;  %v14153_v39 = vld [vmem:[%s15017_s6 + $0x6c] ss:$16 sps:$4 sm:$0xff]   ;;  %v14160_v33 = vld [vmem:[%s15017_s6 + $0x60] ss:$16 sps:$4 sm:$0xff]  }
 0x9e4   :  { %v6627_v23 = vadd.f32 %v15303_v20, %v6569_v35  ;;  %v6629_v10 = vadd.f32 %v15304_v2, %v6610_v26  ;;  %v6571_v30 = vpop.f32.mrb[95].mxu0  ;;  %v6612_v58 = vpop.f32.mrb[111].mxu1  ;;  %v14165_v8 = vld [vmem:[%s15017_s6 + $0x68] ss:$16 sps:$4 sm:$0xff]   ;;  %v14172_v35 = vld [vmem:[%s15017_s6 + $0x84] ss:$16 sps:$4 sm:$0xff]  }
 0x9e5   :  { %v6628_v53 = vadd.f32 %v15305_v46, %v6571_v30  ;;  %v6630_v31 = vadd.f32 %v15306_v22, %v6612_v58  ;;  %v14177_v26 = vld [vmem:[%s15017_s6 + $0x8c] ss:$16 sps:$4 sm:$0xff]   ;;  %v14191_v30 = vld [vmem:[%s15017_s6 + $0x88] ss:$16 sps:$4 sm:$0xff]   ;;  %v15318_v58 = vld [vmem:[#allocation10_spill] sm:$0xff] }
 0x9e6   :  { %v9852_v56 = vmul.f32 -1.442695, %v6627_v23  ;;  %v15316_v20 = vld [vmem:[#allocation9_spill] sm:$0xff]  ;;  %v15317_v23 = vld [vmem:[#allocation70_spill] sm:$0xff] }
 0x9e7   :  { %v9853_v15 = vmul.f32 -1.442695, %v6628_v53  ;;  %v9854_v44 = vmul.f32 -1.442695, %v6630_v31  ;;  %v6701_v2 = vpack.c.bf16 %v15317_v23, %v15316_v20  ;;  %v15319_v46 = vld [vmem:[#allocation69_spill] sm:$0xff] }
 0x9e8   :  { %10723 = vpow2.f32 %v9852_v56  ;;  %v6704_v53 = vpack.c.bf16 %v15319_v46, %v15318_v58  ;;  %v14200_v22 = vld [vmem:[%s15017_s6 + $0xa4] ss:$16 sps:$4 sm:$0xff]   ;;  %v14205_v31 = vld [vmem:[%s15017_s6 + $0xac] ss:$16 sps:$4 sm:$0xff]   ;;  %v14212_v56 = vld [vmem:[%s15017_s6 + $0xa0] ss:$16 sps:$4 sm:$0xff]  }
 0x9e9   :  { %10725 = vpow2.f32 %v9853_v15  ;;  %v14217_v15 = vld [vmem:[%s15017_s6 + $0xa8] ss:$16 sps:$4 sm:$0xff]  }
 0x9ea   :  { %10727 = vpow2.f32 %v9854_v44 }
 0x9eb   :  { %10729 = vtanh.f32 %v6629_v10  ;;  %v14186_v10 = vld [vmem:[%s15017_s6 + $0x80] ss:$16 sps:$4 sm:$0xff]  }
 0x9ed   :  { %v10722_v25 = vpop.eup %10721 }
 0x9ee   :  { %v14075_v1 = vmul.f32 %v10722_v25, %v10720_v24  ;;  %v14224_v24 = vld [vmem:[%s15017_s6 + $0xc4] ss:$16 sps:$4 sm:$0xff]   ;;  %v14229_v25 = vld [vmem:[%s15017_s6 + $0xcc] ss:$16 sps:$4 sm:$0xff]  }
 0x9f0   :  { %15307 = vst [vmem:[#allocation50_spill] sm:$0xff] %v14075_v1  ;;  %v6703_v44 = vpack.c.bf16 %v14075_v1, %v13824_v61  ;;  %v14255_v61 = vld [vmem:[%s15017_s6 + $0xec] ss:$16 sps:$4 sm:$0xff]  }
 0x9f2   :  { %v10724_v3 = vpop.eup %10723 }
 0x9f3   :  { %v10726_v32 = vpop.eup %10725  ;;  %v6658_v5 = vadd.f32 1.0, %v10724_v3  ;;  %v14238_v3 = vld [vmem:[%s15017_s6 + $0xc0] ss:$16 sps:$4 sm:$0xff]  }
 0x9f4   :  { %v6664_v50 = vadd.f32 1.0, %v10726_v32  ;;  %v10728_v54 = vpop.eup %10727  ;;  %v14243_v32 = vld [vmem:[%s15017_s6 + $0xc8] ss:$16 sps:$4 sm:$0xff]  }
 0x9f5   :  { %10731 = vrcp.f32 %v6658_v5  ;;  %v10730_v21 = vpop.eup %10729  ;;  %v6671_v42 = vadd.f32 1.0, %v10728_v54  ;;  %v14250_v5 = vld [vmem:[%s15017_s6 + $0xe4] ss:$16 sps:$4 sm:$0xff]   ;;  %v14269_v54 = vld [vmem:[%s15017_s6 + $0xe8] ss:$16 sps:$4 sm:$0xff]  }
 0x9f6   :  { %10733 = vrcp.f32 %v6664_v50  ;;  %v14264_v50 = vld [vmem:[%s15017_s6 + $0xe0] ss:$16 sps:$4 sm:$0xff]  }
 0x9f7   :  { %10735 = vrcp.f32 %v6671_v42 }
 0x9ff   :  { %v10732_v45 = vpop.eup %10731 }
 0xa00   :  { %v10734_v28 = vpop.eup %10733  ;;  %v6675_v29 = vmul.f32 %v10732_v45, %v10730_v21  ;;  %v6769_v21 = vld [vmem:[%s15018_s7] sm:$0xf] }
 0xa01   :  { %v6674_v37 = vmul.f32 %v10734_v28, %v13821_v16  ;;  %v10736_v59 = vpop.eup %10735  ;;  %v14089_v16 = vld [vmem:[%s15017_s6 + $0x8] ss:$16 sps:$4 sm:$0xff]   ;;  %v6786_v9 = vrot.slane %v6769_v21, %v15323_v51 }
 0xa03   :  { %v6676_v49 = vadd.f32 %v6675_v29, %v6674_v37  ;;  %v15320_v29 = vld [vmem:[#allocation16_spill] sm:$0xff]  ;;  %v15321_v37 = vld [vmem:[#allocation30_spill] sm:$0xff] }
 0xa04   :  { %v6774_v42 = vrot.slane %v6769_v21, %v15320_v29 }
 0xa05   :  { %10737 = vtanh.f32 %v6676_v49  ;;  %v6782_v49 = vrot.slane %v6769_v21, %v15321_v37 }
 0xa0f   :  { %v10738_v34 = vpop.eup %10737 }
 0xa10   :  { %v6678_v52 = vmul.f32 %v10738_v34, %v10736_v59 }
 0xa12   :  { %v6698_v19 = vpack.c.bf16 %v13826_v11, %v6678_v52  ;;  %v14096_v11 = vld [vmem:[%s15017_s6 + $0x24] ss:$16 sps:$4 sm:$0xff]   ;;  %v15322_v52 = vld [vmem:[#allocation17_spill] sm:$0xff] }
 0xa14   :  { %7143 = vmatprep.mubr.bf16.mxu0 %v6698_v19  ;;  %7216 = vmatprep.mubr.bf16.mxu1 %v6698_v19  ;;  %v6778_v19 = vrot.slane %v6769_v21, %v15322_v52 }
 0xa15   :  { %7144 = vmatmul.mubr.bf16.vlgmr.msra.gmra.mrb[96].mxu0 %v6697_v27  ;;  %7217 = vmatmul.mubr.bf16.vlgmr.msra.gmra.mrb[112].mxu1 %v6697_v27 }
 0xa16   :  { %7153 = vmatprep.mubr.bf16.mxu0 %v6700_v38  ;;  %7226 = vmatprep.mubr.bf16.mxu1 %v6700_v38 }
 0xa17   :  { %7486 = vmatpush1.bf16.msra.mxu0 %v14084_v4  ;;  %7527 = vmatpush1.bf16.msra.mxu1 %v14089_v16 }
 0xa18   :  { %7487 = vmatprep.subr.bf16.mxu0 %v14096_v11  ;;  %7528 = vmatprep.subr.bf16.mxu1 %v14101_v60 }
 0xa1b   :  { %7488 = vmatpush1.bf16.msra.mxu0 %v14108_v18  ;;  %7529 = vmatpush1.bf16.msra.mxu1 %v14113_v14 }
 0xa1c   :  { %7489 = vmatprep.subr.bf16.mxu0 %v14120_v17  ;;  %7530 = vmatprep.subr.bf16.mxu1 %v14125_v57 }
 0xa1d   :  { %7154 = vmatmul.mubr.bf16.gmra.mrb[100].mxu0 %v6699_v63  ;;  %7227 = vmatmul.mubr.bf16.gmra.mrb[116].mxu1 %v6699_v63 }
 0xa1e   :  { %7163 = vmatprep.mubr.bf16.mxu0 %v6702_v7  ;;  %7236 = vmatprep.mubr.bf16.mxu1 %v6702_v7 }
 0xa1f   :  { %7490 = vmatpush1.bf16.msra.mxu0 %v14134_v0  ;;  %7531 = vmatpush1.bf16.msra.mxu1 %v14139_v41 }
 0xa20   :  { %7491 = vmatprep.subr.bf16.mxu0 %v14148_v47  ;;  %7532 = vmatprep.subr.bf16.mxu1 %v14153_v39 }
 0xa23   :  { %7492 = vmatpush1.bf16.msra.mxu0 %v14160_v33  ;;  %7533 = vmatpush1.bf16.msra.mxu1 %v14165_v8 }
 0xa24   :  { %7493 = vmatprep.subr.bf16.mxu0 %v14172_v35  ;;  %7534 = vmatprep.subr.bf16.mxu1 %v14177_v26 }
 0xa25   :  { %7164 = vmatmul.mubr.bf16.gmra.mrb[104].mxu0 %v6701_v2  ;;  %7237 = vmatmul.mubr.bf16.gmra.mrb[120].mxu1 %v6701_v2 }
 0xa26   :  { %7173 = vmatprep.mubr.bf16.mxu0 %v6704_v53  ;;  %7246 = vmatprep.mubr.bf16.mxu1 %v6704_v53 }
 0xa27   :  { %7494 = vmatpush1.bf16.msra.mxu0 %v14186_v10  ;;  %7535 = vmatpush1.bf16.msra.mxu1 %v14191_v30 }
 0xa28   :  { %7495 = vmatprep.subr.bf16.mxu0 %v14200_v22  ;;  %7536 = vmatprep.subr.bf16.mxu1 %v14205_v31 }
 0xa2b   :  { %7496 = vmatpush1.bf16.msra.mxu0 %v14212_v56  ;;  %7537 = vmatpush1.bf16.msra.mxu1 %v14217_v15 }
 0xa2c   :  { %7497 = vmatprep.subr.bf16.mxu0 %v14224_v24  ;;  %7538 = vmatprep.subr.bf16.mxu1 %v14229_v25 }
 0xa2d   :  { %7174 = vmatmul.mubr.bf16.gmra.mrb[108].mxu0 %v6703_v44  ;;  %7247 = vmatmul.mubr.bf16.gmra.mrb[124].mxu1 %v6703_v44 }
 0xa2e   :  { %7517 = vmatprep.mubr.bf16.mxu0 %v15112_v62  ;;  %7558 = vmatprep.mubr.bf16.mxu1 %v15112_v62 }
 0xa2f   :  { %7498 = vmatpush1.bf16.msra.mxu0 %v14238_v3  ;;  %7539 = vmatpush1.bf16.msra.mxu1 %v14243_v32 }
 0xa30   :  { %7499 = vmatprep.subr.bf16.mxu0 %v14250_v5  ;;  %7540 = vmatprep.subr.bf16.mxu1 %v14255_v61 }
 0xa33   :  { %7500 = vmatpush1.bf16.msra.mxu0 %v14264_v50  ;;  %7541 = vmatpush1.bf16.msra.mxu1 %v14269_v54 }
 0xa34   :  { %7600 = vmatprep.subr.bf16.mxu0 %v14057_v43  ;;  %7641 = vmatprep.subr.bf16.mxu1 %v14062_v12 }
 0xa36   :  { %7518 = vmatmul.mubr.bf16.vlgmr.msra.gmra.mrb[112].mxu0 %v15112_v62  ;;  %7559 = vmatmul.mubr.bf16.vlgmr.msra.gmra.mrb[128].mxu1 %v15112_v62 }
 0xa37   :  { %7601 = vmatpush1.bf16.msra.mxu0 %v14084_v4  ;;  %7642 = vmatpush1.bf16.msra.mxu1 %v14089_v16 }
 0xa38   :  { %7602 = vmatprep.subr.bf16.mxu0 %v14096_v11  ;;  %7643 = vmatprep.subr.bf16.mxu1 %v14101_v60 }
 0xa39   :  { %7632 = vmatprep.mubr.bf16.mxu0 %v15112_v62  ;;  %7673 = vmatprep.mubr.bf16.mxu1 %v15112_v62 }
 0xa3b   :  { %7603 = vmatpush1.bf16.msra.mxu0 %v14108_v18  ;;  %7644 = vmatpush1.bf16.msra.mxu1 %v14113_v14 }
 0xa3c   :  { %7604 = vmatprep.subr.bf16.mxu0 %v14120_v17  ;;  %7645 = vmatprep.subr.bf16.mxu1 %v14125_v57 }
 0xa3f   :  { %7605 = vmatpush1.bf16.msra.mxu0 %v14134_v0  ;;  %7646 = vmatpush1.bf16.msra.mxu1 %v14139_v41 }
 0xa40   :  { %7606 = vmatprep.subr.bf16.mxu0 %v14148_v47  ;;  %7647 = vmatprep.subr.bf16.mxu1 %v14153_v39 }
 0xa43   :  { %7607 = vmatpush1.bf16.msra.mxu0 %v14160_v33  ;;  %7648 = vmatpush1.bf16.msra.mxu1 %v14165_v8 }
 0xa44   :  { %7608 = vmatprep.subr.bf16.mxu0 %v14172_v35  ;;  %7649 = vmatprep.subr.bf16.mxu1 %v14177_v26 }
 0xa47   :  { %7609 = vmatpush1.bf16.msra.mxu0 %v14186_v10  ;;  %7650 = vmatpush1.bf16.msra.mxu1 %v14191_v30 }
 0xa48   :  { %7610 = vmatprep.subr.bf16.mxu0 %v14200_v22  ;;  %7651 = vmatprep.subr.bf16.mxu1 %v14205_v31 }
 0xa4b   :  { %7611 = vmatpush1.bf16.msra.mxu0 %v14212_v56  ;;  %7652 = vmatpush1.bf16.msra.mxu1 %v14217_v15 }
 0xa4c   :  { %7612 = vmatprep.subr.bf16.mxu0 %v14224_v24  ;;  %7653 = vmatprep.subr.bf16.mxu1 %v14229_v25 }
 0xa4f   :  { %7613 = vmatpush1.bf16.msra.mxu0 %v14238_v3  ;;  %7654 = vmatpush1.bf16.msra.mxu1 %v14243_v32 }
 0xa50   :  { %7614 = vmatprep.subr.bf16.mxu0 %v14250_v5  ;;  %7655 = vmatprep.subr.bf16.mxu1 %v14255_v61 }
 0xa53   :  { %7615 = vmatpush1.bf16.msra.mxu0 %v14264_v50  ;;  %7656 = vmatpush1.bf16.msra.mxu1 %v14269_v54 }
 0xa54   :  { %7715 = vmatprep.subr.bf16.mxu0 %v14057_v43  ;;  %7756 = vmatprep.subr.bf16.mxu1 %v14062_v12 }
 0xae8   :  { %v14316_v45 = vpop.f32.mrb[96].mxu0  ;;  %v14318_v28 = vpop.f32.mrb[112].mxu1 }
 0xae9   :  { %v7147_v59 = vpop.f32.mrb[97].mxu0  ;;  %v7220_v34 = vpop.f32.mrb[113].mxu1 }
 0xaea   :  { %v7149_v27 = vpop.f32.mrb[98].mxu0  ;;  %v7222_v13 = vpop.f32.mrb[114].mxu1 }
 0xaeb   :  { %v14324_v6 = vadd.f32 %v7149_v27, %v6774_v42  ;;  %v14326_v38 = vadd.f32 %v7222_v13, %v6782_v49  ;;  %v7151_v48 = vpop.f32.mrb[99].mxu0  ;;  %v7224_v36 = vpop.f32.mrb[115].mxu1 }
 0xaec   :  { %v14328_v63 = vadd.f32 %v7151_v48, %v6778_v19  ;;  %v14330_v55 = vadd.f32 %v7224_v36, %v6786_v9 }
 0xaf0   :  { %v7155_v40 = vpop.f32.mrb[100].mxu0  ;;  %v7228_v7 = vpop.f32.mrb[116].mxu1 }
 0xaf1   :  { %v14332_v20 = vadd.f32 %v7155_v40, %v6774_v42  ;;  %v14334_v23 = vadd.f32 %v7228_v7, %v6782_v49  ;;  %v7157_v2 = vpop.f32.mrb[101].mxu0  ;;  %v7230_v58 = vpop.f32.mrb[117].mxu1 }
 0xaf2   :  { %v14336_v53 = vadd.f32 %v7157_v2, %v6778_v19  ;;  %v14338_v44 = vadd.f32 %v7230_v58, %v6786_v9  ;;  %v7159_v21 = vpop.f32.mrb[102].mxu0  ;;  %v7232_v27 = vpop.f32.mrb[118].mxu1 }
 0xaf3   :  { %15324 = vst [vmem:[#allocation62_spill] sm:$0xff] %v14334_v23  ;;  %v14340_v13 = vadd.f32 %v7159_v21, %v6774_v42  ;;  %v14342_v48 = vadd.f32 %v7232_v27, %v6782_v49  ;;  %v7161_v36 = vpop.f32.mrb[103].mxu0  ;;  %v7234_v37 = vpop.f32.mrb[119].mxu1 }
 0xaf4   :  { %15325 = vst [vmem:[#allocation51_spill] sm:$0xff] %v14336_v53  ;;  %15326 = vst [vmem:[#allocation63_spill] sm:$0xff] %v14338_v44  ;;  %v14344_v51 = vadd.f32 %v7161_v36, %v6778_v19  ;;  %v14346_v40 = vadd.f32 %v7234_v37, %v6786_v9 }
 0xaf5   :  { %15327 = vst [vmem:[#allocation54_spill] sm:$0xff] %v14340_v13  ;;  %15328 = vst [vmem:[#allocation66_spill] sm:$0xff] %v14342_v48 }
 0xaf6   :  { %15329 = vst [vmem:[#allocation55_spill] sm:$0xff] %v14344_v51  ;;  %15330 = vst [vmem:[#allocation67_spill] sm:$0xff] %v14346_v40 }
 0xaf8   :  { %v7165_v7 = vpop.f32.mrb[104].mxu0  ;;  %v7238_v52 = vpop.f32.mrb[120].mxu1 }
 0xaf9   :  { %v14348_v29 = vadd.f32 %v7165_v7, %v6774_v42  ;;  %v14350_v2 = vadd.f32 %v7238_v52, %v6782_v49  ;;  %v7167_v58 = vpop.f32.mrb[105].mxu0  ;;  %v7240_v1 = vpop.f32.mrb[121].mxu1 }
 0xafa   :  { %v14352_v46 = vadd.f32 %v7167_v58, %v6778_v19  ;;  %v14354_v21 = vadd.f32 %v7240_v1, %v6786_v9  ;;  %v7169_v27 = vpop.f32.mrb[106].mxu0  ;;  %v7242_v48 = vpop.f32.mrb[122].mxu1 }
 0xafb   :  { %15331 = vst [vmem:[#allocation5_spill] sm:$0xff] %v14348_v29  ;;  %15332 = vst [vmem:[#allocation11_spill] sm:$0xff] %v14350_v2  ;;  %v14356_v13 = vadd.f32 %v7169_v27, %v6774_v42  ;;  %v14358_v36 = vadd.f32 %v7242_v48, %v6782_v49  ;;  %v7171_v37 = vpop.f32.mrb[107].mxu0  ;;  %v7244_v40 = vpop.f32.mrb[123].mxu1 }
 0xafc   :  { %15333 = vst [vmem:[#allocation6_spill] sm:$0xff] %v14352_v46  ;;  %15334 = vst [vmem:[#allocation12_spill] sm:$0xff] %v14354_v21  ;;  %v14360_v51 = vadd.f32 %v7171_v37, %v6778_v19  ;;  %v14362_v7 = vadd.f32 %v7244_v40, %v6786_v9 }
 0xafd   :  { %15335 = vst [vmem:[#allocation7_spill] sm:$0xff] %v14356_v13  ;;  %15336 = vst [vmem:[#allocation13_spill] sm:$0xff] %v14358_v36 }
 0xafe   :  { %15337 = vst [vmem:[#allocation8_spill] sm:$0xff] %v14360_v51  ;;  %15338 = vst [vmem:[#allocation14_spill] sm:$0xff] %v14362_v7 }
 0xb00   :  { %v7175_v52 = vpop.f32.mrb[108].mxu0  ;;  %v7248_v2 = vpop.f32.mrb[124].mxu1 }
 0xb01   :  { %v14364_v29 = vadd.f32 %v7175_v52, %v6774_v42  ;;  %v14366_v58 = vadd.f32 %v7248_v2, %v6782_v49  ;;  %v7177_v1 = vpop.f32.mrb[109].mxu0  ;;  %v7250_v21 = vpop.f32.mrb[125].mxu1  ;;  %v7146_v2 = vadd.f32 %v14316_v45, %v6774_v42 }
 0xb02   :  { %v14368_v46 = vadd.f32 %v7177_v1, %v6778_v19  ;;  %v14370_v27 = vadd.f32 %v7250_v21, %v6786_v9  ;;  %v7179_v48 = vpop.f32.mrb[110].mxu0  ;;  %v7252_v36 = vpop.f32.mrb[126].mxu1  ;;  %v7148_v1 = vadd.f32 %v7147_v59, %v6778_v19 }
 0xb03   :  { %15339 = vst [vmem:[#allocation24_spill] sm:$0xff] %v14364_v29  ;;  %15340 = vst [vmem:[#allocation38_spill] sm:$0xff] %v14366_v58  ;;  %v14372_v13 = vadd.f32 %v7179_v48, %v6774_v42  ;;  %v14374_v37 = vadd.f32 %v7252_v36, %v6782_v49  ;;  %v7181_v40 = vpop.f32.mrb[111].mxu0  ;;  %v7254_v7 = vpop.f32.mrb[127].mxu1  ;;  %v7219_v58 = vadd.f32 %v14318_v28, %v6782_v49 }
 0xb04   :  { %15341 = vst [vmem:[#allocation25_spill] sm:$0xff] %v14368_v46  ;;  %15342 = vst [vmem:[#allocation39_spill] sm:$0xff] %v14370_v27  ;;  %v14376_v51 = vadd.f32 %v7181_v40, %v6778_v19  ;;  %v14378_v52 = vadd.f32 %v7254_v7, %v6786_v9  ;;  %v7221_v46 = vadd.f32 %v7220_v34, %v6786_v9 }
 0xb05   :  { %15343 = vst [vmem:[#allocation48_spill] sm:$0xff] %v14372_v13  ;;  %15344 = vst [vmem:[#allocation60_spill] sm:$0xff] %v14374_v37 }
 0xb06   :  { %15345 = vst [vmem:[#allocation49_spill] sm:$0xff] %v14376_v51  ;;  %15346 = vst [vmem:[#allocation61_spill] sm:$0xff] %v14378_v52 }
 0xb09   :  { %v7519_v21 = vpop.f32.mrb[112].mxu0  ;;  %v7560_v27 = vpop.f32.mrb[128].mxu1 }
 0xb0a   :  { %v7567_v29 = vadd.f32 %v7519_v21, %v7146_v2  ;;  %v7569_v44 = vadd.f32 %v7560_v27, %v7219_v58  ;;  %v7521_v48 = vpop.f32.mrb[113].mxu0  ;;  %v7562_v13 = vpop.f32.mrb[129].mxu1 }
 0xb0b   :  { %v7568_v36 = vadd.f32 %v7521_v48, %v7148_v1  ;;  %v7570_v37 = vadd.f32 %v7562_v13, %v7221_v46  ;;  %v7523_v53 = vpop.f32.mrb[114].mxu0  ;;  %v7564_v23 = vpop.f32.mrb[130].mxu1 }
 0xb0c   :  { %v9951_v40 = vmul.f32 -1.442695, %v7567_v29  ;;  %v7524_v51 = vpop.f32.mrb[115].mxu0  ;;  %v7565_v7 = vpop.f32.mrb[131].mxu1 }
 0xb0d   :  { %v9952_v52 = vmul.f32 -1.442695, %v7568_v36  ;;  %v9953_v45 = vmul.f32 -1.442695, %v7570_v37 }
 0xb0e   :  { %10739 = vpow2.f32 %v9951_v40 }
 0xb0f   :  { %10741 = vpow2.f32 %v9952_v52 }
 0xb10   :  { %10743 = vpow2.f32 %v9953_v45 }
 0xb11   :  { %10745 = vtanh.f32 %v7569_v44 }
 0xb18   :  { %v10740_v28 = vpop.eup %10739 }
 0xb19   :  { %v10742_v42 = vpop.eup %10741  ;;  %v7574_v49 = vadd.f32 1.0, %v10740_v28 }
 0xb1a   :  { %v7580_v59 = vadd.f32 1.0, %v10742_v42  ;;  %v10744_v34 = vpop.eup %10743 }
 0xb1b   :  { %10747 = vrcp.f32 %v7574_v49  ;;  %v10746_v19 = vpop.eup %10745  ;;  %v7587_v29 = vadd.f32 1.0, %v10744_v34 }
 0xb1c   :  { %10749 = vrcp.f32 %v7580_v59 }
 0xb1d   :  { %10751 = vrcp.f32 %v7587_v29 }
 0xb25   :  { %v10748_v46 = vpop.eup %10747 }
 0xb26   :  { %v10750_v9 = vpop.eup %10749  ;;  %v7591_v23 = vmul.f32 %v10748_v46, %v10746_v19 }
 0xb27   :  { %v7590_v51 = vmul.f32 0.0, %v10750_v9  ;;  %v10752_v13 = vpop.eup %10751 }
 0xb29   :  { %v14382_v53 = vadd.f32 %v7591_v23, %v7590_v51 }
 0xb2b   :  { %10753 = vtanh.f32 %v14382_v53 }
 0xb35   :  { %v10754_v58 = vpop.eup %10753 }
 0xb36   :  { %v7594_v27 = vmul.f32 %v10754_v58, %v10752_v13 }
 0xb38   :  { %v7599_v37 = vpack.c.bf16 %v7594_v27, %v7594_v27 }
 0xb3a   :  { %7633 = vmatmul.mubr.bf16.vlgmr.msra.gmra.mrb[116].mxu0 %v7599_v37  ;;  %7674 = vmatmul.mubr.bf16.vlgmr.msra.gmra.mrb[132].mxu1 %v7599_v37 }
 0xb3b   :  { %7716 = vmatpush1.bf16.msra.mxu0 %v14084_v4  ;;  %7757 = vmatpush1.bf16.msra.mxu1 %v14089_v16 }
 0xb3c   :  { %7717 = vmatprep.subr.bf16.mxu0 %v14096_v11  ;;  %7758 = vmatprep.subr.bf16.mxu1 %v14101_v60 }
 0xb3d   :  { %7747 = vmatprep.mubr.bf16.mxu0 %v15112_v62  ;;  %7788 = vmatprep.mubr.bf16.mxu1 %v15112_v62 }
 0xb3f   :  { %7718 = vmatpush1.bf16.msra.mxu0 %v14108_v18  ;;  %7759 = vmatpush1.bf16.msra.mxu1 %v14113_v14 }
 0xb40   :  { %7719 = vmatprep.subr.bf16.mxu0 %v14120_v17  ;;  %7760 = vmatprep.subr.bf16.mxu1 %v14125_v57 }
 0xb43   :  { %7720 = vmatpush1.bf16.msra.mxu0 %v14134_v0  ;;  %7761 = vmatpush1.bf16.msra.mxu1 %v14139_v41 }
 0xb44   :  { %7721 = vmatprep.subr.bf16.mxu0 %v14148_v47  ;;  %7762 = vmatprep.subr.bf16.mxu1 %v14153_v39 }
 0xb47   :  { %7722 = vmatpush1.bf16.msra.mxu0 %v14160_v33  ;;  %7763 = vmatpush1.bf16.msra.mxu1 %v14165_v8 }
 0xb48   :  { %7723 = vmatprep.subr.bf16.mxu0 %v14172_v35  ;;  %7764 = vmatprep.subr.bf16.mxu1 %v14177_v26 }
 0xb4b   :  { %7724 = vmatpush1.bf16.msra.mxu0 %v14186_v10  ;;  %7765 = vmatpush1.bf16.msra.mxu1 %v14191_v30 }
 0xb4c   :  { %7725 = vmatprep.subr.bf16.mxu0 %v14200_v22  ;;  %7766 = vmatprep.subr.bf16.mxu1 %v14205_v31 }
 0xb4f   :  { %7726 = vmatpush1.bf16.msra.mxu0 %v14212_v56  ;;  %7767 = vmatpush1.bf16.msra.mxu1 %v14217_v15 }
 0xb50   :  { %7727 = vmatprep.subr.bf16.mxu0 %v14224_v24  ;;  %7768 = vmatprep.subr.bf16.mxu1 %v14229_v25 }
 0xb53   :  { %7728 = vmatpush1.bf16.msra.mxu0 %v14238_v3  ;;  %7769 = vmatpush1.bf16.msra.mxu1 %v14243_v32 }
 0xb54   :  { %7729 = vmatprep.subr.bf16.mxu0 %v14250_v5  ;;  %7770 = vmatprep.subr.bf16.mxu1 %v14255_v61 }
 0xb57   :  { %7730 = vmatpush1.bf16.msra.mxu0 %v14264_v50  ;;  %7771 = vmatpush1.bf16.msra.mxu1 %v14269_v54 }
 0xb58   :  { %7830 = vmatprep.subr.bf16.mxu0 %v14057_v43  ;;  %7871 = vmatprep.subr.bf16.mxu1 %v14062_v12 }
 0xc0d   :  { %v7634_v44 = vpop.f32.mrb[116].mxu0  ;;  %v7675_v52 = vpop.f32.mrb[132].mxu1 }
 0xc0e   :  { %v7682_v2 = vadd.f32 %v7634_v44, %v14324_v6  ;;  %v7684_v1 = vadd.f32 %v7675_v52, %v14326_v38  ;;  %v7636_v21 = vpop.f32.mrb[117].mxu0  ;;  %v7677_v48 = vpop.f32.mrb[133].mxu1 }
 0xc0f   :  { %v7683_v36 = vadd.f32 %v7636_v21, %v14328_v63  ;;  %v7685_v40 = vadd.f32 %v7677_v48, %v14330_v55  ;;  %v7638_v7 = vpop.f32.mrb[118].mxu0  ;;  %v7679_v45 = vpop.f32.mrb[134].mxu1  ;;  %v15347_v21 = vld [vmem:[#allocation62_spill] sm:$0xff] }
 0xc10   :  { %v9954_v28 = vmul.f32 -1.442695, %v7682_v2  ;;  %v7639_v42 = vpop.f32.mrb[119].mxu0  ;;  %v7680_v49 = vpop.f32.mrb[135].mxu1  ;;  %v15348_v7 = vld [vmem:[#allocation51_spill] sm:$0xff] }
 0xc11   :  { %v9955_v59 = vmul.f32 -1.442695, %v7683_v36  ;;  %v9956_v34 = vmul.f32 -1.442695, %v7685_v40 }
 0xc12   :  { %10755 = vpow2.f32 %v9954_v28  ;;  %v15349_v28 = vld [vmem:[#allocation63_spill] sm:$0xff] }
 0xc13   :  { %10757 = vpow2.f32 %v9955_v59 }
 0xc14   :  { %10759 = vpow2.f32 %v9956_v34 }
 0xc15   :  { %10761 = vtanh.f32 %v7684_v1 }
 0xc1c   :  { %v10756_v19 = vpop.eup %10755 }
 0xc1d   :  { %v10758_v46 = vpop.eup %10757  ;;  %v7689_v6 = vadd.f32 1.0, %v10756_v19 }
 0xc1e   :  { %v7695_v38 = vadd.f32 1.0, %v10758_v46  ;;  %v10760_v63 = vpop.eup %10759 }
 0xc1f   :  { %10763 = vrcp.f32 %v7689_v6  ;;  %v10762_v9 = vpop.eup %10761  ;;  %v7702_v51 = vadd.f32 1.0, %v10760_v63 }
 0xc20   :  { %10765 = vrcp.f32 %v7695_v38 }
 0xc21   :  { %10767 = vrcp.f32 %v7702_v51 }
 0xc29   :  { %v10764_v55 = vpop.eup %10763 }
 0xc2a   :  { %v10766_v23 = vpop.eup %10765  ;;  %v7706_v29 = vmul.f32 %v10764_v55, %v10762_v9 }
 0xc2b   :  { %v7705_v13 = vmul.f32 %v10766_v23, %v14382_v53  ;;  %v10768_v27 = vpop.eup %10767 }
 0xc2d   :  { %v14424_v58 = vadd.f32 %v7706_v29, %v7705_v13 }
 0xc2f   :  { %10769 = vtanh.f32 %v14424_v58 }
 0xc39   :  { %v10770_v37 = vpop.eup %10769 }
 0xc3a   :  { %v7709_v44 = vmul.f32 %v10770_v37, %v10768_v27 }
 0xc3c   :  { %v7714_v52 = vpack.c.bf16 %v7709_v44, %v7709_v44 }
 0xc3e   :  { %7748 = vmatmul.mubr.bf16.vlgmr.msra.gmra.mrb[120].mxu0 %v7714_v52  ;;  %7789 = vmatmul.mubr.bf16.vlgmr.msra.gmra.mrb[136].mxu1 %v7714_v52 }
 0xc3f   :  { %7831 = vmatpush1.bf16.msra.mxu0 %v14084_v4  ;;  %7872 = vmatpush1.bf16.msra.mxu1 %v14089_v16 }
 0xc40   :  { %7832 = vmatprep.subr.bf16.mxu0 %v14096_v11  ;;  %7873 = vmatprep.subr.bf16.mxu1 %v14101_v60 }
 0xc41   :  { %7862 = vmatprep.mubr.bf16.mxu0 %v15112_v62  ;;  %7903 = vmatprep.mubr.bf16.mxu1 %v15112_v62 }
 0xc43   :  { %7833 = vmatpush1.bf16.msra.mxu0 %v14108_v18  ;;  %7874 = vmatpush1.bf16.msra.mxu1 %v14113_v14 }
 0xc44   :  { %7834 = vmatprep.subr.bf16.mxu0 %v14120_v17  ;;  %7875 = vmatprep.subr.bf16.mxu1 %v14125_v57 }
 0xc47   :  { %7835 = vmatpush1.bf16.msra.mxu0 %v14134_v0  ;;  %7876 = vmatpush1.bf16.msra.mxu1 %v14139_v41 }
 0xc48   :  { %7836 = vmatprep.subr.bf16.mxu0 %v14148_v47  ;;  %7877 = vmatprep.subr.bf16.mxu1 %v14153_v39 }
 0xc4b   :  { %7837 = vmatpush1.bf16.msra.mxu0 %v14160_v33  ;;  %7878 = vmatpush1.bf16.msra.mxu1 %v14165_v8 }
 0xc4c   :  { %7838 = vmatprep.subr.bf16.mxu0 %v14172_v35  ;;  %7879 = vmatprep.subr.bf16.mxu1 %v14177_v26 }
 0xc4f   :  { %7839 = vmatpush1.bf16.msra.mxu0 %v14186_v10  ;;  %7880 = vmatpush1.bf16.msra.mxu1 %v14191_v30 }
 0xc50   :  { %7840 = vmatprep.subr.bf16.mxu0 %v14200_v22  ;;  %7881 = vmatprep.subr.bf16.mxu1 %v14205_v31 }
 0xc53   :  { %7841 = vmatpush1.bf16.msra.mxu0 %v14212_v56  ;;  %7882 = vmatpush1.bf16.msra.mxu1 %v14217_v15 }
 0xc54   :  { %7842 = vmatprep.subr.bf16.mxu0 %v14224_v24  ;;  %7883 = vmatprep.subr.bf16.mxu1 %v14229_v25 }
 0xc57   :  { %7843 = vmatpush1.bf16.msra.mxu0 %v14238_v3  ;;  %7884 = vmatpush1.bf16.msra.mxu1 %v14243_v32 }
 0xc58   :  { %7844 = vmatprep.subr.bf16.mxu0 %v14250_v5  ;;  %7885 = vmatprep.subr.bf16.mxu1 %v14255_v61 }
 0xc5b   :  { %7845 = vmatpush1.bf16.msra.mxu0 %v14264_v50  ;;  %7886 = vmatpush1.bf16.msra.mxu1 %v14269_v54 }
 0xc5c   :  { %7945 = vmatprep.subr.bf16.mxu0 %v14057_v43  ;;  %7986 = vmatprep.subr.bf16.mxu1 %v14062_v12 }
 0xd11   :  { %v7749_v53 = vpop.f32.mrb[120].mxu0  ;;  %v7790_v2 = vpop.f32.mrb[136].mxu1 }
 0xd12   :  { %v7797_v1 = vadd.f32 %v7749_v53, %v14332_v20  ;;  %v7799_v48 = vadd.f32 %v7790_v2, %v15347_v21  ;;  %v7751_v36 = vpop.f32.mrb[121].mxu0  ;;  %v7792_v40 = vpop.f32.mrb[137].mxu1 }
 0xd13   :  { %v7798_v45 = vadd.f32 %v7751_v36, %v15348_v7  ;;  %v7800_v42 = vadd.f32 %v7792_v40, %v15349_v28  ;;  %v7753_v49 = vpop.f32.mrb[122].mxu0  ;;  %v7794_v59 = vpop.f32.mrb[138].mxu1  ;;  %v15350_v36 = vld [vmem:[#allocation54_spill] sm:$0xff] }
 0xd14   :  { %v9957_v34 = vmul.f32 -1.442695, %v7797_v1  ;;  %v7754_v19 = vpop.f32.mrb[123].mxu0  ;;  %v7795_v46 = vpop.f32.mrb[139].mxu1  ;;  %v14510_v1 = vld [vmem:[%s15017_s6 + $0xc] ss:$16 sps:$4 sm:$0xff]  }
 0xd15   :  { %v9958_v43 = vmul.f32 -1.442695, %v7798_v45  ;;  %v9959_v12 = vmul.f32 -1.442695, %v7800_v42  ;;  %v15351_v7 = vld [vmem:[#allocation66_spill] sm:$0xff]  ;;  %v15352_v49 = vld [vmem:[#allocation55_spill] sm:$0xff] }
 0xd16   :  { %10771 = vpow2.f32 %v9957_v34  ;;  %v15353_v34 = vld [vmem:[#allocation67_spill] sm:$0xff] }
 0xd17   :  { %10773 = vpow2.f32 %v9958_v43 }
 0xd18   :  { %10775 = vpow2.f32 %v9959_v12 }
 0xd19   :  { %10777 = vtanh.f32 %v7799_v48 }
 0xd20   :  { %v10772_v6 = vpop.eup %10771 }
 0xd21   :  { %v10774_v38 = vpop.eup %10773  ;;  %v7804_v20 = vadd.f32 1.0, %v10772_v6 }
 0xd22   :  { %v7810_v63 = vadd.f32 1.0, %v10774_v38  ;;  %v10776_v9 = vpop.eup %10775 }
 0xd23   :  { %10779 = vrcp.f32 %v7804_v20  ;;  %v10778_v55 = vpop.eup %10777  ;;  %v7817_v13 = vadd.f32 1.0, %v10776_v9 }
 0xd24   :  { %10781 = vrcp.f32 %v7810_v63 }
 0xd25   :  { %10783 = vrcp.f32 %v7817_v13 }
 0xd2d   :  { %v10780_v23 = vpop.eup %10779 }
 0xd2e   :  { %v10782_v29 = vpop.eup %10781  ;;  %v7821_v51 = vmul.f32 %v10780_v23, %v10778_v55 }
 0xd2f   :  { %v7820_v27 = vmul.f32 %v10782_v29, %v14424_v58  ;;  %v10784_v44 = vpop.eup %10783  ;;  %v14504_v58 = vld [vmem:[%s15017_s6 + $0x4] ss:$16 sps:$4 sm:$0xff]  }
 0xd31   :  { %v14466_v37 = vadd.f32 %v7821_v51, %v7820_v27 }
 0xd33   :  { %10785 = vtanh.f32 %v14466_v37 }
 0xd3d   :  { %v10786_v52 = vpop.eup %10785 }
 0xd3e   :  { %v7824_v53 = vmul.f32 %v10786_v52, %v10784_v44 }
 0xd40   :  { %v7829_v2 = vpack.c.bf16 %v7824_v53, %v7824_v53 }
 0xd42   :  { %7863 = vmatmul.mubr.bf16.vlgmr.msra.gmra.mrb[124].mxu0 %v7829_v2  ;;  %7904 = vmatmul.mubr.bf16.vlgmr.msra.gmra.mrb[140].mxu1 %v7829_v2 }
 0xd43   :  { %7946 = vmatpush1.bf16.msra.mxu0 %v14084_v4  ;;  %7987 = vmatpush1.bf16.msra.mxu1 %v14089_v16 }
 0xd44   :  { %7947 = vmatprep.subr.bf16.mxu0 %v14096_v11  ;;  %7988 = vmatprep.subr.bf16.mxu1 %v14101_v60 }
 0xd45   :  { %7977 = vmatprep.mubr.bf16.mxu0 %v15112_v62  ;;  %8018 = vmatprep.mubr.bf16.mxu1 %v15112_v62 }
 0xd47   :  { %7948 = vmatpush1.bf16.msra.mxu0 %v14108_v18  ;;  %7989 = vmatpush1.bf16.msra.mxu1 %v14113_v14 }
 0xd48   :  { %7949 = vmatprep.subr.bf16.mxu0 %v14120_v17  ;;  %7990 = vmatprep.subr.bf16.mxu1 %v14125_v57 }
 0xd4b   :  { %7950 = vmatpush1.bf16.msra.mxu0 %v14134_v0  ;;  %7991 = vmatpush1.bf16.msra.mxu1 %v14139_v41 }
 0xd4c   :  { %7951 = vmatprep.subr.bf16.mxu0 %v14148_v47  ;;  %7992 = vmatprep.subr.bf16.mxu1 %v14153_v39 }
 0xd4f   :  { %7952 = vmatpush1.bf16.msra.mxu0 %v14160_v33  ;;  %7993 = vmatpush1.bf16.msra.mxu1 %v14165_v8 }
 0xd50   :  { %7953 = vmatprep.subr.bf16.mxu0 %v14172_v35  ;;  %7994 = vmatprep.subr.bf16.mxu1 %v14177_v26 }
 0xd53   :  { %7954 = vmatpush1.bf16.msra.mxu0 %v14186_v10  ;;  %7995 = vmatpush1.bf16.msra.mxu1 %v14191_v30 }
 0xd54   :  { %7955 = vmatprep.subr.bf16.mxu0 %v14200_v22  ;;  %7996 = vmatprep.subr.bf16.mxu1 %v14205_v31 }
 0xd57   :  { %7956 = vmatpush1.bf16.msra.mxu0 %v14212_v56  ;;  %7997 = vmatpush1.bf16.msra.mxu1 %v14217_v15 }
 0xd58   :  { %7957 = vmatprep.subr.bf16.mxu0 %v14224_v24  ;;  %7998 = vmatprep.subr.bf16.mxu1 %v14229_v25 }
 0xd5b   :  { %7958 = vmatpush1.bf16.msra.mxu0 %v14238_v3  ;;  %7999 = vmatpush1.bf16.msra.mxu1 %v14243_v32 }
 0xd5c   :  { %7959 = vmatprep.subr.bf16.mxu0 %v14250_v5  ;;  %8000 = vmatprep.subr.bf16.mxu1 %v14255_v61 }
 0xd5f   :  { %7960 = vmatpush1.bf16.msra.mxu0 %v14264_v50  ;;  %8001 = vmatpush1.bf16.msra.mxu1 %v14269_v54 }
 0xd60   :  { %8060 = vmatprep.subr.bf16.mxu0 %v14504_v58  ;;  %8101 = vmatprep.subr.bf16.mxu1 %v14510_v1 }
 0xe15   :  { %v7864_v21 = vpop.f32.mrb[124].mxu0  ;;  %v7905_v48 = vpop.f32.mrb[140].mxu1 }
 0xe16   :  { %v7912_v40 = vadd.f32 %v7864_v21, %v15350_v36  ;;  %v7914_v45 = vadd.f32 %v7905_v48, %v15351_v7  ;;  %v7866_v28 = vpop.f32.mrb[125].mxu0  ;;  %v7907_v42 = vpop.f32.mrb[141].mxu1 }
 0xe17   :  { %v7913_v59 = vadd.f32 %v7866_v28, %v15352_v49  ;;  %v7915_v19 = vadd.f32 %v7907_v42, %v15353_v34  ;;  %v7868_v46 = vpop.f32.mrb[126].mxu0  ;;  %v7909_v43 = vpop.f32.mrb[142].mxu1 }
 0xe18   :  { %v9960_v12 = vmul.f32 -1.442695, %v7912_v40  ;;  %v7869_v6 = vpop.f32.mrb[127].mxu0  ;;  %v7910_v38 = vpop.f32.mrb[143].mxu1 }
 0xe19   :  { %v9961_v20 = vmul.f32 -1.442695, %v7913_v59  ;;  %v9962_v63 = vmul.f32 -1.442695, %v7915_v19 }
 0xe1a   :  { %10787 = vpow2.f32 %v9960_v12 }
 0xe1b   :  { %10789 = vpow2.f32 %v9961_v20 }
 0xe1c   :  { %10791 = vpow2.f32 %v9962_v63 }
 0xe1d   :  { %10793 = vtanh.f32 %v7914_v45 }
 0xe24   :  { %v10788_v9 = vpop.eup %10787 }
 0xe25   :  { %v10790_v55 = vpop.eup %10789  ;;  %v7919_v23 = vadd.f32 1.0, %v10788_v9 }
 0xe26   :  { %v7925_v29 = vadd.f32 1.0, %v10790_v55  ;;  %v10792_v51 = vpop.eup %10791 }
 0xe27   :  { %10795 = vrcp.f32 %v7919_v23  ;;  %v10794_v13 = vpop.eup %10793  ;;  %v7932_v53 = vadd.f32 1.0, %v10792_v51 }
 0xe28   :  { %10797 = vrcp.f32 %v7925_v29 }
 0xe29   :  { %10799 = vrcp.f32 %v7932_v53  ;;  %v14584_v53 = vld [vmem:[%s15017_s6 + $0x2c] ss:$16 sps:$4 sm:$0xff]  }
 0xe31   :  { %v10796_v27 = vpop.eup %10795 }
 0xe32   :  { %v10798_v44 = vpop.eup %10797  ;;  %v7936_v52 = vmul.f32 %v10796_v27, %v10794_v13  ;;  %v14566_v27 = vld [vmem:[%s15017_s6] ss:$16 sps:$4 sm:$0xff]  }
 0xe33   :  { %v7935_v2 = vmul.f32 %v10798_v44, %v14466_v37  ;;  %v10800_v48 = vpop.eup %10799  ;;  %v14572_v44 = vld [vmem:[%s15017_s6 + $0x8] ss:$16 sps:$4 sm:$0xff]  }
 0xe35   :  { %v14518_v21 = vadd.f32 %v7936_v52, %v7935_v2  ;;  %v14578_v52 = vld [vmem:[%s15017_s6 + $0x24] ss:$16 sps:$4 sm:$0xff]   ;;  %v14592_v2 = vld [vmem:[%s15017_s6 + $0x20] ss:$16 sps:$4 sm:$0xff]  }
 0xe37   :  { %10801 = vtanh.f32 %v14518_v21 }
 0xe41   :  { %v10802_v36 = vpop.eup %10801 }
 0xe42   :  { %v7939_v40 = vmul.f32 %v10802_v36, %v10800_v48  ;;  %v14604_v48 = vld [vmem:[%s15017_s6 + $0x44] ss:$16 sps:$4 sm:$0xff]   ;;  %v14610_v36 = vld [vmem:[%s15017_s6 + $0x4c] ss:$16 sps:$4 sm:$0xff]  }
 0xe44   :  { %v7944_v7 = vpack.c.bf16 %v7939_v40, %v7939_v40  ;;  %v14616_v40 = vld [vmem:[%s15017_s6 + $0x40] ss:$16 sps:$4 sm:$0xff]  }
 0xe46   :  { %7978 = vmatmul.mubr.bf16.vlgmr.msra.gmra.mrb[128].mxu0 %v7944_v7  ;;  %8019 = vmatmul.mubr.bf16.vlgmr.msra.gmra.mrb[144].mxu1 %v7944_v7  ;;  %v14622_v7 = vld [vmem:[%s15017_s6 + $0x48] ss:$16 sps:$4 sm:$0xff]  }
 0xe47   :  { %8061 = vmatpush1.bf16.msra.mxu0 %v14084_v4  ;;  %8102 = vmatpush1.bf16.msra.mxu1 %v14089_v16 }
 0xe48   :  { %8062 = vmatprep.subr.bf16.mxu0 %v14096_v11  ;;  %8103 = vmatprep.subr.bf16.mxu1 %v14101_v60  ;;  %v15354_v11 = vld [vmem:[#allocation5_spill] sm:$0xff] }
 0xe49   :  { %8092 = vmatprep.mubr.bf16.mxu0 %v15112_v62  ;;  %8133 = vmatprep.mubr.bf16.mxu1 %v15112_v62 }
 0xe4b   :  { %8063 = vmatpush1.bf16.msra.mxu0 %v14108_v18  ;;  %8104 = vmatpush1.bf16.msra.mxu1 %v14113_v14  ;;  %v15355_v18 = vld [vmem:[#allocation11_spill] sm:$0xff] }
 0xe4c   :  { %8064 = vmatprep.subr.bf16.mxu0 %v14120_v17  ;;  %8105 = vmatprep.subr.bf16.mxu1 %v14125_v57 }
 0xe4f   :  { %8065 = vmatpush1.bf16.msra.mxu0 %v14134_v0  ;;  %8106 = vmatpush1.bf16.msra.mxu1 %v14139_v41  ;;  %v15356_v0 = vld [vmem:[#allocation6_spill] sm:$0xff] }
 0xe50   :  { %8066 = vmatprep.subr.bf16.mxu0 %v14148_v47  ;;  %8107 = vmatprep.subr.bf16.mxu1 %v14153_v39  ;;  %v15357_v47 = vld [vmem:[#allocation12_spill] sm:$0xff] }
 0xe53   :  { %8067 = vmatpush1.bf16.msra.mxu0 %v14160_v33  ;;  %8108 = vmatpush1.bf16.msra.mxu1 %v14165_v8 }
 0xe54   :  { %8068 = vmatprep.subr.bf16.mxu0 %v14172_v35  ;;  %8109 = vmatprep.subr.bf16.mxu1 %v14177_v26 }
 0xe57   :  { %8069 = vmatpush1.bf16.msra.mxu0 %v14186_v10  ;;  %8110 = vmatpush1.bf16.msra.mxu1 %v14191_v30 }
 0xe58   :  { %8070 = vmatprep.subr.bf16.mxu0 %v14200_v22  ;;  %8111 = vmatprep.subr.bf16.mxu1 %v14205_v31 }
 0xe5b   :  { %8071 = vmatpush1.bf16.msra.mxu0 %v14212_v56  ;;  %8112 = vmatpush1.bf16.msra.mxu1 %v14217_v15 }
 0xe5c   :  { %8072 = vmatprep.subr.bf16.mxu0 %v14224_v24  ;;  %8113 = vmatprep.subr.bf16.mxu1 %v14229_v25 }
 0xe5f   :  { %8073 = vmatpush1.bf16.msra.mxu0 %v14238_v3  ;;  %8114 = vmatpush1.bf16.msra.mxu1 %v14243_v32 }
 0xe60   :  { %8074 = vmatprep.subr.bf16.mxu0 %v14250_v5  ;;  %8115 = vmatprep.subr.bf16.mxu1 %v14255_v61 }
 0xe63   :  { %8075 = vmatpush1.bf16.msra.mxu0 %v14264_v50  ;;  %8116 = vmatpush1.bf16.msra.mxu1 %v14269_v54 }
 0xe64   :  { %8175 = vmatprep.subr.bf16.mxu0 %v14504_v58  ;;  %8216 = vmatprep.subr.bf16.mxu1 %v14510_v1 }
 0xf19   :  { %v7979_v4 = vpop.f32.mrb[128].mxu0  ;;  %v8020_v16 = vpop.f32.mrb[144].mxu1 }
 0xf1a   :  { %v8027_v60 = vadd.f32 %v7979_v4, %v15354_v11  ;;  %v8029_v14 = vadd.f32 %v8020_v16, %v15355_v18  ;;  %v7981_v17 = vpop.f32.mrb[129].mxu0  ;;  %v8022_v57 = vpop.f32.mrb[145].mxu1  ;;  %v14628_v4 = vld [vmem:[%s15017_s6 + $0x64] ss:$16 sps:$4 sm:$0xff]   ;;  %v14634_v16 = vld [vmem:[%s15017_s6 + $0x6c] ss:$16 sps:$4 sm:$0xff]  }
 0xf1b   :  { %v8028_v41 = vadd.f32 %v7981_v17, %v15356_v0  ;;  %v8030_v39 = vadd.f32 %v8022_v57, %v15357_v47  ;;  %v7983_v33 = vpop.f32.mrb[130].mxu0  ;;  %v8024_v8 = vpop.f32.mrb[146].mxu1  ;;  %v14640_v11 = vld [vmem:[%s15017_s6 + $0x60] ss:$16 sps:$4 sm:$0xff]  }
 0xf1c   :  { %v9963_v37 = vmul.f32 -1.442695, %v8027_v60  ;;  %v7984_v45 = vpop.f32.mrb[131].mxu0  ;;  %v8025_v28 = vpop.f32.mrb[147].mxu1  ;;  %v14646_v60 = vld [vmem:[%s15017_s6 + $0x68] ss:$16 sps:$4 sm:$0xff]  }
 0xf1d   :  { %v9964_v42 = vmul.f32 -1.442695, %v8028_v41  ;;  %v9965_v49 = vmul.f32 -1.442695, %v8030_v39 }
 0xf1e   :  { %10803 = vpow2.f32 %v9963_v37 }
 0xf1f   :  { %10805 = vpow2.f32 %v9964_v42 }
 0xf20   :  { %10807 = vpow2.f32 %v9965_v49 }
 0xf21   :  { %10809 = vtanh.f32 %v8029_v14 }
 0xf28   :  { %v10804_v59 = vpop.eup %10803 }
 0xf29   :  { %v10806_v34 = vpop.eup %10805  ;;  %v8034_v19 = vadd.f32 1.0, %v10804_v59 }
 0xf2a   :  { %v8040_v46 = vadd.f32 1.0, %v10806_v34  ;;  %v10808_v43 = vpop.eup %10807 }
 0xf2b   :  { %10811 = vrcp.f32 %v8034_v19  ;;  %v10810_v12 = vpop.eup %10809  ;;  %v8047_v63 = vadd.f32 1.0, %v10808_v43  ;;  %v10908_v19 = vld [vmem:[%s15017_s6 + $0x8c] ss:$16 sps:$4 sm:$0xff]   ;;  %v10910_v43 = vld [vmem:[%s15017_s6 + $0x88] ss:$16 sps:$4 sm:$0xff]  }
 0xf2c   :  { %10813 = vrcp.f32 %v8040_v46  ;;  %v10909_v46 = vld [vmem:[%s15017_s6 + $0x80] ss:$16 sps:$4 sm:$0xff]  }
 0xf2d   :  { %10815 = vrcp.f32 %v8047_v63  ;;  %v10915_v63 = vld [vmem:[%s15017_s6 + $0xc4] ss:$16 sps:$4 sm:$0xff]  }
 0xf35   :  { %v10812_v6 = vpop.eup %10811 }
 0xf36   :  { %v10814_v38 = vpop.eup %10813  ;;  %v8051_v20 = vmul.f32 %v10812_v6, %v10810_v12  ;;  %v10911_v12 = vld [vmem:[%s15017_s6 + $0xa4] ss:$16 sps:$4 sm:$0xff]   ;;  %v10912_v6 = vld [vmem:[%s15017_s6 + $0xac] ss:$16 sps:$4 sm:$0xff]  }
 0xf37   :  { %v8050_v9 = vmul.f32 %v10814_v38, %v14518_v21  ;;  %v10816_v23 = vpop.eup %10815  ;;  %v14598_v21 = vld [vmem:[%s15017_s6 + $0x28] ss:$16 sps:$4 sm:$0xff]   ;;  %v10913_v38 = vld [vmem:[%s15017_s6 + $0xa0] ss:$16 sps:$4 sm:$0xff]  }
 0xf39   :  { %v14560_v55 = vadd.f32 %v8051_v20, %v8050_v9  ;;  %v10914_v20 = vld [vmem:[%s15017_s6 + $0xa8] ss:$16 sps:$4 sm:$0xff]   ;;  %v10916_v9 = vld [vmem:[%s15017_s6 + $0xcc] ss:$16 sps:$4 sm:$0xff]  }
 0xf3b   :  { %10817 = vtanh.f32 %v14560_v55 }
 0xf45   :  { %v10818_v29 = vpop.eup %10817 }
 0xf46   :  { %v8054_v51 = vmul.f32 %v10818_v29, %v10816_v23  ;;  %v10918_v23 = vld [vmem:[%s15017_s6 + $0xc8] ss:$16 sps:$4 sm:$0xff]   ;;  %v10919_v29 = vld [vmem:[%s15017_s6 + $0xe4] ss:$16 sps:$4 sm:$0xff]  }
 0xf48   :  { %v8059_v13 = vpack.c.bf16 %v8054_v51, %v8054_v51  ;;  %v10920_v51 = vld [vmem:[%s15017_s6 + $0xec] ss:$16 sps:$4 sm:$0xff]  }
 0xf4a   :  { %8093 = vmatmul.mubr.bf16.vlgmr.msra.gmra.mrb[132].mxu0 %v8059_v13  ;;  %8134 = vmatmul.mubr.bf16.vlgmr.msra.gmra.mrb[148].mxu1 %v8059_v13  ;;  %v10921_v13 = vld [vmem:[%s15017_s6 + $0xe0] ss:$16 sps:$4 sm:$0xff]  }
 0xf4b   :  { %8176 = vmatpush1.bf16.msra.mxu0 %v14566_v27  ;;  %8217 = vmatpush1.bf16.msra.mxu1 %v14572_v44 }
 0xf4c   :  { %8177 = vmatprep.subr.bf16.mxu0 %v14578_v52  ;;  %8218 = vmatprep.subr.bf16.mxu1 %v14584_v53 }
 0xf4d   :  { %8207 = vmatprep.mubr.bf16.mxu0 %v15112_v62  ;;  %8248 = vmatprep.mubr.bf16.mxu1 %v15112_v62 }
 0xf4f   :  { %8178 = vmatpush1.bf16.msra.mxu0 %v14592_v2  ;;  %8219 = vmatpush1.bf16.msra.mxu1 %v14598_v21 }
 0xf50   :  { %8179 = vmatprep.subr.bf16.mxu0 %v14604_v48  ;;  %8220 = vmatprep.subr.bf16.mxu1 %v14610_v36 }
 0xf53   :  { %8180 = vmatpush1.bf16.msra.mxu0 %v14616_v40  ;;  %8221 = vmatpush1.bf16.msra.mxu1 %v14622_v7 }
 0xf54   :  { %8181 = vmatprep.subr.bf16.mxu0 %v14628_v4  ;;  %8222 = vmatprep.subr.bf16.mxu1 %v14634_v16 }
 0xf57   :  { %8182 = vmatpush1.bf16.msra.mxu0 %v14640_v11  ;;  %8223 = vmatpush1.bf16.msra.mxu1 %v14646_v60 }
 0xf58   :  { %8183 = vmatprep.subr.bf16.mxu0 %v14172_v35  ;;  %8224 = vmatprep.subr.bf16.mxu1 %v14177_v26 }
 0xf5b   :  { %8184 = vmatpush1.bf16.msra.mxu0 %v14186_v10  ;;  %8225 = vmatpush1.bf16.msra.mxu1 %v14191_v30  ;;  %v15358_v10 = vld [vmem:[#allocation7_spill] sm:$0xff] }
 0xf5c   :  { %8185 = vmatprep.subr.bf16.mxu0 %v14200_v22  ;;  %8226 = vmatprep.subr.bf16.mxu1 %v14205_v31  ;;  %v15359_v22 = vld [vmem:[#allocation13_spill] sm:$0xff] }
 0xf5f   :  { %8186 = vmatpush1.bf16.msra.mxu0 %v14212_v56  ;;  %8227 = vmatpush1.bf16.msra.mxu1 %v14217_v15 }
 0xf60   :  { %8187 = vmatprep.subr.bf16.mxu0 %v14224_v24  ;;  %8228 = vmatprep.subr.bf16.mxu1 %v14229_v25  ;;  %v15360_v24 = vld [vmem:[#allocation8_spill] sm:$0xff] }
 0xf63   :  { %8188 = vmatpush1.bf16.msra.mxu0 %v14238_v3  ;;  %8229 = vmatpush1.bf16.msra.mxu1 %v14243_v32  ;;  %v15361_v3 = vld [vmem:[#allocation14_spill] sm:$0xff] }
 0xf64   :  { %8189 = vmatprep.subr.bf16.mxu0 %v14250_v5  ;;  %8230 = vmatprep.subr.bf16.mxu1 %v14255_v61 }
 0xf67   :  { %8190 = vmatpush1.bf16.msra.mxu0 %v14264_v50  ;;  %8231 = vmatpush1.bf16.msra.mxu1 %v14269_v54 }
 0xf68   :  { %8290 = vmatprep.subr.bf16.mxu0 %v14504_v58  ;;  %8331 = vmatprep.subr.bf16.mxu1 %v14510_v1 }
0x101d   :  { %v8094_v35 = vpop.f32.mrb[132].mxu0  ;;  %v8135_v26 = vpop.f32.mrb[148].mxu1 }
0x101e   :  { %v8142_v30 = vadd.f32 %v8094_v35, %v15358_v10  ;;  %v8144_v31 = vadd.f32 %v8135_v26, %v15359_v22  ;;  %v8096_v56 = vpop.f32.mrb[133].mxu0  ;;  %v8137_v15 = vpop.f32.mrb[149].mxu1 }
0x101f   :  { %v8143_v25 = vadd.f32 %v8096_v56, %v15360_v24  ;;  %v8145_v32 = vadd.f32 %v8137_v15, %v15361_v3  ;;  %v8098_v5 = vpop.f32.mrb[134].mxu0  ;;  %v8139_v61 = vpop.f32.mrb[150].mxu1 }
0x1020   :  { %v9966_v50 = vmul.f32 -1.442695, %v8142_v30  ;;  %v8099_v54 = vpop.f32.mrb[135].mxu0  ;;  %v8140_v18 = vpop.f32.mrb[151].mxu1 }
0x1021   :  { %v9967_v58 = vmul.f32 -1.442695, %v8143_v25  ;;  %v9968_v1 = vmul.f32 -1.442695, %v8145_v32 }
0x1022   :  { %10819 = vpow2.f32 %v9966_v50 }
0x1023   :  { %10821 = vpow2.f32 %v9967_v58 }
0x1024   :  { %10823 = vpow2.f32 %v9968_v1 }
0x1025   :  { %10825 = vtanh.f32 %v8144_v31 }
0x102c   :  { %v10820_v14 = vpop.eup %10819 }
0x102d   :  { %v10822_v17 = vpop.eup %10821  ;;  %v8149_v57 = vadd.f32 1.0, %v10820_v14 }
0x102e   :  { %v8155_v0 = vadd.f32 1.0, %v10822_v17  ;;  %v10824_v41 = vpop.eup %10823 }
0x102f   :  { %10827 = vrcp.f32 %v8149_v57  ;;  %v10826_v47 = vpop.eup %10825  ;;  %v8162_v37 = vadd.f32 1.0, %v10824_v41  ;;  %v10371_v41 = vld [vmem:[%s15019_s5] ss:$16 sps:$4 sm:$0xff]  }
0x1030   :  { %10829 = vrcp.f32 %v8155_v0 }
0x1031   :  { %10831 = vrcp.f32 %v8162_v37  ;;  %v15366_v37 = vld [vmem:[#allocation69_spill] sm:$0xff] }
0x1039   :  { %v10828_v39 = vpop.eup %10827 }
0x103a   :  { %v10830_v33 = vpop.eup %10829  ;;  %v8166_v8 = vmul.f32 %v10828_v39, %v10826_v47  ;;  %v10374_v47 = vld [vmem:[%s15019_s5 + $0x8] ss:$16 sps:$4 sm:$0xff]  }
0x103b   :  { %v8165_v45 = vmul.f32 %v10830_v33, %v14560_v55  ;;  %v10832_v42 = vpop.eup %10831  ;;  %v10917_v55 = vld [vmem:[%s15017_s6 + $0xc0] ss:$16 sps:$4 sm:$0xff]   ;;  %v10379_v33 = vld [vmem:[%s15019_s5 + $0x24] ss:$16 sps:$4 sm:$0xff]  }
0x103d   :  { %v14672_v28 = vadd.f32 %v8166_v8, %v8165_v45  ;;  %v10382_v8 = vld [vmem:[%s15019_s5 + $0x2c] ss:$16 sps:$4 sm:$0xff]   ;;  %v8403_v45 = vpack.c.bf16 %v15366_v37, %v15366_v37  ;;  %v10468_v37 = vld [vmem:[%s15020_s9] sm:$0xff]  }
0x103f   :  { %10833 = vtanh.f32 %v14672_v28 }
0x1049   :  { %v10834_v49 = vpop.eup %10833 }
0x104a   :  { %v8169_v59 = vmul.f32 %v10834_v49, %v10832_v42  ;;  %v10380_v42 = vld [vmem:[%s15019_s5 + $0x28] ss:$16 sps:$4 sm:$0xff]   ;;  %v10385_v49 = vld [vmem:[%s15019_s5 + $0x44] ss:$16 sps:$4 sm:$0xff]  }
0x104c   :  { %v8174_v34 = vpack.c.bf16 %v8169_v59, %v8169_v59  ;;  %v10388_v59 = vld [vmem:[%s15019_s5 + $0x4c] ss:$16 sps:$4 sm:$0xff]  }
0x104e   :  { %8208 = vmatmul.mubr.bf16.vlgmr.msra.gmra.mrb[136].mxu0 %v8174_v34  ;;  %8249 = vmatmul.mubr.bf16.vlgmr.msra.gmra.mrb[152].mxu1 %v8174_v34  ;;  %v10383_v34 = vld [vmem:[%s15019_s5 + $0x40] ss:$16 sps:$4 sm:$0xff]  }
0x104f   :  { %8291 = vmatpush1.bf16.msra.mxu0 %v14566_v27  ;;  %8332 = vmatpush1.bf16.msra.mxu1 %v14572_v44  ;;  %v10922_v27 = vld [vmem:[%s15017_s6 + $0xe8] ss:$16 sps:$4 sm:$0xff]   ;;  %v10373_v44 = vld [vmem:[%s15019_s5 + $0x4] ss:$16 sps:$4 sm:$0xff]  }
0x1050   :  { %8292 = vmatprep.subr.bf16.mxu0 %v14578_v52  ;;  %8333 = vmatprep.subr.bf16.mxu1 %v14584_v53  ;;  %v10376_v52 = vld [vmem:[%s15019_s5 + $0xc] ss:$16 sps:$4 sm:$0xff]  }
0x1051   :  { %8322 = vmatprep.mubr.bf16.mxu0 %v15112_v62  ;;  %8363 = vmatprep.mubr.bf16.mxu1 %v15112_v62  ;;  %v10907_v62 = vld [vmem:[%s15017_s6 + $0x84] ss:$16 sps:$4 sm:$0xff]  }
0x1053   :  { %8293 = vmatpush1.bf16.msra.mxu0 %v14592_v2  ;;  %8334 = vmatpush1.bf16.msra.mxu1 %v14598_v21  ;;  %v15362_v21 = vld [vmem:[#allocation24_spill] sm:$0xff] }
0x1054   :  { %8294 = vmatprep.subr.bf16.mxu0 %v14604_v48  ;;  %8335 = vmatprep.subr.bf16.mxu1 %v14610_v36  ;;  %v15363_v36 = vld [vmem:[#allocation38_spill] sm:$0xff] }
0x1057   :  { %8295 = vmatpush1.bf16.msra.mxu0 %v14616_v40  ;;  %8336 = vmatpush1.bf16.msra.mxu1 %v14622_v7 }
0x1058   :  { %8296 = vmatprep.subr.bf16.mxu0 %v14628_v4  ;;  %8337 = vmatprep.subr.bf16.mxu1 %v14634_v16  ;;  %v15364_v16 = vld [vmem:[#allocation25_spill] sm:$0xff] }
0x105b   :  { %8297 = vmatpush1.bf16.msra.mxu0 %v14640_v11  ;;  %8338 = vmatpush1.bf16.msra.mxu1 %v14646_v60  ;;  %v15365_v60 = vld [vmem:[#allocation39_spill] sm:$0xff] }
0x105c   :  { %8298 = vmatprep.subr.bf16.mxu0 %v10907_v62  ;;  %8339 = vmatprep.subr.bf16.mxu1 %v10908_v19  ;;  %v10386_v62 = vld [vmem:[%s15019_s5 + $0x48] ss:$16 sps:$4 sm:$0xff]   ;;  %v10391_v19 = vld [vmem:[%s15019_s5 + $0x64] ss:$16 sps:$4 sm:$0xff]  }
0x105f   :  { %8299 = vmatpush1.bf16.msra.mxu0 %v10909_v46  ;;  %8340 = vmatpush1.bf16.msra.mxu1 %v10910_v43  ;;  %v10394_v46 = vld [vmem:[%s15019_s5 + $0x6c] ss:$16 sps:$4 sm:$0xff]   ;;  %v10389_v43 = vld [vmem:[%s15019_s5 + $0x60] ss:$16 sps:$4 sm:$0xff]  }
0x1060   :  { %8300 = vmatprep.subr.bf16.mxu0 %v10911_v12  ;;  %8341 = vmatprep.subr.bf16.mxu1 %v10912_v6  ;;  %v10392_v12 = vld [vmem:[%s15019_s5 + $0x68] ss:$16 sps:$4 sm:$0xff]   ;;  %v10397_v6 = vld [vmem:[%s15019_s5 + $0x84] ss:$16 sps:$4 sm:$0xff]  }
0x1063   :  { %8301 = vmatpush1.bf16.msra.mxu0 %v10913_v38  ;;  %8342 = vmatpush1.bf16.msra.mxu1 %v10914_v20  ;;  %v10400_v38 = vld [vmem:[%s15019_s5 + $0x8c] ss:$16 sps:$4 sm:$0xff]   ;;  %v10395_v20 = vld [vmem:[%s15019_s5 + $0x80] ss:$16 sps:$4 sm:$0xff]  }
0x1064   :  { %8302 = vmatprep.subr.bf16.mxu0 %v10915_v63  ;;  %8343 = vmatprep.subr.bf16.mxu1 %v10916_v9  ;;  %v10398_v63 = vld [vmem:[%s15019_s5 + $0x88] ss:$16 sps:$4 sm:$0xff]   ;;  %v10403_v9 = vld [vmem:[%s15019_s5 + $0xa4] ss:$16 sps:$4 sm:$0xff]  }
0x1067   :  { %8303 = vmatpush1.bf16.msra.mxu0 %v10917_v55  ;;  %8344 = vmatpush1.bf16.msra.mxu1 %v10918_v23  ;;  %v10406_v55 = vld [vmem:[%s15019_s5 + $0xac] ss:$16 sps:$4 sm:$0xff]   ;;  %v10401_v23 = vld [vmem:[%s15019_s5 + $0xa0] ss:$16 sps:$4 sm:$0xff]  }
0x1068   :  { %8304 = vmatprep.subr.bf16.mxu0 %v10919_v29  ;;  %8345 = vmatprep.subr.bf16.mxu1 %v10920_v51  ;;  %v10404_v29 = vld [vmem:[%s15019_s5 + $0xa8] ss:$16 sps:$4 sm:$0xff]   ;;  %v10409_v51 = vld [vmem:[%s15019_s5 + $0xc4] ss:$16 sps:$4 sm:$0xff]  }
0x106b   :  { %8305 = vmatpush1.bf16.msra.mxu0 %v10921_v13  ;;  %8346 = vmatpush1.bf16.msra.mxu1 %v10922_v27  ;;  %v10412_v13 = vld [vmem:[%s15019_s5 + $0xcc] ss:$16 sps:$4 sm:$0xff]   ;;  %v10407_v27 = vld [vmem:[%s15019_s5 + $0xc0] ss:$16 sps:$4 sm:$0xff]  }
0x106c   :  { %8810 = vmatprep.subr.bf16.mxu0 %v10373_v44  ;;  %8851 = vmatprep.subr.bf16.mxu1 %v10376_v52  ;;  %v10410_v44 = vld [vmem:[%s15019_s5 + $0xc8] ss:$16 sps:$4 sm:$0xff]   ;;  %v10415_v52 = vld [vmem:[%s15019_s5 + $0xe4] ss:$16 sps:$4 sm:$0xff]  }
0x1121   :  { %v8209_v53 = vpop.f32.mrb[136].mxu0  ;;  %v8250_v2 = vpop.f32.mrb[152].mxu1 }
0x1122   :  { %v8257_v48 = vadd.f32 %v8209_v53, %v15362_v21  ;;  %v8259_v40 = vadd.f32 %v8250_v2, %v15363_v36  ;;  %v8211_v7 = vpop.f32.mrb[137].mxu0  ;;  %v8252_v4 = vpop.f32.mrb[153].mxu1  ;;  %v10418_v53 = vld [vmem:[%s15019_s5 + $0xec] ss:$16 sps:$4 sm:$0xff]   ;;  %v10413_v2 = vld [vmem:[%s15019_s5 + $0xe0] ss:$16 sps:$4 sm:$0xff]  }
0x1123   :  { %v8258_v11 = vadd.f32 %v8211_v7, %v15364_v16  ;;  %v8260_v35 = vadd.f32 %v8252_v4, %v15365_v60  ;;  %v8213_v26 = vpop.f32.mrb[138].mxu0  ;;  %v8254_v10 = vpop.f32.mrb[154].mxu1  ;;  %v10416_v21 = vld [vmem:[%s15019_s5 + $0xe8] ss:$16 sps:$4 sm:$0xff]   ;;  %v10424_v36 = vld [vmem:[%s15019_s5 + $0x10c] ss:$16 sps:$4 sm:$0xff]  }
0x1124   :  { %v9969_v30 = vmul.f32 -1.442695, %v8257_v48  ;;  %v8214_v22 = vpop.f32.mrb[139].mxu0  ;;  %v8255_v31 = vpop.f32.mrb[155].mxu1  ;;  %v10421_v48 = vld [vmem:[%s15019_s5 + $0x104] ss:$16 sps:$4 sm:$0xff]  }
0x1125   :  { %v9970_v56 = vmul.f32 -1.442695, %v8258_v11  ;;  %v9971_v15 = vmul.f32 -1.442695, %v8260_v35  ;;  %v10422_v7 = vld [vmem:[%s15019_s5 + $0x108] ss:$16 sps:$4 sm:$0xff]  }
0x1126   :  { %10835 = vpow2.f32 %v9969_v30  ;;  %v10427_v4 = vld [vmem:[%s15019_s5 + $0x124] ss:$16 sps:$4 sm:$0xff]   ;;  %v10430_v16 = vld [vmem:[%s15019_s5 + $0x12c] ss:$16 sps:$4 sm:$0xff]   ;;  %v10425_v11 = vld [vmem:[%s15019_s5 + $0x120] ss:$16 sps:$4 sm:$0xff]  }
0x1127   :  { %10837 = vpow2.f32 %v9970_v56  ;;  %v10428_v60 = vld [vmem:[%s15019_s5 + $0x128] ss:$16 sps:$4 sm:$0xff]   ;;  %v10433_v35 = vld [vmem:[%s15019_s5 + $0x144] ss:$16 sps:$4 sm:$0xff]   ;;  %v10436_v26 = vld [vmem:[%s15019_s5 + $0x14c] ss:$16 sps:$4 sm:$0xff]  }
0x1128   :  { %10839 = vpow2.f32 %v9971_v15  ;;  %v10431_v10 = vld [vmem:[%s15019_s5 + $0x140] ss:$16 sps:$4 sm:$0xff]   ;;  %v10434_v30 = vld [vmem:[%s15019_s5 + $0x148] ss:$16 sps:$4 sm:$0xff]   ;;  %v10439_v22 = vld [vmem:[%s15019_s5 + $0x164] ss:$16 sps:$4 sm:$0xff]  }
0x1129   :  { %10841 = vtanh.f32 %v8259_v40  ;;  %v10419_v40 = vld [vmem:[%s15019_s5 + $0x100] ss:$16 sps:$4 sm:$0xff]   ;;  %v10442_v31 = vld [vmem:[%s15019_s5 + $0x16c] ss:$16 sps:$4 sm:$0xff]   ;;  %v10440_v15 = vld [vmem:[%s15019_s5 + $0x168] ss:$16 sps:$4 sm:$0xff]  }
0x112a   :  { %v10437_v56 = vld [vmem:[%s15019_s5 + $0x160] ss:$16 sps:$4 sm:$0xff]  }
0x1130   :  { %v10836_v24 = vpop.eup %10835 }
0x1131   :  { %v10838_v25 = vpop.eup %10837  ;;  %v8264_v3 = vadd.f32 1.0, %v10836_v24  ;;  %v10445_v24 = vld [vmem:[%s15019_s5 + $0x184] ss:$16 sps:$4 sm:$0xff]  }
0x1132   :  { %v8270_v32 = vadd.f32 1.0, %v10838_v25  ;;  %v10840_v5 = vpop.eup %10839  ;;  %v10448_v25 = vld [vmem:[%s15019_s5 + $0x18c] ss:$16 sps:$4 sm:$0xff]  }
0x1133   :  { %10843 = vrcp.f32 %v8264_v3  ;;  %v10842_v61 = vpop.eup %10841  ;;  %v8277_v58 = vadd.f32 1.0, %v10840_v5  ;;  %v10443_v3 = vld [vmem:[%s15019_s5 + $0x180] ss:$16 sps:$4 sm:$0xff]   ;;  %v10451_v5 = vld [vmem:[%s15019_s5 + $0x1a4] ss:$16 sps:$4 sm:$0xff]  }
0x1134   :  { %10845 = vrcp.f32 %v8270_v32  ;;  %v10446_v32 = vld [vmem:[%s15019_s5 + $0x188] ss:$16 sps:$4 sm:$0xff]  }
0x1135   :  { %10847 = vrcp.f32 %v8277_v58  ;;  %v10460_v58 = vld [vmem:[%s15019_s5 + $0x1cc] ss:$16 sps:$4 sm:$0xff]  }
0x113d   :  { %v10844_v50 = vpop.eup %10843 }
0x113e   :  { %v10846_v54 = vpop.eup %10845  ;;  %v8281_v18 = vmul.f32 %v10844_v50, %v10842_v61  ;;  %v10454_v61 = vld [vmem:[%s15019_s5 + $0x1ac] ss:$16 sps:$4 sm:$0xff]   ;;  %v10449_v50 = vld [vmem:[%s15019_s5 + $0x1a0] ss:$16 sps:$4 sm:$0xff]  }
0x113f   :  { %v8280_v1 = vmul.f32 %v10846_v54, %v14672_v28  ;;  %v10848_v17 = vpop.eup %10847  ;;  %v10377_v28 = vld [vmem:[%s15019_s5 + $0x20] ss:$16 sps:$4 sm:$0xff]   ;;  %v10452_v54 = vld [vmem:[%s15019_s5 + $0x1a8] ss:$16 sps:$4 sm:$0xff]  }
0x1141   :  { %v14750_v14 = vadd.f32 %v8281_v18, %v8280_v1  ;;  %v10457_v18 = vld [vmem:[%s15019_s5 + $0x1c4] ss:$16 sps:$4 sm:$0xff]   ;;  %v10455_v1 = vld [vmem:[%s15019_s5 + $0x1c0] ss:$16 sps:$4 sm:$0xff]  }
0x1143   :  { %10849 = vtanh.f32 %v14750_v14 }
0x114d   :  { %v10850_v57 = vpop.eup %10849 }
0x114e   :  { %v8284_v0 = vmul.f32 %v10850_v57, %v10848_v17  ;;  %v10458_v17 = vld [vmem:[%s15019_s5 + $0x1c8] ss:$16 sps:$4 sm:$0xff]   ;;  %v10463_v57 = vld [vmem:[%s15019_s5 + $0x1e4] ss:$16 sps:$4 sm:$0xff]  }
0x1150   :  { %v8289_v39 = vpack.c.bf16 %v8284_v0, %v8284_v0  ;;  %v10466_v0 = vld [vmem:[%s15019_s5 + $0x1ec] ss:$16 sps:$4 sm:$0xff]  }
0x1152   :  { %8323 = vmatmul.mubr.bf16.vlgmr.msra.gmra.mrb[140].mxu0 %v8289_v39  ;;  %8364 = vmatmul.mubr.bf16.vlgmr.msra.gmra.mrb[156].mxu1 %v8289_v39  ;;  %v15367_v39 = vld [vmem:[#allocation50_spill] sm:$0xff] }
0x1153   :  { %8811 = vmatpush1.bf16.msra.mxu0 %v10371_v41  ;;  %8852 = vmatpush1.bf16.msra.mxu1 %v10374_v47  ;;  %v10461_v41 = vld [vmem:[%s15019_s5 + $0x1e0] ss:$16 sps:$4 sm:$0xff]   ;;  %v10464_v47 = vld [vmem:[%s15019_s5 + $0x1e8] ss:$16 sps:$4 sm:$0xff]  }
0x1154   :  { %8842 = vmatprep.mubr.bf16.mxu0 %v8403_v45  ;;  %8883 = vmatprep.mubr.bf16.mxu1 %v8403_v45  ;;  %v10469_v45 = vld [vmem:[%s15020_s9 + $0x48] sm:$0xff]  }
0x1155   :  { %8812 = vmatprep.subr.bf16.mxu0 %v10379_v33  ;;  %8853 = vmatprep.subr.bf16.mxu1 %v10382_v8  ;;  %v8402_v33 = vpack.c.bf16 %v15367_v39, %v15367_v39  ;;  %v10467_v8 = vld [vmem:[%s15020_s9 + $0x40] sm:$0xff]  }
0x1157   :  { %8813 = vmatpush1.bf16.msra.mxu0 %v10377_v28  ;;  %8854 = vmatpush1.bf16.msra.mxu1 %v10380_v42  ;;  %v10470_v28 = vld [vmem:[%s15020_s9 + $0x8] sm:$0xff]   ;;  %v10471_v42 = vld [vmem:[%s15020_s9 + $0x50] sm:$0xff]  }
0x1158   :  { %8814 = vmatprep.subr.bf16.mxu0 %v10385_v49  ;;  %8855 = vmatprep.subr.bf16.mxu1 %v10388_v59  ;;  %v10472_v49 = vld [vmem:[%s15020_s9 + $0x10] sm:$0xff]   ;;  %v10473_v59 = vld [vmem:[%s15020_s9 + $0x58] sm:$0xff]  }
0x115b   :  { %8815 = vmatpush1.bf16.msra.mxu0 %v10383_v34  ;;  %8856 = vmatpush1.bf16.msra.mxu1 %v10386_v62  ;;  %v10474_v34 = vld [vmem:[%s15020_s9 + $0x18] sm:$0xff]   ;;  %v10475_v62 = vld [vmem:[%s15020_s9 + $0x60] sm:$0xff]  }
0x115c   :  { %8816 = vmatprep.subr.bf16.mxu0 %v10391_v19  ;;  %8857 = vmatprep.subr.bf16.mxu1 %v10394_v46  ;;  %v10476_v19 = vld [vmem:[%s15020_s9 + $0x20] sm:$0xff]   ;;  %v10477_v46 = vld [vmem:[%s15020_s9 + $0x68] sm:$0xff]  }
0x115f   :  { %8817 = vmatpush1.bf16.msra.mxu0 %v10389_v43  ;;  %8858 = vmatpush1.bf16.msra.mxu1 %v10392_v12  ;;  %v10478_v43 = vld [vmem:[%s15020_s9 + $0x28] sm:$0xff]   ;;  %v10479_v12 = vld [vmem:[%s15020_s9 + $0x70] sm:$0xff]  }
0x1160   :  { %8818 = vmatprep.subr.bf16.mxu0 %v10397_v6  ;;  %8859 = vmatprep.subr.bf16.mxu1 %v10400_v38  ;;  %v10480_v6 = vld [vmem:[%s15020_s9 + $0x30] sm:$0xff]   ;;  %v10481_v38 = vld [vmem:[%s15020_s9 + $0x78] sm:$0xff]  }
0x1163   :  { %8819 = vmatpush1.bf16.msra.mxu0 %v10395_v20  ;;  %8860 = vmatpush1.bf16.msra.mxu1 %v10398_v63  ;;  %v10482_v20 = vld [vmem:[%s15020_s9 + $0x38] sm:$0xff]  }
0x1164   :  { %8820 = vmatprep.subr.bf16.mxu0 %v10403_v9  ;;  %8861 = vmatprep.subr.bf16.mxu1 %v10406_v55  ;;  %v15368_v55 = vld [vmem:[#allocation48_spill] sm:$0xff] }
0x1167   :  { %8821 = vmatpush1.bf16.msra.mxu0 %v10401_v23  ;;  %8862 = vmatpush1.bf16.msra.mxu1 %v10404_v29  ;;  %v15369_v29 = vld [vmem:[#allocation60_spill] sm:$0xff] }
0x1168   :  { %8822 = vmatprep.subr.bf16.mxu0 %v10409_v51  ;;  %8863 = vmatprep.subr.bf16.mxu1 %v10412_v13 }
0x116b   :  { %8823 = vmatpush1.bf16.msra.mxu0 %v10407_v27  ;;  %8864 = vmatpush1.bf16.msra.mxu1 %v10410_v44  ;;  %v15370_v44 = vld [vmem:[#allocation49_spill] sm:$0xff] }
0x116c   :  { %8824 = vmatprep.subr.bf16.mxu0 %v10415_v52  ;;  %8865 = vmatprep.subr.bf16.mxu1 %v10418_v53  ;;  %v15371_v53 = vld [vmem:[#allocation61_spill] sm:$0xff] }
0x116f   :  { %8825 = vmatpush1.bf16.msra.mxu0 %v10413_v2  ;;  %8866 = vmatpush1.bf16.msra.mxu1 %v10416_v21 }
0x1170   :  { %8826 = vmatprep.subr.bf16.mxu0 %v10421_v48  ;;  %8867 = vmatprep.subr.bf16.mxu1 %v10424_v36 }
0x1173   :  { %8827 = vmatpush1.bf16.msra.mxu0 %v10419_v40  ;;  %8868 = vmatpush1.bf16.msra.mxu1 %v10422_v7 }
0x1174   :  { %8828 = vmatprep.subr.bf16.mxu0 %v10427_v4  ;;  %8869 = vmatprep.subr.bf16.mxu1 %v10430_v16 }
0x1177   :  { %8829 = vmatpush1.bf16.msra.mxu0 %v10425_v11  ;;  %8870 = vmatpush1.bf16.msra.mxu1 %v10428_v60 }
0x1178   :  { %8830 = vmatprep.subr.bf16.mxu0 %v10433_v35  ;;  %8871 = vmatprep.subr.bf16.mxu1 %v10436_v26 }
0x117b   :  { %8831 = vmatpush1.bf16.msra.mxu0 %v10431_v10  ;;  %8872 = vmatpush1.bf16.msra.mxu1 %v10434_v30 }
0x117c   :  { %8832 = vmatprep.subr.bf16.mxu0 %v10439_v22  ;;  %8873 = vmatprep.subr.bf16.mxu1 %v10442_v31 }
0x117f   :  { %8833 = vmatpush1.bf16.msra.mxu0 %v10437_v56  ;;  %8874 = vmatpush1.bf16.msra.mxu1 %v10440_v15 }
0x1180   :  { %8834 = vmatprep.subr.bf16.mxu0 %v10445_v24  ;;  %8875 = vmatprep.subr.bf16.mxu1 %v10448_v25 }
0x1183   :  { %8835 = vmatpush1.bf16.msra.mxu0 %v10443_v3  ;;  %8876 = vmatpush1.bf16.msra.mxu1 %v10446_v32 }
0x1184   :  { %8836 = vmatprep.subr.bf16.mxu0 %v10451_v5  ;;  %8877 = vmatprep.subr.bf16.mxu1 %v10454_v61  ;;  %v8468_v61 = vld [vmem:[%s15021_s8] sm:$0xf] }
0x1187   :  { %8837 = vmatpush1.bf16.msra.mxu0 %v10449_v50  ;;  %8878 = vmatpush1.bf16.msra.mxu1 %v10452_v54  ;;  %v15372_v50 = vld [vmem:[#allocation16_spill] sm:$0xff] }
0x1188   :  { %8838 = vmatprep.subr.bf16.mxu0 %v10457_v18  ;;  %8879 = vmatprep.subr.bf16.mxu1 %v10460_v58  ;;  %v8473_v54 = vrot.slane %v8468_v61, %v15372_v50  ;;  %v15373_v18 = vld [vmem:[#allocation17_spill] sm:$0xff] }
0x1189   :  { %v8477_v58 = vrot.slane %v8468_v61, %v15373_v18 }
0x118b   :  { %8839 = vmatpush1.bf16.msra.mxu0 %v10455_v1  ;;  %8880 = vmatpush1.bf16.msra.mxu1 %v10458_v17 }
0x118c   :  { %8840 = vmatprep.subr.bf16.mxu0 %v10463_v57  ;;  %8881 = vmatprep.subr.bf16.mxu1 %v10466_v0 }
0x118f   :  { %8841 = vmatpush1.bf16.msra.mxu0 %v10461_v41  ;;  %8882 = vmatpush1.bf16.msra.mxu1 %v10464_v47 }
0x1190   :  { %10059 = vmatprep.subr.bf16.mxu0 %v10467_v8 }
0x1192   :  { %8843 = vmatmul.mubr.bf16.vlgmr.msra.gmra.mrb[144].mxu0 %v8402_v33  ;;  %8884 = vmatmul.mubr.bf16.vlgmr.msra.gmra.mrb[160].mxu1 %v8402_v33 }
0x1193   :  { %10060 = vmatpush3.bf16.msra.mxu0 %v10468_v37 }
0x1194   :  { %10061 = vmatprep.subr.bf16.mxu0 %v10469_v45 }
0x1197   :  { %10062 = vmatpush3.bf16.msra.mxu0 %v10470_v28  ;;  %v15374_v28 = vld [vmem:[#allocation31_spill] sm:$0xff] }
0x1198   :  { %10063 = vmatprep.subr.bf16.mxu0 %v10471_v42  ;;  %v8485_v42 = vrot.slane %v8468_v61, %v15374_v28 }
0x119b   :  { %10064 = vmatpush3.bf16.msra.mxu0 %v10472_v49 }
0x119c   :  { %10065 = vmatprep.subr.bf16.mxu0 %v10473_v59  ;;  %v15375_v59 = vld [vmem:[#allocation30_spill] sm:$0xff] }
0x119f   :  { %10066 = vmatpush3.bf16.msra.mxu0 %v10474_v34  ;;  %v8481_v34 = vrot.slane %v8468_v61, %v15375_v59 }
0x11a0   :  { %10067 = vmatprep.subr.bf16.mxu0 %v10475_v62 }
0x11a3   :  { %10068 = vmatpush3.bf16.msra.mxu0 %v10476_v19 }
0x11a4   :  { %10069 = vmatprep.subr.bf16.mxu0 %v10477_v46 }
0x11a7   :  { %10070 = vmatpush3.bf16.msra.mxu0 %v10478_v43 }
0x11a8   :  { %10071 = vmatprep.subr.bf16.mxu0 %v10479_v12 }
0x11ab   :  { %10072 = vmatpush3.bf16.msra.mxu0 %v10480_v6 }
0x11ac   :  { %10073 = vmatprep.subr.bf16.mxu0 %v10481_v38 }
0x11af   :  { %10074 = vmatpush3.bf16.msra.mxu0 %v10482_v20 }
0x1225   :  { %v8324_v63 = vpop.f32.mrb[140].mxu0  ;;  %v8365_v9 = vpop.f32.mrb[156].mxu1 }
0x1226   :  { %v8372_v23 = vadd.f32 %v8324_v63, %v15368_v55  ;;  %v8374_v51 = vadd.f32 %v8365_v9, %v15369_v29  ;;  %v8326_v13 = vpop.f32.mrb[141].mxu0  ;;  %v8367_v27 = vpop.f32.mrb[157].mxu1 }
0x1227   :  { %v8373_v52 = vadd.f32 %v8326_v13, %v15370_v44  ;;  %v8375_v2 = vadd.f32 %v8367_v27, %v15371_v53  ;;  %v8328_v21 = vpop.f32.mrb[142].mxu0  ;;  %v8369_v48 = vpop.f32.mrb[158].mxu1 }
0x1228   :  { %v9972_v36 = vmul.f32 -1.442695, %v8372_v23  ;;  %v8329_v40 = vpop.f32.mrb[143].mxu0  ;;  %v8370_v7 = vpop.f32.mrb[159].mxu1  ;;  %v10042_v48 = vld [vmem:[%s15022_s10] ss:$0 sm:$0xff] }
0x1229   :  { %v9973_v4 = vmul.f32 -1.442695, %v8373_v52  ;;  %v9974_v16 = vmul.f32 -1.442695, %v8375_v2 }
0x122a   :  { %10851 = vpow2.f32 %v9972_v36 }
0x122b   :  { %10853 = vpow2.f32 %v9973_v4 }
0x122c   :  { %10855 = vpow2.f32 %v9974_v16 }
0x122d   :  { %10857 = vtanh.f32 %v8374_v51 }
0x1234   :  { %v10852_v11 = vpop.eup %10851 }
0x1235   :  { %v10854_v60 = vpop.eup %10853  ;;  %v8379_v35 = vadd.f32 1.0, %v10852_v11 }
0x1236   :  { %v8385_v26 = vadd.f32 1.0, %v10854_v60  ;;  %v10856_v10 = vpop.eup %10855 }
0x1237   :  { %10859 = vrcp.f32 %v8379_v35  ;;  %v10858_v30 = vpop.eup %10857  ;;  %v8392_v15 = vadd.f32 1.0, %v10856_v10 }
0x1238   :  { %10861 = vrcp.f32 %v8385_v26 }
0x1239   :  { %10863 = vrcp.f32 %v8392_v15 }
0x1241   :  { %v10860_v22 = vpop.eup %10859 }
0x1242   :  { %v10862_v31 = vpop.eup %10861  ;;  %v8396_v56 = vmul.f32 %v10860_v22, %v10858_v30 }
0x1243   :  { %v8395_v24 = vmul.f32 %v10862_v31, %v14750_v14  ;;  %v10864_v3 = vpop.eup %10863 }
0x1245   :  { %v8397_v25 = vadd.f32 %v8396_v56, %v8395_v24 }
0x1247   :  { %10865 = vtanh.f32 %v8397_v25 }
0x1251   :  { %v10866_v32 = vpop.eup %10865 }
0x1252   :  { %v8399_v5 = vmul.f32 %v10866_v32, %v10864_v3 }
0x1254   :  { %v8916_v53 = vpack.c.bf16 %v8399_v5, %v8399_v5 }
0x1265   :  { %v8844_v1 = vpop.f32.mrb[144].mxu0  ;;  %v8885_v17 = vpop.f32.mrb[160].mxu1 }
0x1266   :  { %v8845_v57 = vadd.f32 %v8844_v1, %v8473_v54  ;;  %v8846_v0 = vpop.f32.mrb[145].mxu0  ;;  %v8887_v41 = vpop.f32.mrb[161].mxu1  ;;  %v8886_v19 = vadd.f32 %v8885_v17, %v8481_v34 }
0x1267   :  { %v8847_v14 = vadd.f32 %v8846_v0, %v8477_v58  ;;  %v8848_v47 = vpop.f32.mrb[146].mxu0  ;;  %v8889_v39 = vpop.f32.mrb[162].mxu1  ;;  %v8888_v49 = vadd.f32 %v8887_v41, %v8485_v42 }
0x1268   :  { %v10039_v33 = vmul.f32 -1.442695, %v8845_v57  ;;  %v8849_v8 = vpop.f32.mrb[147].mxu0  ;;  %v8890_v37 = vpop.f32.mrb[163].mxu1 }
0x1269   :  { %v10040_v45 = vmul.f32 -1.442695, %v8847_v14  ;;  %v10041_v62 = vmul.f32 -1.442695, %v8888_v49 }
0x126a   :  { %10867 = vpow2.f32 %v10039_v33 }
0x126b   :  { %10869 = vpow2.f32 %v10040_v45 }
0x126c   :  { %10871 = vpow2.f32 %v10041_v62 }
0x126d   :  { %10873 = vtanh.f32 %v8886_v19 }
0x1274   :  { %v10868_v46 = vpop.eup %10867 }
0x1275   :  { %v10870_v43 = vpop.eup %10869  ;;  %v8895_v12 = vadd.f32 1.0, %v10868_v46 }
0x1276   :  { %v8901_v6 = vadd.f32 1.0, %v10870_v43  ;;  %v10872_v38 = vpop.eup %10871 }
0x1277   :  { %10875 = vrcp.f32 %v8895_v12  ;;  %v10874_v20 = vpop.eup %10873  ;;  %v8908_v23 = vadd.f32 1.0, %v10872_v38 }
0x1278   :  { %10877 = vrcp.f32 %v8901_v6 }
0x1279   :  { %10879 = vrcp.f32 %v8908_v23 }
0x1281   :  { %v10876_v63 = vpop.eup %10875 }
0x1282   :  { %v10878_v9 = vpop.eup %10877  ;;  %v8912_v55 = vmul.f32 %v10876_v63, %v10874_v20 }
0x1283   :  { %v8911_v29 = vmul.f32 0.0, %v10878_v9  ;;  %v10880_v13 = vpop.eup %10879 }
0x1285   :  { %v8913_v51 = vadd.f32 %v8912_v55, %v8911_v29 }
0x1287   :  { %10881 = vtanh.f32 %v8913_v51 }
0x1291   :  { %v10882_v27 = vpop.eup %10881 }
0x1292   :  { %v8915_v44 = vmul.f32 %v10882_v27, %v10880_v13 }
0x1294   :  { %v8917_v52 = vpack.c.bf16 %v8915_v44, %v8915_v44 }
0x1296   :  { %9085 = vmatprep.mubr.bf16.mxu0 %v8917_v52 }
0x1297   :  { %9086 = vmatmul.mubr.bf16.vlgmr.msra.gmra.mrb[148].mxu0 %v8916_v53 }
0x136a   :  { %v10075_v2 = vpop.f32.mrb[148].mxu0 }
0x136b   :  { %v10076_v21 = vpop.f32.mrb[149].mxu0 }
0x136c   :  { %v10077_v36 = vadd.f32 %v10076_v21, %v10075_v2  ;;  %v10078_v40 = vpop.f32.mrb[150].mxu0 }
0x136d   :  { %v10079_v7 = vpop.f32.mrb[151].mxu0 }
0x136e   :  { %v9088_v4 = vadd.f32 %v10077_v36, %v10042_v48 }
0x1370   :  { %v9094_v16 = vsel %vm9093_vm2, %v9088_v4, -inf }
0x1371   :  { %9095 = vmax.xlane.f32.xlu0 %v9094_v16 }
0x13fe   :  { %v9096_v11 = vpop.xlane.xlu0 %9095 }
0x13ff   :  { %v9097_v60 = vsub.f32 %v9088_v4, %v9096_v11 }
0x1401   :  { %v9098_v35 = vmul.f32 1.442695, %v9097_v60 }
0x1403   :  { %10883 = vpow2.f32 %v9098_v35 }
0x140d   :  { %v10884_v26 = vpop.eup %10883 }
0x140e   :  { %v9100_v10 = vsel %vm9093_vm2, %v10884_v26, 0.0 }
0x140f   :  { %9101 = vadd.xlane.f32.xlu0 %v9100_v10 }
0x149c   :  { %v9102_v30 = vpop.xlane.xlu0 %9101 }
0x149d   :  { %10885 = vlog2.f32 %v9102_v30 }
0x14a7   :  { %v10886_v22 = vpop.eup %10885 }
0x14a8   :  { %v9104_v31 = vmul.f32 0.6931472, %v10886_v22 }
0x14aa   :  { %v9105_v56 = vsub.f32 %v9097_v60, %v9104_v31 }
0x14ac   :  { %9106 = vst.msk [vmem:[%s15023_s11] sm:$0xff] %vm9093_vm2, %v9105_v56 }

</bundles_post_ra>
